<compile_context>
chip_gen: v7x
topology: tpu7x:2x2x1
jax: 0.10.0
libtpu: 0.0.40
codegen_flags: <defaults>
</compile_context>

<pallas_src>
import functools

import jax
import jax.numpy as jnp
import numpy as np
from jax.experimental import pallas as pl
from jax.experimental.pallas import tpu as pltpu


# ------------------------------ Pallas kernel ------------------------------

def _attention_kernel(x_ref, wqkv_ref, wproj_ref, bproj_ref, o_ref, acc_ref, *,
                      num_heads, seq_len):
    """Fused attention forward for `block_b` batch elements.

    x_ref:     (rows, C)    rows = block_b * seq_len activations
    wqkv_ref:  (C, 3*C)     bf16 qkv weight, `x @ W` layout, scale folded into q cols
    wproj_ref: (C, C)       bf16 output-projection weight, `x @ W` layout
    bproj_ref: (1, C)       f32 output-projection bias
    o_ref:     (rows, C)    output
    acc_ref:   (rows, C)    f32 VMEM scratch holding concatenated head outputs
    """
    rows, C = x_ref.shape
    N = seq_len
    BB = rows // N                       # batch elements in this block
    H = num_heads
    D = C // H

    # ---- QKV projection: one wide MXU matmul with M = rows (128+). ----------
    x = x_ref[...].astype(jnp.bfloat16)                                  # (rows, C)
    qkv = jnp.dot(x, wqkv_ref[...], preferred_element_type=jnp.float32)  # (rows, 3C) f32
    # bf16 copy feeds every downstream MXU matmul; restore per-batch structure.
    qkv = qkv.astype(jnp.bfloat16).reshape(BB, N, 3 * C)

    # ---- Per-head attention, batched over BB in a single dot_general. -------
    for h in range(H):
        qh = qkv[:, :, 0 * C + h * D: 0 * C + (h + 1) * D]               # (BB, N, D)
        kh = qkv[:, :, 1 * C + h * D: 1 * C + (h + 1) * D]
        vh = qkv[:, :, 2 * C + h * D: 2 * C + (h + 1) * D]

        # scores (scale already folded into q via w_qkv)
        s = jnp.einsum("bqd,bkd->bqk", qh, kh,
                       preferred_element_type=jnp.float32)               # (BB, N, N) f32

        # numerically-stable softmax; normalization deferred to after PV.
        s = s - jnp.max(s, axis=-1, keepdims=True)
        p = jnp.exp(s)                                                   # f32 (v5e-safe)
        inv = pl.reciprocal(jnp.sum(p, axis=-1, keepdims=True), approx=True)  # EUP

        oh = jnp.einsum("bqk,bkd->bqd", p.astype(jnp.bfloat16), vh,
                        preferred_element_type=jnp.float32)              # (BB, N, D) f32

        # Write this head straight into the lane-dense scratch (no concat).
        acc_ref[:, h * D:(h + 1) * D] = (oh * inv).reshape(rows, D)

    # ---- Output projection + bias from the (rows, C) scratch. ---------------
    o = acc_ref[...].astype(jnp.bfloat16)
    y = jnp.dot(o, wproj_ref[...], preferred_element_type=jnp.float32)
    o_ref[...] = (y + bproj_ref[...]).astype(o_ref.dtype)

    # TODO(synk): attn_drop / proj_drop (nn.Dropout) are identity at the module
    # defaults (p=0.0) and in eval mode, so dropout is intentionally omitted.


# -------------------------------- wrapper ----------------------------------

def attention_forward(kparams, x, *, num_heads, block_b=None):
    """x: (B, N, C) -> (B, N, C), matching Attention.forward."""
    B, N, C = x.shape
    assert C % num_heads == 0
    if block_b is None:
        # Largest small batch block that divides B -> M = block_b*N MXU rows.
        block_b = next(bb for bb in (4, 2, 1) if B % bb == 0)
    rows = block_b * N

    kernel = functools.partial(_attention_kernel,
                               num_heads=num_heads, seq_len=N)

    x_flat = x.reshape(B * N, C)       # lane-dense (B*N, C) slab; free reshape
    out = pl.pallas_call(
        kernel,
        out_shape=jax.ShapeDtypeStruct((B * N, C), x.dtype),
        grid=(B // block_b,),
        in_specs=[
            pl.BlockSpec((rows, C), lambda i: (i, 0)),       # x rows (per block)
            pl.BlockSpec((C, 3 * C), lambda i: (0, 0)),      # w_qkv  (resident)
            pl.BlockSpec((C, C), lambda i: (0, 0)),          # w_proj (resident)
            pl.BlockSpec((1, C), lambda i: (0, 0)),          # b_proj (resident)
        ],
        out_specs=pl.BlockSpec((rows, C), lambda i: (i, 0)),
        scratch_shapes=[pltpu.VMEM((rows, C), jnp.float32)],  # head-concat slab
        compiler_params=pltpu.CompilerParams(
            dimension_semantics=("parallel",),               # megacore sharding
        ),
    )(x_flat, kparams["w_qkv"], kparams["w_proj"], kparams["b_proj"])
    return out.reshape(B, N, C)


# ------------------------------ parameters ---------------------------------

def init_params(key, dim):
    """Raw module parameters (f32, pre-transposed to `x @ W` layout)."""
    k1, k2, k3 = jax.random.split(key, 3)
    bound = 1.0 / float(np.sqrt(dim))
    return {
        # qkv_bias=False (module default) -> no qkv bias parameter.
        "w_qkv": jax.random.uniform(k1, (dim, 3 * dim), jnp.float32, -bound, bound),
        "w_proj": jax.random.uniform(k2, (dim, dim), jnp.float32, -bound, bound),
        "b_proj": jax.random.uniform(k3, (1, dim), jnp.float32, -bound, bound),
    }


def prepare_kernel_params(params, *, num_heads):
    """One-time host-side transform: fold the attention scale into the q
    columns of w_qkv and cast MXU weights to bf16 (bias stays f32)."""
    dim = params["w_proj"].shape[0]
    scale = (dim // num_heads) ** -0.5
    w_qkv = params["w_qkv"]
    w_qkv = jnp.concatenate([w_qkv[:, :dim] * scale, w_qkv[:, dim:]], axis=1)
    return {
        "w_qkv": w_qkv.astype(jnp.bfloat16),
        "w_proj": params["w_proj"].astype(jnp.bfloat16),
        "b_proj": params["b_proj"],
    }


# ------------------------- pure-JAX reference ------------------------------

def attention_ref(params, x, *, num_heads):
    """f32 reference with the exact module semantics (explicit scale)."""
    B, N, C = x.shape
    D = C // num_heads
    qkv = jnp.einsum("bnc,cd->bnd", x, params["w_qkv"])
    qkv = qkv.reshape(B, N, 3, num_heads, D).transpose(2, 0, 3, 1, 4)
    q, k, v = qkv[0], qkv[1], qkv[2]
    attn = jnp.einsum("bhqd,bhkd->bhqk", q, k) * (D ** -0.5)
    attn = jax.nn.softmax(attn, axis=-1)
    o = jnp.einsum("bhqk,bhkd->bhqd", attn, v)
    o = o.transpose(0, 2, 1, 3).reshape(B, N, C)
    return jnp.einsum("bnc,cd->bnd", o, params["w_proj"]) + params["b_proj"]


# ---------------------------------- main ------------------------------------

if __name__ == "__main__":
    B, N, C, H = 2, 64, 128, 8        # batch, seq, dim, heads (head_dim = 16)

    key = jax.random.PRNGKey(0)
    kp, kx = jax.random.split(key)
    params = init_params(kp, C)
    x = jax.random.normal(kx, (B, N, C), jnp.float32)

    kparams = prepare_kernel_params(params, num_heads=H)
    fwd = jax.jit(functools.partial(attention_forward, num_heads=H))
    out = fwd(kparams, x)
    jax.block_until_ready(out)

    assert out.shape == (B, N, C)

    ref = attention_ref(params, x, num_heads=H)
    # bf16 MXU inputs + approx-reciprocal softmax -> a few e-3 abs deviation.
    np.testing.assert_allclose(np.asarray(out), np.asarray(ref),
                               rtol=2e-2, atol=2e-2)
    print("KERNEL_OK")
</pallas_src>

<mosaic_0001>
module attributes {stable_mosaic.version = 11 : i64} {
  func.func @_attention_kernel(%arg0: i32, %arg1: memref<128x128xf32, #tpu.memory_space<vmem>>, %arg2: memref<128x384xbf16, #tpu.memory_space<vmem>>, %arg3: memref<128x128xbf16, #tpu.memory_space<vmem>>, %arg4: memref<1x128xf32, #tpu.memory_space<vmem>>, %arg5: memref<128x128xf32, #tpu.memory_space<vmem>>, %arg6: memref<128x128xf32, #tpu.memory_space<vmem>>) attributes {dimension_semantics = [#tpu.dimension_semantics<parallel>], iteration_bounds = array<i64: 1>, scalar_prefetch = 0 : i64, scratch_operands = 1 : i64, tpu.core_type = #tpu.core_type<tc>, window_params = [{transform_indices = @transform_0, window_bounds = array<i64: 128, 128>}, {pipeline_mode = #tpu.pipeline_mode<synchronous>, transform_indices = @transform_1, window_bounds = array<i64: 128, 384>}, {pipeline_mode = #tpu.pipeline_mode<synchronous>, transform_indices = @transform_2, window_bounds = array<i64: 128, 128>}, {pipeline_mode = #tpu.pipeline_mode<synchronous>, transform_indices = @transform_3, window_bounds = array<i64: 1, 128>}, {transform_indices = @transform_4, window_bounds = array<i64: 128, 128>}]} {
    %c0 = arith.constant 0 : index
    %c0_0 = arith.constant 0 : index
    %0 = vector.load %arg1[%c0, %c0_0] : memref<128x128xf32, #tpu.memory_space<vmem>>, vector<128x128xf32>
    %1 = arith.truncf %0 : vector<128x128xf32> to vector<128x128xbf16>
    %c0_1 = arith.constant 0 : index
    %c0_2 = arith.constant 0 : index
    %2 = vector.load %arg2[%c0_1, %c0_2] : memref<128x384xbf16, #tpu.memory_space<vmem>>, vector<128x384xbf16>
    %cst = arith.constant dense<0.000000e+00> : vector<128x384xf32>
    %3 = tpu.matmul %1, %2, %cst {dimension_numbers = #tpu.dot_dimension_numbers<[1], [0], [0], [1], [0, 0, 1, 1], [], []>} : vector<128x128xbf16>, vector<128x384xbf16>, vector<128x384xf32> -> vector<128x384xf32>
    %4 = arith.truncf %3 : vector<128x384xf32> to vector<128x384xbf16>
    %5 = vector.shape_cast %4 : vector<128x384xbf16> to vector<2x64x384xbf16>
    %6 = vector.extract_strided_slice %5 {offsets = [0, 0, 0], sizes = [2, 64, 16], strides = [1, 1, 1]} : vector<2x64x384xbf16> to vector<2x64x16xbf16>
    %7 = vector.extract_strided_slice %5 {offsets = [0, 0, 128], sizes = [2, 64, 16], strides = [1, 1, 1]} : vector<2x64x384xbf16> to vector<2x64x16xbf16>
    %8 = vector.extract_strided_slice %5 {offsets = [0, 0, 256], sizes = [2, 64, 16], strides = [1, 1, 1]} : vector<2x64x384xbf16> to vector<2x64x16xbf16>
    "tpu.trace_start"() <{level = 10 : i32, message = "bqd,bkd->bqk"}> : () -> ()
    %cst_3 = arith.constant dense<0.000000e+00> : vector<2x64x64xf32>
    %9 = tpu.matmul %6, %7, %cst_3 {dimension_numbers = #tpu.dot_dimension_numbers<[2], [2], [1], [1], [0, 0, 0, 1, 1, 1], [0], [0]>} : vector<2x64x16xbf16>, vector<2x64x16xbf16>, vector<2x64x64xf32> -> vector<2x64x64xf32>
    "tpu.trace_stop"() : () -> ()
    %cst_4 = arith.constant dense<0xFF800000> : vector<2x64xf32>
    %10 = vector.multi_reduction <maximumf>, %9, %cst_4 [2] : vector<2x64x64xf32> to vector<2x64xf32>
    %11 = vector.shape_cast %10 : vector<2x64xf32> to vector<2x64x1xf32>
    %12 = vector.broadcast %11 : vector<2x64x1xf32> to vector<2x64x64xf32>
    %13 = arith.subf %9, %12 : vector<2x64x64xf32>
    %14 = math.exp %13 : vector<2x64x64xf32>
    %cst_5 = arith.constant dense<0.000000e+00> : vector<2x64xf32>
    %15 = vector.multi_reduction <add>, %14, %cst_5 [2] : vector<2x64x64xf32> to vector<2x64xf32>
    %16 = vector.shape_cast %15 : vector<2x64xf32> to vector<2x64x1xf32>
    %17 = tpu.reciprocal %16 {approx = true} : vector<2x64x1xf32> -> vector<2x64x1xf32>
    %18 = arith.truncf %14 : vector<2x64x64xf32> to vector<2x64x64xbf16>
    "tpu.trace_start"() <{level = 10 : i32, message = "bqk,bkd->bqd"}> : () -> ()
    %cst_6 = arith.constant dense<0.000000e+00> : vector<2x64x16xf32>
    %19 = tpu.matmul %18, %8, %cst_6 {dimension_numbers = #tpu.dot_dimension_numbers<[2], [1], [1], [2], [0, 0, 0, 1, 1, 2], [0], [0]>} : vector<2x64x64xbf16>, vector<2x64x16xbf16>, vector<2x64x16xf32> -> vector<2x64x16xf32>
    "tpu.trace_stop"() : () -> ()
    %20 = vector.broadcast %17 : vector<2x64x1xf32> to vector<2x64x16xf32>
    %21 = arith.mulf %19, %20 : vector<2x64x16xf32>
    %22 = vector.shape_cast %21 : vector<2x64x16xf32> to vector<128x16xf32>
    %c0_7 = arith.constant 0 : index
    %c0_8 = arith.constant 0 : index
    %23 = vector.load %arg6[%c0_7, %c0_8] : memref<128x128xf32, #tpu.memory_space<vmem>>, vector<128x16xf32>
    tpu.vector_store %arg6[%c0_7, %c0_8], %22 {strides = array<i32>} : memref<128x128xf32, #tpu.memory_space<vmem>>, vector<128x16xf32>,
    %24 = vector.extract_strided_slice %5 {offsets = [0, 0, 16], sizes = [2, 64, 16], strides = [1, 1, 1]} : vector<2x64x384xbf16> to vector<2x64x16xbf16>
    %25 = vector.extract_strided_slice %5 {offsets = [0, 0, 144], sizes = [2, 64, 16], strides = [1, 1, 1]} : vector<2x64x384xbf16> to vector<2x64x16xbf16>
    %26 = vector.extract_strided_slice %5 {offsets = [0, 0, 272], sizes = [2, 64, 16], strides = [1, 1, 1]} : vector<2x64x384xbf16> to vector<2x64x16xbf16>
    "tpu.trace_start"() <{level = 10 : i32, message = "bqd,bkd->bqk"}> : () -> ()
    %cst_9 = arith.constant dense<0.000000e+00> : vector<2x64x64xf32>
    %27 = tpu.matmul %24, %25, %cst_9 {dimension_numbers = #tpu.dot_dimension_numbers<[2], [2], [1], [1], [0, 0, 0, 1, 1, 1], [0], [0]>} : vector<2x64x16xbf16>, vector<2x64x16xbf16>, vector<2x64x64xf32> -> vector<2x64x64xf32>
    "tpu.trace_stop"() : () -> ()
    %cst_10 = arith.constant dense<0xFF800000> : vector<2x64xf32>
    %28 = vector.multi_reduction <maximumf>, %27, %cst_10 [2] : vector<2x64x64xf32> to vector<2x64xf32>
    %29 = vector.shape_cast %28 : vector<2x64xf32> to vector<2x64x1xf32>
    %30 = vector.broadcast %29 : vector<2x64x1xf32> to vector<2x64x64xf32>
    %31 = arith.subf %27, %30 : vector<2x64x64xf32>
    %32 = math.exp %31 : vector<2x64x64xf32>
    %cst_11 = arith.constant dense<0.000000e+00> : vector<2x64xf32>
    %33 = vector.multi_reduction <add>, %32, %cst_11 [2] : vector<2x64x64xf32> to vector<2x64xf32>
    %34 = vector.shape_cast %33 : vector<2x64xf32> to vector<2x64x1xf32>
    %35 = tpu.reciprocal %34 {approx = true} : vector<2x64x1xf32> -> vector<2x64x1xf32>
    %36 = arith.truncf %32 : vector<2x64x64xf32> to vector<2x64x64xbf16>
    "tpu.trace_start"() <{level = 10 : i32, message = "bqk,bkd->bqd"}> : () -> ()
    %cst_12 = arith.constant dense<0.000000e+00> : vector<2x64x16xf32>
    %37 = tpu.matmul %36, %26, %cst_12 {dimension_numbers = #tpu.dot_dimension_numbers<[2], [1], [1], [2], [0, 0, 0, 1, 1, 2], [0], [0]>} : vector<2x64x64xbf16>, vector<2x64x16xbf16>, vector<2x64x16xf32> -> vector<2x64x16xf32>
    "tpu.trace_stop"() : () -> ()
    %38 = vector.broadcast %35 : vector<2x64x1xf32> to vector<2x64x16xf32>
    %39 = arith.mulf %37, %38 : vector<2x64x16xf32>
    %40 = vector.shape_cast %39 : vector<2x64x16xf32> to vector<128x16xf32>
    %c0_13 = arith.constant 0 : index
    %c16 = arith.constant 16 : index
    %41 = vector.load %arg6[%c0_13, %c16] : memref<128x128xf32, #tpu.memory_space<vmem>>, vector<128x16xf32>
    tpu.vector_store %arg6[%c0_13, %c16], %40 {strides = array<i32>} : memref<128x128xf32, #tpu.memory_space<vmem>>, vector<128x16xf32>,
    %42 = vector.extract_strided_slice %5 {offsets = [0, 0, 32], sizes = [2, 64, 16], strides = [1, 1, 1]} : vector<2x64x384xbf16> to vector<2x64x16xbf16>
    %43 = vector.extract_strided_slice %5 {offsets = [0, 0, 160], sizes = [2, 64, 16], strides = [1, 1, 1]} : vector<2x64x384xbf16> to vector<2x64x16xbf16>
    %44 = vector.extract_strided_slice %5 {offsets = [0, 0, 288], sizes = [2, 64, 16], strides = [1, 1, 1]} : vector<2x64x384xbf16> to vector<2x64x16xbf16>
    "tpu.trace_start"() <{level = 10 : i32, message = "bqd,bkd->bqk"}> : () -> ()
    %cst_14 = arith.constant dense<0.000000e+00> : vector<2x64x64xf32>
    %45 = tpu.matmul %42, %43, %cst_14 {dimension_numbers = #tpu.dot_dimension_numbers<[2], [2], [1], [1], [0, 0, 0, 1, 1, 1], [0], [0]>} : vector<2x64x16xbf16>, vector<2x64x16xbf16>, vector<2x64x64xf32> -> vector<2x64x64xf32>
    "tpu.trace_stop"() : () -> ()
    %cst_15 = arith.constant dense<0xFF800000> : vector<2x64xf32>
    %46 = vector.multi_reduction <maximumf>, %45, %cst_15 [2] : vector<2x64x64xf32> to vector<2x64xf32>
    %47 = vector.shape_cast %46 : vector<2x64xf32> to vector<2x64x1xf32>
    %48 = vector.broadcast %47 : vector<2x64x1xf32> to vector<2x64x64xf32>
    %49 = arith.subf %45, %48 : vector<2x64x64xf32>
    %50 = math.exp %49 : vector<2x64x64xf32>
    %cst_16 = arith.constant dense<0.000000e+00> : vector<2x64xf32>
    %51 = vector.multi_reduction <add>, %50, %cst_16 [2] : vector<2x64x64xf32> to vector<2x64xf32>
    %52 = vector.shape_cast %51 : vector<2x64xf32> to vector<2x64x1xf32>
    %53 = tpu.reciprocal %52 {approx = true} : vector<2x64x1xf32> -> vector<2x64x1xf32>
    %54 = arith.truncf %50 : vector<2x64x64xf32> to vector<2x64x64xbf16>
    "tpu.trace_start"() <{level = 10 : i32, message = "bqk,bkd->bqd"}> : () -> ()
    %cst_17 = arith.constant dense<0.000000e+00> : vector<2x64x16xf32>
    %55 = tpu.matmul %54, %44, %cst_17 {dimension_numbers = #tpu.dot_dimension_numbers<[2], [1], [1], [2], [0, 0, 0, 1, 1, 2], [0], [0]>} : vector<2x64x64xbf16>, vector<2x64x16xbf16>, vector<2x64x16xf32> -> vector<2x64x16xf32>
    "tpu.trace_stop"() : () -> ()
    %56 = vector.broadcast %53 : vector<2x64x1xf32> to vector<2x64x16xf32>
    %57 = arith.mulf %55, %56 : vector<2x64x16xf32>
    %58 = vector.shape_cast %57 : vector<2x64x16xf32> to vector<128x16xf32>
    %c0_18 = arith.constant 0 : index
    %c32 = arith.constant 32 : index
    %59 = vector.load %arg6[%c0_18, %c32] : memref<128x128xf32, #tpu.memory_space<vmem>>, vector<128x16xf32>
    tpu.vector_store %arg6[%c0_18, %c32], %58 {strides = array<i32>} : memref<128x128xf32, #tpu.memory_space<vmem>>, vector<128x16xf32>,
    %60 = vector.extract_strided_slice %5 {offsets = [0, 0, 48], sizes = [2, 64, 16], strides = [1, 1, 1]} : vector<2x64x384xbf16> to vector<2x64x16xbf16>
    %61 = vector.extract_strided_slice %5 {offsets = [0, 0, 176], sizes = [2, 64, 16], strides = [1, 1, 1]} : vector<2x64x384xbf16> to vector<2x64x16xbf16>
    %62 = vector.extract_strided_slice %5 {offsets = [0, 0, 304], sizes = [2, 64, 16], strides = [1, 1, 1]} : vector<2x64x384xbf16> to vector<2x64x16xbf16>
    "tpu.trace_start"() <{level = 10 : i32, message = "bqd,bkd->bqk"}> : () -> ()
    %cst_19 = arith.constant dense<0.000000e+00> : vector<2x64x64xf32>
    %63 = tpu.matmul %60, %61, %cst_19 {dimension_numbers = #tpu.dot_dimension_numbers<[2], [2], [1], [1], [0, 0, 0, 1, 1, 1], [0], [0]>} : vector<2x64x16xbf16>, vector<2x64x16xbf16>, vector<2x64x64xf32> -> vector<2x64x64xf32>
    "tpu.trace_stop"() : () -> ()
    %cst_20 = arith.constant dense<0xFF800000> : vector<2x64xf32>
    %64 = vector.multi_reduction <maximumf>, %63, %cst_20 [2] : vector<2x64x64xf32> to vector<2x64xf32>
    %65 = vector.shape_cast %64 : vector<2x64xf32> to vector<2x64x1xf32>
    %66 = vector.broadcast %65 : vector<2x64x1xf32> to vector<2x64x64xf32>
    %67 = arith.subf %63, %66 : vector<2x64x64xf32>
    %68 = math.exp %67 : vector<2x64x64xf32>
    %cst_21 = arith.constant dense<0.000000e+00> : vector<2x64xf32>
    %69 = vector.multi_reduction <add>, %68, %cst_21 [2] : vector<2x64x64xf32> to vector<2x64xf32>
    %70 = vector.shape_cast %69 : vector<2x64xf32> to vector<2x64x1xf32>
    %71 = tpu.reciprocal %70 {approx = true} : vector<2x64x1xf32> -> vector<2x64x1xf32>
    %72 = arith.truncf %68 : vector<2x64x64xf32> to vector<2x64x64xbf16>
    "tpu.trace_start"() <{level = 10 : i32, message = "bqk,bkd->bqd"}> : () -> ()
    %cst_22 = arith.constant dense<0.000000e+00> : vector<2x64x16xf32>
    %73 = tpu.matmul %72, %62, %cst_22 {dimension_numbers = #tpu.dot_dimension_numbers<[2], [1], [1], [2], [0, 0, 0, 1, 1, 2], [0], [0]>} : vector<2x64x64xbf16>, vector<2x64x16xbf16>, vector<2x64x16xf32> -> vector<2x64x16xf32>
    "tpu.trace_stop"() : () -> ()
    %74 = vector.broadcast %71 : vector<2x64x1xf32> to vector<2x64x16xf32>
    %75 = arith.mulf %73, %74 : vector<2x64x16xf32>
    %76 = vector.shape_cast %75 : vector<2x64x16xf32> to vector<128x16xf32>
    %c0_23 = arith.constant 0 : index
    %c48 = arith.constant 48 : index
    %77 = vector.load %arg6[%c0_23, %c48] : memref<128x128xf32, #tpu.memory_space<vmem>>, vector<128x16xf32>
    tpu.vector_store %arg6[%c0_23, %c48], %76 {strides = array<i32>} : memref<128x128xf32, #tpu.memory_space<vmem>>, vector<128x16xf32>,
    %78 = vector.extract_strided_slice %5 {offsets = [0, 0, 64], sizes = [2, 64, 16], strides = [1, 1, 1]} : vector<2x64x384xbf16> to vector<2x64x16xbf16>
    %79 = vector.extract_strided_slice %5 {offsets = [0, 0, 192], sizes = [2, 64, 16], strides = [1, 1, 1]} : vector<2x64x384xbf16> to vector<2x64x16xbf16>
    %80 = vector.extract_strided_slice %5 {offsets = [0, 0, 320], sizes = [2, 64, 16], strides = [1, 1, 1]} : vector<2x64x384xbf16> to vector<2x64x16xbf16>
    "tpu.trace_start"() <{level = 10 : i32, message = "bqd,bkd->bqk"}> : () -> ()
    %cst_24 = arith.constant dense<0.000000e+00> : vector<2x64x64xf32>
    %81 = tpu.matmul %78, %79, %cst_24 {dimension_numbers = #tpu.dot_dimension_numbers<[2], [2], [1], [1], [0, 0, 0, 1, 1, 1], [0], [0]>} : vector<2x64x16xbf16>, vector<2x64x16xbf16>, vector<2x64x64xf32> -> vector<2x64x64xf32>
    "tpu.trace_stop"() : () -> ()
    %cst_25 = arith.constant dense<0xFF800000> : vector<2x64xf32>
    %82 = vector.multi_reduction <maximumf>, %81, %cst_25 [2] : vector<2x64x64xf32> to vector<2x64xf32>
    %83 = vector.shape_cast %82 : vector<2x64xf32> to vector<2x64x1xf32>
    %84 = vector.broadcast %83 : vector<2x64x1xf32> to vector<2x64x64xf32>
    %85 = arith.subf %81, %84 : vector<2x64x64xf32>
    %86 = math.exp %85 : vector<2x64x64xf32>
    %cst_26 = arith.constant dense<0.000000e+00> : vector<2x64xf32>
    %87 = vector.multi_reduction <add>, %86, %cst_26 [2] : vector<2x64x64xf32> to vector<2x64xf32>
    %88 = vector.shape_cast %87 : vector<2x64xf32> to vector<2x64x1xf32>
    %89 = tpu.reciprocal %88 {approx = true} : vector<2x64x1xf32> -> vector<2x64x1xf32>
    %90 = arith.truncf %86 : vector<2x64x64xf32> to vector<2x64x64xbf16>
    "tpu.trace_start"() <{level = 10 : i32, message = "bqk,bkd->bqd"}> : () -> ()
    %cst_27 = arith.constant dense<0.000000e+00> : vector<2x64x16xf32>
    %91 = tpu.matmul %90, %80, %cst_27 {dimension_numbers = #tpu.dot_dimension_numbers<[2], [1], [1], [2], [0, 0, 0, 1, 1, 2], [0], [0]>} : vector<2x64x64xbf16>, vector<2x64x16xbf16>, vector<2x64x16xf32> -> vector<2x64x16xf32>
    "tpu.trace_stop"() : () -> ()
    %92 = vector.broadcast %89 : vector<2x64x1xf32> to vector<2x64x16xf32>
    %93 = arith.mulf %91, %92 : vector<2x64x16xf32>
    %94 = vector.shape_cast %93 : vector<2x64x16xf32> to vector<128x16xf32>
    %c0_28 = arith.constant 0 : index
    %c64 = arith.constant 64 : index
    %95 = vector.load %arg6[%c0_28, %c64] : memref<128x128xf32, #tpu.memory_space<vmem>>, vector<128x16xf32>
    tpu.vector_store %arg6[%c0_28, %c64], %94 {strides = array<i32>} : memref<128x128xf32, #tpu.memory_space<vmem>>, vector<128x16xf32>,
    %96 = vector.extract_strided_slice %5 {offsets = [0, 0, 80], sizes = [2, 64, 16], strides = [1, 1, 1]} : vector<2x64x384xbf16> to vector<2x64x16xbf16>
    %97 = vector.extract_strided_slice %5 {offsets = [0, 0, 208], sizes = [2, 64, 16], strides = [1, 1, 1]} : vector<2x64x384xbf16> to vector<2x64x16xbf16>
    %98 = vector.extract_strided_slice %5 {offsets = [0, 0, 336], sizes = [2, 64, 16], strides = [1, 1, 1]} : vector<2x64x384xbf16> to vector<2x64x16xbf16>
    "tpu.trace_start"() <{level = 10 : i32, message = "bqd,bkd->bqk"}> : () -> ()
    %cst_29 = arith.constant dense<0.000000e+00> : vector<2x64x64xf32>
    %99 = tpu.matmul %96, %97, %cst_29 {dimension_numbers = #tpu.dot_dimension_numbers<[2], [2], [1], [1], [0, 0, 0, 1, 1, 1], [0], [0]>} : vector<2x64x16xbf16>, vector<2x64x16xbf16>, vector<2x64x64xf32> -> vector<2x64x64xf32>
    "tpu.trace_stop"() : () -> ()
    %cst_30 = arith.constant dense<0xFF800000> : vector<2x64xf32>
    %100 = vector.multi_reduction <maximumf>, %99, %cst_30 [2] : vector<2x64x64xf32> to vector<2x64xf32>
    %101 = vector.shape_cast %100 : vector<2x64xf32> to vector<2x64x1xf32>
    %102 = vector.broadcast %101 : vector<2x64x1xf32> to vector<2x64x64xf32>
    %103 = arith.subf %99, %102 : vector<2x64x64xf32>
    %104 = math.exp %103 : vector<2x64x64xf32>
    %cst_31 = arith.constant dense<0.000000e+00> : vector<2x64xf32>
    %105 = vector.multi_reduction <add>, %104, %cst_31 [2] : vector<2x64x64xf32> to vector<2x64xf32>
    %106 = vector.shape_cast %105 : vector<2x64xf32> to vector<2x64x1xf32>
    %107 = tpu.reciprocal %106 {approx = true} : vector<2x64x1xf32> -> vector<2x64x1xf32>
    %108 = arith.truncf %104 : vector<2x64x64xf32> to vector<2x64x64xbf16>
    "tpu.trace_start"() <{level = 10 : i32, message = "bqk,bkd->bqd"}> : () -> ()
    %cst_32 = arith.constant dense<0.000000e+00> : vector<2x64x16xf32>
    %109 = tpu.matmul %108, %98, %cst_32 {dimension_numbers = #tpu.dot_dimension_numbers<[2], [1], [1], [2], [0, 0, 0, 1, 1, 2], [0], [0]>} : vector<2x64x64xbf16>, vector<2x64x16xbf16>, vector<2x64x16xf32> -> vector<2x64x16xf32>
    "tpu.trace_stop"() : () -> ()
    %110 = vector.broadcast %107 : vector<2x64x1xf32> to vector<2x64x16xf32>
    %111 = arith.mulf %109, %110 : vector<2x64x16xf32>
    %112 = vector.shape_cast %111 : vector<2x64x16xf32> to vector<128x16xf32>
    %c0_33 = arith.constant 0 : index
    %c80 = arith.constant 80 : index
    %113 = vector.load %arg6[%c0_33, %c80] : memref<128x128xf32, #tpu.memory_space<vmem>>, vector<128x16xf32>
    tpu.vector_store %arg6[%c0_33, %c80], %112 {strides = array<i32>} : memref<128x128xf32, #tpu.memory_space<vmem>>, vector<128x16xf32>,
    %114 = vector.extract_strided_slice %5 {offsets = [0, 0, 96], sizes = [2, 64, 16], strides = [1, 1, 1]} : vector<2x64x384xbf16> to vector<2x64x16xbf16>
    %115 = vector.extract_strided_slice %5 {offsets = [0, 0, 224], sizes = [2, 64, 16], strides = [1, 1, 1]} : vector<2x64x384xbf16> to vector<2x64x16xbf16>
    %116 = vector.extract_strided_slice %5 {offsets = [0, 0, 352], sizes = [2, 64, 16], strides = [1, 1, 1]} : vector<2x64x384xbf16> to vector<2x64x16xbf16>
    "tpu.trace_start"() <{level = 10 : i32, message = "bqd,bkd->bqk"}> : () -> ()
    %cst_34 = arith.constant dense<0.000000e+00> : vector<2x64x64xf32>
    %117 = tpu.matmul %114, %115, %cst_34 {dimension_numbers = #tpu.dot_dimension_numbers<[2], [2], [1], [1], [0, 0, 0, 1, 1, 1], [0], [0]>} : vector<2x64x16xbf16>, vector<2x64x16xbf16>, vector<2x64x64xf32> -> vector<2x64x64xf32>
    "tpu.trace_stop"() : () -> ()
    %cst_35 = arith.constant dense<0xFF800000> : vector<2x64xf32>
    %118 = vector.multi_reduction <maximumf>, %117, %cst_35 [2] : vector<2x64x64xf32> to vector<2x64xf32>
    %119 = vector.shape_cast %118 : vector<2x64xf32> to vector<2x64x1xf32>
    %120 = vector.broadcast %119 : vector<2x64x1xf32> to vector<2x64x64xf32>
    %121 = arith.subf %117, %120 : vector<2x64x64xf32>
    %122 = math.exp %121 : vector<2x64x64xf32>
    %cst_36 = arith.constant dense<0.000000e+00> : vector<2x64xf32>
    %123 = vector.multi_reduction <add>, %122, %cst_36 [2] : vector<2x64x64xf32> to vector<2x64xf32>
    %124 = vector.shape_cast %123 : vector<2x64xf32> to vector<2x64x1xf32>
    %125 = tpu.reciprocal %124 {approx = true} : vector<2x64x1xf32> -> vector<2x64x1xf32>
    %126 = arith.truncf %122 : vector<2x64x64xf32> to vector<2x64x64xbf16>
    "tpu.trace_start"() <{level = 10 : i32, message = "bqk,bkd->bqd"}> : () -> ()
    %cst_37 = arith.constant dense<0.000000e+00> : vector<2x64x16xf32>
    %127 = tpu.matmul %126, %116, %cst_37 {dimension_numbers = #tpu.dot_dimension_numbers<[2], [1], [1], [2], [0, 0, 0, 1, 1, 2], [0], [0]>} : vector<2x64x64xbf16>, vector<2x64x16xbf16>, vector<2x64x16xf32> -> vector<2x64x16xf32>
    "tpu.trace_stop"() : () -> ()
    %128 = vector.broadcast %125 : vector<2x64x1xf32> to vector<2x64x16xf32>
    %129 = arith.mulf %127, %128 : vector<2x64x16xf32>
    %130 = vector.shape_cast %129 : vector<2x64x16xf32> to vector<128x16xf32>
    %c0_38 = arith.constant 0 : index
    %c96 = arith.constant 96 : index
    %131 = vector.load %arg6[%c0_38, %c96] : memref<128x128xf32, #tpu.memory_space<vmem>>, vector<128x16xf32>
    tpu.vector_store %arg6[%c0_38, %c96], %130 {strides = array<i32>} : memref<128x128xf32, #tpu.memory_space<vmem>>, vector<128x16xf32>,
    %132 = vector.extract_strided_slice %5 {offsets = [0, 0, 112], sizes = [2, 64, 16], strides = [1, 1, 1]} : vector<2x64x384xbf16> to vector<2x64x16xbf16>
    %133 = vector.extract_strided_slice %5 {offsets = [0, 0, 240], sizes = [2, 64, 16], strides = [1, 1, 1]} : vector<2x64x384xbf16> to vector<2x64x16xbf16>
    %134 = vector.extract_strided_slice %5 {offsets = [0, 0, 368], sizes = [2, 64, 16], strides = [1, 1, 1]} : vector<2x64x384xbf16> to vector<2x64x16xbf16>
    "tpu.trace_start"() <{level = 10 : i32, message = "bqd,bkd->bqk"}> : () -> ()
    %cst_39 = arith.constant dense<0.000000e+00> : vector<2x64x64xf32>
    %135 = tpu.matmul %132, %133, %cst_39 {dimension_numbers = #tpu.dot_dimension_numbers<[2], [2], [1], [1], [0, 0, 0, 1, 1, 1], [0], [0]>} : vector<2x64x16xbf16>, vector<2x64x16xbf16>, vector<2x64x64xf32> -> vector<2x64x64xf32>
    "tpu.trace_stop"() : () -> ()
    %cst_40 = arith.constant dense<0xFF800000> : vector<2x64xf32>
    %136 = vector.multi_reduction <maximumf>, %135, %cst_40 [2] : vector<2x64x64xf32> to vector<2x64xf32>
    %137 = vector.shape_cast %136 : vector<2x64xf32> to vector<2x64x1xf32>
    %138 = vector.broadcast %137 : vector<2x64x1xf32> to vector<2x64x64xf32>
    %139 = arith.subf %135, %138 : vector<2x64x64xf32>
    %140 = math.exp %139 : vector<2x64x64xf32>
    %cst_41 = arith.constant dense<0.000000e+00> : vector<2x64xf32>
    %141 = vector.multi_reduction <add>, %140, %cst_41 [2] : vector<2x64x64xf32> to vector<2x64xf32>
    %142 = vector.shape_cast %141 : vector<2x64xf32> to vector<2x64x1xf32>
    %143 = tpu.reciprocal %142 {approx = true} : vector<2x64x1xf32> -> vector<2x64x1xf32>
    %144 = arith.truncf %140 : vector<2x64x64xf32> to vector<2x64x64xbf16>
    "tpu.trace_start"() <{level = 10 : i32, message = "bqk,bkd->bqd"}> : () -> ()
    %cst_42 = arith.constant dense<0.000000e+00> : vector<2x64x16xf32>
    %145 = tpu.matmul %144, %134, %cst_42 {dimension_numbers = #tpu.dot_dimension_numbers<[2], [1], [1], [2], [0, 0, 0, 1, 1, 2], [0], [0]>} : vector<2x64x64xbf16>, vector<2x64x16xbf16>, vector<2x64x16xf32> -> vector<2x64x16xf32>
    "tpu.trace_stop"() : () -> ()
    %146 = vector.broadcast %143 : vector<2x64x1xf32> to vector<2x64x16xf32>
    %147 = arith.mulf %145, %146 : vector<2x64x16xf32>
    %148 = vector.shape_cast %147 : vector<2x64x16xf32> to vector<128x16xf32>
    %c0_43 = arith.constant 0 : index
    %c112 = arith.constant 112 : index
    %149 = vector.load %arg6[%c0_43, %c112] : memref<128x128xf32, #tpu.memory_space<vmem>>, vector<128x16xf32>
    tpu.vector_store %arg6[%c0_43, %c112], %148 {strides = array<i32>} : memref<128x128xf32, #tpu.memory_space<vmem>>, vector<128x16xf32>,
    %c0_44 = arith.constant 0 : index
    %c0_45 = arith.constant 0 : index
    %150 = vector.load %arg6[%c0_44, %c0_45] : memref<128x128xf32, #tpu.memory_space<vmem>>, vector<128x128xf32>
    %151 = arith.truncf %150 : vector<128x128xf32> to vector<128x128xbf16>
    %c0_46 = arith.constant 0 : index
    %c0_47 = arith.constant 0 : index
    %152 = vector.load %arg3[%c0_46, %c0_47] : memref<128x128xbf16, #tpu.memory_space<vmem>>, vector<128x128xbf16>
    %cst_48 = arith.constant dense<0.000000e+00> : vector<128x128xf32>
    %153 = tpu.matmul %151, %152, %cst_48 {dimension_numbers = #tpu.dot_dimension_numbers<[1], [0], [0], [1], [0, 0, 1, 1], [], []>} : vector<128x128xbf16>, vector<128x128xbf16>, vector<128x128xf32> -> vector<128x128xf32>
    %c0_49 = arith.constant 0 : index
    %c0_50 = arith.constant 0 : index
    %154 = vector.load %arg4[%c0_49, %c0_50] : memref<1x128xf32, #tpu.memory_space<vmem>>, vector<1x128xf32>
    %155 = vector.broadcast %154 : vector<1x128xf32> to vector<128x128xf32>
    %156 = arith.addf %153, %155 : vector<128x128xf32>
    %c0_51 = arith.constant 0 : index
    %c0_52 = arith.constant 0 : index
    %157 = vector.load %arg5[%c0_51, %c0_52] : memref<128x128xf32, #tpu.memory_space<vmem>>, vector<128x128xf32>
    tpu.vector_store %arg5[%c0_51, %c0_52], %156 {strides = array<i32>} : memref<128x128xf32, #tpu.memory_space<vmem>>, vector<128x128xf32>,
    return
  }
  func.func @transform_0(%arg0: i32) -> (i32, i32) {
    %c0_i32 = arith.constant 0 : i32
    %c0_i32_0 = arith.constant 0 : i32
    return %arg0, %c0_i32 : i32, i32
  }
  func.func @transform_1(%arg0: i32) -> (i32, i32) {
    %c0_i32 = arith.constant 0 : i32
    %c0_i32_0 = arith.constant 0 : i32
    %c0_i32_1 = arith.constant 0 : i32
    return %c0_i32, %c0_i32_0 : i32, i32
  }
  func.func @transform_2(%arg0: i32) -> (i32, i32) {
    %c0_i32 = arith.constant 0 : i32
    %c0_i32_0 = arith.constant 0 : i32
    %c0_i32_1 = arith.constant 0 : i32
    return %c0_i32, %c0_i32_0 : i32, i32
  }
  func.func @transform_3(%arg0: i32) -> (i32, i32) {
    %c0_i32 = arith.constant 0 : i32
    %c0_i32_0 = arith.constant 0 : i32
    %c0_i32_1 = arith.constant 0 : i32
    return %c0_i32, %c0_i32_0 : i32, i32
  }
  func.func @transform_4(%arg0: i32) -> (i32, i32) {
    %c0_i32 = arith.constant 0 : i32
    %c0_i32_0 = arith.constant 0 : i32
    return %arg0, %c0_i32 : i32, i32
  }
}

</mosaic_0001>

<bundles_post_ra>
// kernel: attention_forward.1
= control target key start
LH: loop header
LB: loop body
LE: loop exit
PB: predicated region body
PF: predicated region fallthrough
CT: control target
= control target key end

     0   :  { %9 = vsyncpa [#allocation4], 0  ;;  %s10701_s0 = inlined_call_operand.hbm [shape: f32[128,128], index: 0, kind: input, shape index: {}]   ;;  %s10702_s1 = inlined_call_operand.hbm [shape: bf16[128,384], index: 1, kind: input, shape index: {}]   ;;  %s10703_s2 = inlined_call_operand.hbm [shape: bf16[128,128], index: 2, kind: input, shape index: {}]   ;;  %s10704_s3 = inlined_call_operand.vmem [shape: f32[1,128], index: 3, kind: input, shape index: {}]   ;;  %s10705_s4 = inlined_call_operand.hbm [shape: f32[128,128], index: 4, kind: output, shape index: {}]  }
   0x1   :  { %10 = vsyncpa [#allocation7], 0 }
   0x2   :  { %11 = vsyncpa [#allocation5], 0  ;;  %s7601_s15 = smov [#allocation6]   ;;  %s7507_s19 = scalar_lea.hbm %s10702_s1, 3072 }
   0x3   :  { %s29_s16 = sshll.u32 %s7601_s15, 4  ;;  %p7508_p0 = scmp.ne.s32.totalorder %s10702_s1, %s7507_s19  ;;  %s30_s16 = int_to_ptr.vmem [resolvable:$true] %s29_s16 }
   0x4   :  { %p7511_p1 = scmp.lt.u32.totalorder %s7507_s19, %s10702_s1 }
   0x6   :  { %p7513_p2 = pnand %p7511_p1, %p7508_p0 }
   0x8   :  { %7516 = shalt.err (!%p7513_p2)
}
   0x9   :  { %s7517_s24 = scalar_lea.vmem %s30_s16, 3072  ;;  %p7522_p4 = scmp.lt.s32.totalorder %s30_s16, %s30_s16 }
   0xa   :  { %p7518_p3 = scmp.ne.s32.totalorder %s30_s16, %s7517_s24  ;;  %p7523_p5 = scmp.lt.s32.totalorder %s7517_s24, %s7517_s24 }
   0xc   :  { %p7524_p6 = por %p7523_p5, %p7522_p4 }
   0xe   :  { %p7525_p7 = pnand %p7524_p6, %p7518_p3 }
  0x10   :  { %7528 = shalt.err (!%p7525_p7)
}
  0x11   :  { %s7602_s25 = smov 192   ;;  %s7603_s26 = smov 12  }
  0x12   :  { %35 = dma.hbm_to_vmem [thread:$0]  %s10702_s1, 3072, %s30_s16, [#allocation7], %s7602_s25, %s7602_s25, %s7603_s26  }
  0x13   :  { %s7604_s29 = smov [#allocation3]   ;;  %s7529_s7 = scalar_lea.hbm %s10701_s0, 2048 }
  0x14   :  { %s17_s30 = sshll.u32 %s7604_s29, 4  ;;  %p7530_p8 = scmp.ne.s32.totalorder %s10701_s0, %s7529_s7  ;;  %s18_s30 = int_to_ptr.vmem [resolvable:$true] %s17_s30 }
  0x15   :  { %p7533_p9 = scmp.lt.u32.totalorder %s7529_s7, %s10701_s0 }
  0x17   :  { %p7535_p10 = pnand %p7533_p9, %p7530_p8 }
  0x19   :  { %7538 = shalt.err (!%p7535_p10)
}
  0x1a   :  { %s7539_s12 = scalar_lea.vmem %s18_s30, 2048  ;;  %p7544_p12 = scmp.lt.s32.totalorder %s18_s30, %s18_s30 }
  0x1b   :  { %p7540_p11 = scmp.ne.s32.totalorder %s18_s30, %s7539_s12  ;;  %p7545_p13 = scmp.lt.s32.totalorder %s7539_s12, %s7539_s12 }
  0x1d   :  { %p7546_p0 = por %p7545_p13, %p7544_p12 }
  0x1f   :  { %p7547_p1 = pnand %p7546_p0, %p7540_p11 }
  0x21   :  { %7550 = shalt.err (!%p7547_p1)
}
  0x22   :  { %s7605_s1 = smov 128   ;;  %s7606_s13 = smov 8  }
  0x23   :  { %23 = dma.hbm_to_vmem [thread:$0]  %s10701_s0, 2048, %s18_s30, [#allocation4], %s7605_s1, %s7605_s1, %s7606_s13  }
  0x24   :  { %s7607_s16 = smov [#allocation8]   ;;  %s7551_s20 = scalar_lea.hbm %s10703_s2, 1024 }
  0x25   :  { %s41_s17 = sshll.u32 %s7607_s16, 4  ;;  %p7552_p2 = scmp.ne.s32.totalorder %s10703_s2, %s7551_s20  ;;  %s42_s17 = int_to_ptr.vmem [resolvable:$true] %s41_s17 }
  0x26   :  { %p7555_p3 = scmp.lt.u32.totalorder %s7551_s20, %s10703_s2 }
  0x28   :  { %p7557_p4 = pnand %p7555_p3, %p7552_p2 }
  0x2a   :  { %7560 = shalt.err (!%p7557_p4)
}
  0x2b   :  { %s7561_s25 = scalar_lea.vmem %s42_s17, 1024  ;;  %p7566_p6 = scmp.lt.s32.totalorder %s42_s17, %s42_s17 }
  0x2c   :  { %p7562_p5 = scmp.ne.s32.totalorder %s42_s17, %s7561_s25  ;;  %p7567_p7 = scmp.lt.s32.totalorder %s7561_s25, %s7561_s25 }
  0x2e   :  { %p7568_p8 = por %p7567_p7, %p7566_p6 }
  0x30   :  { %p7569_p9 = pnand %p7568_p8, %p7562_p5 }
  0x32   :  { %7572 = shalt.err (!%p7569_p9)
}
  0x33   :  { %s7608_s0 = smov 64   ;;  %s7609_s26 = smov 4  }
  0x34   :  { %47 = dma.hbm_to_vmem [thread:$0]  %s10703_s2, 1024, %s42_s17, [#allocation7], %s7608_s0, %s7608_s0, %s7609_s26  }
  0x35   :  { %7595 = dma.done.wait [#allocation4], 2048  }
  0x36   :  { %7596 = vsyncadd [#allocation4], 4294965248 }
  0x37   :  { %7597 = dma.done.wait [#allocation7], 4096  }
  0x38   :  { %7598 = vsyncadd [#allocation7], 4294963200  ;;  %v7610_v0 = vmov 0   ;;  %v6955_v1 = vld [vmem:[#allocation6 + $0x4] ss:$12 sps:$4 sm:$0xff]   ;;  %v61_v18 = vld [vmem:[#allocation3 + $0x8] sm:$0xff] }
  0x39   :  { %276 = vmatprep.mubr.bf16.mxu0 %v7610_v0  ;;  %316 = vmatprep.mubr.bf16.mxu1 %v7610_v0  ;;  %v6957_v2 = vld [vmem:[#allocation6] ss:$12 sps:$4 sm:$0xff]   ;;  %v6958_v3 = vld [vmem:[#allocation6 + $0x1c] ss:$12 sps:$4 sm:$0xff]   ;;  %v6960_v4 = vld [vmem:[#allocation6 + $0x18] ss:$12 sps:$4 sm:$0xff]  }
  0x3a   :  { %244 = vmatprep.subr.bf16.mxu0 %v6955_v1  ;;  %6858 = vmatprep.subr.bf16.mxu1 %v6955_v1  ;;  %v6961_v5 = vld [vmem:[#allocation6 + $0x34] ss:$12 sps:$4 sm:$0xff]   ;;  %v6963_v6 = vld [vmem:[#allocation6 + $0x30] ss:$12 sps:$4 sm:$0xff]   ;;  %v6964_v7 = vld [vmem:[#allocation6 + $0x4c] ss:$12 sps:$4 sm:$0xff]  }
  0x3b   :  { %245 = vmatpush1.bf16.msra.mxu0 %v6957_v2  ;;  %6866 = vmatpush1.bf16.msra.mxu1 %v6957_v2  ;;  %v6966_v8 = vld [vmem:[#allocation6 + $0x48] ss:$12 sps:$4 sm:$0xff]   ;;  %v6967_v9 = vld [vmem:[#allocation6 + $0x64] ss:$12 sps:$4 sm:$0xff]   ;;  %v6969_v10 = vld [vmem:[#allocation6 + $0x60] ss:$12 sps:$4 sm:$0xff]  }
  0x3c   :  { %246 = vmatprep.subr.bf16.mxu0 %v6958_v3  ;;  %6859 = vmatprep.subr.bf16.mxu1 %v6958_v3  ;;  %v6970_v11 = vld [vmem:[#allocation6 + $0x7c] ss:$12 sps:$4 sm:$0xff]   ;;  %v6972_v12 = vld [vmem:[#allocation6 + $0x78] ss:$12 sps:$4 sm:$0xff]   ;;  %v6973_v13 = vld [vmem:[#allocation6 + $0x94] ss:$12 sps:$4 sm:$0xff]  }
  0x3d   :  { %v6975_v14 = vld [vmem:[#allocation6 + $0x90] ss:$12 sps:$4 sm:$0xff]   ;;  %v6976_v15 = vld [vmem:[#allocation6 + $0xac] ss:$12 sps:$4 sm:$0xff]   ;;  %v6978_v16 = vld [vmem:[#allocation6 + $0xa8] ss:$12 sps:$4 sm:$0xff]  }
  0x3e   :  { %v60_v17 = vld [vmem:[#allocation3] sm:$0xff]  ;;  %v69_v20 = vld [vmem:[#allocation3 + $0x48] sm:$0xff]  ;;  %v62_v25 = vld [vmem:[#allocation3 + $0x10] sm:$0xff]  ;;  %vm478_vm0 = vcmask 130048   ;;  %vm657_vm1 = vcmask 523264   ;;  %s7611_s2 = smov 112  }
  0x3f   :  { %247 = vmatpush1.bf16.msra.mxu0 %v6960_v4  ;;  %6867 = vmatpush1.bf16.msra.mxu1 %v6960_v4  ;;  %v68_v19 = vld [vmem:[#allocation3 + $0x40] sm:$0xff]  ;;  %v6979_v21 = vld [vmem:[#allocation6 + $0x8] ss:$12 sps:$4 sm:$0xff]   ;;  %v76_v22 = vpack.c.bf16 %v61_v18, %v60_v17  ;;  %v63_v26 = vld [vmem:[#allocation3 + $0x18] sm:$0xff]  ;;  %s7612_s29 = smov 96   ;;  %s7613_s30 = smov 80  }
  0x40   :  { %248 = vmatprep.subr.bf16.mxu0 %v6961_v5  ;;  %6860 = vmatprep.subr.bf16.mxu1 %v6961_v5  ;;  %v80_v23 = vpack.c.bf16 %v69_v20, %v68_v19  ;;  %v6980_v24 = vld [vmem:[#allocation6 + $0x20] ss:$12 sps:$4 sm:$0xff]   ;;  %v70_v27 = vld [vmem:[#allocation3 + $0x50] sm:$0xff]  ;;  %v71_v28 = vld [vmem:[#allocation3 + $0x58] sm:$0xff]  ;;  %v77_v30 = vpack.c.bf16 %v63_v26, %v62_v25  ;;  %s7614_s5 = smov 48   ;;  %s7615_s6 = smov 32  }
  0x41   :  { %v6981_v29 = vld [vmem:[#allocation6 + $0x38] ss:$12 sps:$4 sm:$0xff]   ;;  %v81_v31 = vpack.c.bf16 %v71_v28, %v70_v27  ;;  %v6982_v32 = vld [vmem:[#allocation6 + $0x50] ss:$12 sps:$4 sm:$0xff]   ;;  %v65_v34 = vld [vmem:[#allocation3 + $0x28] sm:$0xff]  ;;  %s7616_s7 = smov 16  }
  0x42   :  { %v64_v33 = vld [vmem:[#allocation3 + $0x20] sm:$0xff]  ;;  %v73_v36 = vld [vmem:[#allocation3 + $0x68] sm:$0xff]  ;;  %v66_v41 = vld [vmem:[#allocation3 + $0x30] sm:$0xff]  ;;  %vm1672_vm2 = vcmask 261248   ;;  %vm2325_vm3 = vcmask 392448   ;;  %vm2978_vm4 = vcmask 523648  }
  0x43   :  { %249 = vmatpush1.bf16.msra.mxu0 %v6963_v6  ;;  %6868 = vmatpush1.bf16.msra.mxu1 %v6963_v6  ;;  %v72_v35 = vld [vmem:[#allocation3 + $0x60] sm:$0xff]  ;;  %v6983_v37 = vld [vmem:[#allocation6 + $0x68] ss:$12 sps:$4 sm:$0xff]   ;;  %v78_v38 = vpack.c.bf16 %v65_v34, %v64_v33  ;;  %v67_v42 = vld [vmem:[#allocation3 + $0x38] sm:$0xff]  ;;  %vm3631_vm5 = vcmask 654848   ;;  %vm4284_vm6 = vcmask 786048  }
  0x44   :  { %250 = vmatprep.subr.bf16.mxu0 %v6964_v7  ;;  %6861 = vmatprep.subr.bf16.mxu1 %v6964_v7  ;;  %v82_v39 = vpack.c.bf16 %v73_v36, %v72_v35  ;;  %v6984_v40 = vld [vmem:[#allocation6 + $0x80] ss:$12 sps:$4 sm:$0xff]   ;;  %v74_v43 = vld [vmem:[#allocation3 + $0x70] sm:$0xff]  ;;  %v75_v44 = vld [vmem:[#allocation3 + $0x78] sm:$0xff]  ;;  %v79_v46 = vpack.c.bf16 %v67_v42, %v66_v41  ;;  %vm4937_vm7 = vcmask 917248   ;;  %vm5590_vm8 = vcmask 1048448  }
  0x45   :  { %v6985_v45 = vld [vmem:[#allocation6 + $0x98] ss:$12 sps:$4 sm:$0xff]   ;;  %v83_v47 = vpack.c.bf16 %v75_v44, %v74_v43  ;;  %v6986_v48 = vld [vmem:[#allocation6 + $0xb0] ss:$12 sps:$4 sm:$0xff]  }
  0x47   :  { %251 = vmatpush1.bf16.msra.mxu0 %v6966_v8  ;;  %6869 = vmatpush1.bf16.msra.mxu1 %v6966_v8 }
  0x48   :  { %252 = vmatprep.subr.bf16.mxu0 %v6967_v9  ;;  %6862 = vmatprep.subr.bf16.mxu1 %v6967_v9 }
  0x4b   :  { %253 = vmatpush1.bf16.msra.mxu0 %v6969_v10  ;;  %6870 = vmatpush1.bf16.msra.mxu1 %v6969_v10 }
  0x4c   :  { %254 = vmatprep.subr.bf16.mxu0 %v6970_v11  ;;  %6863 = vmatprep.subr.bf16.mxu1 %v6970_v11 }
  0x4f   :  { %255 = vmatpush1.bf16.msra.mxu0 %v6972_v12  ;;  %6871 = vmatpush1.bf16.msra.mxu1 %v6972_v12 }
  0x50   :  { %256 = vmatprep.subr.bf16.mxu0 %v6973_v13  ;;  %6864 = vmatprep.subr.bf16.mxu1 %v6973_v13 }
  0x53   :  { %257 = vmatpush1.bf16.msra.mxu0 %v6975_v14  ;;  %6872 = vmatpush1.bf16.msra.mxu1 %v6975_v14 }
  0x54   :  { %258 = vmatprep.subr.bf16.mxu0 %v6976_v15  ;;  %6865 = vmatprep.subr.bf16.mxu1 %v6976_v15 }
  0x57   :  { %259 = vmatpush1.bf16.msra.mxu0 %v6978_v16  ;;  %6873 = vmatpush1.bf16.msra.mxu1 %v6978_v16 }
  0x58   :  { %6282 = vmatprep.subr.bf16.mxu1 %v6979_v21 }
  0x5a   :  { %277 = vmatmul.mubr.bf16.vlgmr.msra.gmra.mrb[0].mxu0 %v76_v22  ;;  %317 = vmatmul.mubr.bf16.vlgmr.msra.gmra.mrb[0].mxu1 %v80_v23 }
  0x5b   :  { %286 = vmatprep.mubr.bf16.mxu0 %v7610_v0  ;;  %326 = vmatprep.mubr.bf16.mxu1 %v7610_v0 }
  0x5c   :  { %6283 = vmatpush3.bf16.msra.mxu1 %v6979_v21 }
  0x5d   :  { %6284 = vmatprep.subr.bf16.mxu1 %v6980_v24 }
  0x60   :  { %6285 = vmatpush3.bf16.msra.mxu1 %v6980_v24 }
  0x61   :  { %6286 = vmatprep.subr.bf16.mxu1 %v6981_v29 }
  0x62   :  { %287 = vmatmul.mubr.bf16.gmra.mrb[4].mxu0 %v77_v30  ;;  %327 = vmatmul.mubr.bf16.gmra.mrb[4].mxu1 %v81_v31 }
  0x63   :  { %296 = vmatprep.mubr.bf16.mxu0 %v7610_v0  ;;  %336 = vmatprep.mubr.bf16.mxu1 %v7610_v0 }
  0x64   :  { %6287 = vmatpush3.bf16.msra.mxu1 %v6981_v29 }
  0x65   :  { %6288 = vmatprep.subr.bf16.mxu1 %v6982_v32 }
  0x68   :  { %6289 = vmatpush3.bf16.msra.mxu1 %v6982_v32 }
  0x69   :  { %6290 = vmatprep.subr.bf16.mxu1 %v6983_v37 }
  0x6a   :  { %297 = vmatmul.mubr.bf16.gmra.mrb[8].mxu0 %v78_v38  ;;  %337 = vmatmul.mubr.bf16.gmra.mrb[8].mxu1 %v82_v39 }
  0x6b   :  { %306 = vmatprep.mubr.bf16.mxu0 %v7610_v0  ;;  %346 = vmatprep.mubr.bf16.mxu1 %v7610_v0 }
  0x6c   :  { %6291 = vmatpush3.bf16.msra.mxu1 %v6983_v37 }
  0x6d   :  { %6292 = vmatprep.subr.bf16.mxu1 %v6984_v40 }
  0x70   :  { %6293 = vmatpush3.bf16.msra.mxu1 %v6984_v40 }
  0x71   :  { %6294 = vmatprep.subr.bf16.mxu1 %v6985_v45 }
  0x72   :  { %307 = vmatmul.mubr.bf16.gmra.mrb[12].mxu0 %v79_v46  ;;  %347 = vmatmul.mubr.bf16.gmra.mrb[12].mxu1 %v83_v47 }
  0x73   :  { %6298 = vmatprep.mubr.bf16.mxu1 %v76_v22 }
  0x74   :  { %6295 = vmatpush3.bf16.msra.mxu1 %v6985_v45 }
  0x75   :  { %6296 = vmatprep.subr.bf16.mxu1 %v6986_v48 }
  0x78   :  { %6297 = vmatpush3.bf16.msra.mxu1 %v6986_v48 }
  0x7b   :  { %6299 = vmatmul.mubr.bf16.vlgmr.msra.gmra.mrb[16].mxu1 %v77_v30 }
  0x7c   :  { %6302 = vmatprep.mubr.bf16.mxu1 %v78_v38 }
  0x83   :  { %6303 = vmatmul.mubr.bf16.gmra.mrb[20].mxu1 %v79_v46 }
  0x84   :  { %6306 = vmatprep.mubr.bf16.mxu1 %v80_v23 }
  0x8b   :  { %6307 = vmatmul.mubr.bf16.gmra.mrb[24].mxu1 %v81_v31 }
  0x8c   :  { %6310 = vmatprep.mubr.bf16.mxu1 %v82_v39 }
  0x93   :  { %6311 = vmatmul.mubr.bf16.gmra.mrb[28].mxu1 %v83_v47 }
 0x12d   :  { %v278_v49 = vpop.f32.mrb[0].mxu0  ;;  %v318_v50 = vpop.f32.mrb[0].mxu1 }
 0x12e   :  { %v280_v51 = vpop.f32.mrb[1].mxu0  ;;  %v320_v52 = vpop.f32.mrb[1].mxu1 }
 0x12f   :  { %v282_v53 = vpop.f32.mrb[2].mxu0  ;;  %v322_v54 = vpop.f32.mrb[2].mxu1 }
 0x130   :  { %v7692_v55 = vpack.c.bf16 %v282_v53, %v278_v49  ;;  %v7694_v56 = vpack.c.bf16 %v322_v54, %v318_v50  ;;  %v284_v57 = vpop.f32.mrb[3].mxu0  ;;  %v324_v58 = vpop.f32.mrb[3].mxu1 }
 0x131   :  { %v7696_v59 = vpack.c.bf16 %v284_v57, %v280_v51  ;;  %v7698_v60 = vpack.c.bf16 %v324_v58, %v320_v52 }
 0x132   :  { %6322 = vmatprep.mubr.msk.bf16.mxu1 %vm478_vm0, %v7692_v55  ;;  %6338 = vmatprep.mubr.msk.bf16.mxu0 %vm478_vm0, %v7694_v56 }
 0x133   :  { %6874 = vmatprep.subr.msk.bf16.mxu1 %vm478_vm0, %v7696_v59  ;;  %6878 = vmatprep.subr.msk.bf16.mxu0 %vm478_vm0, %v7698_v60  ;;  %v492_v61 = vsel %vm478_vm0, %v7696_v59, 0  ;;  %v581_v62 = vsel %vm478_vm0, %v7698_v60, 0 }
 0x134   :  { %6315 = vmatpush3.bf16.xpose.msra.mxu1 %v492_v61  ;;  %6331 = vmatpush3.bf16.xpose.msra.mxu0 %v581_v62 }
 0x135   :  { %v288_v63 = vpop.f32.mrb[4].mxu0  ;;  %v328_v0 = vpop.f32.mrb[4].mxu1 }
 0x136   :  { %v290_v1 = vpop.f32.mrb[5].mxu0  ;;  %v330_v2 = vpop.f32.mrb[5].mxu1 }
 0x137   :  { %v292_v3 = vpop.f32.mrb[6].mxu0  ;;  %v332_v4 = vpop.f32.mrb[6].mxu1 }
 0x138   :  { %v7712_v5 = vpack.c.bf16 %v292_v3, %v288_v63  ;;  %v7714_v6 = vpack.c.bf16 %v332_v4, %v328_v0  ;;  %v294_v7 = vpop.f32.mrb[7].mxu0  ;;  %v334_v8 = vpop.f32.mrb[7].mxu1 }
 0x139   :  { %v7716_v9 = vpack.c.bf16 %v294_v7, %v290_v1  ;;  %v7718_v10 = vpack.c.bf16 %v334_v8, %v330_v2 }
 0x13b   :  { %6875 = vmatprep.subr.msk.bf16.mxu1 %vm478_vm0, %v7716_v9  ;;  %6879 = vmatprep.subr.msk.bf16.mxu0 %vm478_vm0, %v7718_v10  ;;  %v495_v11 = vsel %vm478_vm0, %v7716_v9, 0  ;;  %v584_v12 = vsel %vm478_vm0, %v7718_v10, 0 }
 0x13c   :  { %6317 = vmatpush3.bf16.xpose.msra.mxu1 %v495_v11  ;;  %6333 = vmatpush3.bf16.xpose.msra.mxu0 %v584_v12 }
 0x13d   :  { %v298_v13 = vpop.f32.mrb[8].mxu0  ;;  %v338_v14 = vpop.f32.mrb[8].mxu1 }
 0x13e   :  { %v300_v15 = vpop.f32.mrb[9].mxu0  ;;  %v340_v16 = vpop.f32.mrb[9].mxu1 }
 0x13f   :  { %v302_v17 = vpop.f32.mrb[10].mxu0  ;;  %v342_v18 = vpop.f32.mrb[10].mxu1 }
 0x140   :  { %v7728_v19 = vpack.c.bf16 %v302_v17, %v298_v13  ;;  %v7730_v20 = vpack.c.bf16 %v342_v18, %v338_v14  ;;  %v304_v21 = vpop.f32.mrb[11].mxu0  ;;  %v344_v22 = vpop.f32.mrb[11].mxu1 }
 0x141   :  { %v7732_v23 = vpack.c.bf16 %v304_v21, %v300_v15  ;;  %v7734_v24 = vpack.c.bf16 %v344_v22, %v340_v16 }
 0x143   :  { %6876 = vmatprep.subr.msk.bf16.mxu1 %vm478_vm0, %v7732_v23  ;;  %6880 = vmatprep.subr.msk.bf16.mxu0 %vm478_vm0, %v7734_v24  ;;  %v498_v25 = vsel %vm478_vm0, %v7732_v23, 0  ;;  %v587_v26 = vsel %vm478_vm0, %v7734_v24, 0 }
 0x144   :  { %6319 = vmatpush3.bf16.xpose.msra.mxu1 %v498_v25  ;;  %6335 = vmatpush3.bf16.xpose.msra.mxu0 %v587_v26 }
 0x145   :  { %v308_v27 = vpop.f32.mrb[12].mxu0  ;;  %v348_v28 = vpop.f32.mrb[12].mxu1 }
 0x146   :  { %v310_v29 = vpop.f32.mrb[13].mxu0  ;;  %v350_v30 = vpop.f32.mrb[13].mxu1 }
 0x147   :  { %v312_v31 = vpop.f32.mrb[14].mxu0  ;;  %v352_v32 = vpop.f32.mrb[14].mxu1 }
 0x148   :  { %v7744_v33 = vpack.c.bf16 %v312_v31, %v308_v27  ;;  %v7746_v34 = vpack.c.bf16 %v352_v32, %v348_v28  ;;  %v314_v35 = vpop.f32.mrb[15].mxu0  ;;  %v354_v36 = vpop.f32.mrb[15].mxu1 }
 0x149   :  { %v7748_v37 = vpack.c.bf16 %v314_v35, %v310_v29  ;;  %v7750_v38 = vpack.c.bf16 %v354_v36, %v350_v30 }
 0x14b   :  { %6877 = vmatprep.subr.msk.bf16.mxu1 %vm478_vm0, %v7748_v37  ;;  %6881 = vmatprep.subr.msk.bf16.mxu0 %vm478_vm0, %v7750_v38  ;;  %v501_v39 = vsel %vm478_vm0, %v7748_v37, 0  ;;  %v590_v40 = vsel %vm478_vm0, %v7750_v38, 0 }
 0x14c   :  { %6321 = vmatpush3.bf16.xpose.msra.mxu1 %v501_v39  ;;  %6337 = vmatpush3.bf16.xpose.msra.mxu0 %v590_v40 }
 0x14e   :  { %v6300_v41 = vpop.f32.mrb[16].mxu1 }
 0x14f   :  { %v391_v42 = vpop.f32.mrb[17].mxu1 }
 0x150   :  { %v6301_v43 = vpop.f32.mrb[18].mxu1 }
 0x151   :  { %v7760_v44 = vpack.c.bf16 %v6301_v43, %v6300_v41  ;;  %v394_v45 = vpop.f32.mrb[19].mxu1 }
 0x152   :  { %v7762_v46 = vpack.c.bf16 %v394_v45, %v391_v42 }
 0x153   :  { %6323 = vmatmul.mubr.msk.bf16.vlgmr.msra.gmra.mrb[32].mxu1 %vm478_vm0, %v7712_v5  ;;  %6339 = vmatmul.mubr.msk.bf16.vlgmr.msra.gmra.mrb[16].mxu0 %vm478_vm0, %v7714_v6 }
 0x154   :  { %6326 = vmatprep.mubr.msk.bf16.mxu1 %vm478_vm0, %v7728_v19  ;;  %6342 = vmatprep.mubr.msk.bf16.mxu0 %vm478_vm0, %v7730_v20 }
 0x155   :  { %6346 = vmatprep.subr.bf16.mxu1 %v7762_v46 }
 0x156   :  { %6347 = vmatpush3.bf16.msra.mxu1 %v7762_v46  ;;  %v6304_v47 = vpop.f32.mrb[20].mxu1 }
 0x157   :  { %v407_v48 = vpop.f32.mrb[21].mxu1  ;;  %6348 = vmatprep.subr.bf16.mxu1 %v7760_v44 }
 0x158   :  { %v6305_v49 = vpop.f32.mrb[22].mxu1 }
 0x159   :  { %v7775_v50 = vpack.c.bf16 %v6305_v49, %v6304_v47  ;;  %v410_v51 = vpop.f32.mrb[23].mxu1 }
 0x15a   :  { %v7777_v52 = vpack.c.bf16 %v410_v51, %v407_v48  ;;  %6349 = vmatpush3.bf16.msra.mxu1 %v7760_v44 }
 0x15b   :  { %6327 = vmatmul.mubr.msk.bf16.gmra.mrb[36].mxu1 %vm478_vm0, %v7744_v33  ;;  %6343 = vmatmul.mubr.msk.bf16.gmra.mrb[20].mxu0 %vm478_vm0, %v7746_v34 }
 0x15c   :  { %6350 = vmatprep.subr.bf16.mxu1 %v7777_v52 }
 0x15e   :  { %6351 = vmatpush3.bf16.msra.mxu1 %v7777_v52  ;;  %v6308_v53 = vpop.f32.mrb[24].mxu1 }
 0x15f   :  { %6352 = vmatprep.subr.bf16.mxu1 %v7775_v50  ;;  %v423_v54 = vpop.f32.mrb[25].mxu1 }
 0x160   :  { %v6309_v57 = vpop.f32.mrb[26].mxu1 }
 0x161   :  { %v7787_v58 = vpack.c.bf16 %v6309_v57, %v6308_v53  ;;  %v426_v61 = vpop.f32.mrb[27].mxu1 }
 0x162   :  { %6353 = vmatpush3.bf16.msra.mxu1 %v7775_v50  ;;  %v7790_v62 = vpack.c.bf16 %v426_v61, %v423_v54 }
 0x164   :  { %6362 = vmatprep.subr.bf16.mxu1 %v7790_v62 }
 0x166   :  { %v6312_v63 = vpop.f32.mrb[28].mxu1 }
 0x167   :  { %v439_v0 = vpop.f32.mrb[29].mxu1 }
 0x168   :  { %v6313_v1 = vpop.f32.mrb[30].mxu1 }
 0x169   :  { %v7793_v2 = vpack.c.bf16 %v6313_v1, %v6312_v63  ;;  %v442_v3 = vpop.f32.mrb[31].mxu1 }
 0x16a   :  { %v7795_v4 = vpack.c.bf16 %v442_v3, %v439_v0 }
 0x226   :  { %v7797_v7 = vpop.f32.mrb[32].mxu1  ;;  %v7799_v8 = vpop.f32.mrb[16].mxu0 }
 0x227   :  { %v7801_v11 = vpop.f32.mrb[33].mxu1  ;;  %v7803_v12 = vpop.f32.mrb[17].mxu0  ;;  %v688_v13 = vsel %vm657_vm1, %v7799_v8, -inf  ;;  %v664_v14 = vsel %vm657_vm1, %v7797_v7, -inf }
 0x228   :  { %689 = vmax.xlane.f32.xlu0 %v688_v13  ;;  %v7809_v15 = vpop.f32.mrb[18].mxu0  ;;  %665 = vmax.xlane.f32.xlu1 %v664_v14  ;;  %v7811_v16 = vpop.f32.mrb[34].mxu1  ;;  %v658_v21 = vsel %vm657_vm1, %v7801_v11, -inf  ;;  %v682_v29 = vsel %vm657_vm1, %v7803_v12, -inf }
 0x229   :  { %v7813_v17 = vpop.f32.mrb[35].mxu1  ;;  %v7815_v18 = vpop.f32.mrb[19].mxu0  ;;  %v667_v22 = vsel %vm657_vm1, %v7811_v16, -inf  ;;  %v691_v30 = vsel %vm657_vm1, %v7809_v15, -inf }
 0x22a   :  { %v685_v39 = vsel %vm657_vm1, %v7815_v18, -inf  ;;  %v661_v40 = vsel %vm657_vm1, %v7813_v17, -inf }
 0x22c   :  { %659 = vmax.xlane.f32.xlu0 %v658_v21  ;;  %668 = vmax.xlane.f32.xlu1 %v667_v22 }
 0x22e   :  { %v7821_v25 = vpop.f32.mrb[36].mxu1  ;;  %v7823_v26 = vpop.f32.mrb[20].mxu0 }
 0x22f   :  { %v7825_v27 = vpop.f32.mrb[37].mxu1  ;;  %v7827_v28 = vpop.f32.mrb[21].mxu0  ;;  %v676_v41 = vsel %vm657_vm1, %v7821_v25, -inf  ;;  %v700_v45 = vsel %vm657_vm1, %v7823_v26, -inf }
 0x230   :  { %v7833_v31 = vpop.f32.mrb[22].mxu0  ;;  %683 = vmax.xlane.f32.xlu0 %v682_v29  ;;  %692 = vmax.xlane.f32.xlu1 %v691_v30  ;;  %v7835_v32 = vpop.f32.mrb[38].mxu1  ;;  %v670_v42 = vsel %vm657_vm1, %v7825_v27, -inf  ;;  %v694_v43 = vsel %vm657_vm1, %v7827_v28, -inf }
 0x231   :  { %v7837_v35 = vpop.f32.mrb[39].mxu1  ;;  %v7839_v36 = vpop.f32.mrb[23].mxu0  ;;  %v679_v47 = vsel %vm657_vm1, %v7835_v32, -inf  ;;  %v703_v48 = vsel %vm657_vm1, %v7833_v31, -inf }
 0x232   :  { %v673_v49 = vsel %vm657_vm1, %v7837_v35, -inf  ;;  %v697_v51 = vsel %vm657_vm1, %v7839_v36, -inf }
 0x234   :  { %686 = vmax.xlane.f32.xlu1 %v685_v39  ;;  %662 = vmax.xlane.f32.xlu0 %v661_v40 }
 0x238   :  { %677 = vmax.xlane.f32.xlu0 %v676_v41 }
 0x23c   :  { %671 = vmax.xlane.f32.xlu0 %v670_v42 }
 0x245   :  { %1030 = vrot.lane.b32.xlu1 %v7716_v9, %s7611_s2 }
 0x249   :  { %1141 = vrot.lane.b32.xlu1 %v7698_v60, %s7611_s2 }
 0x24d   :  { %1143 = vrot.lane.b32.xlu1 %v7718_v10, %s7611_s2 }
 0x252   :  { %1028 = vrot.lane.b32.xlu0 %v7696_v59, %s7611_s2 }
 0x271   :  { %695 = vmax.xlane.f32.xlu1 %v694_v43  ;;  %701 = vmax.xlane.f32.xlu0 %v700_v45 }
 0x275   :  { %680 = vmax.xlane.f32.xlu1 %v679_v47 }
 0x279   :  { %704 = vmax.xlane.f32.xlu1 %v703_v48 }
 0x27d   :  { %674 = vmax.xlane.f32.xlu1 %v673_v49 }
 0x287   :  { %1032 = vrot.lane.b32.xlu0 %v7732_v23, %s7611_s2 }
 0x28b   :  { %1034 = vrot.lane.b32.xlu0 %v7748_v37, %s7611_s2 }
 0x28e   :  { %1018 = vrot.lane.b32.xlu1 %v7712_v5, %s7611_s2 }
 0x28f   :  { %1016 = vrot.lane.b32.xlu0 %v7692_v55, %s7611_s2 }
 0x293   :  { %1145 = vrot.lane.b32.xlu0 %v7734_v24, %s7611_s2 }
 0x297   :  { %1129 = vrot.lane.b32.xlu0 %v7694_v56, %s7611_s2 }
 0x29b   :  { %1020 = vrot.lane.b32.xlu0 %v7728_v19, %s7611_s2 }
 0x29f   :  { %1133 = vrot.lane.b32.xlu0 %v7730_v20, %s7611_s2 }
 0x2a3   :  { %1410 = vrot.lane.b32.xlu0 %v7762_v46, %s7611_s2 }
 0x2a7   :  { %1414 = vrot.lane.b32.xlu0 %v7777_v52, %s7611_s2 }
 0x2ab   :  { %1503 = vrot.lane.b32.xlu0 %v7790_v62, %s7611_s2 }
 0x2af   :  { %1509 = vrot.lane.b32.xlu0 %v7793_v2, %s7611_s2 }
 0x2b2   :  { %698 = vmax.xlane.f32.xlu1 %v697_v51 }
 0x2b3   :  { %1699 = vrot.lane.b32.xlu0 %v7716_v9, %s7612_s29 }
 0x2b5   :  { %v690_v53 = vpop.xlane.xlu0 %689  ;;  %v666_v54 = vpop.xlane.xlu1 %665 }
 0x2b6   :  { %v708_v57 = vsub.f32 %v7797_v7, %v666_v54  ;;  %v716_v0 = vsub.f32 %v7799_v8, %v690_v53 }
 0x2b7   :  { %1802 = vrot.lane.b32.xlu0 %v7698_v60, %s7612_s29 }
 0x2b8   :  { %v726_v1 = vmul.f32 1.442695, %v708_v57  ;;  %v742_v29 = vmul.f32 1.442695, %v716_v0 }
 0x2b9   :  { %v660_v61 = vpop.xlane.xlu0 %659  ;;  %v669_v63 = vpop.xlane.xlu1 %668 }
 0x2ba   :  { %v709_v3 = vsub.f32 %v7811_v16, %v669_v63  ;;  %v706_v13 = vsub.f32 %v7801_v11, %v660_v61  ;;  %6995 = vpow2.f32 %v726_v1 }
 0x2bb   :  { %1703 = vrot.lane.b32.xlu0 %v7748_v37, %s7612_s29 }
 0x2bc   :  { %v728_v14 = vmul.f32 1.442695, %v709_v3  ;;  %v722_v39 = vmul.f32 1.442695, %v706_v13 }
 0x2bd   :  { %v684_v21 = vpop.xlane.xlu0 %683  ;;  %v693_v22 = vpop.xlane.xlu1 %692 }
 0x2be   :  { %v714_v7 = vsub.f32 %v7803_v12, %v684_v21  ;;  %v717_v30 = vsub.f32 %v7809_v15, %v693_v22  ;;  %6997 = vpow2.f32 %v728_v14 }
 0x2bf   :  { %6999 = vpow2.f32 %v742_v29 }
 0x2c0   :  { %v744_v8 = vmul.f32 1.442695, %v717_v30  ;;  %v738_v40 = vmul.f32 1.442695, %v714_v7 }
 0x2c1   :  { %v687_v41 = vpop.xlane.xlu1 %686  ;;  %v663_v16 = vpop.xlane.xlu0 %662 }
 0x2c2   :  { %v715_v42 = vsub.f32 %v7815_v18, %v687_v41  ;;  %v707_v11 = vsub.f32 %v7813_v17, %v663_v16  ;;  %7001 = vpow2.f32 %v744_v8 }
 0x2c3   :  { %1147 = vrot.lane.b32.xlu1 %v7750_v38, %s7611_s2  ;;  %7003 = vpow2.f32 %v722_v39 }
 0x2c4   :  { %v740_v43 = vmul.f32 1.442695, %v715_v42  ;;  %v724_v12 = vmul.f32 1.442695, %v707_v11  ;;  %7005 = vpow2.f32 %v738_v40  ;;  %v7911_v45 = vpop.eup %6995 }
 0x2c5   :  { %v678_v15 = vpop.xlane.xlu0 %677  ;;  %10789 = vst [vmem:[#allocation13_spill] sm:$0xff] %v7911_v45  ;;  %v1031_v63 = vpop.permute.xlu1 %1030 }
 0x2c6   :  { %7007 = vpow2.f32 %v740_v43  ;;  %v1052_v14 = vsel %vm478_vm0, %v1031_v63, 0  ;;  %v712_v29 = vsub.f32 %v7821_v25, %v678_v15 }
 0x2c7   :  { %7009 = vpow2.f32 %v724_v12  ;;  %1131 = vrot.lane.b32.xlu1 %v7714_v6, %s7611_s2 }
 0x2c8   :  { %v7913_v47 = vpop.eup %6997  ;;  %v734_v39 = vmul.f32 1.442695, %v712_v29 }
 0x2c9   :  { %10790 = vst [vmem:[#allocation14_spill] sm:$0xff] %v7913_v47  ;;  %v672_v18 = vpop.xlane.xlu0 %671  ;;  %v819_v17 = vpack.c.bf16 %v7913_v47, %v7911_v45  ;;  %v7919_v48 = vpop.eup %6999 }
 0x2ca   :  { %10791 = vst [vmem:[#allocation15_spill] sm:$0xff] %v7919_v48  ;;  %v7959_v21 = vpop.permute.xlu1 %1141  ;;  %7011 = vpow2.f32 %v734_v39  ;;  %v710_v43 = vsub.f32 %v7825_v27, %v672_v18 }
 0x2cb   :  { %1022 = vrot.lane.b32.xlu1 %v7744_v33, %s7611_s2 }
 0x2cc   :  { %v7921_v49 = vpop.eup %7001 }
 0x2cd   :  { %10792 = vst [vmem:[#allocation16_spill] sm:$0xff] %v7921_v49  ;;  %v1029_v51 = vpop.permute.xlu0 %1028  ;;  %v7923_v53 = vpop.eup %7003  ;;  %v823_v54 = vpack.c.bf16 %v7921_v49, %v7919_v48 }
 0x2ce   :  { %10793 = vst [vmem:[#allocation17_spill] sm:$0xff] %v7923_v53  ;;  %6882 = vmatprep.subr.msk.bf16.mxu0 %vm478_vm0, %v1029_v51  ;;  %v1049_v57 = vsel %vm478_vm0, %v1029_v51, 0  ;;  %v7929_v61 = vpop.eup %7005  ;;  %v1144_v22 = vpop.permute.xlu1 %1143  ;;  %v730_v51 = vmul.f32 1.442695, %v710_v43 }
 0x2cf   :  { %10794 = vst [vmem:[#allocation18_spill] sm:$0xff] %v7929_v61  ;;  %6379 = vmatpush3.bf16.xpose.msra.mxu0 %v1049_v57  ;;  %1135 = vrot.lane.b32.xlu1 %v7746_v34, %s7611_s2 }
 0x2d0   :  { %v7933_v0 = vpop.eup %7007  ;;  %6883 = vmatprep.subr.msk.bf16.mxu0 %vm478_vm0, %v1031_v63 }
 0x2d1   :  { %10795 = vst [vmem:[#allocation19_spill] sm:$0xff] %v7933_v0  ;;  %v7936_v1 = vpop.eup %7009  ;;  %v822_v3 = vpack.c.bf16 %v7933_v0, %v7929_v61 }
 0x2d2   :  { %10796 = vst [vmem:[#allocation20_spill] sm:$0xff] %v7936_v1  ;;  %v818_v13 = vpack.c.bf16 %v7936_v1, %v7923_v53 }
 0x2d3   :  { %1412 = vrot.lane.b32.xlu1 %v7760_v44, %s7611_s2 }
 0x2d4   :  { %6354 = vmatprep.mubr.msk.bf16.mxu1 %vm657_vm1, %v818_v13 }
 0x2d5   :  { %6355 = vmatmul.mubr.msk.bf16.vlgmr.msra.gmra.mrb[40].mxu1 %vm657_vm1, %v819_v17 }
 0x2d6   :  { %6363 = vmatpush3.bf16.msra.mxu1 %v7790_v62 }
 0x2d7   :  { %6364 = vmatprep.subr.bf16.mxu1 %v7787_v58  ;;  %6381 = vmatpush3.bf16.xpose.msra.mxu0 %v1052_v14 }
 0x2d8   :  { %1416 = vrot.lane.b32.xlu1 %v7775_v50, %s7611_s2 }
 0x2da   :  { %6365 = vmatpush3.bf16.msra.mxu1 %v7787_v58 }
 0x2db   :  { %6366 = vmatprep.subr.bf16.mxu1 %v7795_v4 }
 0x2dc   :  { %1505 = vrot.lane.b32.xlu1 %v7787_v58, %s7611_s2 }
 0x2de   :  { %6367 = vmatpush3.bf16.msra.mxu1 %v7795_v4 }
 0x2df   :  { %6368 = vmatprep.subr.bf16.mxu1 %v7793_v2 }
 0x2e0   :  { %1697 = vrot.lane.b32.xlu1 %v7696_v59, %s7612_s29 }
 0x2e2   :  { %6369 = vmatpush3.bf16.msra.mxu1 %v7793_v2 }
 0x2e3   :  { %6886 = vmatprep.subr.msk.bf16.mxu1 %vm478_vm0, %v7959_v21 }
 0x2e4   :  { %1507 = vrot.lane.b32.xlu1 %v7795_v4, %s7611_s2 }
 0x2e8   :  { %1701 = vrot.lane.b32.xlu1 %v7732_v23, %s7612_s29 }
 0x2ec   :  { %1804 = vrot.lane.b32.xlu1 %v7718_v10, %s7612_s29 }
 0x2fe   :  { %v7971_v7 = vpop.xlane.xlu1 %695  ;;  %v702_v30 = vpop.xlane.xlu0 %701 }
 0x2ff   :  { %v720_v8 = vsub.f32 %v7823_v26, %v702_v30 }
 0x301   :  { %v750_v25 = vmul.f32 1.442695, %v720_v8 }
 0x302   :  { %v1033_v40 = vpop.permute.xlu0 %1032  ;;  %v681_v41 = vpop.xlane.xlu1 %680 }
 0x303   :  { %v713_v16 = vsub.f32 %v7835_v32, %v681_v41  ;;  %6884 = vmatprep.subr.msk.bf16.mxu0 %vm478_vm0, %v1033_v40  ;;  %v1055_v42 = vsel %vm478_vm0, %v1033_v40, 0 }
 0x304   :  { %6383 = vmatpush3.bf16.xpose.msra.mxu0 %v1055_v42 }
 0x305   :  { %v736_v11 = vmul.f32 1.442695, %v713_v16 }
 0x306   :  { %v1035_v12 = vpop.permute.xlu0 %1034  ;;  %v705_v15 = vpop.xlane.xlu1 %704 }
 0x307   :  { %7013 = vpow2.f32 %v736_v11  ;;  %v721_v17 = vsub.f32 %v7833_v31, %v705_v15  ;;  %6885 = vmatprep.subr.msk.bf16.mxu0 %vm478_vm0, %v1035_v12  ;;  %v1058_v27 = vsel %vm478_vm0, %v1035_v12, 0  ;;  %v7983_v31 = vpop.eup %7011  ;;  %v1162_v12 = vsel %vm478_vm0, %v7959_v21, 0 }
 0x308   :  { %7015 = vpow2.f32 %v750_v25  ;;  %10797 = vst [vmem:[#allocation21_spill] sm:$0xff] %v7983_v31  ;;  %v1165_v15 = vsel %vm478_vm0, %v1144_v22, 0 }
 0x309   :  { %v752_v26 = vmul.f32 1.442695, %v721_v17  ;;  %v718_v17 = vsub.f32 %v7827_v28, %v7971_v7 }
 0x30a   :  { %v1017_v32 = vpop.permute.xlu0 %1016  ;;  %v675_v57 = vpop.xlane.xlu1 %674 }
 0x30b   :  { %7017 = vpow2.f32 %v752_v26  ;;  %v711_v63 = vsub.f32 %v7837_v35, %v675_v57  ;;  %6386 = vmatprep.mubr.msk.bf16.mxu0 %vm478_vm0, %v1017_v32  ;;  %v746_v26 = vmul.f32 1.442695, %v718_v17 }
 0x30c   :  { %6385 = vmatpush3.bf16.xpose.msra.mxu0 %v1058_v27  ;;  %7019 = vpow2.f32 %v730_v51 }
 0x30d   :  { %v732_v18 = vmul.f32 1.442695, %v711_v63 }
 0x30e   :  { %v1146_v13 = vpop.permute.xlu0 %1145  ;;  %v1019_v29 = vpop.permute.xlu1 %1018 }
 0x30f   :  { %7021 = vpow2.f32 %v732_v18 }
 0x310   :  { %7023 = vpow2.f32 %v746_v26 }
 0x311   :  { %v7985_v14 = vpop.eup %7013 }
 0x312   :  { %10798 = vst [vmem:[#allocation22_spill] sm:$0xff] %v7985_v14  ;;  %v1130_v30 = vpop.permute.xlu0 %1129  ;;  %v821_v39 = vpack.c.bf16 %v7985_v14, %v7983_v31  ;;  %v7990_v35 = vpop.eup %7015 }
 0x313   :  { %6387 = vmatmul.mubr.msk.bf16.vlgmr.msra.gmra.mrb[24].mxu0 %vm478_vm0, %v1019_v29  ;;  %10799 = vst [vmem:[#allocation23_spill] sm:$0xff] %v7990_v35 }
 0x315   :  { %v7992_v8 = vpop.eup %7017 }
 0x316   :  { %10800 = vst [vmem:[#allocation24_spill] sm:$0xff] %v7992_v8  ;;  %v1021_v40 = vpop.permute.xlu0 %1020  ;;  %v825_v41 = vpack.c.bf16 %v7992_v8, %v7990_v35  ;;  %v7997_v16 = vpop.eup %7019 }
 0x317   :  { %6390 = vmatprep.mubr.msk.bf16.mxu0 %vm478_vm0, %v1021_v40  ;;  %10801 = vst [vmem:[#allocation25_spill] sm:$0xff] %v7997_v16 }
 0x319   :  { %v7999_v42 = vpop.eup %7021 }
 0x31a   :  { %10802 = vst [vmem:[#allocation26_spill] sm:$0xff] %v7999_v42  ;;  %v1134_v11 = vpop.permute.xlu0 %1133  ;;  %v820_v43 = vpack.c.bf16 %v7999_v42, %v7997_v16  ;;  %v8025_v28 = vpop.eup %7023 }
 0x31b   :  { %10803 = vst [vmem:[#allocation27_spill] sm:$0xff] %v8025_v28 }
 0x31c   :  { %6358 = vmatprep.mubr.msk.bf16.mxu1 %vm657_vm1, %v820_v43 }
 0x31d   :  { %6359 = vmatmul.mubr.msk.bf16.gmra.mrb[44].mxu1 %vm657_vm1, %v821_v39 }
 0x31e   :  { %v1411_v25 = vpop.permute.xlu0 %1410  ;;  %6370 = vmatprep.mubr.msk.bf16.mxu1 %vm657_vm1, %v822_v3  ;;  %v1168_v3 = vsel %vm478_vm0, %v1146_v13, 0 }
 0x31f   :  { %6410 = vmatprep.subr.bf16.mxu0 %v1411_v25 }
 0x320   :  { %6411 = vmatpush3.bf16.msra.mxu0 %v1411_v25 }
 0x322   :  { %v1415_v51 = vpop.permute.xlu0 %1414 }
 0x325   :  { %6371 = vmatmul.mubr.msk.bf16.vlgmr.msra.gmra.mrb[48].mxu1 %vm657_vm1, %v823_v54 }
 0x326   :  { %6395 = vmatpush3.bf16.xpose.msra.mxu1 %v1162_v12  ;;  %v1504_v63 = vpop.permute.xlu0 %1503 }
 0x327   :  { %6887 = vmatprep.subr.msk.bf16.mxu1 %vm478_vm0, %v1144_v22 }
 0x32a   :  { %v1510_v43 = vpop.permute.xlu0 %1509 }
 0x32e   :  { %6397 = vmatpush3.bf16.xpose.msra.mxu1 %v1165_v15 }
 0x32f   :  { %6888 = vmatprep.subr.msk.bf16.mxu1 %vm478_vm0, %v1146_v13 }
 0x336   :  { %6399 = vmatpush3.bf16.xpose.msra.mxu1 %v1168_v3 }
 0x33f   :  { %v699_v54 = vpop.xlane.xlu1 %698 }
 0x340   :  { %v719_v32 = vsub.f32 %v7839_v36, %v699_v54 }
 0x342   :  { %v748_v21 = vmul.f32 1.442695, %v719_v32 }
 0x343   :  { %v1148_v57 = vpop.permute.xlu1 %1147 }
 0x344   :  { %7025 = vpow2.f32 %v748_v21  ;;  %6889 = vmatprep.subr.msk.bf16.mxu1 %vm478_vm0, %v1148_v57  ;;  %v1171_v22 = vsel %vm478_vm0, %v1148_v57, 0 }
 0x345   :  { %6401 = vmatpush3.bf16.xpose.msra.mxu1 %v1171_v22 }
 0x346   :  { %6426 = vmatprep.subr.bf16.mxu1 %v1504_v63 }
 0x347   :  { %v1132_v27 = vpop.permute.xlu1 %1131 }
 0x34b   :  { %v1023_v18 = vpop.permute.xlu1 %1022 }
 0x34c   :  { %6391 = vmatmul.mubr.msk.bf16.gmra.mrb[28].mxu0 %vm478_vm0, %v1023_v18 }
 0x34e   :  { %v8027_v7 = vpop.eup %7025 }
 0x34f   :  { %10804 = vst [vmem:[#allocation28_spill] sm:$0xff] %v8027_v7  ;;  %v1136_v36 = vpop.permute.xlu1 %1135  ;;  %v824_v13 = vpack.c.bf16 %v8027_v7, %v8025_v28 }
 0x351   :  { %6374 = vmatprep.mubr.msk.bf16.mxu1 %vm657_vm1, %v824_v13 }
 0x352   :  { %6375 = vmatmul.mubr.msk.bf16.gmra.mrb[52].mxu1 %vm657_vm1, %v825_v41 }
 0x353   :  { %6402 = vmatprep.mubr.msk.bf16.mxu1 %vm478_vm0, %v1130_v30  ;;  %v1413_v29 = vpop.permute.xlu1 %1412  ;;  %v8041_v30 = vpop.permute.xlu0 %1699 }
 0x354   :  { %6412 = vmatprep.subr.bf16.mxu0 %v1413_v29 }
 0x355   :  { %6413 = vmatpush3.bf16.msra.mxu0 %v1413_v29 }
 0x356   :  { %6414 = vmatprep.subr.bf16.mxu0 %v1415_v51 }
 0x357   :  { %v1417_v39 = vpop.permute.xlu1 %1416  ;;  %v8043_v12 = vpop.permute.xlu0 %1802 }
 0x359   :  { %6415 = vmatpush3.bf16.msra.mxu0 %v1415_v51 }
 0x35a   :  { %6403 = vmatmul.mubr.msk.bf16.vlgmr.msra.gmra.mrb[56].mxu1 %vm478_vm0, %v1132_v27  ;;  %6416 = vmatprep.subr.bf16.mxu0 %v1417_v39 }
 0x35b   :  { %6427 = vmatpush3.bf16.msra.mxu1 %v1504_v63  ;;  %6406 = vmatprep.mubr.msk.bf16.mxu1 %vm478_vm0, %v1134_v11  ;;  %v1506_v40 = vpop.permute.xlu1 %1505 }
 0x35c   :  { %6428 = vmatprep.subr.bf16.mxu1 %v1506_v40 }
 0x35d   :  { %6417 = vmatpush3.bf16.msra.mxu0 %v1417_v39 }
 0x35f   :  { %6429 = vmatpush3.bf16.msra.mxu1 %v1506_v40  ;;  %v8036_v41 = vpop.permute.xlu1 %1697 }
 0x360   :  { %6890 = vmatprep.subr.msk.bf16.mxu0 %vm478_vm0, %v8036_v41 }
 0x362   :  { %6407 = vmatmul.mubr.msk.bf16.gmra.mrb[60].mxu1 %vm478_vm0, %v1136_v36 }
 0x363   :  { %v1508_v25 = vpop.permute.xlu1 %1507 }
 0x364   :  { %6430 = vmatprep.subr.bf16.mxu1 %v1508_v25 }
 0x365   :  { %6431 = vmatpush3.bf16.msra.mxu1 %v1508_v25 }
 0x366   :  { %6432 = vmatprep.subr.bf16.mxu1 %v1510_v43 }
 0x369   :  { %6433 = vmatpush3.bf16.msra.mxu1 %v1510_v43 }
 0x36a   :  { %6894 = vmatprep.subr.msk.bf16.mxu1 %vm478_vm0, %v8043_v12 }
 0x3a8   :  { %v8047_v11 = vpop.f32.mrb[40].mxu1 }
 0x3a9   :  { %10805 = vst [vmem:[#allocation29_spill] sm:$0xff] %v8047_v11  ;;  %v8049_v15 = vpop.f32.mrb[41].mxu1 }
 0x3aa   :  { %10806 = vst [vmem:[#allocation30_spill] sm:$0xff] %v8049_v15  ;;  %v8051_v3 = vpop.f32.mrb[42].mxu1 }
 0x3ab   :  { %10807 = vst [vmem:[#allocation31_spill] sm:$0xff] %v8051_v3  ;;  %v8053_v17 = vpop.f32.mrb[43].mxu1  ;;  %v1704_v3 = vpop.permute.xlu0 %1703 }
 0x3ac   :  { %10808 = vst [vmem:[#allocation32_spill] sm:$0xff] %v8053_v17 }
 0x3e6   :  { %v8055_v26 = vpop.f32.mrb[24].mxu0 }
 0x3e7   :  { %v8057_v51 = vpop.f32.mrb[25].mxu0  ;;  %v1244_v54 = vsel %vm657_vm1, %v8055_v26, -inf }
 0x3e8   :  { %1245 = vmax.xlane.f32.xlu0 %v1244_v54  ;;  %v8061_v32 = vpop.f32.mrb[26].mxu0  ;;  %v1238_v22 = vsel %vm657_vm1, %v8057_v51, -inf }
 0x3e9   :  { %v8063_v21 = vpop.f32.mrb[27].mxu0  ;;  %v1247_v63 = vsel %vm657_vm1, %v8061_v32, -inf }
 0x3ea   :  { %v1241_v57 = vsel %vm657_vm1, %v8063_v21, -inf }
 0x3eb   :  { %1242 = vmax.xlane.f32.xlu1 %v1241_v57 }
 0x3ec   :  { %1239 = vmax.xlane.f32.xlu0 %v1238_v22 }
 0x3f0   :  { %v8071_v27 = vpop.f32.mrb[44].mxu1  ;;  %1248 = vmax.xlane.f32.xlu0 %v1247_v63 }
 0x3f1   :  { %10809 = vst [vmem:[#allocation33_spill] sm:$0xff] %v8071_v27  ;;  %v8073_v18 = vpop.f32.mrb[45].mxu1 }
 0x3f2   :  { %10810 = vst [vmem:[#allocation34_spill] sm:$0xff] %v8073_v18  ;;  %v8075_v36 = vpop.f32.mrb[46].mxu1 }
 0x3f3   :  { %10811 = vst [vmem:[#allocation35_spill] sm:$0xff] %v8075_v36  ;;  %v8077_v13 = vpop.f32.mrb[47].mxu1  ;;  %v1702_v36 = vpop.permute.xlu1 %1701 }
 0x3f4   :  { %10812 = vst [vmem:[#allocation36_spill] sm:$0xff] %v8077_v13 }
 0x3f7   :  { %v8147_v17 = vpop.permute.xlu1 %1804 }
 0x3f8   :  { %v8079_v29 = vpop.f32.mrb[48].mxu1 }
 0x3f9   :  { %10813 = vst [vmem:[#allocation37_spill] sm:$0xff] %v8079_v29  ;;  %v8081_v39 = vpop.f32.mrb[49].mxu1 }
 0x3fa   :  { %10814 = vst [vmem:[#allocation38_spill] sm:$0xff] %v8081_v39  ;;  %v8083_v40 = vpop.f32.mrb[50].mxu1 }
 0x3fb   :  { %10815 = vst [vmem:[#allocation39_spill] sm:$0xff] %v8083_v40  ;;  %v8085_v43 = vpop.f32.mrb[51].mxu1 }
 0x3fc   :  { %10816 = vst [vmem:[#allocation40_spill] sm:$0xff] %v8085_v43 }
 0x41f   :  { %v8087_v25 = vpop.f32.mrb[28].mxu0 }
 0x420   :  { %v8089_v54 = vpop.f32.mrb[29].mxu0  ;;  %v1256_v57 = vsel %vm657_vm1, %v8087_v25, -inf }
 0x421   :  { %1257 = vmax.xlane.f32.xlu0 %v1256_v57  ;;  %v8093_v22 = vpop.f32.mrb[30].mxu0  ;;  %v1250_v63 = vsel %vm657_vm1, %v8089_v54, -inf }
 0x422   :  { %1251 = vmax.xlane.f32.xlu1 %v1250_v63  ;;  %v8097_v8 = vpop.f32.mrb[31].mxu0  ;;  %v1259_v39 = vsel %vm657_vm1, %v8093_v22, -inf }
 0x423   :  { %v1253_v35 = vsel %vm657_vm1, %v8097_v8, -inf }
 0x425   :  { %v8101_v29 = vpop.f32.mrb[52].mxu1  ;;  %1254 = vmax.xlane.f32.xlu0 %v1253_v35 }
 0x426   :  { %10817 = vst [vmem:[#allocation41_spill] sm:$0xff] %v8101_v29  ;;  %v8105_v27 = vpop.f32.mrb[53].mxu1  ;;  %1260 = vmax.xlane.f32.xlu1 %v1259_v39 }
 0x427   :  { %10818 = vst [vmem:[#allocation42_spill] sm:$0xff] %v8105_v27  ;;  %v8107_v57 = vpop.f32.mrb[54].mxu1 }
 0x428   :  { %10819 = vst [vmem:[#allocation43_spill] sm:$0xff] %v8107_v57  ;;  %v8109_v18 = vpop.f32.mrb[55].mxu1 }
 0x429   :  { %10820 = vst [vmem:[#allocation44_spill] sm:$0xff] %v8109_v18 }
 0x42d   :  { %v8111_v11 = vpop.f32.mrb[56].mxu1 }
 0x42e   :  { %v8113_v63 = vpop.f32.mrb[57].mxu1  ;;  %v1268_v15 = vsel %vm657_vm1, %v8111_v11, -inf }
 0x42f   :  { %v8117_v40 = vpop.f32.mrb[58].mxu1  ;;  %1269 = vmax.xlane.f32.xlu0 %v1268_v15  ;;  %v1262_v35 = vsel %vm657_vm1, %v8113_v63, -inf }
 0x430   :  { %v8121_v29 = vpop.f32.mrb[59].mxu1  ;;  %1263 = vmax.xlane.f32.xlu1 %v1262_v35  ;;  %v1271_v57 = vsel %vm657_vm1, %v8117_v40, -inf }
 0x431   :  { %v1265_v39 = vsel %vm657_vm1, %v8121_v29, -inf }
 0x433   :  { %1266 = vmax.xlane.f32.xlu0 %v1265_v39 }
 0x434   :  { %1272 = vmax.xlane.f32.xlu1 %v1271_v57 }
 0x435   :  { %v8127_v27 = vpop.f32.mrb[60].mxu1 }
 0x436   :  { %v8129_v18 = vpop.f32.mrb[61].mxu1  ;;  %v1280_v57 = vsel %vm657_vm1, %v8127_v27, -inf }
 0x437   :  { %v8131_v43 = vpop.f32.mrb[62].mxu1  ;;  %v1274_v39 = vsel %vm657_vm1, %v8129_v18, -inf }
 0x438   :  { %v8133_v15 = vpop.f32.mrb[63].mxu1  ;;  %v1283_v13 = vsel %vm657_vm1, %v8131_v43, -inf }
 0x439   :  { %v1277_v35 = vsel %vm657_vm1, %v8133_v15, -inf }
 0x445   :  { %1691 = vrot.lane.b32.xlu1 %v7712_v5, %s7612_s29 }
 0x449   :  { %1689 = vrot.lane.b32.xlu0 %v7692_v55, %s7612_s29 }
 0x468   :  { %1278 = vmax.xlane.f32.xlu0 %v1277_v35 }
 0x469   :  { %1281 = vmax.xlane.f32.xlu1 %v1280_v57 }
 0x46d   :  { %1275 = vmax.xlane.f32.xlu1 %v1274_v39 }
 0x471   :  { %1284 = vmax.xlane.f32.xlu1 %v1283_v13 }
 0x475   :  { %v1246_v28 = vpop.xlane.xlu0 %1245 }
 0x476   :  { %v1288_v35 = vsub.f32 %v8055_v26, %v1246_v28  ;;  %v1718_v28 = vsel %vm478_vm0, %v8036_v41, 0  ;;  %v1724_v41 = vsel %vm478_vm0, %v1702_v36, 0 }
 0x478   :  { %v1243_v48 = vpop.xlane.xlu1 %1242  ;;  %v1306_v39 = vmul.f32 1.442695, %v1288_v35 }
 0x479   :  { %v1287_v61 = vsub.f32 %v8063_v21, %v1243_v48  ;;  %v1240_v31 = vpop.xlane.xlu0 %1239 }
 0x47a   :  { %v1286_v57 = vsub.f32 %v8057_v51, %v1240_v31 }
 0x47b   :  { %v1304_v16 = vmul.f32 1.442695, %v1287_v61 }
 0x47c   :  { %v1302_v45 = vmul.f32 1.442695, %v1286_v57 }
 0x47d   :  { %7027 = vpow2.f32 %v1304_v16  ;;  %v1249_v53 = vpop.xlane.xlu0 %1248 }
 0x47e   :  { %7029 = vpow2.f32 %v1302_v45  ;;  %v1289_v7 = vsub.f32 %v8061_v32, %v1249_v53  ;;  %1806 = vrot.lane.b32.xlu0 %v7734_v24, %s7612_s29 }
 0x47f   :  { %7031 = vpow2.f32 %v1306_v39 }
 0x480   :  { %v1308_v13 = vmul.f32 1.442695, %v1289_v7  ;;  %v1721_v7 = vsel %vm478_vm0, %v8041_v30, 0 }
 0x482   :  { %7033 = vpow2.f32 %v1308_v13  ;;  %1808 = vrot.lane.b32.xlu1 %v7750_v38, %s7612_s29  ;;  %1794 = vrot.lane.b32.xlu0 %v7694_v56, %s7612_s29 }
 0x486   :  { %1796 = vrot.lane.b32.xlu1 %v7714_v6, %s7612_s29  ;;  %1693 = vrot.lane.b32.xlu0 %v7728_v19, %s7612_s29 }
 0x487   :  { %v8163_v45 = vpop.eup %7027 }
 0x488   :  { %v8165_v48 = vpop.eup %7029 }
 0x489   :  { %10821 = vst [vmem:[#allocation45_spill] sm:$0xff] %v8165_v48  ;;  %v1398_v53 = vpack.c.bf16 %v8163_v45, %v8165_v48  ;;  %v8173_v61 = vpop.eup %7031 }
 0x48a   :  { %1695 = vrot.lane.b32.xlu1 %v7744_v33, %s7612_s29  ;;  %1798 = vrot.lane.b32.xlu0 %v7730_v20, %s7612_s29  ;;  %10822 = vst [vmem:[#allocation46_spill] sm:$0xff] %v8173_v61 }
 0x48b   :  { %6418 = vmatprep.mubr.msk.bf16.mxu0 %vm657_vm1, %v1398_v53 }
 0x48c   :  { %v8176_v31 = vpop.eup %7033 }
 0x48d   :  { %10823 = vst [vmem:[#allocation47_spill] sm:$0xff] %v8176_v31  ;;  %v1399_v16 = vpack.c.bf16 %v8176_v31, %v8173_v61 }
 0x48e   :  { %1800 = vrot.lane.b32.xlu1 %v7746_v34, %s7612_s29  ;;  %2067 = vrot.lane.b32.xlu0 %v7762_v46, %s7612_s29 }
 0x48f   :  { %6419 = vmatmul.mubr.msk.bf16.vlgmr.msra.gmra.mrb[32].mxu0 %vm657_vm1, %v1399_v16 }
 0x490   :  { %6443 = vmatpush3.bf16.xpose.msra.mxu0 %v1718_v28 }
 0x491   :  { %6891 = vmatprep.subr.msk.bf16.mxu0 %vm478_vm0, %v8041_v30  ;;  %v1727_v30 = vsel %vm478_vm0, %v1704_v3, 0 }
 0x492   :  { %2069 = vrot.lane.b32.xlu1 %v7760_v44, %s7612_s29  ;;  %2071 = vrot.lane.b32.xlu0 %v7777_v52, %s7612_s29 }
 0x496   :  { %2073 = vrot.lane.b32.xlu1 %v7775_v50, %s7612_s29  ;;  %2156 = vrot.lane.b32.xlu0 %v7790_v62, %s7612_s29 }
 0x498   :  { %6445 = vmatpush3.bf16.xpose.msra.mxu0 %v1721_v7 }
 0x499   :  { %6892 = vmatprep.subr.msk.bf16.mxu0 %vm478_vm0, %v1702_v36 }
 0x49a   :  { %2158 = vrot.lane.b32.xlu1 %v7787_v58, %s7612_s29  ;;  %2162 = vrot.lane.b32.xlu0 %v7793_v2, %s7612_s29 }
 0x49e   :  { %2350 = vrot.lane.b32.xlu1 %v7696_v59, %s7613_s30  ;;  %2352 = vrot.lane.b32.xlu0 %v7716_v9, %s7613_s30 }
 0x4a0   :  { %6447 = vmatpush3.bf16.xpose.msra.mxu0 %v1724_v41 }
 0x4a1   :  { %6893 = vmatprep.subr.msk.bf16.mxu0 %vm478_vm0, %v1704_v3 }
 0x4a2   :  { %2160 = vrot.lane.b32.xlu1 %v7795_v4, %s7612_s29  ;;  %2455 = vrot.lane.b32.xlu0 %v7698_v60, %s7613_s30 }
 0x4a6   :  { %2354 = vrot.lane.b32.xlu1 %v7732_v23, %s7613_s30  ;;  %2356 = vrot.lane.b32.xlu0 %v7748_v37, %s7613_s30 }
 0x4a8   :  { %6449 = vmatpush3.bf16.xpose.msra.mxu0 %v1727_v30 }
 0x4aa   :  { %2457 = vrot.lane.b32.xlu1 %v7718_v10, %s7613_s30 }
 0x4ae   :  { %v1258_v26 = vpop.xlane.xlu0 %1257 }
 0x4af   :  { %v1292_v51 = vsub.f32 %v8087_v25, %v1258_v26  ;;  %v1252_v32 = vpop.xlane.xlu1 %1251 }
 0x4b0   :  { %v1290_v21 = vsub.f32 %v8089_v54, %v1252_v32 }
 0x4b1   :  { %v1314_v36 = vmul.f32 1.442695, %v1292_v51 }
 0x4b2   :  { %v1310_v35 = vmul.f32 1.442695, %v1290_v21  ;;  %v1255_v57 = vpop.xlane.xlu0 %1254 }
 0x4b3   :  { %v1291_v39 = vsub.f32 %v8097_v8, %v1255_v57  ;;  %v1261_v13 = vpop.xlane.xlu1 %1260  ;;  %7035 = vpow2.f32 %v1314_v36 }
 0x4b4   :  { %v1293_v53 = vsub.f32 %v8093_v22, %v1261_v13  ;;  %7037 = vpow2.f32 %v1310_v35 }
 0x4b5   :  { %v1312_v3 = vmul.f32 1.442695, %v1291_v39 }
 0x4b6   :  { %v1316_v16 = vmul.f32 1.442695, %v1293_v53 }
 0x4b7   :  { %7039 = vpow2.f32 %v1312_v3 }
 0x4b8   :  { %7041 = vpow2.f32 %v1316_v16 }
 0x4bc   :  { %v1270_v28 = vpop.xlane.xlu0 %1269 }
 0x4bd   :  { %v1296_v25 = vsub.f32 %v8111_v11, %v1270_v28  ;;  %v1264_v7 = vpop.xlane.xlu1 %1263  ;;  %v8227_v41 = vpop.eup %7035 }
 0x4be   :  { %v1294_v54 = vsub.f32 %v8113_v63, %v1264_v7  ;;  %10824 = vst [vmem:[#allocation48_spill] sm:$0xff] %v8227_v41  ;;  %v8229_v26 = vpop.eup %7037  ;;  %v1823_v7 = vsel %vm478_vm0, %v8043_v12, 0 }
 0x4bf   :  { %v1322_v30 = vmul.f32 1.442695, %v1296_v25  ;;  %10825 = vst [vmem:[#allocation49_spill] sm:$0xff] %v8229_v26 }
 0x4c0   :  { %v1318_v8 = vmul.f32 1.442695, %v1294_v54  ;;  %v1267_v51 = vpop.xlane.xlu0 %1266  ;;  %v1826_v54 = vsel %vm478_vm0, %v8147_v17, 0 }
 0x4c1   :  { %v8231_v22 = vpop.eup %7039  ;;  %v1295_v32 = vsub.f32 %v8121_v29, %v1267_v51  ;;  %v1273_v21 = vpop.xlane.xlu1 %1272  ;;  %7043 = vpow2.f32 %v1322_v30 }
 0x4c2   :  { %10826 = vst [vmem:[#allocation50_spill] sm:$0xff] %v8231_v22  ;;  %v8234_v36 = vpop.eup %7041  ;;  %v1297_v35 = vsub.f32 %v8117_v40, %v1273_v21  ;;  %v1400_v11 = vpack.c.bf16 %v8231_v22, %v8229_v26  ;;  %7045 = vpow2.f32 %v1318_v8 }
 0x4c3   :  { %10827 = vst [vmem:[#allocation51_spill] sm:$0xff] %v8234_v36  ;;  %v1320_v63 = vmul.f32 1.442695, %v1295_v32  ;;  %v1401_v57 = vpack.c.bf16 %v8234_v36, %v8227_v41 }
 0x4c4   :  { %v1324_v39 = vmul.f32 1.442695, %v1297_v35  ;;  %v1690_v13 = vpop.permute.xlu0 %1689  ;;  %6422 = vmatprep.mubr.msk.bf16.mxu0 %vm657_vm1, %v1400_v11 }
 0x4c5   :  { %7047 = vpow2.f32 %v1320_v63  ;;  %6423 = vmatmul.mubr.msk.bf16.gmra.mrb[36].mxu0 %vm657_vm1, %v1401_v57  ;;  %v1692_v29 = vpop.permute.xlu1 %1691 }
 0x4c6   :  { %7049 = vpow2.f32 %v1324_v39  ;;  %6450 = vmatprep.mubr.msk.bf16.mxu0 %vm478_vm0, %v1690_v13 }
 0x4cb   :  { %v8244_v40 = vpop.eup %7043 }
 0x4cc   :  { %10828 = vst [vmem:[#allocation52_spill] sm:$0xff] %v8244_v40  ;;  %v8247_v53 = vpop.eup %7045 }
 0x4cd   :  { %6451 = vmatmul.mubr.msk.bf16.vlgmr.msra.gmra.mrb[40].mxu0 %vm478_vm0, %v1692_v29  ;;  %10829 = vst [vmem:[#allocation53_spill] sm:$0xff] %v8247_v53 }
 0x4cf   :  { %v8249_v3 = vpop.eup %7047 }
 0x4d0   :  { %10830 = vst [vmem:[#allocation54_spill] sm:$0xff] %v8249_v3  ;;  %v8251_v16 = vpop.eup %7049  ;;  %v1402_v28 = vpack.c.bf16 %v8249_v3, %v8247_v53 }
 0x4d1   :  { %10831 = vst [vmem:[#allocation55_spill] sm:$0xff] %v8251_v16  ;;  %v1403_v25 = vpack.c.bf16 %v8251_v16, %v8244_v40 }
 0x4d2   :  { %6434 = vmatprep.mubr.msk.bf16.mxu1 %vm657_vm1, %v1402_v28 }
 0x4d3   :  { %6435 = vmatmul.mubr.msk.bf16.vlgmr.msra.gmra.mrb[64].mxu1 %vm657_vm1, %v1403_v25 }
 0x4d4   :  { %6459 = vmatpush3.bf16.xpose.msra.mxu1 %v1823_v7 }
 0x4d5   :  { %6895 = vmatprep.subr.msk.bf16.mxu1 %vm478_vm0, %v8147_v17 }
 0x4dc   :  { %6461 = vmatpush3.bf16.xpose.msra.mxu1 %v1826_v54 }
 0x4f5   :  { %v1279_v30 = vpop.xlane.xlu0 %1278 }
 0x4f6   :  { %v1299_v8 = vsub.f32 %v8133_v15, %v1279_v30  ;;  %v1282_v51 = vpop.xlane.xlu1 %1281 }
 0x4f7   :  { %v1300_v35 = vsub.f32 %v8127_v27, %v1282_v51 }
 0x4f8   :  { %v1328_v21 = vmul.f32 1.442695, %v1299_v8 }
 0x4f9   :  { %v1807_v32 = vpop.permute.xlu0 %1806  ;;  %v1330_v17 = vmul.f32 1.442695, %v1300_v35 }
 0x4fa   :  { %6896 = vmatprep.subr.msk.bf16.mxu1 %vm478_vm0, %v1807_v32  ;;  %v1276_v11 = vpop.xlane.xlu1 %1275  ;;  %v1829_v12 = vsel %vm478_vm0, %v1807_v32, 0  ;;  %7051 = vpow2.f32 %v1328_v21 }
 0x4fb   :  { %v1298_v63 = vsub.f32 %v8129_v18, %v1276_v11  ;;  %6463 = vmatpush3.bf16.xpose.msra.mxu1 %v1829_v12 }
 0x4fd   :  { %v1326_v57 = vmul.f32 1.442695, %v1298_v63  ;;  %v1795_v39 = vpop.permute.xlu0 %1794 }
 0x4fe   :  { %v1285_v13 = vpop.xlane.xlu1 %1284 }
 0x4ff   :  { %7053 = vpow2.f32 %v1326_v57  ;;  %v1301_v15 = vsub.f32 %v8131_v43, %v1285_v13 }
 0x500   :  { %7055 = vpow2.f32 %v1330_v17 }
 0x501   :  { %v1332_v29 = vmul.f32 1.442695, %v1301_v15  ;;  %v1694_v28 = vpop.permute.xlu0 %1693 }
 0x502   :  { %6454 = vmatprep.mubr.msk.bf16.mxu0 %vm478_vm0, %v1694_v28  ;;  %v1809_v27 = vpop.permute.xlu1 %1808 }
 0x503   :  { %7057 = vpow2.f32 %v1332_v29  ;;  %6897 = vmatprep.subr.msk.bf16.mxu1 %vm478_vm0, %v1809_v27  ;;  %v1832_v18 = vsel %vm478_vm0, %v1809_v27, 0 }
 0x504   :  { %6465 = vmatpush3.bf16.xpose.msra.mxu1 %v1832_v18  ;;  %v8274_v54 = vpop.eup %7051 }
 0x505   :  { %v1799_v25 = vpop.permute.xlu0 %1798  ;;  %10832 = vst [vmem:[#allocation56_spill] sm:$0xff] %v8274_v54 }
 0x506   :  { %v1797_v7 = vpop.permute.xlu1 %1796 }
 0x509   :  { %v8276_v30 = vpop.eup %7053  ;;  %v2068_v8 = vpop.permute.xlu0 %2067 }
 0x50a   :  { %10833 = vst [vmem:[#allocation57_spill] sm:$0xff] %v8276_v30  ;;  %6474 = vmatprep.subr.bf16.mxu0 %v2068_v8  ;;  %v1696_v43 = vpop.permute.xlu1 %1695  ;;  %v1404_v51 = vpack.c.bf16 %v8274_v54, %v8276_v30  ;;  %v8281_v32 = vpop.eup %7055 }
 0x50b   :  { %6455 = vmatmul.mubr.msk.bf16.gmra.mrb[44].mxu0 %vm478_vm0, %v1696_v43  ;;  %10834 = vst [vmem:[#allocation58_spill] sm:$0xff] %v8281_v32 }
 0x50c   :  { %6475 = vmatpush3.bf16.msra.mxu0 %v2068_v8  ;;  %6438 = vmatprep.mubr.msk.bf16.mxu1 %vm657_vm1, %v1404_v51 }
 0x50d   :  { %v8284_v21 = vpop.eup %7057  ;;  %v2072_v35 = vpop.permute.xlu0 %2071 }
 0x50e   :  { %10835 = vst [vmem:[#allocation59_spill] sm:$0xff] %v8284_v21  ;;  %v1801_v11 = vpop.permute.xlu1 %1800  ;;  %v1405_v12 = vpack.c.bf16 %v8284_v21, %v8281_v32 }
 0x510   :  { %6439 = vmatmul.mubr.msk.bf16.gmra.mrb[68].mxu1 %vm657_vm1, %v1405_v12 }
 0x511   :  { %v2157_v63 = vpop.permute.xlu0 %2156  ;;  %6466 = vmatprep.mubr.msk.bf16.mxu1 %vm478_vm0, %v1795_v39 }
 0x512   :  { %6490 = vmatprep.subr.bf16.mxu1 %v2157_v63  ;;  %v2070_v57 = vpop.permute.xlu1 %2069 }
 0x513   :  { %6476 = vmatprep.subr.bf16.mxu0 %v2070_v57 }
 0x514   :  { %6477 = vmatpush3.bf16.msra.mxu0 %v2070_v57 }
 0x515   :  { %6478 = vmatprep.subr.bf16.mxu0 %v2072_v35  ;;  %v2163_v15 = vpop.permute.xlu0 %2162 }
 0x516   :  { %v2074_v17 = vpop.permute.xlu1 %2073 }
 0x518   :  { %6467 = vmatmul.mubr.msk.bf16.vlgmr.msra.gmra.mrb[72].mxu1 %vm478_vm0, %v1797_v7  ;;  %6479 = vmatpush3.bf16.msra.mxu0 %v2072_v35 }
 0x519   :  { %6491 = vmatpush3.bf16.msra.mxu1 %v2157_v63  ;;  %6470 = vmatprep.mubr.msk.bf16.mxu1 %vm478_vm0, %v1799_v25  ;;  %v8297_v39 = vpop.permute.xlu0 %2352 }
 0x51a   :  { %6480 = vmatprep.subr.bf16.mxu0 %v2074_v17  ;;  %v2159_v13 = vpop.permute.xlu1 %2158 }
 0x51b   :  { %6492 = vmatprep.subr.bf16.mxu1 %v2159_v13 }
 0x51c   :  { %6481 = vmatpush3.bf16.msra.mxu0 %v2074_v17 }
 0x51d   :  { %6493 = vmatpush3.bf16.msra.mxu1 %v2159_v13  ;;  %v8299_v27 = vpop.permute.xlu0 %2455 }
 0x51e   :  { %v8292_v29 = vpop.permute.xlu1 %2350 }
 0x51f   :  { %6898 = vmatprep.subr.msk.bf16.mxu0 %vm478_vm0, %v8292_v29 }
 0x520   :  { %6471 = vmatmul.mubr.msk.bf16.gmra.mrb[76].mxu1 %vm478_vm0, %v1801_v11 }
 0x521   :  { %v2357_v47 = vpop.permute.xlu0 %2356 }
 0x522   :  { %v2161_v28 = vpop.permute.xlu1 %2160 }
 0x523   :  { %6494 = vmatprep.subr.bf16.mxu1 %v2161_v28 }
 0x524   :  { %6495 = vmatpush3.bf16.msra.mxu1 %v2161_v28 }
 0x525   :  { %6496 = vmatprep.subr.bf16.mxu1 %v2163_v15 }
 0x528   :  { %6497 = vmatpush3.bf16.msra.mxu1 %v2163_v15 }
 0x529   :  { %6902 = vmatprep.subr.msk.bf16.mxu1 %vm478_vm0, %v8299_v27 }
 0x562   :  { %v8303_v18 = vpop.f32.mrb[32].mxu0 }
 0x563   :  { %10836 = vst [vmem:[#allocation60_spill] sm:$0xff] %v8303_v18  ;;  %v8305_v25 = vpop.f32.mrb[33].mxu0 }
 0x564   :  { %10837 = vst [vmem:[#allocation61_spill] sm:$0xff] %v8305_v25  ;;  %v8307_v7 = vpop.f32.mrb[34].mxu0 }
 0x565   :  { %10838 = vst [vmem:[#allocation62_spill] sm:$0xff] %v8307_v7  ;;  %v8309_v8 = vpop.f32.mrb[35].mxu0 }
 0x566   :  { %10839 = vst [vmem:[#allocation63_spill] sm:$0xff] %v8309_v8 }
 0x598   :  { %v8311_v43 = vpop.f32.mrb[36].mxu0 }
 0x599   :  { %10840 = vst [vmem:[#allocation64_spill] sm:$0xff] %v8311_v43  ;;  %v8313_v51 = vpop.f32.mrb[37].mxu0 }
 0x59a   :  { %10841 = vst [vmem:[#allocation65_spill] sm:$0xff] %v8313_v51  ;;  %v8315_v35 = vpop.f32.mrb[38].mxu0 }
 0x59b   :  { %10842 = vst [vmem:[#allocation66_spill] sm:$0xff] %v8315_v35  ;;  %v8317_v11 = vpop.f32.mrb[39].mxu0 }
 0x59c   :  { %10843 = vst [vmem:[#allocation67_spill] sm:$0xff] %v8317_v11 }
 0x5a0   :  { %v8319_v12 = vpop.f32.mrb[40].mxu0 }
 0x5a1   :  { %v8321_v63 = vpop.f32.mrb[41].mxu0  ;;  %v1905_v57 = vsel %vm657_vm1, %v8319_v12, -inf }
 0x5a2   :  { %1906 = vmax.xlane.f32.xlu0 %v1905_v57  ;;  %v8325_v17 = vpop.f32.mrb[42].mxu0  ;;  %v1899_v28 = vsel %vm657_vm1, %v8321_v63, -inf }
 0x5a3   :  { %v1766_v13 = vpop.f32.mrb[43].mxu0  ;;  %v1908_v57 = vsel %vm657_vm1, %v8325_v17, -inf }
 0x5a4   :  { %v1902_v15 = vsel %vm657_vm1, %v1766_v13, -inf }
 0x5a5   :  { %1903 = vmax.xlane.f32.xlu1 %v1902_v15 }
 0x5a6   :  { %v8330_v35 = vpop.f32.mrb[64].mxu1  ;;  %1900 = vmax.xlane.f32.xlu0 %v1899_v28 }
 0x5a7   :  { %10844 = vst [vmem:[#allocation68_spill] sm:$0xff] %v8330_v35  ;;  %v8332_v11 = vpop.f32.mrb[65].mxu1 }
 0x5a8   :  { %10845 = vst [vmem:[#allocation69_spill] sm:$0xff] %v8332_v11  ;;  %v8334_v43 = vpop.f32.mrb[66].mxu1 }
 0x5a9   :  { %10846 = vst [vmem:[#allocation70_spill] sm:$0xff] %v8334_v43  ;;  %v8336_v51 = vpop.f32.mrb[67].mxu1 }
 0x5aa   :  { %10847 = vst [vmem:[#allocation71_spill] sm:$0xff] %v8336_v51  ;;  %1909 = vmax.xlane.f32.xlu0 %v1908_v57 }
 0x5de   :  { %v8340_v7 = vpop.f32.mrb[44].mxu0 }
 0x5df   :  { %v8342_v18 = vpop.f32.mrb[45].mxu0  ;;  %v1917_v15 = vsel %vm657_vm1, %v8340_v7, -inf }
 0x5e0   :  { %1918 = vmax.xlane.f32.xlu0 %v1917_v15  ;;  %v8346_v35 = vpop.f32.mrb[46].mxu0  ;;  %v1911_v28 = vsel %vm657_vm1, %v8342_v18, -inf }
 0x5e1   :  { %1912 = vmax.xlane.f32.xlu1 %v1911_v28  ;;  %v8350_v43 = vpop.f32.mrb[47].mxu0  ;;  %v1920_v25 = vsel %vm657_vm1, %v8346_v35, -inf }
 0x5e2   :  { %v1914_v51 = vsel %vm657_vm1, %v8350_v43, -inf }
 0x5e3   :  { %v8354_v57 = vpop.f32.mrb[68].mxu1 }
 0x5e4   :  { %10848 = vst [vmem:[#allocation72_spill] sm:$0xff] %v8354_v57  ;;  %v8356_v11 = vpop.f32.mrb[69].mxu1  ;;  %1915 = vmax.xlane.f32.xlu0 %v1914_v51 }
 0x5e5   :  { %10849 = vst [vmem:[#allocation73_spill] sm:$0xff] %v8356_v11  ;;  %v8360_v15 = vpop.f32.mrb[70].mxu1  ;;  %1921 = vmax.xlane.f32.xlu1 %v1920_v25 }
 0x5e6   :  { %10850 = vst [vmem:[#allocation74_spill] sm:$0xff] %v8360_v15  ;;  %v8362_v49 = vpop.f32.mrb[71].mxu1 }
 0x5e7   :  { %10851 = vst [vmem:[#allocation75_spill] sm:$0xff] %v8362_v49 }
 0x5eb   :  { %v8364_v0 = vpop.f32.mrb[72].mxu1 }
 0x5ec   :  { %v8366_v28 = vpop.f32.mrb[73].mxu1  ;;  %v1929_v32 = vsel %vm657_vm1, %v8364_v0, -inf }
 0x5ed   :  { %v8370_v14 = vpop.f32.mrb[74].mxu1  ;;  %1930 = vmax.xlane.f32.xlu0 %v1929_v32  ;;  %v1923_v51 = vsel %vm657_vm1, %v8366_v28, -inf }
 0x5ee   :  { %v8374_v57 = vpop.f32.mrb[75].mxu1  ;;  %1924 = vmax.xlane.f32.xlu1 %v1923_v51  ;;  %v1932_v15 = vsel %vm657_vm1, %v8370_v14, -inf }
 0x5ef   :  { %v1926_v25 = vsel %vm657_vm1, %v8374_v57, -inf }
 0x5f1   :  { %1927 = vmax.xlane.f32.xlu0 %v1926_v25  ;;  %v2355_v25 = vpop.permute.xlu1 %2354 }
 0x5f2   :  { %1933 = vmax.xlane.f32.xlu1 %v1932_v15 }
 0x5f3   :  { %v8380_v49 = vpop.f32.mrb[76].mxu1 }
 0x5f4   :  { %v8382_v11 = vpop.f32.mrb[77].mxu1  ;;  %v1941_v15 = vsel %vm657_vm1, %v8380_v49, -inf }
 0x5f5   :  { %v8384_v30 = vpop.f32.mrb[78].mxu1  ;;  %v1935_v42 = vsel %vm657_vm1, %v8382_v11, -inf  ;;  %v8398_v1 = vpop.permute.xlu1 %2457 }
 0x5f6   :  { %v8386_v32 = vpop.f32.mrb[79].mxu1  ;;  %v1944_v8 = vsel %vm657_vm1, %v8384_v30, -inf }
 0x5f7   :  { %v1938_v51 = vsel %vm657_vm1, %v8386_v32, -inf }
 0x603   :  { %2344 = vrot.lane.b32.xlu1 %v7712_v5, %s7613_s30 }
 0x607   :  { %2342 = vrot.lane.b32.xlu0 %v7692_v55, %s7613_s30 }
 0x626   :  { %1939 = vmax.xlane.f32.xlu0 %v1938_v51 }
 0x627   :  { %1942 = vmax.xlane.f32.xlu1 %v1941_v15 }
 0x62b   :  { %1936 = vmax.xlane.f32.xlu1 %v1935_v42 }
 0x62f   :  { %v1907_v40 = vpop.xlane.xlu0 %1906  ;;  %1945 = vmax.xlane.f32.xlu1 %v1944_v8 }
 0x630   :  { %v1949_v51 = vsub.f32 %v8319_v12, %v1907_v40 }
 0x632   :  { %v1904_v53 = vpop.xlane.xlu1 %1903  ;;  %v1967_v26 = vmul.f32 1.442695, %v1949_v51 }
 0x633   :  { %v1948_v21 = vsub.f32 %v1766_v13, %v1904_v53  ;;  %v1901_v54 = vpop.xlane.xlu0 %1900 }
 0x634   :  { %v1947_v15 = vsub.f32 %v8321_v63, %v1901_v54  ;;  %v2374_v54 = vsel %vm478_vm0, %v8297_v39, 0 }
 0x635   :  { %v1965_v41 = vmul.f32 1.442695, %v1948_v21  ;;  %v2377_v21 = vsel %vm478_vm0, %v2355_v25, 0 }
 0x636   :  { %v1963_v16 = vmul.f32 1.442695, %v1947_v15 }
 0x637   :  { %7059 = vpow2.f32 %v1965_v41  ;;  %v1910_v3 = vpop.xlane.xlu0 %1909 }
 0x638   :  { %7061 = vpow2.f32 %v1963_v16  ;;  %v1950_v42 = vsub.f32 %v8325_v17, %v1910_v3  ;;  %v2371_v16 = vsel %vm478_vm0, %v8292_v29, 0  ;;  %v2380_v29 = vsel %vm478_vm0, %v2357_v47, 0 }
 0x639   :  { %7063 = vpow2.f32 %v1967_v26 }
 0x63a   :  { %v1969_v31 = vmul.f32 1.442695, %v1950_v42 }
 0x63c   :  { %7065 = vpow2.f32 %v1969_v31  ;;  %2459 = vrot.lane.b32.xlu0 %v7734_v24, %s7613_s30 }
 0x640   :  { %2461 = vrot.lane.b32.xlu1 %v7750_v38, %s7613_s30  ;;  %2447 = vrot.lane.b32.xlu0 %v7694_v56, %s7613_s30 }
 0x641   :  { %v8411_v40 = vpop.eup %7059 }
 0x642   :  { %v8413_v53 = vpop.eup %7061 }
 0x643   :  { %10852 = vst [vmem:[#allocation76_spill] sm:$0xff] %v8413_v53  ;;  %v2059_v41 = vpack.c.bf16 %v8411_v40, %v8413_v53  ;;  %v8421_v31 = vpop.eup %7063 }
 0x644   :  { %2449 = vrot.lane.b32.xlu1 %v7714_v6, %s7613_s30  ;;  %2346 = vrot.lane.b32.xlu0 %v7728_v19, %s7613_s30  ;;  %10853 = vst [vmem:[#allocation77_spill] sm:$0xff] %v8421_v31 }
 0x645   :  { %6482 = vmatprep.mubr.msk.bf16.mxu0 %vm657_vm1, %v2059_v41 }
 0x646   :  { %v8424_v26 = vpop.eup %7065 }
 0x647   :  { %v2060_v3 = vpack.c.bf16 %v8424_v26, %v8421_v31 }
 0x648   :  { %2348 = vrot.lane.b32.xlu1 %v7744_v33, %s7613_s30  ;;  %2451 = vrot.lane.b32.xlu0 %v7730_v20, %s7613_s30 }
 0x649   :  { %6483 = vmatmul.mubr.msk.bf16.vlgmr.msra.gmra.mrb[48].mxu0 %vm657_vm1, %v2060_v3 }
 0x64a   :  { %6507 = vmatpush3.bf16.xpose.msra.mxu0 %v2371_v16 }
 0x64b   :  { %6899 = vmatprep.subr.msk.bf16.mxu0 %vm478_vm0, %v8297_v39 }
 0x64c   :  { %2453 = vrot.lane.b32.xlu1 %v7746_v34, %s7613_s30  ;;  %2720 = vrot.lane.b32.xlu0 %v7762_v46, %s7613_s30 }
 0x650   :  { %2722 = vrot.lane.b32.xlu1 %v7760_v44, %s7613_s30  ;;  %2724 = vrot.lane.b32.xlu0 %v7777_v52, %s7613_s30 }
 0x652   :  { %6509 = vmatpush3.bf16.xpose.msra.mxu0 %v2374_v54 }
 0x653   :  { %6900 = vmatprep.subr.msk.bf16.mxu0 %vm478_vm0, %v2355_v25 }
 0x654   :  { %2726 = vrot.lane.b32.xlu1 %v7775_v50, %s7613_s30  ;;  %2809 = vrot.lane.b32.xlu0 %v7790_v62, %s7613_s30 }
 0x658   :  { %2811 = vrot.lane.b32.xlu1 %v7787_v58, %s7613_s30  ;;  %2815 = vrot.lane.b32.xlu0 %v7793_v2, %s7613_s30 }
 0x65a   :  { %6511 = vmatpush3.bf16.xpose.msra.mxu0 %v2377_v21 }
 0x65b   :  { %6901 = vmatprep.subr.msk.bf16.mxu0 %vm478_vm0, %v2357_v47 }
 0x65c   :  { %3003 = vrot.lane.b32.xlu1 %v7696_v59, %s7608_s0  ;;  %3005 = vrot.lane.b32.xlu0 %v7716_v9, %s7608_s0 }
 0x660   :  { %2813 = vrot.lane.b32.xlu1 %v7795_v4, %s7613_s30  ;;  %3108 = vrot.lane.b32.xlu0 %v7698_v60, %s7608_s0 }
 0x662   :  { %6513 = vmatpush3.bf16.xpose.msra.mxu0 %v2380_v29 }
 0x664   :  { %3007 = vrot.lane.b32.xlu1 %v7732_v23, %s7608_s0  ;;  %3009 = vrot.lane.b32.xlu0 %v7748_v37, %s7608_s0 }
 0x668   :  { %3110 = vrot.lane.b32.xlu1 %v7718_v10, %s7608_s0 }
 0x66d   :  { %v1919_v39 = vpop.xlane.xlu0 %1918 }
 0x66e   :  { %v1953_v8 = vsub.f32 %v8340_v7, %v1919_v39  ;;  %v1913_v12 = vpop.xlane.xlu1 %1912 }
 0x66f   :  { %v1951_v63 = vsub.f32 %v8342_v18, %v1913_v12 }
 0x670   :  { %v1975_v17 = vmul.f32 1.442695, %v1953_v8 }
 0x671   :  { %v1971_v13 = vmul.f32 1.442695, %v1951_v63  ;;  %v1916_v25 = vpop.xlane.xlu0 %1915 }
 0x672   :  { %v1952_v47 = vsub.f32 %v8350_v43, %v1916_v25  ;;  %v1922_v51 = vpop.xlane.xlu1 %1921  ;;  %7067 = vpow2.f32 %v1975_v17 }
 0x673   :  { %v1954_v15 = vsub.f32 %v8346_v35, %v1922_v51  ;;  %7069 = vpow2.f32 %v1971_v13 }
 0x674   :  { %v1973_v42 = vmul.f32 1.442695, %v1952_v47 }
 0x675   :  { %v1977_v41 = vmul.f32 1.442695, %v1954_v15 }
 0x676   :  { %7071 = vpow2.f32 %v1973_v42 }
 0x677   :  { %7073 = vpow2.f32 %v1977_v41 }
 0x67a   :  { %v1931_v3 = vpop.xlane.xlu0 %1930 }
 0x67b   :  { %v1957_v7 = vsub.f32 %v8364_v0, %v1931_v3  ;;  %v1925_v16 = vpop.xlane.xlu1 %1924 }
 0x67c   :  { %v1955_v18 = vsub.f32 %v8366_v28, %v1925_v16  ;;  %v8479_v21 = vpop.eup %7067  ;;  %v2479_v16 = vsel %vm478_vm0, %v8398_v1, 0 }
 0x67d   :  { %v1983_v54 = vmul.f32 1.442695, %v1957_v7  ;;  %10854 = vst [vmem:[#allocation78_spill] sm:$0xff] %v8479_v21  ;;  %v8481_v39 = vpop.eup %7069  ;;  %v2476_v7 = vsel %vm478_vm0, %v8299_v27, 0 }
 0x67e   :  { %v1979_v29 = vmul.f32 1.442695, %v1955_v18  ;;  %v1928_v43 = vpop.xlane.xlu0 %1927  ;;  %10855 = vst [vmem:[#allocation79_spill] sm:$0xff] %v8481_v39 }
 0x67f   :  { %v1956_v35 = vsub.f32 %v8374_v57, %v1928_v43  ;;  %v1934_v8 = vpop.xlane.xlu1 %1933  ;;  %7075 = vpow2.f32 %v1983_v54 }
 0x680   :  { %v8484_v12 = vpop.eup %7071  ;;  %v1958_v63 = vsub.f32 %v8370_v14, %v1934_v8  ;;  %7077 = vpow2.f32 %v1979_v29 }
 0x681   :  { %10856 = vst [vmem:[#allocation80_spill] sm:$0xff] %v8484_v12  ;;  %v8487_v17 = vpop.eup %7073  ;;  %v1981_v0 = vmul.f32 1.442695, %v1956_v35  ;;  %v2061_v28 = vpack.c.bf16 %v8484_v12, %v8481_v39 }
 0x682   :  { %10857 = vst [vmem:[#allocation81_spill] sm:$0xff] %v8487_v17  ;;  %v1985_v13 = vmul.f32 1.442695, %v1958_v63  ;;  %v2062_v25 = vpack.c.bf16 %v8487_v17, %v8479_v21  ;;  %v2343_v57 = vpop.permute.xlu0 %2342 }
 0x683   :  { %7079 = vpow2.f32 %v1981_v0  ;;  %6486 = vmatprep.mubr.msk.bf16.mxu0 %vm657_vm1, %v2061_v28  ;;  %v2345_v47 = vpop.permute.xlu1 %2344 }
 0x684   :  { %7081 = vpow2.f32 %v1985_v13  ;;  %6487 = vmatmul.mubr.msk.bf16.gmra.mrb[52].mxu0 %vm657_vm1, %v2062_v25 }
 0x685   :  { %6514 = vmatprep.mubr.msk.bf16.mxu0 %vm478_vm0, %v2343_v57 }
 0x689   :  { %v8496_v14 = vpop.eup %7075 }
 0x68a   :  { %10858 = vst [vmem:[#allocation82_spill] sm:$0xff] %v8496_v14  ;;  %v8498_v51 = vpop.eup %7077 }
 0x68b   :  { %10859 = vst [vmem:[#allocation83_spill] sm:$0xff] %v8498_v51 }
 0x68c   :  { %6515 = vmatmul.mubr.msk.bf16.vlgmr.msra.gmra.mrb[56].mxu0 %vm478_vm0, %v2345_v47 }
 0x68d   :  { %v8501_v15 = vpop.eup %7079 }
 0x68e   :  { %10860 = vst [vmem:[#allocation84_spill] sm:$0xff] %v8501_v15  ;;  %v8503_v42 = vpop.eup %7081  ;;  %v2063_v41 = vpack.c.bf16 %v8501_v15, %v8498_v51 }
 0x68f   :  { %10861 = vst [vmem:[#allocation85_spill] sm:$0xff] %v8503_v42  ;;  %v2064_v3 = vpack.c.bf16 %v8503_v42, %v8496_v14 }
 0x690   :  { %6498 = vmatprep.mubr.msk.bf16.mxu1 %vm657_vm1, %v2063_v41 }
 0x691   :  { %6499 = vmatmul.mubr.msk.bf16.vlgmr.msra.gmra.mrb[80].mxu1 %vm657_vm1, %v2064_v3 }
 0x692   :  { %6523 = vmatpush3.bf16.xpose.msra.mxu1 %v2476_v7 }
 0x693   :  { %6903 = vmatprep.subr.msk.bf16.mxu1 %vm478_vm0, %v8398_v1 }
 0x69a   :  { %6525 = vmatpush3.bf16.xpose.msra.mxu1 %v2479_v16 }
 0x6b3   :  { %v1940_v18 = vpop.xlane.xlu0 %1939 }
 0x6b4   :  { %v1960_v54 = vsub.f32 %v8386_v32, %v1940_v18  ;;  %v1943_v29 = vpop.xlane.xlu1 %1942 }
 0x6b5   :  { %v1961_v8 = vsub.f32 %v8380_v49, %v1943_v29 }
 0x6b6   :  { %v1989_v35 = vmul.f32 1.442695, %v1960_v54 }
 0x6b7   :  { %v2460_v43 = vpop.permute.xlu0 %2459  ;;  %v1991_v1 = vmul.f32 1.442695, %v1961_v8 }
 0x6b8   :  { %6904 = vmatprep.subr.msk.bf16.mxu1 %vm478_vm0, %v2460_v43  ;;  %v1937_v63 = vpop.xlane.xlu1 %1936  ;;  %v2482_v27 = vsel %vm478_vm0, %v2460_v43, 0  ;;  %7083 = vpow2.f32 %v1989_v35 }
 0x6b9   :  { %v1959_v0 = vsub.f32 %v8382_v11, %v1937_v63  ;;  %6527 = vmatpush3.bf16.xpose.msra.mxu1 %v2482_v27 }
 0x6bb   :  { %v1987_v28 = vmul.f32 1.442695, %v1959_v0  ;;  %v2448_v13 = vpop.permute.xlu0 %2447 }
 0x6bc   :  { %v1946_v25 = vpop.xlane.xlu1 %1945 }
 0x6bd   :  { %7085 = vpow2.f32 %v1987_v28  ;;  %v1962_v32 = vsub.f32 %v8384_v30, %v1946_v25 }
 0x6be   :  { %7087 = vpow2.f32 %v1991_v1 }
 0x6bf   :  { %v1993_v57 = vmul.f32 1.442695, %v1962_v32  ;;  %v2347_v47 = vpop.permute.xlu0 %2346 }
 0x6c0   :  { %6518 = vmatprep.mubr.msk.bf16.mxu0 %vm478_vm0, %v2347_v47  ;;  %v2462_v49 = vpop.permute.xlu1 %2461 }
 0x6c1   :  { %7089 = vpow2.f32 %v1993_v57  ;;  %6905 = vmatprep.subr.msk.bf16.mxu1 %vm478_vm0, %v2462_v49  ;;  %v2485_v11 = vsel %vm478_vm0, %v2462_v49, 0 }
 0x6c2   :  { %6529 = vmatpush3.bf16.xpose.msra.mxu1 %v2485_v11  ;;  %v8526_v7 = vpop.eup %7083 }
 0x6c3   :  { %v2452_v41 = vpop.permute.xlu0 %2451  ;;  %10862 = vst [vmem:[#allocation86_spill] sm:$0xff] %v8526_v7 }
 0x6c4   :  { %v2450_v3 = vpop.permute.xlu1 %2449 }
 0x6c7   :  { %v8528_v16 = vpop.eup %7085  ;;  %v2721_v18 = vpop.permute.xlu0 %2720 }
 0x6c8   :  { %10863 = vst [vmem:[#allocation87_spill] sm:$0xff] %v8528_v16  ;;  %6538 = vmatprep.subr.bf16.mxu0 %v2721_v18  ;;  %v2349_v30 = vpop.permute.xlu1 %2348  ;;  %v2065_v54 = vpack.c.bf16 %v8526_v7, %v8528_v16  ;;  %v8533_v29 = vpop.eup %7087 }
 0x6c9   :  { %6519 = vmatmul.mubr.msk.bf16.gmra.mrb[60].mxu0 %vm478_vm0, %v2349_v30  ;;  %10864 = vst [vmem:[#allocation88_spill] sm:$0xff] %v8533_v29 }
 0x6ca   :  { %6539 = vmatpush3.bf16.msra.mxu0 %v2721_v18  ;;  %6502 = vmatprep.mubr.msk.bf16.mxu1 %vm657_vm1, %v2065_v54 }
 0x6cb   :  { %v8536_v43 = vpop.eup %7089  ;;  %v2725_v35 = vpop.permute.xlu0 %2724 }
 0x6cc   :  { %10865 = vst [vmem:[#allocation89_spill] sm:$0xff] %v8536_v43  ;;  %v2454_v8 = vpop.permute.xlu1 %2453  ;;  %v2066_v63 = vpack.c.bf16 %v8536_v43, %v8533_v29 }
 0x6ce   :  { %6503 = vmatmul.mubr.msk.bf16.gmra.mrb[84].mxu1 %vm657_vm1, %v2066_v63 }
 0x6cf   :  { %v2810_v27 = vpop.permute.xlu0 %2809  ;;  %6530 = vmatprep.mubr.msk.bf16.mxu1 %vm478_vm0, %v2448_v13 }
 0x6d0   :  { %6554 = vmatprep.subr.bf16.mxu1 %v2810_v27  ;;  %v2723_v0 = vpop.permute.xlu1 %2722 }
 0x6d1   :  { %6540 = vmatprep.subr.bf16.mxu0 %v2723_v0 }
 0x6d2   :  { %6541 = vmatpush3.bf16.msra.mxu0 %v2723_v0 }
 0x6d3   :  { %6542 = vmatprep.subr.bf16.mxu0 %v2725_v35  ;;  %v2816_v25 = vpop.permute.xlu0 %2815 }
 0x6d4   :  { %v2727_v28 = vpop.permute.xlu1 %2726 }
 0x6d6   :  { %6531 = vmatmul.mubr.msk.bf16.vlgmr.msra.gmra.mrb[88].mxu1 %vm478_vm0, %v2450_v3  ;;  %6543 = vmatpush3.bf16.msra.mxu0 %v2725_v35 }
 0x6d7   :  { %6555 = vmatpush3.bf16.msra.mxu1 %v2810_v27  ;;  %6534 = vmatprep.mubr.msk.bf16.mxu1 %vm478_vm0, %v2452_v41  ;;  %v8549_v13 = vpop.permute.xlu0 %3005 }
 0x6d8   :  { %6544 = vmatprep.subr.bf16.mxu0 %v2727_v28  ;;  %v2812_v1 = vpop.permute.xlu1 %2811 }
 0x6d9   :  { %6556 = vmatprep.subr.bf16.mxu1 %v2812_v1 }
 0x6da   :  { %6545 = vmatpush3.bf16.msra.mxu0 %v2727_v28 }
 0x6db   :  { %6557 = vmatpush3.bf16.msra.mxu1 %v2812_v1  ;;  %v8551_v47 = vpop.permute.xlu0 %3108 }
 0x6dc   :  { %v8544_v32 = vpop.permute.xlu1 %3003 }
 0x6dd   :  { %6906 = vmatprep.subr.msk.bf16.mxu0 %vm478_vm0, %v8544_v32 }
 0x6de   :  { %6535 = vmatmul.mubr.msk.bf16.gmra.mrb[92].mxu1 %vm478_vm0, %v2454_v8 }
 0x6df   :  { %v3010_v43 = vpop.permute.xlu0 %3009 }
 0x6e0   :  { %v2814_v57 = vpop.permute.xlu1 %2813 }
 0x6e1   :  { %6558 = vmatprep.subr.bf16.mxu1 %v2814_v57 }
 0x6e2   :  { %6559 = vmatpush3.bf16.msra.mxu1 %v2814_v57 }
 0x6e3   :  { %6560 = vmatprep.subr.bf16.mxu1 %v2816_v25 }
 0x6e6   :  { %6561 = vmatpush3.bf16.msra.mxu1 %v2816_v25 }
 0x6e7   :  { %6910 = vmatprep.subr.msk.bf16.mxu1 %vm478_vm0, %v8551_v47 }
 0x71c   :  { %v8555_v49 = vpop.f32.mrb[48].mxu0 }
 0x71d   :  { %10866 = vst [vmem:[#allocation90_spill] sm:$0xff] %v8555_v49  ;;  %v8557_v11 = vpop.f32.mrb[49].mxu0 }
 0x71e   :  { %10867 = vst [vmem:[#allocation91_spill] sm:$0xff] %v8557_v11  ;;  %v8559_v41 = vpop.f32.mrb[50].mxu0 }
 0x71f   :  { %10868 = vst [vmem:[#allocation92_spill] sm:$0xff] %v8559_v41  ;;  %v8561_v3 = vpop.f32.mrb[51].mxu0 }
 0x720   :  { %10869 = vst [vmem:[#allocation93_spill] sm:$0xff] %v8561_v3 }
 0x757   :  { %v8563_v18 = vpop.f32.mrb[52].mxu0 }
 0x758   :  { %10870 = vst [vmem:[#allocation94_spill] sm:$0xff] %v8563_v18  ;;  %v8565_v30 = vpop.f32.mrb[53].mxu0 }
 0x759   :  { %10871 = vst [vmem:[#allocation95_spill] sm:$0xff] %v8565_v30  ;;  %v8567_v54 = vpop.f32.mrb[54].mxu0 }
 0x75a   :  { %10872 = vst [vmem:[#allocation96_spill] sm:$0xff] %v8567_v54  ;;  %v8569_v35 = vpop.f32.mrb[55].mxu0 }
 0x75b   :  { %10873 = vst [vmem:[#allocation97_spill] sm:$0xff] %v8569_v35 }
 0x75f   :  { %v8571_v8 = vpop.f32.mrb[56].mxu0 }
 0x760   :  { %v8573_v63 = vpop.f32.mrb[57].mxu0  ;;  %v2558_v27 = vsel %vm657_vm1, %v8571_v8, -inf }
 0x761   :  { %2559 = vmax.xlane.f32.xlu0 %v2558_v27  ;;  %v8577_v0 = vpop.f32.mrb[58].mxu0  ;;  %v2552_v57 = vsel %vm657_vm1, %v8573_v63, -inf }
 0x762   :  { %v2419_v28 = vpop.f32.mrb[59].mxu0  ;;  %v2561_v27 = vsel %vm657_vm1, %v8577_v0, -inf }
 0x763   :  { %v2555_v1 = vsel %vm657_vm1, %v2419_v28, -inf }
 0x764   :  { %v8580_v25 = vpop.f32.mrb[80].mxu1  ;;  %2556 = vmax.xlane.f32.xlu1 %v2555_v1 }
 0x765   :  { %10874 = vst [vmem:[#allocation98_spill] sm:$0xff] %v8580_v25  ;;  %v8584_v54 = vpop.f32.mrb[81].mxu1  ;;  %2553 = vmax.xlane.f32.xlu0 %v2552_v57 }
 0x766   :  { %10875 = vst [vmem:[#allocation99_spill] sm:$0xff] %v8584_v54  ;;  %v8586_v35 = vpop.f32.mrb[82].mxu1 }
 0x767   :  { %10876 = vst [vmem:[#allocation100_spill] sm:$0xff] %v8586_v35  ;;  %v8588_v18 = vpop.f32.mrb[83].mxu1 }
 0x768   :  { %10877 = vst [vmem:[#allocation101_spill] sm:$0xff] %v8588_v18 }
 0x769   :  { %2562 = vmax.xlane.f32.xlu0 %v2561_v27 }
 0x79c   :  { %v8592_v30 = vpop.f32.mrb[60].mxu0 }
 0x79d   :  { %v8594_v41 = vpop.f32.mrb[61].mxu0  ;;  %v2570_v1 = vsel %vm657_vm1, %v8592_v30, -inf }
 0x79e   :  { %2571 = vmax.xlane.f32.xlu0 %v2570_v1  ;;  %v8598_v25 = vpop.f32.mrb[62].mxu0  ;;  %v2564_v57 = vsel %vm657_vm1, %v8594_v41, -inf }
 0x79f   :  { %2565 = vmax.xlane.f32.xlu1 %v2564_v57  ;;  %v8602_v35 = vpop.f32.mrb[63].mxu0  ;;  %v2573_v3 = vsel %vm657_vm1, %v8598_v25, -inf }
 0x7a0   :  { %v2567_v18 = vsel %vm657_vm1, %v8602_v35, -inf }
 0x7a1   :  { %v8606_v27 = vpop.f32.mrb[84].mxu1 }
 0x7a2   :  { %10878 = vst [vmem:[#allocation102_spill] sm:$0xff] %v8606_v27  ;;  %v8608_v54 = vpop.f32.mrb[85].mxu1  ;;  %2568 = vmax.xlane.f32.xlu0 %v2567_v18 }
 0x7a3   :  { %10879 = vst [vmem:[#allocation103_spill] sm:$0xff] %v8608_v54  ;;  %v8612_v1 = vpop.f32.mrb[86].mxu1  ;;  %2574 = vmax.xlane.f32.xlu1 %v2573_v3 }
 0x7a4   :  { %10880 = vst [vmem:[#allocation104_spill] sm:$0xff] %v8612_v1  ;;  %v8614_v49 = vpop.f32.mrb[87].mxu1 }
 0x7a5   :  { %10881 = vst [vmem:[#allocation105_spill] sm:$0xff] %v8614_v49 }
 0x7a9   :  { %v8616_v11 = vpop.f32.mrb[88].mxu1 }
 0x7aa   :  { %v8618_v57 = vpop.f32.mrb[89].mxu1  ;;  %v2582_v29 = vsel %vm657_vm1, %v8616_v11, -inf }
 0x7ab   :  { %v8622_v16 = vpop.f32.mrb[90].mxu1  ;;  %2583 = vmax.xlane.f32.xlu0 %v2582_v29  ;;  %v2576_v18 = vsel %vm657_vm1, %v8618_v57, -inf }
 0x7ac   :  { %v8626_v27 = vpop.f32.mrb[91].mxu1  ;;  %2577 = vmax.xlane.f32.xlu1 %v2576_v18  ;;  %v2585_v1 = vsel %vm657_vm1, %v8622_v16, -inf }
 0x7ad   :  { %v2579_v3 = vsel %vm657_vm1, %v8626_v27, -inf }
 0x7af   :  { %2580 = vmax.xlane.f32.xlu0 %v2579_v3  ;;  %v3008_v3 = vpop.permute.xlu1 %3007 }
 0x7b0   :  { %2586 = vmax.xlane.f32.xlu1 %v2585_v1 }
 0x7b1   :  { %v8632_v49 = vpop.f32.mrb[92].mxu1 }
 0x7b2   :  { %v8634_v54 = vpop.f32.mrb[93].mxu1  ;;  %v2594_v1 = vsel %vm657_vm1, %v8632_v49, -inf }
 0x7b3   :  { %v8636_v14 = vpop.f32.mrb[94].mxu1  ;;  %v2588_v51 = vsel %vm657_vm1, %v8634_v54, -inf  ;;  %v8652_v21 = vpop.permute.xlu1 %3110 }
 0x7b4   :  { %v8638_v29 = vpop.f32.mrb[95].mxu1  ;;  %v2597_v7 = vsel %vm657_vm1, %v8636_v14, -inf }
 0x7b5   :  { %v2591_v18 = vsel %vm657_vm1, %v8638_v29, -inf }
 0x7c1   :  { %2997 = vrot.lane.b32.xlu1 %v7712_v5, %s7608_s0 }
 0x7c5   :  { %2995 = vrot.lane.b32.xlu0 %v7692_v55, %s7608_s0 }
 0x7e4   :  { %2592 = vmax.xlane.f32.xlu0 %v2591_v18 }
 0x7e5   :  { %2595 = vmax.xlane.f32.xlu1 %v2594_v1 }
 0x7e9   :  { %2589 = vmax.xlane.f32.xlu1 %v2588_v51 }
 0x7ed   :  { %2598 = vmax.xlane.f32.xlu1 %v2597_v7  ;;  %v3033_v7 = vsel %vm478_vm0, %v3010_v43, 0 }
 0x7ee   :  { %v2560_v42 = vpop.xlane.xlu0 %2559 }
 0x7ef   :  { %v2602_v18 = vsub.f32 %v8571_v8, %v2560_v42  ;;  %v3030_v42 = vsel %vm478_vm0, %v3008_v3, 0 }
 0x7f1   :  { %v2557_v39 = vpop.xlane.xlu1 %2556  ;;  %v2620_v12 = vmul.f32 1.442695, %v2602_v18 }
 0x7f2   :  { %v2601_v15 = vsub.f32 %v2419_v28, %v2557_v39  ;;  %v2554_v31 = vpop.xlane.xlu0 %2553 }
 0x7f3   :  { %v2600_v1 = vsub.f32 %v8573_v63, %v2554_v31 }
 0x7f4   :  { %v2618_v17 = vmul.f32 1.442695, %v2601_v15  ;;  %v3027_v15 = vsel %vm478_vm0, %v8549_v13, 0 }
 0x7f5   :  { %v2616_v53 = vmul.f32 1.442695, %v2600_v1 }
 0x7f6   :  { %7091 = vpow2.f32 %v2618_v17  ;;  %v2563_v51 = vpop.xlane.xlu0 %2562  ;;  %v3024_v17 = vsel %vm478_vm0, %v8544_v32, 0 }
 0x7f7   :  { %7093 = vpow2.f32 %v2616_v53  ;;  %v2603_v36 = vsub.f32 %v8577_v0, %v2563_v51 }
 0x7f8   :  { %7095 = vpow2.f32 %v2620_v12 }
 0x7f9   :  { %v2622_v61 = vmul.f32 1.442695, %v2603_v36 }
 0x7fa   :  { %3112 = vrot.lane.b32.xlu0 %v7734_v24, %s7608_s0 }
 0x7fb   :  { %7097 = vpow2.f32 %v2622_v61 }
 0x7fe   :  { %3114 = vrot.lane.b32.xlu1 %v7750_v38, %s7608_s0  ;;  %3100 = vrot.lane.b32.xlu0 %v7694_v56, %s7608_s0 }
 0x800   :  { %v8663_v31 = vpop.eup %7091 }
 0x801   :  { %v8665_v39 = vpop.eup %7093 }
 0x802   :  { %10882 = vst [vmem:[#allocation106_spill] sm:$0xff] %v8665_v39  ;;  %3102 = vrot.lane.b32.xlu1 %v7714_v6, %s7608_s0  ;;  %2999 = vrot.lane.b32.xlu0 %v7728_v19, %s7608_s0  ;;  %v2712_v36 = vpack.c.bf16 %v8663_v31, %v8665_v39  ;;  %v8673_v61 = vpop.eup %7095 }
 0x803   :  { %10883 = vst [vmem:[#allocation107_spill] sm:$0xff] %v8673_v61 }
 0x804   :  { %6546 = vmatprep.mubr.msk.bf16.mxu0 %vm657_vm1, %v2712_v36 }
 0x805   :  { %v8676_v53 = vpop.eup %7097 }
 0x806   :  { %v2713_v12 = vpack.c.bf16 %v8676_v53, %v8673_v61  ;;  %3001 = vrot.lane.b32.xlu1 %v7744_v33, %s7608_s0  ;;  %3104 = vrot.lane.b32.xlu0 %v7730_v20, %s7608_s0 }
 0x808   :  { %6547 = vmatmul.mubr.msk.bf16.vlgmr.msra.gmra.mrb[64].mxu0 %vm657_vm1, %v2713_v12 }
 0x809   :  { %6571 = vmatpush3.bf16.xpose.msra.mxu0 %v3024_v17 }
 0x80a   :  { %6907 = vmatprep.subr.msk.bf16.mxu0 %vm478_vm0, %v8549_v13  ;;  %3106 = vrot.lane.b32.xlu1 %v7746_v34, %s7608_s0 }
 0x80b   :  { %3373 = vrot.lane.b32.xlu0 %v7762_v46, %s7608_s0 }
 0x80e   :  { %3375 = vrot.lane.b32.xlu1 %v7760_v44, %s7608_s0 }
 0x80f   :  { %3377 = vrot.lane.b32.xlu0 %v7777_v52, %s7608_s0 }
 0x811   :  { %6573 = vmatpush3.bf16.xpose.msra.mxu0 %v3027_v15 }
 0x812   :  { %6908 = vmatprep.subr.msk.bf16.mxu0 %vm478_vm0, %v3008_v3  ;;  %3379 = vrot.lane.b32.xlu1 %v7775_v50, %s7608_s0 }
 0x813   :  { %3462 = vrot.lane.b32.xlu0 %v7790_v62, %s7608_s0 }
 0x816   :  { %3464 = vrot.lane.b32.xlu1 %v7787_v58, %s7608_s0 }
 0x817   :  { %3468 = vrot.lane.b32.xlu0 %v7793_v2, %s7608_s0 }
 0x819   :  { %6575 = vmatpush3.bf16.xpose.msra.mxu0 %v3030_v42 }
 0x81a   :  { %6909 = vmatprep.subr.msk.bf16.mxu0 %vm478_vm0, %v3010_v43  ;;  %3656 = vrot.lane.b32.xlu1 %v7696_v59, %s7614_s5 }
 0x81b   :  { %3658 = vrot.lane.b32.xlu0 %v7716_v9, %s7614_s5 }
 0x81e   :  { %3466 = vrot.lane.b32.xlu1 %v7795_v4, %s7608_s0 }
 0x81f   :  { %3761 = vrot.lane.b32.xlu0 %v7698_v60, %s7614_s5 }
 0x821   :  { %6577 = vmatpush3.bf16.xpose.msra.mxu0 %v3033_v7 }
 0x822   :  { %3660 = vrot.lane.b32.xlu1 %v7732_v23, %s7614_s5 }
 0x823   :  { %3662 = vrot.lane.b32.xlu0 %v7748_v37, %s7614_s5 }
 0x826   :  { %3763 = vrot.lane.b32.xlu1 %v7718_v10, %s7614_s5 }
 0x82b   :  { %v2572_v32 = vpop.xlane.xlu0 %2571 }
 0x82c   :  { %v2606_v13 = vsub.f32 %v8592_v30, %v2572_v32  ;;  %v2566_v8 = vpop.xlane.xlu1 %2565 }
 0x82d   :  { %v2604_v63 = vsub.f32 %v8594_v41, %v2566_v8 }
 0x82e   :  { %v2628_v0 = vmul.f32 1.442695, %v2606_v13 }
 0x82f   :  { %v2624_v28 = vmul.f32 1.442695, %v2604_v63  ;;  %v2569_v3 = vpop.xlane.xlu0 %2568 }
 0x830   :  { %v2605_v43 = vsub.f32 %v8602_v35, %v2569_v3  ;;  %v2575_v18 = vpop.xlane.xlu1 %2574  ;;  %7099 = vpow2.f32 %v2628_v0 }
 0x831   :  { %v2607_v1 = vsub.f32 %v8598_v25, %v2575_v18  ;;  %7101 = vpow2.f32 %v2624_v28 }
 0x832   :  { %v2626_v51 = vmul.f32 1.442695, %v2605_v43 }
 0x833   :  { %v2630_v36 = vmul.f32 1.442695, %v2607_v1 }
 0x834   :  { %7103 = vpow2.f32 %v2626_v51 }
 0x835   :  { %7105 = vpow2.f32 %v2630_v36 }
 0x838   :  { %v2584_v12 = vpop.xlane.xlu0 %2583 }
 0x839   :  { %v2610_v30 = vsub.f32 %v8616_v11, %v2584_v12  ;;  %v2578_v17 = vpop.xlane.xlu1 %2577 }
 0x83a   :  { %v2608_v41 = vsub.f32 %v8618_v57, %v2578_v17  ;;  %v8731_v42 = vpop.eup %7099  ;;  %v3132_v17 = vsel %vm478_vm0, %v8652_v21, 0 }
 0x83b   :  { %v2636_v15 = vmul.f32 1.442695, %v2610_v30  ;;  %10884 = vst [vmem:[#allocation108_spill] sm:$0xff] %v8731_v42  ;;  %v8733_v32 = vpop.eup %7101  ;;  %v3129_v30 = vsel %vm478_vm0, %v8551_v47, 0 }
 0x83c   :  { %v2632_v7 = vmul.f32 1.442695, %v2608_v41  ;;  %v2581_v35 = vpop.xlane.xlu0 %2580  ;;  %10885 = vst [vmem:[#allocation109_spill] sm:$0xff] %v8733_v32 }
 0x83d   :  { %v2609_v25 = vsub.f32 %v8626_v27, %v2581_v35  ;;  %v2587_v13 = vpop.xlane.xlu1 %2586  ;;  %7107 = vpow2.f32 %v2636_v15 }
 0x83e   :  { %v8736_v8 = vpop.eup %7103  ;;  %v2611_v63 = vsub.f32 %v8622_v16, %v2587_v13  ;;  %7109 = vpow2.f32 %v2632_v7 }
 0x83f   :  { %10886 = vst [vmem:[#allocation110_spill] sm:$0xff] %v8736_v8  ;;  %v8739_v0 = vpop.eup %7105  ;;  %v2634_v11 = vmul.f32 1.442695, %v2609_v25  ;;  %v2714_v57 = vpack.c.bf16 %v8736_v8, %v8733_v32 }
 0x840   :  { %10887 = vst [vmem:[#allocation111_spill] sm:$0xff] %v8739_v0  ;;  %v2638_v28 = vmul.f32 1.442695, %v2611_v63  ;;  %v2715_v3 = vpack.c.bf16 %v8739_v0, %v8731_v42  ;;  %v2996_v27 = vpop.permute.xlu0 %2995 }
 0x841   :  { %7111 = vpow2.f32 %v2634_v11  ;;  %6550 = vmatprep.mubr.msk.bf16.mxu0 %vm657_vm1, %v2714_v57  ;;  %v2998_v43 = vpop.permute.xlu1 %2997 }
 0x842   :  { %7113 = vpow2.f32 %v2638_v28  ;;  %6551 = vmatmul.mubr.msk.bf16.gmra.mrb[68].mxu0 %vm657_vm1, %v2715_v3 }
 0x843   :  { %6578 = vmatprep.mubr.msk.bf16.mxu0 %vm478_vm0, %v2996_v27 }
 0x847   :  { %v8748_v16 = vpop.eup %7107 }
 0x848   :  { %10888 = vst [vmem:[#allocation112_spill] sm:$0xff] %v8748_v16  ;;  %v8750_v18 = vpop.eup %7109 }
 0x849   :  { %10889 = vst [vmem:[#allocation113_spill] sm:$0xff] %v8750_v18 }
 0x84a   :  { %6579 = vmatmul.mubr.msk.bf16.vlgmr.msra.gmra.mrb[72].mxu0 %vm478_vm0, %v2998_v43 }
 0x84b   :  { %v8753_v1 = vpop.eup %7111 }
 0x84c   :  { %10890 = vst [vmem:[#allocation114_spill] sm:$0xff] %v8753_v1  ;;  %v8755_v51 = vpop.eup %7113  ;;  %v2716_v36 = vpack.c.bf16 %v8753_v1, %v8750_v18 }
 0x84d   :  { %10891 = vst [vmem:[#allocation115_spill] sm:$0xff] %v8755_v51  ;;  %v2717_v12 = vpack.c.bf16 %v8755_v51, %v8748_v16 }
 0x84e   :  { %6562 = vmatprep.mubr.msk.bf16.mxu1 %vm657_vm1, %v2716_v36 }
 0x84f   :  { %6563 = vmatmul.mubr.msk.bf16.vlgmr.msra.gmra.mrb[96].mxu1 %vm657_vm1, %v2717_v12 }
 0x850   :  { %6587 = vmatpush3.bf16.xpose.msra.mxu1 %v3129_v30 }
 0x851   :  { %6911 = vmatprep.subr.msk.bf16.mxu1 %vm478_vm0, %v8652_v21 }
 0x858   :  { %6589 = vmatpush3.bf16.xpose.msra.mxu1 %v3132_v17 }
 0x871   :  { %v2593_v41 = vpop.xlane.xlu0 %2592 }
 0x872   :  { %v2613_v15 = vsub.f32 %v8638_v29, %v2593_v41  ;;  %v2596_v7 = vpop.xlane.xlu1 %2595 }
 0x873   :  { %v2614_v13 = vsub.f32 %v8632_v49, %v2596_v7 }
 0x874   :  { %v2642_v25 = vmul.f32 1.442695, %v2613_v15 }
 0x875   :  { %v3113_v35 = vpop.permute.xlu0 %3112  ;;  %v2644_v21 = vmul.f32 1.442695, %v2614_v13 }
 0x876   :  { %6912 = vmatprep.subr.msk.bf16.mxu1 %vm478_vm0, %v3113_v35  ;;  %v2590_v63 = vpop.xlane.xlu1 %2589  ;;  %v3135_v47 = vsel %vm478_vm0, %v3113_v35, 0  ;;  %7115 = vpow2.f32 %v2642_v25 }
 0x877   :  { %v2612_v11 = vsub.f32 %v8634_v54, %v2590_v63  ;;  %6591 = vmatpush3.bf16.xpose.msra.mxu1 %v3135_v47 }
 0x879   :  { %v2640_v57 = vmul.f32 1.442695, %v2612_v11  ;;  %v3101_v28 = vpop.permute.xlu0 %3100 }
 0x87a   :  { %v2599_v3 = vpop.xlane.xlu1 %2598 }
 0x87b   :  { %7117 = vpow2.f32 %v2640_v57  ;;  %v2615_v29 = vsub.f32 %v8636_v14, %v2599_v3 }
 0x87c   :  { %7119 = vpow2.f32 %v2644_v21 }
 0x87d   :  { %v2646_v27 = vmul.f32 1.442695, %v2615_v29  ;;  %v3000_v43 = vpop.permute.xlu0 %2999 }
 0x87e   :  { %6582 = vmatprep.mubr.msk.bf16.mxu0 %vm478_vm0, %v3000_v43  ;;  %v3115_v49 = vpop.permute.xlu1 %3114 }
 0x87f   :  { %7121 = vpow2.f32 %v2646_v27  ;;  %6913 = vmatprep.subr.msk.bf16.mxu1 %vm478_vm0, %v3115_v49  ;;  %v3138_v54 = vsel %vm478_vm0, %v3115_v49, 0 }
 0x880   :  { %6593 = vmatpush3.bf16.xpose.msra.mxu1 %v3138_v54  ;;  %v8778_v30 = vpop.eup %7115 }
 0x881   :  { %v3105_v36 = vpop.permute.xlu0 %3104  ;;  %10892 = vst [vmem:[#allocation116_spill] sm:$0xff] %v8778_v30 }
 0x882   :  { %v3103_v12 = vpop.permute.xlu1 %3102 }
 0x885   :  { %v8780_v17 = vpop.eup %7117  ;;  %v3374_v41 = vpop.permute.xlu0 %3373 }
 0x886   :  { %10893 = vst [vmem:[#allocation117_spill] sm:$0xff] %v8780_v17  ;;  %6602 = vmatprep.subr.bf16.mxu0 %v3374_v41  ;;  %v3002_v14 = vpop.permute.xlu1 %3001  ;;  %v2718_v15 = vpack.c.bf16 %v8778_v30, %v8780_v17  ;;  %v8785_v7 = vpop.eup %7119 }
 0x887   :  { %6583 = vmatmul.mubr.msk.bf16.gmra.mrb[76].mxu0 %vm478_vm0, %v3002_v14  ;;  %10894 = vst [vmem:[#allocation118_spill] sm:$0xff] %v8785_v7 }
 0x888   :  { %6603 = vmatpush3.bf16.msra.mxu0 %v3374_v41  ;;  %6566 = vmatprep.mubr.msk.bf16.mxu1 %vm657_vm1, %v2718_v15 }
 0x889   :  { %v8788_v35 = vpop.eup %7121  ;;  %v3378_v25 = vpop.permute.xlu0 %3377 }
 0x88a   :  { %10895 = vst [vmem:[#allocation119_spill] sm:$0xff] %v8788_v35  ;;  %v3107_v13 = vpop.permute.xlu1 %3106  ;;  %v2719_v63 = vpack.c.bf16 %v8788_v35, %v8785_v7 }
 0x88c   :  { %6567 = vmatmul.mubr.msk.bf16.gmra.mrb[100].mxu1 %vm657_vm1, %v2719_v63 }
 0x88d   :  { %v3463_v47 = vpop.permute.xlu0 %3462  ;;  %6594 = vmatprep.mubr.msk.bf16.mxu1 %vm478_vm0, %v3101_v28 }
 0x88e   :  { %6618 = vmatprep.subr.bf16.mxu1 %v3463_v47  ;;  %v3376_v11 = vpop.permute.xlu1 %3375 }
 0x88f   :  { %6604 = vmatprep.subr.bf16.mxu0 %v3376_v11 }
 0x890   :  { %6605 = vmatpush3.bf16.msra.mxu0 %v3376_v11 }
 0x891   :  { %6606 = vmatprep.subr.bf16.mxu0 %v3378_v25  ;;  %v3469_v3 = vpop.permute.xlu0 %3468 }
 0x892   :  { %v3380_v57 = vpop.permute.xlu1 %3379 }
 0x894   :  { %6595 = vmatmul.mubr.msk.bf16.vlgmr.msra.gmra.mrb[104].mxu1 %vm478_vm0, %v3103_v12  ;;  %6607 = vmatpush3.bf16.msra.mxu0 %v3378_v25 }
 0x895   :  { %6619 = vmatpush3.bf16.msra.mxu1 %v3463_v47  ;;  %6598 = vmatprep.mubr.msk.bf16.mxu1 %vm478_vm0, %v3105_v36  ;;  %v8801_v28 = vpop.permute.xlu0 %3658 }
 0x896   :  { %6608 = vmatprep.subr.bf16.mxu0 %v3380_v57  ;;  %v3465_v21 = vpop.permute.xlu1 %3464 }
 0x897   :  { %6620 = vmatprep.subr.bf16.mxu1 %v3465_v21 }
 0x898   :  { %6609 = vmatpush3.bf16.msra.mxu0 %v3380_v57 }
 0x899   :  { %6621 = vmatpush3.bf16.msra.mxu1 %v3465_v21  ;;  %v8803_v43 = vpop.permute.xlu0 %3761 }
 0x89a   :  { %v8796_v29 = vpop.permute.xlu1 %3656 }
 0x89b   :  { %6914 = vmatprep.subr.msk.bf16.mxu0 %vm478_vm0, %v8796_v29 }
 0x89c   :  { %6599 = vmatmul.mubr.msk.bf16.gmra.mrb[108].mxu1 %vm478_vm0, %v3107_v13 }
 0x89d   :  { %v3663_v35 = vpop.permute.xlu0 %3662 }
 0x89e   :  { %v3467_v27 = vpop.permute.xlu1 %3466 }
 0x89f   :  { %6622 = vmatprep.subr.bf16.mxu1 %v3467_v27 }
 0x8a0   :  { %6623 = vmatpush3.bf16.msra.mxu1 %v3467_v27 }
 0x8a1   :  { %6624 = vmatprep.subr.bf16.mxu1 %v3469_v3 }
 0x8a4   :  { %6625 = vmatpush3.bf16.msra.mxu1 %v3469_v3 }
 0x8a5   :  { %6918 = vmatprep.subr.msk.bf16.mxu1 %vm478_vm0, %v8803_v43 }
 0x8db   :  { %v8807_v49 = vpop.f32.mrb[64].mxu0 }
 0x8dc   :  { %10896 = vst [vmem:[#allocation120_spill] sm:$0xff] %v8807_v49  ;;  %v8809_v54 = vpop.f32.mrb[65].mxu0 }
 0x8dd   :  { %10897 = vst [vmem:[#allocation121_spill] sm:$0xff] %v8809_v54  ;;  %v8811_v36 = vpop.f32.mrb[66].mxu0 }
 0x8de   :  { %10898 = vst [vmem:[#allocation122_spill] sm:$0xff] %v8811_v36  ;;  %v8813_v12 = vpop.f32.mrb[67].mxu0 }
 0x8df   :  { %10899 = vst [vmem:[#allocation123_spill] sm:$0xff] %v8813_v12 }
 0x915   :  { %v8815_v41 = vpop.f32.mrb[68].mxu0 }
 0x916   :  { %10900 = vst [vmem:[#allocation124_spill] sm:$0xff] %v8815_v41  ;;  %v8817_v14 = vpop.f32.mrb[69].mxu0 }
 0x917   :  { %10901 = vst [vmem:[#allocation125_spill] sm:$0xff] %v8817_v14  ;;  %v8819_v15 = vpop.f32.mrb[70].mxu0 }
 0x918   :  { %10902 = vst [vmem:[#allocation126_spill] sm:$0xff] %v8819_v15  ;;  %v8821_v25 = vpop.f32.mrb[71].mxu0 }
 0x919   :  { %10903 = vst [vmem:[#allocation127_spill] sm:$0xff] %v8821_v25 }
 0x91d   :  { %v8823_v13 = vpop.f32.mrb[72].mxu0 }
 0x91e   :  { %v8825_v63 = vpop.f32.mrb[73].mxu0  ;;  %v3211_v47 = vsel %vm657_vm1, %v8823_v13, -inf }
 0x91f   :  { %3212 = vmax.xlane.f32.xlu0 %v3211_v47  ;;  %v8829_v11 = vpop.f32.mrb[74].mxu0  ;;  %v3205_v27 = vsel %vm657_vm1, %v8825_v63, -inf }
 0x920   :  { %v3072_v57 = vpop.f32.mrb[75].mxu0  ;;  %v3214_v47 = vsel %vm657_vm1, %v8829_v11, -inf }
 0x921   :  { %v3208_v21 = vsel %vm657_vm1, %v3072_v57, -inf }
 0x922   :  { %v8832_v3 = vpop.f32.mrb[96].mxu1  ;;  %3209 = vmax.xlane.f32.xlu1 %v3208_v21 }
 0x923   :  { %10904 = vst [vmem:[#allocation128_spill] sm:$0xff] %v8832_v3  ;;  %v8836_v15 = vpop.f32.mrb[97].mxu1  ;;  %3206 = vmax.xlane.f32.xlu0 %v3205_v27 }
 0x924   :  { %10905 = vst [vmem:[#allocation129_spill] sm:$0xff] %v8836_v15  ;;  %v8838_v25 = vpop.f32.mrb[98].mxu1 }
 0x925   :  { %10906 = vst [vmem:[#allocation130_spill] sm:$0xff] %v8838_v25  ;;  %v8840_v41 = vpop.f32.mrb[99].mxu1 }
 0x926   :  { %10907 = vst [vmem:[#allocation131_spill] sm:$0xff] %v8840_v41 }
 0x927   :  { %3215 = vmax.xlane.f32.xlu0 %v3214_v47 }
 0x95a   :  { %v8844_v14 = vpop.f32.mrb[76].mxu0 }
 0x95b   :  { %v8846_v36 = vpop.f32.mrb[77].mxu0  ;;  %v3223_v21 = vsel %vm657_vm1, %v8844_v14, -inf }
 0x95c   :  { %3224 = vmax.xlane.f32.xlu0 %v3223_v21  ;;  %v8850_v3 = vpop.f32.mrb[78].mxu0  ;;  %v3217_v27 = vsel %vm657_vm1, %v8846_v36, -inf }
 0x95d   :  { %3218 = vmax.xlane.f32.xlu1 %v3217_v27  ;;  %v8854_v25 = vpop.f32.mrb[79].mxu0  ;;  %v3226_v12 = vsel %vm657_vm1, %v8850_v3, -inf }
 0x95e   :  { %v3220_v41 = vsel %vm657_vm1, %v8854_v25, -inf }
 0x95f   :  { %v8858_v47 = vpop.f32.mrb[100].mxu1 }
 0x960   :  { %10908 = vst [vmem:[#allocation132_spill] sm:$0xff] %v8858_v47  ;;  %v8860_v15 = vpop.f32.mrb[101].mxu1  ;;  %3221 = vmax.xlane.f32.xlu0 %v3220_v41 }
 0x961   :  { %10909 = vst [vmem:[#allocation133_spill] sm:$0xff] %v8860_v15  ;;  %v8864_v21 = vpop.f32.mrb[102].mxu1  ;;  %3227 = vmax.xlane.f32.xlu1 %v3226_v12 }
 0x962   :  { %10910 = vst [vmem:[#allocation134_spill] sm:$0xff] %v8864_v21  ;;  %v8866_v49 = vpop.f32.mrb[103].mxu1 }
 0x963   :  { %10911 = vst [vmem:[#allocation135_spill] sm:$0xff] %v8866_v49 }
 0x967   :  { %v8868_v54 = vpop.f32.mrb[104].mxu1 }
 0x968   :  { %v8870_v27 = vpop.f32.mrb[105].mxu1  ;;  %v3235_v7 = vsel %vm657_vm1, %v8868_v54, -inf }
 0x969   :  { %v8874_v17 = vpop.f32.mrb[106].mxu1  ;;  %3236 = vmax.xlane.f32.xlu0 %v3235_v7  ;;  %v3229_v41 = vsel %vm657_vm1, %v8870_v27, -inf }
 0x96a   :  { %v8878_v47 = vpop.f32.mrb[107].mxu1  ;;  %3230 = vmax.xlane.f32.xlu1 %v3229_v41  ;;  %v3238_v21 = vsel %vm657_vm1, %v8874_v17, -inf }
 0x96b   :  { %v3232_v12 = vsel %vm657_vm1, %v8878_v47, -inf }
 0x96d   :  { %3233 = vmax.xlane.f32.xlu0 %v3232_v12  ;;  %v3661_v12 = vpop.permute.xlu1 %3660 }
 0x96e   :  { %3239 = vmax.xlane.f32.xlu1 %v3238_v21 }
 0x96f   :  { %v8884_v49 = vpop.f32.mrb[108].mxu1 }
 0x970   :  { %v8886_v15 = vpop.f32.mrb[109].mxu1  ;;  %v3247_v21 = vsel %vm657_vm1, %v8884_v49, -inf }
 0x971   :  { %v8888_v16 = vpop.f32.mrb[110].mxu1  ;;  %v3241_v18 = vsel %vm657_vm1, %v8886_v15, -inf  ;;  %v8904_v42 = vpop.permute.xlu1 %3763 }
 0x972   :  { %v8890_v7 = vpop.f32.mrb[111].mxu1  ;;  %v3250_v30 = vsel %vm657_vm1, %v8888_v16, -inf }
 0x973   :  { %v3244_v41 = vsel %vm657_vm1, %v8890_v7, -inf }
 0x97f   :  { %3650 = vrot.lane.b32.xlu1 %v7712_v5, %s7614_s5 }
 0x983   :  { %3648 = vrot.lane.b32.xlu0 %v7692_v55, %s7614_s5 }
 0x9a2   :  { %3245 = vmax.xlane.f32.xlu0 %v3244_v41 }
 0x9a3   :  { %3248 = vmax.xlane.f32.xlu1 %v3247_v21 }
 0x9a7   :  { %3242 = vmax.xlane.f32.xlu1 %v3241_v18 }
 0x9ab   :  { %3251 = vmax.xlane.f32.xlu1 %v3250_v30  ;;  %v3686_v30 = vsel %vm478_vm0, %v3663_v35, 0 }
 0x9ac   :  { %v3213_v51 = vpop.xlane.xlu0 %3212 }
 0x9ad   :  { %v3255_v41 = vsub.f32 %v8823_v13, %v3213_v51  ;;  %v3683_v51 = vsel %vm478_vm0, %v3661_v12, 0 }
 0x9af   :  { %v3210_v32 = vpop.xlane.xlu1 %3209  ;;  %v3273_v8 = vmul.f32 1.442695, %v3255_v41 }
 0x9b0   :  { %v3254_v1 = vsub.f32 %v3072_v57, %v3210_v32  ;;  %v3207_v61 = vpop.xlane.xlu0 %3206 }
 0x9b1   :  { %v3253_v21 = vsub.f32 %v8825_v63, %v3207_v61 }
 0x9b2   :  { %v3271_v0 = vmul.f32 1.442695, %v3254_v1  ;;  %v3680_v1 = vsel %vm478_vm0, %v8801_v28, 0 }
 0x9b3   :  { %v3269_v39 = vmul.f32 1.442695, %v3253_v21 }
 0x9b4   :  { %7123 = vpow2.f32 %v3271_v0  ;;  %v3216_v18 = vpop.xlane.xlu0 %3215  ;;  %v3677_v0 = vsel %vm478_vm0, %v8796_v29, 0 }
 0x9b5   :  { %7125 = vpow2.f32 %v3269_v39  ;;  %v3256_v22 = vsub.f32 %v8829_v11, %v3216_v18 }
 0x9b6   :  { %7127 = vpow2.f32 %v3273_v8 }
 0x9b7   :  { %v3275_v48 = vmul.f32 1.442695, %v3256_v22 }
 0x9b8   :  { %3765 = vrot.lane.b32.xlu0 %v7734_v24, %s7614_s5 }
 0x9b9   :  { %7129 = vpow2.f32 %v3275_v48 }
 0x9bc   :  { %3767 = vrot.lane.b32.xlu1 %v7750_v38, %s7614_s5  ;;  %3753 = vrot.lane.b32.xlu0 %v7694_v56, %s7614_s5 }
 0x9be   :  { %v8915_v61 = vpop.eup %7123 }
 0x9bf   :  { %10912 = vst [vmem:[#allocation136_spill] sm:$0xff] %v8915_v61  ;;  %v8917_v32 = vpop.eup %7125 }
 0x9c0   :  { %10913 = vst [vmem:[#allocation137_spill] sm:$0xff] %v8917_v32  ;;  %3755 = vrot.lane.b32.xlu1 %v7714_v6, %s7614_s5  ;;  %3652 = vrot.lane.b32.xlu0 %v7728_v19, %s7614_s5  ;;  %v3365_v22 = vpack.c.bf16 %v8915_v61, %v8917_v32  ;;  %v8925_v48 = vpop.eup %7127 }
 0x9c1   :  { %10914 = vst [vmem:[#allocation138_spill] sm:$0xff] %v8925_v48 }
 0x9c2   :  { %6610 = vmatprep.mubr.msk.bf16.mxu0 %vm657_vm1, %v3365_v22 }
 0x9c3   :  { %v8928_v39 = vpop.eup %7129 }
 0x9c4   :  { %10915 = vst [vmem:[#allocation139_spill] sm:$0xff] %v8928_v39  ;;  %v3366_v8 = vpack.c.bf16 %v8928_v39, %v8925_v48  ;;  %3654 = vrot.lane.b32.xlu1 %v7744_v33, %s7614_s5  ;;  %3757 = vrot.lane.b32.xlu0 %v7730_v20, %s7614_s5 }
 0x9c6   :  { %6611 = vmatmul.mubr.msk.bf16.vlgmr.msra.gmra.mrb[80].mxu0 %vm657_vm1, %v3366_v8 }
 0x9c7   :  { %6635 = vmatpush3.bf16.xpose.msra.mxu0 %v3677_v0 }
 0x9c8   :  { %6915 = vmatprep.subr.msk.bf16.mxu0 %vm478_vm0, %v8801_v28  ;;  %3759 = vrot.lane.b32.xlu1 %v7746_v34, %s7614_s5 }
 0x9c9   :  { %4026 = vrot.lane.b32.xlu0 %v7762_v46, %s7614_s5 }
 0x9cc   :  { %4028 = vrot.lane.b32.xlu1 %v7760_v44, %s7614_s5 }
 0x9cd   :  { %4030 = vrot.lane.b32.xlu0 %v7777_v52, %s7614_s5 }
 0x9cf   :  { %6637 = vmatpush3.bf16.xpose.msra.mxu0 %v3680_v1 }
 0x9d0   :  { %6916 = vmatprep.subr.msk.bf16.mxu0 %vm478_vm0, %v3661_v12  ;;  %4032 = vrot.lane.b32.xlu1 %v7775_v50, %s7614_s5 }
 0x9d1   :  { %4115 = vrot.lane.b32.xlu0 %v7790_v62, %s7614_s5 }
 0x9d4   :  { %4117 = vrot.lane.b32.xlu1 %v7787_v58, %s7614_s5 }
 0x9d5   :  { %4121 = vrot.lane.b32.xlu0 %v7793_v2, %s7614_s5 }
 0x9d7   :  { %6639 = vmatpush3.bf16.xpose.msra.mxu0 %v3683_v51 }
 0x9d8   :  { %6917 = vmatprep.subr.msk.bf16.mxu0 %vm478_vm0, %v3663_v35  ;;  %4309 = vrot.lane.b32.xlu1 %v7696_v59, %s7615_s6 }
 0x9d9   :  { %4311 = vrot.lane.b32.xlu0 %v7716_v9, %s7615_s6 }
 0x9dc   :  { %4119 = vrot.lane.b32.xlu1 %v7795_v4, %s7614_s5 }
 0x9dd   :  { %4414 = vrot.lane.b32.xlu0 %v7698_v60, %s7615_s6 }
 0x9df   :  { %6641 = vmatpush3.bf16.xpose.msra.mxu0 %v3686_v30 }
 0x9e0   :  { %4313 = vrot.lane.b32.xlu1 %v7732_v23, %s7615_s6 }
 0x9e1   :  { %4315 = vrot.lane.b32.xlu0 %v7748_v37, %s7615_s6 }
 0x9e4   :  { %4416 = vrot.lane.b32.xlu1 %v7718_v10, %s7615_s6 }
 0x9e9   :  { %v3225_v29 = vpop.xlane.xlu0 %3224 }
 0x9ea   :  { %v3259_v28 = vsub.f32 %v8844_v14, %v3225_v29  ;;  %v3219_v13 = vpop.xlane.xlu1 %3218 }
 0x9eb   :  { %v3257_v63 = vsub.f32 %v8846_v36, %v3219_v13 }
 0x9ec   :  { %v3281_v11 = vmul.f32 1.442695, %v3259_v28 }
 0x9ed   :  { %v3277_v57 = vmul.f32 1.442695, %v3257_v63  ;;  %v3222_v12 = vpop.xlane.xlu0 %3221 }
 0x9ee   :  { %v3258_v35 = vsub.f32 %v8854_v25, %v3222_v12  ;;  %v3228_v41 = vpop.xlane.xlu1 %3227  ;;  %7131 = vpow2.f32 %v3281_v11 }
 0x9ef   :  { %v3260_v21 = vsub.f32 %v8850_v3, %v3228_v41  ;;  %7133 = vpow2.f32 %v3277_v57 }
 0x9f0   :  { %v3279_v18 = vmul.f32 1.442695, %v3258_v35 }
 0x9f1   :  { %v3283_v22 = vmul.f32 1.442695, %v3260_v21 }
 0x9f2   :  { %7135 = vpow2.f32 %v3279_v18 }
 0x9f3   :  { %7137 = vpow2.f32 %v3283_v22 }
 0x9f6   :  { %v3237_v8 = vpop.xlane.xlu0 %3236 }
 0x9f7   :  { %v3263_v14 = vsub.f32 %v8868_v54, %v3237_v8  ;;  %v3231_v0 = vpop.xlane.xlu1 %3230 }
 0x9f8   :  { %v3261_v36 = vsub.f32 %v8870_v27, %v3231_v0  ;;  %v8983_v51 = vpop.eup %7131  ;;  %v3785_v0 = vsel %vm478_vm0, %v8904_v42, 0 }
 0x9f9   :  { %v3289_v1 = vmul.f32 1.442695, %v3263_v14  ;;  %10916 = vst [vmem:[#allocation140_spill] sm:$0xff] %v8983_v51  ;;  %v8985_v29 = vpop.eup %7133  ;;  %v3782_v14 = vsel %vm478_vm0, %v8803_v43, 0 }
 0x9fa   :  { %v3285_v30 = vmul.f32 1.442695, %v3261_v36  ;;  %v3234_v25 = vpop.xlane.xlu0 %3233  ;;  %10917 = vst [vmem:[#allocation141_spill] sm:$0xff] %v8985_v29 }
 0x9fb   :  { %v3262_v3 = vsub.f32 %v8878_v47, %v3234_v25  ;;  %v3240_v28 = vpop.xlane.xlu1 %3239  ;;  %7139 = vpow2.f32 %v3289_v1 }
 0x9fc   :  { %v8988_v13 = vpop.eup %7135  ;;  %v3264_v63 = vsub.f32 %v8874_v17, %v3240_v28  ;;  %7141 = vpow2.f32 %v3285_v30 }
 0x9fd   :  { %10918 = vst [vmem:[#allocation142_spill] sm:$0xff] %v8988_v13  ;;  %v8991_v11 = vpop.eup %7137  ;;  %v3287_v54 = vmul.f32 1.442695, %v3262_v3  ;;  %v3367_v27 = vpack.c.bf16 %v8988_v13, %v8985_v29 }
 0x9fe   :  { %10919 = vst [vmem:[#allocation143_spill] sm:$0xff] %v8991_v11  ;;  %v3291_v57 = vmul.f32 1.442695, %v3264_v63  ;;  %v3368_v12 = vpack.c.bf16 %v8991_v11, %v8983_v51  ;;  %v3649_v47 = vpop.permute.xlu0 %3648 }
 0x9ff   :  { %7143 = vpow2.f32 %v3287_v54  ;;  %6614 = vmatprep.mubr.msk.bf16.mxu0 %vm657_vm1, %v3367_v27  ;;  %v3651_v35 = vpop.permute.xlu1 %3650 }
 0xa00   :  { %7145 = vpow2.f32 %v3291_v57  ;;  %6615 = vmatmul.mubr.msk.bf16.gmra.mrb[84].mxu0 %vm657_vm1, %v3368_v12 }
 0xa01   :  { %6642 = vmatprep.mubr.msk.bf16.mxu0 %vm478_vm0, %v3649_v47 }
 0xa05   :  { %v9000_v17 = vpop.eup %7139 }
 0xa06   :  { %10920 = vst [vmem:[#allocation144_spill] sm:$0xff] %v9000_v17  ;;  %v9002_v41 = vpop.eup %7141 }
 0xa07   :  { %10921 = vst [vmem:[#allocation145_spill] sm:$0xff] %v9002_v41 }
 0xa08   :  { %6643 = vmatmul.mubr.msk.bf16.vlgmr.msra.gmra.mrb[88].mxu0 %vm478_vm0, %v3651_v35 }
 0xa09   :  { %v9005_v21 = vpop.eup %7143 }
 0xa0a   :  { %10922 = vst [vmem:[#allocation146_spill] sm:$0xff] %v9005_v21  ;;  %v9007_v18 = vpop.eup %7145  ;;  %v3369_v22 = vpack.c.bf16 %v9005_v21, %v9002_v41 }
 0xa0b   :  { %10923 = vst [vmem:[#allocation147_spill] sm:$0xff] %v9007_v18  ;;  %v3370_v8 = vpack.c.bf16 %v9007_v18, %v9000_v17 }
 0xa0c   :  { %6626 = vmatprep.mubr.msk.bf16.mxu1 %vm657_vm1, %v3369_v22 }
 0xa0d   :  { %6627 = vmatmul.mubr.msk.bf16.vlgmr.msra.gmra.mrb[112].mxu1 %vm657_vm1, %v3370_v8 }
 0xa0e   :  { %6651 = vmatpush3.bf16.xpose.msra.mxu1 %v3782_v14 }
 0xa0f   :  { %6919 = vmatprep.subr.msk.bf16.mxu1 %vm478_vm0, %v8904_v42 }
 0xa16   :  { %6653 = vmatpush3.bf16.xpose.msra.mxu1 %v3785_v0 }
 0xa2f   :  { %v3246_v36 = vpop.xlane.xlu0 %3245 }
 0xa30   :  { %v3266_v1 = vsub.f32 %v8890_v7, %v3246_v36  ;;  %v3249_v30 = vpop.xlane.xlu1 %3248 }
 0xa31   :  { %v3267_v28 = vsub.f32 %v8884_v49, %v3249_v30 }
 0xa32   :  { %v3295_v3 = vmul.f32 1.442695, %v3266_v1 }
 0xa33   :  { %v3766_v25 = vpop.permute.xlu0 %3765  ;;  %v3297_v42 = vmul.f32 1.442695, %v3267_v28 }
 0xa34   :  { %6920 = vmatprep.subr.msk.bf16.mxu1 %vm478_vm0, %v3766_v25  ;;  %v3243_v63 = vpop.xlane.xlu1 %3242  ;;  %v3788_v43 = vsel %vm478_vm0, %v3766_v25, 0  ;;  %7147 = vpow2.f32 %v3295_v3 }
 0xa35   :  { %v3265_v54 = vsub.f32 %v8886_v15, %v3243_v63  ;;  %6655 = vmatpush3.bf16.xpose.msra.mxu1 %v3788_v43 }
 0xa37   :  { %v3293_v27 = vmul.f32 1.442695, %v3265_v54  ;;  %v3754_v57 = vpop.permute.xlu0 %3753 }
 0xa38   :  { %v3252_v12 = vpop.xlane.xlu1 %3251 }
 0xa39   :  { %7149 = vpow2.f32 %v3293_v27  ;;  %v3268_v7 = vsub.f32 %v8888_v16, %v3252_v12 }
 0xa3a   :  { %7151 = vpow2.f32 %v3297_v42 }
 0xa3b   :  { %v3299_v47 = vmul.f32 1.442695, %v3268_v7  ;;  %v3653_v35 = vpop.permute.xlu0 %3652 }
 0xa3c   :  { %6646 = vmatprep.mubr.msk.bf16.mxu0 %vm478_vm0, %v3653_v35  ;;  %v3768_v49 = vpop.permute.xlu1 %3767 }
 0xa3d   :  { %7153 = vpow2.f32 %v3299_v47  ;;  %6921 = vmatprep.subr.msk.bf16.mxu1 %vm478_vm0, %v3768_v49  ;;  %v3791_v15 = vsel %vm478_vm0, %v3768_v49, 0 }
 0xa3e   :  { %6657 = vmatpush3.bf16.xpose.msra.mxu1 %v3791_v15  ;;  %v9030_v14 = vpop.eup %7147 }
 0xa3f   :  { %v3758_v22 = vpop.permute.xlu0 %3757  ;;  %10924 = vst [vmem:[#allocation148_spill] sm:$0xff] %v9030_v14 }
 0xa40   :  { %v3756_v8 = vpop.permute.xlu1 %3755 }
 0xa43   :  { %v9032_v0 = vpop.eup %7149  ;;  %v4027_v36 = vpop.permute.xlu0 %4026 }
 0xa44   :  { %10925 = vst [vmem:[#allocation149_spill] sm:$0xff] %v9032_v0  ;;  %6666 = vmatprep.subr.bf16.mxu0 %v4027_v36  ;;  %v3655_v16 = vpop.permute.xlu1 %3654  ;;  %v3371_v1 = vpack.c.bf16 %v9030_v14, %v9032_v0  ;;  %v9037_v30 = vpop.eup %7151 }
 0xa45   :  { %6647 = vmatmul.mubr.msk.bf16.gmra.mrb[92].mxu0 %vm478_vm0, %v3655_v16  ;;  %10926 = vst [vmem:[#allocation150_spill] sm:$0xff] %v9037_v30 }
 0xa46   :  { %6667 = vmatpush3.bf16.msra.mxu0 %v4027_v36  ;;  %6630 = vmatprep.mubr.msk.bf16.mxu1 %vm657_vm1, %v3371_v1 }
 0xa47   :  { %v9040_v25 = vpop.eup %7153  ;;  %v4031_v3 = vpop.permute.xlu0 %4030 }
 0xa48   :  { %10927 = vst [vmem:[#allocation151_spill] sm:$0xff] %v9040_v25  ;;  %v3760_v28 = vpop.permute.xlu1 %3759  ;;  %v3372_v63 = vpack.c.bf16 %v9040_v25, %v9037_v30 }
 0xa4a   :  { %6631 = vmatmul.mubr.msk.bf16.gmra.mrb[116].mxu1 %vm657_vm1, %v3372_v63 }
 0xa4b   :  { %v4116_v43 = vpop.permute.xlu0 %4115  ;;  %6658 = vmatprep.mubr.msk.bf16.mxu1 %vm478_vm0, %v3754_v57 }
 0xa4c   :  { %6682 = vmatprep.subr.bf16.mxu1 %v4116_v43  ;;  %v4029_v54 = vpop.permute.xlu1 %4028 }
 0xa4d   :  { %6668 = vmatprep.subr.bf16.mxu0 %v4029_v54 }
 0xa4e   :  { %6669 = vmatpush3.bf16.msra.mxu0 %v4029_v54 }
 0xa4f   :  { %6670 = vmatprep.subr.bf16.mxu0 %v4031_v3  ;;  %v4122_v12 = vpop.permute.xlu0 %4121 }
 0xa50   :  { %v4033_v27 = vpop.permute.xlu1 %4032 }
 0xa52   :  { %6659 = vmatmul.mubr.msk.bf16.vlgmr.msra.gmra.mrb[120].mxu1 %vm478_vm0, %v3756_v8  ;;  %6671 = vmatpush3.bf16.msra.mxu0 %v4031_v3 }
 0xa53   :  { %6683 = vmatpush3.bf16.msra.mxu1 %v4116_v43  ;;  %6662 = vmatprep.mubr.msk.bf16.mxu1 %vm478_vm0, %v3758_v22  ;;  %v9053_v57 = vpop.permute.xlu0 %4311 }
 0xa54   :  { %6672 = vmatprep.subr.bf16.mxu0 %v4033_v27  ;;  %v4118_v42 = vpop.permute.xlu1 %4117 }
 0xa55   :  { %6684 = vmatprep.subr.bf16.mxu1 %v4118_v42 }
 0xa56   :  { %6673 = vmatpush3.bf16.msra.mxu0 %v4033_v27 }
 0xa57   :  { %6685 = vmatpush3.bf16.msra.mxu1 %v4118_v42  ;;  %v9055_v35 = vpop.permute.xlu0 %4414 }
 0xa58   :  { %v9048_v7 = vpop.permute.xlu1 %4309 }
 0xa59   :  { %6922 = vmatprep.subr.msk.bf16.mxu0 %vm478_vm0, %v9048_v7 }
 0xa5a   :  { %6663 = vmatmul.mubr.msk.bf16.gmra.mrb[124].mxu1 %vm478_vm0, %v3760_v28 }
 0xa5b   :  { %v4316_v25 = vpop.permute.xlu0 %4315 }
 0xa5c   :  { %v4120_v47 = vpop.permute.xlu1 %4119 }
 0xa5d   :  { %6686 = vmatprep.subr.bf16.mxu1 %v4120_v47 }
 0xa5e   :  { %6687 = vmatpush3.bf16.msra.mxu1 %v4120_v47 }
 0xa5f   :  { %6688 = vmatprep.subr.bf16.mxu1 %v4122_v12 }
 0xa62   :  { %6689 = vmatpush3.bf16.msra.mxu1 %v4122_v12 }
 0xa63   :  { %6926 = vmatprep.subr.msk.bf16.mxu1 %vm478_vm0, %v9055_v35 }
 0xa99   :  { %v9059_v49 = vpop.f32.mrb[80].mxu0 }
 0xa9a   :  { %10928 = vst [vmem:[#allocation152_spill] sm:$0xff] %v9059_v49  ;;  %v9061_v15 = vpop.f32.mrb[81].mxu0 }
 0xa9b   :  { %10929 = vst [vmem:[#allocation153_spill] sm:$0xff] %v9061_v15  ;;  %v9063_v22 = vpop.f32.mrb[82].mxu0 }
 0xa9c   :  { %10930 = vst [vmem:[#allocation154_spill] sm:$0xff] %v9063_v22  ;;  %v9065_v8 = vpop.f32.mrb[83].mxu0 }
 0xa9d   :  { %10931 = vst [vmem:[#allocation155_spill] sm:$0xff] %v9065_v8 }
 0xad3   :  { %v9067_v36 = vpop.f32.mrb[84].mxu0 }
 0xad4   :  { %10932 = vst [vmem:[#allocation156_spill] sm:$0xff] %v9067_v36  ;;  %v9069_v16 = vpop.f32.mrb[85].mxu0 }
 0xad5   :  { %10933 = vst [vmem:[#allocation157_spill] sm:$0xff] %v9069_v16  ;;  %v9071_v1 = vpop.f32.mrb[86].mxu0 }
 0xad6   :  { %10934 = vst [vmem:[#allocation158_spill] sm:$0xff] %v9071_v1  ;;  %v9073_v3 = vpop.f32.mrb[87].mxu0 }
 0xad7   :  { %10935 = vst [vmem:[#allocation159_spill] sm:$0xff] %v9073_v3 }
 0xadb   :  { %v9075_v28 = vpop.f32.mrb[88].mxu0 }
 0xadc   :  { %v9077_v63 = vpop.f32.mrb[89].mxu0  ;;  %v3864_v43 = vsel %vm657_vm1, %v9075_v28, -inf }
 0xadd   :  { %3865 = vmax.xlane.f32.xlu0 %v3864_v43  ;;  %v9081_v54 = vpop.f32.mrb[90].mxu0  ;;  %v3858_v47 = vsel %vm657_vm1, %v9077_v63, -inf }
 0xade   :  { %v3725_v27 = vpop.f32.mrb[91].mxu0  ;;  %v3867_v43 = vsel %vm657_vm1, %v9081_v54, -inf }
 0xadf   :  { %v3861_v42 = vsel %vm657_vm1, %v3725_v27, -inf }
 0xae0   :  { %v9084_v12 = vpop.f32.mrb[112].mxu1  ;;  %3862 = vmax.xlane.f32.xlu1 %v3861_v42 }
 0xae1   :  { %10936 = vst [vmem:[#allocation160_spill] sm:$0xff] %v9084_v12  ;;  %v9088_v1 = vpop.f32.mrb[113].mxu1  ;;  %3859 = vmax.xlane.f32.xlu0 %v3858_v47 }
 0xae2   :  { %10937 = vst [vmem:[#allocation161_spill] sm:$0xff] %v9088_v1  ;;  %v9090_v3 = vpop.f32.mrb[114].mxu1 }
 0xae3   :  { %10938 = vst [vmem:[#allocation162_spill] sm:$0xff] %v9090_v3  ;;  %v9092_v36 = vpop.f32.mrb[115].mxu1 }
 0xae4   :  { %10939 = vst [vmem:[#allocation163_spill] sm:$0xff] %v9092_v36 }
 0xae5   :  { %3868 = vmax.xlane.f32.xlu0 %v3867_v43 }
 0xb18   :  { %v9096_v16 = vpop.f32.mrb[92].mxu0 }
 0xb19   :  { %v9098_v22 = vpop.f32.mrb[93].mxu0  ;;  %v3876_v42 = vsel %vm657_vm1, %v9096_v16, -inf }
 0xb1a   :  { %3877 = vmax.xlane.f32.xlu0 %v3876_v42  ;;  %v9102_v12 = vpop.f32.mrb[94].mxu0  ;;  %v3870_v47 = vsel %vm657_vm1, %v9098_v22, -inf }
 0xb1b   :  { %3871 = vmax.xlane.f32.xlu1 %v3870_v47  ;;  %v9106_v3 = vpop.f32.mrb[95].mxu0  ;;  %v3879_v8 = vsel %vm657_vm1, %v9102_v12, -inf }
 0xb1c   :  { %v3873_v36 = vsel %vm657_vm1, %v9106_v3, -inf }
 0xb1d   :  { %v9110_v43 = vpop.f32.mrb[116].mxu1 }
 0xb1e   :  { %10940 = vst [vmem:[#allocation164_spill] sm:$0xff] %v9110_v43  ;;  %v9112_v1 = vpop.f32.mrb[117].mxu1  ;;  %3874 = vmax.xlane.f32.xlu0 %v3873_v36 }
 0xb1f   :  { %10941 = vst [vmem:[#allocation165_spill] sm:$0xff] %v9112_v1  ;;  %v9116_v42 = vpop.f32.mrb[118].mxu1  ;;  %3880 = vmax.xlane.f32.xlu1 %v3879_v8 }
 0xb20   :  { %10942 = vst [vmem:[#allocation166_spill] sm:$0xff] %v9116_v42  ;;  %v9118_v49 = vpop.f32.mrb[119].mxu1 }
 0xb21   :  { %10943 = vst [vmem:[#allocation167_spill] sm:$0xff] %v9118_v49 }
 0xb25   :  { %v9120_v15 = vpop.f32.mrb[120].mxu1 }
 0xb26   :  { %v9122_v47 = vpop.f32.mrb[121].mxu1  ;;  %v3888_v30 = vsel %vm657_vm1, %v9120_v15, -inf }
 0xb27   :  { %v9126_v0 = vpop.f32.mrb[122].mxu1  ;;  %3889 = vmax.xlane.f32.xlu0 %v3888_v30  ;;  %v3882_v36 = vsel %vm657_vm1, %v9122_v47, -inf }
 0xb28   :  { %v9130_v43 = vpop.f32.mrb[123].mxu1  ;;  %3883 = vmax.xlane.f32.xlu1 %v3882_v36  ;;  %v3891_v42 = vsel %vm657_vm1, %v9126_v0, -inf }
 0xb29   :  { %v3885_v8 = vsel %vm657_vm1, %v9130_v43, -inf }
 0xb2b   :  { %3886 = vmax.xlane.f32.xlu0 %v3885_v8  ;;  %v4314_v8 = vpop.permute.xlu1 %4313 }
 0xb2c   :  { %3892 = vmax.xlane.f32.xlu1 %v3891_v42 }
 0xb2d   :  { %v9136_v49 = vpop.f32.mrb[124].mxu1 }
 0xb2e   :  { %v9138_v1 = vpop.f32.mrb[125].mxu1  ;;  %v3900_v42 = vsel %vm657_vm1, %v9136_v49, -inf }
 0xb2f   :  { %v9140_v17 = vpop.f32.mrb[126].mxu1  ;;  %v3894_v41 = vsel %vm657_vm1, %v9138_v1, -inf  ;;  %v9156_v51 = vpop.permute.xlu1 %4416 }
 0xb30   :  { %v9142_v30 = vpop.f32.mrb[127].mxu1  ;;  %v3903_v14 = vsel %vm657_vm1, %v9140_v17, -inf }
 0xb31   :  { %v3897_v36 = vsel %vm657_vm1, %v9142_v30, -inf }
 0xb3d   :  { %4303 = vrot.lane.b32.xlu1 %v7712_v5, %s7615_s6 }
 0xb41   :  { %4301 = vrot.lane.b32.xlu0 %v7692_v55, %s7615_s6 }
 0xb60   :  { %3898 = vmax.xlane.f32.xlu0 %v3897_v36 }
 0xb61   :  { %3901 = vmax.xlane.f32.xlu1 %v3900_v42 }
 0xb65   :  { %3895 = vmax.xlane.f32.xlu1 %v3894_v41 }
 0xb69   :  { %3904 = vmax.xlane.f32.xlu1 %v3903_v14  ;;  %v4339_v14 = vsel %vm478_vm0, %v4316_v25, 0 }
 0xb6a   :  { %v3866_v18 = vpop.xlane.xlu0 %3865 }
 0xb6b   :  { %v3908_v36 = vsub.f32 %v9075_v28, %v3866_v18  ;;  %v4336_v18 = vsel %vm478_vm0, %v4314_v8, 0 }
 0xb6d   :  { %v3863_v29 = vpop.xlane.xlu1 %3862  ;;  %v3926_v13 = vmul.f32 1.442695, %v3908_v36 }
 0xb6e   :  { %v3907_v21 = vsub.f32 %v3725_v27, %v3863_v29  ;;  %v3860_v48 = vpop.xlane.xlu0 %3859 }
 0xb6f   :  { %v3906_v42 = vsub.f32 %v9077_v63, %v3860_v48 }
 0xb70   :  { %v3924_v11 = vmul.f32 1.442695, %v3907_v21  ;;  %v4333_v21 = vsel %vm478_vm0, %v9053_v57, 0 }
 0xb71   :  { %v3922_v32 = vmul.f32 1.442695, %v3906_v42 }
 0xb72   :  { %7155 = vpow2.f32 %v3924_v11  ;;  %v3869_v41 = vpop.xlane.xlu0 %3868  ;;  %v4330_v11 = vsel %vm478_vm0, %v9048_v7, 0 }
 0xb73   :  { %7157 = vpow2.f32 %v3922_v32  ;;  %v3909_v39 = vsub.f32 %v9081_v54, %v3869_v41  ;;  %v4435_v41 = vsel %vm478_vm0, %v9055_v35, 0 }
 0xb74   :  { %7159 = vpow2.f32 %v3926_v13 }
 0xb75   :  { %v3928_v61 = vmul.f32 1.442695, %v3909_v39 }
 0xb76   :  { %4418 = vrot.lane.b32.xlu0 %v7734_v24, %s7615_s6 }
 0xb77   :  { %7161 = vpow2.f32 %v3928_v61 }
 0xb7a   :  { %4420 = vrot.lane.b32.xlu1 %v7750_v38, %s7615_s6  ;;  %4406 = vrot.lane.b32.xlu0 %v7694_v56, %s7615_s6 }
 0xb7c   :  { %v9167_v48 = vpop.eup %7155 }
 0xb7d   :  { %v9169_v29 = vpop.eup %7157 }
 0xb7e   :  { %4408 = vrot.lane.b32.xlu1 %v7714_v6, %s7615_s6  ;;  %4305 = vrot.lane.b32.xlu0 %v7728_v19, %s7615_s6  ;;  %v4018_v32 = vpack.c.bf16 %v9167_v48, %v9169_v29  ;;  %v9177_v61 = vpop.eup %7159 }
 0xb80   :  { %6674 = vmatprep.mubr.msk.bf16.mxu0 %vm657_vm1, %v4018_v32  ;;  %v4438_v32 = vsel %vm478_vm0, %v9156_v51, 0 }
 0xb81   :  { %v9180_v39 = vpop.eup %7161 }
 0xb82   :  { %v4019_v13 = vpack.c.bf16 %v9180_v39, %v9177_v61  ;;  %4307 = vrot.lane.b32.xlu1 %v7744_v33, %s7615_s6  ;;  %4410 = vrot.lane.b32.xlu0 %v7730_v20, %s7615_s6 }
 0xb84   :  { %6675 = vmatmul.mubr.msk.bf16.vlgmr.msra.gmra.mrb[96].mxu0 %vm657_vm1, %v4019_v13 }
 0xb85   :  { %6699 = vmatpush3.bf16.xpose.msra.mxu0 %v4330_v11 }
 0xb86   :  { %6923 = vmatprep.subr.msk.bf16.mxu0 %vm478_vm0, %v9053_v57  ;;  %4412 = vrot.lane.b32.xlu1 %v7746_v34, %s7615_s6 }
 0xb87   :  { %4679 = vrot.lane.b32.xlu0 %v7762_v46, %s7615_s6 }
 0xb8a   :  { %4681 = vrot.lane.b32.xlu1 %v7760_v44, %s7615_s6 }
 0xb8b   :  { %4683 = vrot.lane.b32.xlu0 %v7777_v52, %s7615_s6 }
 0xb8d   :  { %6701 = vmatpush3.bf16.xpose.msra.mxu0 %v4333_v21 }
 0xb8e   :  { %6924 = vmatprep.subr.msk.bf16.mxu0 %vm478_vm0, %v4314_v8  ;;  %4685 = vrot.lane.b32.xlu1 %v7775_v50, %s7615_s6 }
 0xb8f   :  { %4768 = vrot.lane.b32.xlu0 %v7790_v62, %s7615_s6 }
 0xb92   :  { %4770 = vrot.lane.b32.xlu1 %v7787_v58, %s7615_s6 }
 0xb93   :  { %4774 = vrot.lane.b32.xlu0 %v7793_v2, %s7615_s6 }
 0xb95   :  { %6703 = vmatpush3.bf16.xpose.msra.mxu0 %v4336_v18 }
 0xb96   :  { %6925 = vmatprep.subr.msk.bf16.mxu0 %vm478_vm0, %v4316_v25  ;;  %4962 = vrot.lane.b32.xlu1 %v7696_v59, %s7616_s7 }
 0xb97   :  { %4964 = vrot.lane.b32.xlu0 %v7716_v9, %s7616_s7 }
 0xb9a   :  { %4772 = vrot.lane.b32.xlu1 %v7795_v4, %s7615_s6 }
 0xb9b   :  { %5067 = vrot.lane.b32.xlu0 %v7698_v60, %s7616_s7 }
 0xb9d   :  { %6705 = vmatpush3.bf16.xpose.msra.mxu0 %v4339_v14 }
 0xb9e   :  { %4966 = vrot.lane.b32.xlu1 %v7732_v23, %s7616_s7 }
 0xb9f   :  { %4968 = vrot.lane.b32.xlu0 %v7748_v37, %s7616_s7 }
 0xba2   :  { %5069 = vrot.lane.b32.xlu1 %v7718_v10, %s7616_s7 }
 0xba3   :  { %4954 = vrot.lane.b32.xlu0 %v7692_v55, %s7616_s7 }
 0xba6   :  { %4956 = vrot.lane.b32.xlu1 %v7712_v5, %s7616_s7 }
 0xba7   :  { %5071 = vrot.lane.b32.xlu0 %v7734_v24, %s7616_s7  ;;  %v3878_v59 = vpop.xlane.xlu0 %3877 }
 0xba8   :  { %v3912_v60 = vsub.f32 %v9096_v16, %v3878_v59  ;;  %v3872_v9 = vpop.xlane.xlu1 %3871 }
 0xba9   :  { %v3910_v23 = vsub.f32 %v9098_v22, %v3872_v9 }
 0xbaa   :  { %v3934_v25 = vmul.f32 1.442695, %v3912_v60  ;;  %4958 = vrot.lane.b32.xlu1 %v7728_v19, %s7616_s7 }
 0xbab   :  { %v3930_v10 = vmul.f32 1.442695, %v3910_v23  ;;  %4960 = vrot.lane.b32.xlu0 %v7744_v33, %s7616_s7  ;;  %v3875_v55 = vpop.xlane.xlu0 %3874 }
 0xbac   :  { %v3911_v5 = vsub.f32 %v9106_v3, %v3875_v55  ;;  %v3881_v37 = vpop.xlane.xlu1 %3880  ;;  %7163 = vpow2.f32 %v3934_v25 }
 0xbad   :  { %v3913_v24 = vsub.f32 %v9102_v12, %v3881_v37  ;;  %7165 = vpow2.f32 %v3930_v10 }
 0xbae   :  { %v3932_v7 = vmul.f32 1.442695, %v3911_v5  ;;  %5073 = vrot.lane.b32.xlu1 %v7750_v38, %s7616_s7 }
 0xbaf   :  { %v3936_v57 = vmul.f32 1.442695, %v3913_v24  ;;  %5059 = vrot.lane.b32.xlu0 %v7694_v56, %s7616_s7 }
 0xbb0   :  { %7167 = vpow2.f32 %v3932_v7 }
 0xbb1   :  { %7169 = vpow2.f32 %v3936_v57 }
 0xbb2   :  { %5061 = vrot.lane.b32.xlu1 %v7714_v6, %s7616_s7 }
 0xbb3   :  { %5063 = vrot.lane.b32.xlu0 %v7730_v20, %s7616_s7 }
 0xbb4   :  { %v3890_v19 = vpop.xlane.xlu0 %3889 }
 0xbb5   :  { %v3916_v33 = vsub.f32 %v9120_v15, %v3890_v19  ;;  %v3884_v22 = vpop.xlane.xlu1 %3883 }
 0xbb6   :  { %v3914_v16 = vsub.f32 %v9122_v47, %v3884_v22  ;;  %5065 = vrot.lane.b32.xlu1 %v7746_v34, %s7616_s7  ;;  %v9257_v56 = vpop.eup %7163 }
 0xbb7   :  { %v3942_v38 = vmul.f32 1.442695, %v3916_v33  ;;  %5332 = vrot.lane.b32.xlu0 %v7762_v46, %s7616_s7  ;;  %v9259_v28 = vpop.eup %7165 }
 0xbb8   :  { %v3938_v3 = vmul.f32 1.442695, %v3914_v16  ;;  %v3887_v6 = vpop.xlane.xlu0 %3886 }
 0xbb9   :  { %v3915_v20 = vsub.f32 %v9130_v43, %v3887_v6  ;;  %v3893_v63 = vpop.xlane.xlu1 %3892  ;;  %7171 = vpow2.f32 %v3942_v38 }
 0xbba   :  { %v9262_v15 = vpop.eup %7167  ;;  %v3917_v54 = vsub.f32 %v9126_v0, %v3893_v63  ;;  %5334 = vrot.lane.b32.xlu1 %v7760_v44, %s7616_s7  ;;  %7173 = vpow2.f32 %v3938_v3 }
 0xbbb   :  { %v9267_v34 = vpop.eup %7169  ;;  %v3940_v46 = vmul.f32 1.442695, %v3915_v20  ;;  %5336 = vrot.lane.b32.xlu0 %v7777_v52, %s7616_s7  ;;  %v4020_v27 = vpack.c.bf16 %v9262_v15, %v9259_v28 }
 0xbbc   :  { %v3944_v12 = vmul.f32 1.442695, %v3917_v54  ;;  %v4021_v43 = vpack.c.bf16 %v9267_v34, %v9257_v56  ;;  %v4302_v44 = vpop.permute.xlu0 %4301 }
 0xbbd   :  { %7175 = vpow2.f32 %v3940_v46  ;;  %6678 = vmatprep.mubr.msk.bf16.mxu0 %vm657_vm1, %v4020_v27  ;;  %v4304_v0 = vpop.permute.xlu1 %4303 }
 0xbbe   :  { %7177 = vpow2.f32 %v3944_v12  ;;  %5338 = vrot.lane.b32.xlu1 %v7775_v50, %s7616_s7  ;;  %6679 = vmatmul.mubr.msk.bf16.gmra.mrb[100].mxu0 %vm657_vm1, %v4021_v43 }
 0xbbf   :  { %6706 = vmatprep.mubr.msk.bf16.mxu0 %vm478_vm0, %v4302_v44 }
 0xbc3   :  { %v9280_v52 = vpop.eup %7171 }
 0xbc4   :  { %10944 = vst [vmem:[#allocation168_spill] sm:$0xff] %v9280_v52  ;;  %v9282_v47 = vpop.eup %7173 }
 0xbc5   :  { %10945 = vst [vmem:[#allocation169_spill] sm:$0xff] %v9282_v47 }
 0xbc6   :  { %6707 = vmatmul.mubr.msk.bf16.vlgmr.msra.gmra.mrb[104].mxu0 %vm478_vm0, %v4304_v0 }
 0xbc7   :  { %v9285_v8 = vpop.eup %7175 }
 0xbc8   :  { %v9287_v36 = vpop.eup %7177  ;;  %v4022_v42 = vpack.c.bf16 %v9285_v8, %v9282_v47  ;;  %v1998_v47 = vsel %vm657_vm1, %v8411_v40, 0.0  ;;  %v2651_v40 = vsel %vm657_vm1, %v8663_v31, 0.0 }
 0xbc9   :  { %v4023_v50 = vpack.c.bf16 %v9287_v36, %v9280_v52 }
 0xbca   :  { %6690 = vmatprep.mubr.msk.bf16.mxu1 %vm657_vm1, %v4022_v42 }
 0xbcb   :  { %6691 = vmatmul.mubr.msk.bf16.vlgmr.msra.gmra.mrb[128].mxu1 %vm657_vm1, %v4023_v50 }
 0xbcc   :  { %6715 = vmatpush3.bf16.xpose.msra.mxu1 %v4435_v41 }
 0xbcd   :  { %6927 = vmatprep.subr.msk.bf16.mxu1 %vm478_vm0, %v9156_v51 }
 0xbd4   :  { %6717 = vmatpush3.bf16.xpose.msra.mxu1 %v4438_v32 }
 0xbed   :  { %v3899_v13 = vpop.xlane.xlu0 %3898 }
 0xbee   :  { %v3919_v11 = vsub.f32 %v9142_v30, %v3899_v13  ;;  %v3902_v21 = vpop.xlane.xlu1 %3901 }
 0xbef   :  { %v3920_v59 = vsub.f32 %v9136_v49, %v3902_v21 }
 0xbf0   :  { %v3948_v14 = vmul.f32 1.442695, %v3919_v11 }
 0xbf1   :  { %v4419_v18 = vpop.permute.xlu0 %4418  ;;  %v3950_v51 = vmul.f32 1.442695, %v3920_v59 }
 0xbf2   :  { %6928 = vmatprep.subr.msk.bf16.mxu1 %vm478_vm0, %v4419_v18  ;;  %v3896_v60 = vpop.xlane.xlu1 %3895  ;;  %v4441_v35 = vsel %vm478_vm0, %v4419_v18, 0  ;;  %7179 = vpow2.f32 %v3948_v14 }
 0xbf3   :  { %v3918_v9 = vsub.f32 %v9138_v1, %v3896_v60  ;;  %6719 = vmatpush3.bf16.xpose.msra.mxu1 %v4441_v35 }
 0xbf5   :  { %v3946_v23 = vmul.f32 1.442695, %v3918_v9  ;;  %v4407_v25 = vpop.permute.xlu0 %4406 }
 0xbf6   :  { %v3905_v10 = vpop.xlane.xlu1 %3904 }
 0xbf7   :  { %7181 = vpow2.f32 %v3946_v23  ;;  %v3921_v30 = vsub.f32 %v9140_v17, %v3905_v10 }
 0xbf8   :  { %7183 = vpow2.f32 %v3950_v51 }
 0xbf9   :  { %v3952_v55 = vmul.f32 1.442695, %v3921_v30  ;;  %v4306_v5 = vpop.permute.xlu0 %4305 }
 0xbfa   :  { %6710 = vmatprep.mubr.msk.bf16.mxu0 %vm478_vm0, %v4306_v5  ;;  %v4421_v49 = vpop.permute.xlu1 %4420 }
 0xbfb   :  { %7185 = vpow2.f32 %v3952_v55  ;;  %6929 = vmatprep.subr.msk.bf16.mxu1 %vm478_vm0, %v4421_v49  ;;  %v4444_v1 = vsel %vm478_vm0, %v4421_v49, 0 }
 0xbfc   :  { %6721 = vmatpush3.bf16.xpose.msra.mxu1 %v4444_v1  ;;  %v9310_v7 = vpop.eup %7179 }
 0xbfd   :  { %v4411_v37 = vpop.permute.xlu0 %4410  ;;  %10946 = vst [vmem:[#allocation170_spill] sm:$0xff] %v9310_v7 }
 0xbfe   :  { %v4409_v24 = vpop.permute.xlu1 %4408 }
 0xc01   :  { %v9312_v57 = vpop.eup %7181  ;;  %v4680_v19 = vpop.permute.xlu0 %4679 }
 0xc02   :  { %10947 = vst [vmem:[#allocation171_spill] sm:$0xff] %v9312_v57  ;;  %6730 = vmatprep.subr.bf16.mxu0 %v4680_v19  ;;  %v4308_v17 = vpop.permute.xlu1 %4307  ;;  %v4024_v33 = vpack.c.bf16 %v9310_v7, %v9312_v57  ;;  %v9317_v22 = vpop.eup %7183 }
 0xc03   :  { %6711 = vmatmul.mubr.msk.bf16.gmra.mrb[108].mxu0 %vm478_vm0, %v4308_v17  ;;  %10948 = vst [vmem:[#allocation172_spill] sm:$0xff] %v9317_v22 }
 0xc04   :  { %6731 = vmatpush3.bf16.msra.mxu0 %v4680_v19  ;;  %6694 = vmatprep.mubr.msk.bf16.mxu1 %vm657_vm1, %v4024_v33 }
 0xc05   :  { %v9320_v16 = vpop.eup %7185  ;;  %v4684_v38 = vpop.permute.xlu0 %4683 }
 0xc06   :  { %10949 = vst [vmem:[#allocation173_spill] sm:$0xff] %v9320_v16  ;;  %v4413_v3 = vpop.permute.xlu1 %4412  ;;  %v4025_v6 = vpack.c.bf16 %v9320_v16, %v9317_v22 }
 0xc08   :  { %6695 = vmatmul.mubr.msk.bf16.gmra.mrb[132].mxu1 %vm657_vm1, %v4025_v6 }
 0xc09   :  { %v4769_v20 = vpop.permute.xlu0 %4768  ;;  %6722 = vmatprep.mubr.msk.bf16.mxu1 %vm478_vm0, %v4407_v25 }
 0xc0a   :  { %6746 = vmatprep.subr.bf16.mxu1 %v4769_v20  ;;  %v4682_v63 = vpop.permute.xlu1 %4681 }
 0xc0b   :  { %6732 = vmatprep.subr.bf16.mxu0 %v4682_v63 }
 0xc0c   :  { %6733 = vmatpush3.bf16.msra.mxu0 %v4682_v63 }
 0xc0d   :  { %6734 = vmatprep.subr.bf16.mxu0 %v4684_v38  ;;  %v4775_v27 = vpop.permute.xlu0 %4774 }
 0xc0e   :  { %v4686_v54 = vpop.permute.xlu1 %4685 }
 0xc10   :  { %6723 = vmatmul.mubr.msk.bf16.vlgmr.msra.gmra.mrb[136].mxu1 %vm478_vm0, %v4409_v24  ;;  %6735 = vmatpush3.bf16.msra.mxu0 %v4684_v38 }
 0xc11   :  { %6747 = vmatpush3.bf16.msra.mxu1 %v4769_v20  ;;  %6726 = vmatprep.mubr.msk.bf16.mxu1 %vm478_vm0, %v4411_v37  ;;  %v9333_v43 = vpop.permute.xlu0 %4964 }
 0xc12   :  { %6736 = vmatprep.subr.bf16.mxu0 %v4686_v54  ;;  %v4771_v46 = vpop.permute.xlu1 %4770 }
 0xc13   :  { %6748 = vmatprep.subr.bf16.mxu1 %v4771_v46 }
 0xc14   :  { %6737 = vmatpush3.bf16.msra.mxu0 %v4686_v54 }
 0xc15   :  { %6749 = vmatpush3.bf16.msra.mxu1 %v4771_v46  ;;  %v9335_v0 = vpop.permute.xlu0 %5067 }
 0xc16   :  { %v9328_v12 = vpop.permute.xlu1 %4962 }
 0xc17   :  { %6930 = vmatprep.subr.msk.bf16.mxu0 %vm478_vm0, %v9328_v12 }
 0xc18   :  { %6727 = vmatmul.mubr.msk.bf16.gmra.mrb[140].mxu1 %vm478_vm0, %v4413_v3 }
 0xc1a   :  { %v4773_v44 = vpop.permute.xlu1 %4772 }
 0xc1b   :  { %6750 = vmatprep.subr.bf16.mxu1 %v4773_v44 }
 0xc1c   :  { %6751 = vmatpush3.bf16.msra.mxu1 %v4773_v44 }
 0xc1d   :  { %6752 = vmatprep.subr.bf16.mxu1 %v4775_v27 }
 0xc20   :  { %6753 = vmatpush3.bf16.msra.mxu1 %v4775_v27 }
 0xc21   :  { %6934 = vmatprep.subr.msk.bf16.mxu1 %vm478_vm0, %v9335_v0 }
 0xc57   :  { %v9339_v42 = vpop.f32.mrb[96].mxu0 }
 0xc58   :  { %10950 = vst [vmem:[#allocation174_spill] sm:$0xff] %v9339_v42  ;;  %v9341_v50 = vpop.f32.mrb[97].mxu0 }
 0xc59   :  { %10951 = vst [vmem:[#allocation175_spill] sm:$0xff] %v9341_v50  ;;  %v9343_v41 = vpop.f32.mrb[98].mxu0 }
 0xc5a   :  { %10952 = vst [vmem:[#allocation176_spill] sm:$0xff] %v9343_v41  ;;  %v9345_v32 = vpop.f32.mrb[99].mxu0 }
 0xc5b   :  { %10953 = vst [vmem:[#allocation177_spill] sm:$0xff] %v9345_v32  ;;  %v1337_v32 = vsel %vm657_vm1, %v8163_v45, 0.0 }
 0xc91   :  { %v9347_v13 = vpop.f32.mrb[100].mxu0 }
 0xc92   :  { %10954 = vst [vmem:[#allocation178_spill] sm:$0xff] %v9347_v13  ;;  %v9349_v11 = vpop.f32.mrb[101].mxu0 }
 0xc93   :  { %10955 = vst [vmem:[#allocation179_spill] sm:$0xff] %v9349_v11  ;;  %v9351_v21 = vpop.f32.mrb[102].mxu0 }
 0xc94   :  { %10956 = vst [vmem:[#allocation180_spill] sm:$0xff] %v9351_v21  ;;  %v9353_v18 = vpop.f32.mrb[103].mxu0 }
 0xc95   :  { %10957 = vst [vmem:[#allocation181_spill] sm:$0xff] %v9353_v18 }
 0xc99   :  { %v9355_v14 = vpop.f32.mrb[104].mxu0 }
 0xc9a   :  { %v9357_v59 = vpop.f32.mrb[105].mxu0  ;;  %v4517_v60 = vsel %vm657_vm1, %v9355_v14, -inf }
 0xc9b   :  { %4518 = vmax.xlane.f32.xlu0 %v4517_v60  ;;  %v9361_v35 = vpop.f32.mrb[106].mxu0  ;;  %v4511_v51 = vsel %vm657_vm1, %v9357_v59, -inf }
 0xc9c   :  { %v9363_v9 = vpop.f32.mrb[107].mxu0  ;;  %v4520_v5 = vsel %vm657_vm1, %v9361_v35, -inf }
 0xc9d   :  { %v4514_v23 = vsel %vm657_vm1, %v9363_v9, -inf }
 0xc9e   :  { %v9367_v25 = vpop.f32.mrb[128].mxu1  ;;  %4515 = vmax.xlane.f32.xlu1 %v4514_v23 }
 0xc9f   :  { %10958 = vst [vmem:[#allocation182_spill] sm:$0xff] %v9367_v25  ;;  %v9371_v10 = vpop.f32.mrb[129].mxu1  ;;  %4512 = vmax.xlane.f32.xlu0 %v4511_v51 }
 0xca0   :  { %10959 = vst [vmem:[#allocation183_spill] sm:$0xff] %v9371_v10  ;;  %v9373_v30 = vpop.f32.mrb[130].mxu1 }
 0xca1   :  { %10960 = vst [vmem:[#allocation184_spill] sm:$0xff] %v9373_v30  ;;  %v9375_v55 = vpop.f32.mrb[131].mxu1 }
 0xca2   :  { %10961 = vst [vmem:[#allocation185_spill] sm:$0xff] %v9375_v55 }
 0xca3   :  { %4521 = vmax.xlane.f32.xlu0 %v4520_v5 }
 0xcd6   :  { %v9379_v49 = vpop.f32.mrb[108].mxu0 }
 0xcd7   :  { %v9381_v1 = vpop.f32.mrb[109].mxu0  ;;  %v4529_v37 = vsel %vm657_vm1, %v9379_v49, -inf }
 0xcd8   :  { %4530 = vmax.xlane.f32.xlu0 %v4529_v37  ;;  %v9385_v24 = vpop.f32.mrb[110].mxu0  ;;  %v4523_v19 = vsel %vm657_vm1, %v9381_v1, -inf }
 0xcd9   :  { %4524 = vmax.xlane.f32.xlu1 %v4523_v19  ;;  %v9389_v17 = vpop.f32.mrb[111].mxu0  ;;  %v4532_v6 = vsel %vm657_vm1, %v9385_v24, -inf }
 0xcda   :  { %v4526_v33 = vsel %vm657_vm1, %v9389_v17, -inf }
 0xcdb   :  { %v9393_v38 = vpop.f32.mrb[132].mxu1 }
 0xcdc   :  { %10962 = vst [vmem:[#allocation186_spill] sm:$0xff] %v9393_v38  ;;  %v9395_v3 = vpop.f32.mrb[133].mxu1  ;;  %4527 = vmax.xlane.f32.xlu0 %v4526_v33 }
 0xcdd   :  { %10963 = vst [vmem:[#allocation187_spill] sm:$0xff] %v9395_v3  ;;  %v9399_v20 = vpop.f32.mrb[134].mxu1  ;;  %4533 = vmax.xlane.f32.xlu1 %v4532_v6 }
 0xcde   :  { %10964 = vst [vmem:[#allocation188_spill] sm:$0xff] %v9399_v20  ;;  %v9401_v63 = vpop.f32.mrb[135].mxu1  ;;  %v9435_v20 = vpop.permute.xlu0 %4968 }
 0xcdf   :  { %10965 = vst [vmem:[#allocation189_spill] sm:$0xff] %v9401_v63 }
 0xce3   :  { %v9403_v54 = vpop.f32.mrb[136].mxu1 }
 0xce4   :  { %v9405_v46 = vpop.f32.mrb[137].mxu1  ;;  %v4541_v27 = vsel %vm657_vm1, %v9403_v54, -inf }
 0xce5   :  { %v9409_v44 = vpop.f32.mrb[138].mxu1  ;;  %4542 = vmax.xlane.f32.xlu0 %v4541_v27  ;;  %v4535_v60 = vsel %vm657_vm1, %v9405_v46, -inf }
 0xce6   :  { %v9413_v23 = vpop.f32.mrb[139].mxu1  ;;  %4536 = vmax.xlane.f32.xlu1 %v4535_v60  ;;  %v4544_v5 = vsel %vm657_vm1, %v9409_v44, -inf }
 0xce7   :  { %v4538_v51 = vsel %vm657_vm1, %v9413_v23, -inf }
 0xce9   :  { %4539 = vmax.xlane.f32.xlu0 %v4538_v51 }
 0xcea   :  { %4545 = vmax.xlane.f32.xlu1 %v4544_v5  ;;  %v9433_v5 = vpop.permute.xlu1 %4966 }
 0xceb   :  { %v9419_v37 = vpop.f32.mrb[140].mxu1 }
 0xcec   :  { %v9421_v19 = vpop.f32.mrb[141].mxu1  ;;  %v4553_v33 = vsel %vm657_vm1, %v9419_v37, -inf }
 0xced   :  { %v9425_v6 = vpop.f32.mrb[142].mxu1  ;;  %v4547_v60 = vsel %vm657_vm1, %v9421_v19, -inf }
 0xcee   :  { %4554 = vmax.xlane.f32.xlu1 %v4553_v33  ;;  %v9427_v27 = vpop.f32.mrb[143].mxu1  ;;  %v4556_v51 = vsel %vm657_vm1, %v9425_v6, -inf  ;;  %v9437_v63 = vpop.permute.xlu1 %5069 }
 0xcef   :  { %v9441_v33 = vpop.permute.xlu0 %4954  ;;  %v4550_v25 = vsel %vm657_vm1, %v9427_v27, -inf }
 0xcf2   :  { %4548 = vmax.xlane.f32.xlu1 %v4547_v60  ;;  %v9443_v38 = vpop.permute.xlu1 %4956 }
 0xcf3   :  { %v9445_v3 = vpop.permute.xlu0 %5071 }
 0xcf6   :  { %4557 = vmax.xlane.f32.xlu1 %v4556_v51  ;;  %v9449_v60 = vpop.permute.xlu1 %4958 }
 0xcf7   :  { %v9451_v51 = vpop.permute.xlu0 %4960 }
 0xcfa   :  { %v9453_v30 = vpop.permute.xlu1 %5073 }
 0xcfb   :  { %v9455_v55 = vpop.permute.xlu0 %5059 }
 0xcfe   :  { %v9457_v21 = vpop.permute.xlu1 %5061 }
 0xcff   :  { %5421 = vrot.lane.b32.xlu0 %v7790_v62, %s7616_s7  ;;  %v9459_v62 = vpop.permute.xlu0 %5063 }
 0xd02   :  { %v9461_v18 = vpop.permute.xlu1 %5065 }
 0xd03   :  { %10966 = vst [vmem:[#allocation190_spill] sm:$0xff] %v9461_v18  ;;  %v9465_v10 = vpop.permute.xlu0 %5332 }
 0xd07   :  { %5427 = vrot.lane.b32.xlu1 %v7793_v2, %s7616_s7  ;;  %v9467_v2 = vpop.permute.xlu1 %5334  ;;  %v9469_v13 = vpop.permute.xlu0 %5336 }
 0xd0b   :  { %v9471_v11 = vpop.permute.xlu1 %5338 }
 0xd1e   :  { %4551 = vmax.xlane.f32.xlu0 %v4550_v25 }
 0xd28   :  { %v4519_v41 = vpop.xlane.xlu0 %4518 }
 0xd29   :  { %v4561_v50 = vsub.f32 %v9355_v14, %v4519_v41  ;;  %v2004_v41 = vsel %vm657_vm1, %v8424_v26, 0.0  ;;  %v3963_v14 = vsel %vm657_vm1, %v9180_v39, 0.0 }
 0xd2b   :  { %1338 = vadd.xlane.f32.xlu1 %v1337_v32  ;;  %v4516_v42 = vpop.xlane.xlu1 %4515  ;;  %v4579_v7 = vmul.f32 1.442695, %v4561_v50  ;;  %v3957_v50 = vsel %vm657_vm1, %v9167_v48, 0.0 }
 0xd2c   :  { %v4560_v22 = vsub.f32 %v9363_v9, %v4516_v42  ;;  %v4513_v57 = vpop.xlane.xlu0 %4512 }
 0xd2d   :  { %v4559_v52 = vsub.f32 %v9357_v59, %v4513_v57  ;;  %v4989_v59 = vsel %vm478_vm0, %v9433_v5, 0 }
 0xd2e   :  { %v4577_v25 = vmul.f32 1.442695, %v4560_v22 }
 0xd2f   :  { %v4575_v16 = vmul.f32 1.442695, %v4559_v52  ;;  %1999 = vadd.xlane.f32.xlu1 %v1998_v47  ;;  %v2657_v47 = vsel %vm657_vm1, %v8676_v53, 0.0  ;;  %v4983_v53 = vsel %vm478_vm0, %v9328_v12, 0 }
 0xd30   :  { %7187 = vpow2.f32 %v4577_v25  ;;  %v4522_v18 = vpop.xlane.xlu0 %4521  ;;  %v4992_v25 = vsel %vm478_vm0, %v9435_v20, 0 }
 0xd31   :  { %7189 = vpow2.f32 %v4575_v16  ;;  %v4562_v45 = vsub.f32 %v9361_v35, %v4522_v18  ;;  %v10968_v16 = vld [vmem:[#allocation139_spill] sm:$0xff]  ;;  %v4986_v18 = vsel %vm478_vm0, %v9333_v43, 0  ;;  %v10970_v35 = vld [vmem:[#allocation50_spill] sm:$0xff] }
 0xd32   :  { %7191 = vpow2.f32 %v4579_v7  ;;  %v3310_v42 = vsel %vm657_vm1, %v10968_v16, 0.0  ;;  %v1349_v9 = vsel %vm657_vm1, %v10970_v35, 0.0 }
 0xd33   :  { %v4581_v32 = vmul.f32 1.442695, %v4562_v45  ;;  %2005 = vadd.xlane.f32.xlu1 %v2004_v41  ;;  %v10971_v45 = vld [vmem:[#allocation46_spill] sm:$0xff]  ;;  %v10972_v41 = vld [vmem:[#allocation51_spill] sm:$0xff] }
 0xd34   :  { %5423 = vrot.lane.b32.xlu0 %v7787_v58, %s7616_s7  ;;  %v10967_v58 = vld [vmem:[#allocation136_spill] sm:$0xff] }
 0xd35   :  { %7193 = vpow2.f32 %v4581_v32  ;;  %v3304_v31 = vsel %vm657_vm1, %v10967_v58, 0.0  ;;  %v1355_v32 = vsel %vm657_vm1, %v10972_v41, 0.0 }
 0xd37   :  { %2652 = vadd.xlane.f32.xlu1 %v2651_v40  ;;  %v10973_v40 = vld [vmem:[#allocation47_spill] sm:$0xff] }
 0xd38   :  { %5425 = vrot.lane.b32.xlu0 %v7795_v4, %s7616_s7 }
 0xd3a   :  { %v7188_v52 = vpop.eup %7187 }
 0xd3b   :  { %v9491_v57 = vpop.eup %7189  ;;  %2658 = vadd.xlane.f32.xlu1 %v2657_v47  ;;  %v4610_v12 = vsel %vm657_vm1, %v7188_v52, 0.0  ;;  %v10974_v47 = vld [vmem:[#allocation80_spill] sm:$0xff] }
 0xd3c   :  { %v4671_v26 = vpack.c.bf16 %v7188_v52, %v9491_v57  ;;  %v9494_v7 = vpop.eup %7191  ;;  %v1343_v52 = vsel %vm657_vm1, %v10973_v40, 0.0 }
 0xd3e   :  { %6738 = vmatprep.mubr.msk.bf16.mxu0 %vm657_vm1, %v4671_v26  ;;  %v2010_v26 = vsel %vm657_vm1, %v10974_v47, 0.0  ;;  %v10983_v47 = vld [vmem:[#allocation137_spill] sm:$0xff] }
 0xd3f   :  { %v7194_v22 = vpop.eup %7193  ;;  %3305 = vadd.xlane.f32.xlu1 %v3304_v31  ;;  %v10976_v31 = vld [vmem:[#allocation81_spill] sm:$0xff] }
 0xd40   :  { %v4672_v4 = vpack.c.bf16 %v7194_v22, %v9494_v7  ;;  %v4616_v48 = vsel %vm657_vm1, %v7194_v22, 0.0  ;;  %v2016_v22 = vsel %vm657_vm1, %v10976_v31, 0.0 }
 0xd42   :  { %6739 = vmatmul.mubr.msk.bf16.vlgmr.msra.gmra.mrb[112].mxu0 %vm657_vm1, %v4672_v4 }
 0xd43   :  { %6763 = vmatpush3.bf16.xpose.msra.mxu0 %v4983_v53  ;;  %3311 = vadd.xlane.f32.xlu1 %v3310_v42  ;;  %v10977_v42 = vld [vmem:[#allocation77_spill] sm:$0xff] }
 0xd44   :  { %6931 = vmatprep.subr.msk.bf16.mxu0 %vm478_vm0, %v9333_v43  ;;  %v10969_v43 = vld [vmem:[#allocation45_spill] sm:$0xff] }
 0xd45   :  { %v1334_v39 = vsel %vm657_vm1, %v10969_v43, 0.0 }
 0xd47   :  { %3958 = vadd.xlane.f32.xlu1 %v3957_v50  ;;  %v2001_v50 = vsel %vm657_vm1, %v10977_v42, 0.0 }
 0xd4b   :  { %6765 = vmatpush3.bf16.xpose.msra.mxu0 %v4986_v18  ;;  %3964 = vadd.xlane.f32.xlu1 %v3963_v14  ;;  %v10978_v14 = vld [vmem:[#allocation110_spill] sm:$0xff] }
 0xd4c   :  { %6932 = vmatprep.subr.msk.bf16.mxu0 %vm478_vm0, %v9433_v5  ;;  %v1340_v5 = vsel %vm657_vm1, %v10971_v45, 0.0  ;;  %v10980_v45 = vld [vmem:[#allocation111_spill] sm:$0xff] }
 0xd4f   :  { %4611 = vadd.xlane.f32.xlu1 %v4610_v12  ;;  %v2663_v12 = vsel %vm657_vm1, %v10978_v14, 0.0 }
 0xd53   :  { %6767 = vmatpush3.bf16.xpose.msra.mxu0 %v4989_v59  ;;  %4617 = vadd.xlane.f32.xlu1 %v4616_v48 }
 0xd54   :  { %6933 = vmatprep.subr.msk.bf16.mxu0 %vm478_vm0, %v9435_v20  ;;  %v10975_v20 = vld [vmem:[#allocation76_spill] sm:$0xff] }
 0xd55   :  { %v1995_v58 = vsel %vm657_vm1, %v10975_v20, 0.0 }
 0xd57   :  { %1335 = vadd.xlane.f32.xlu0 %v1334_v39  ;;  %1350 = vadd.xlane.f32.xlu1 %v1349_v9  ;;  %v10979_v9 = vld [vmem:[#allocation106_spill] sm:$0xff] }
 0xd5b   :  { %6769 = vmatpush3.bf16.xpose.msra.mxu0 %v4992_v25  ;;  %1341 = vadd.xlane.f32.xlu0 %v1340_v5 }
 0xd5c   :  { %6794 = vmatprep.subr.bf16.mxu0 %v9465_v10  ;;  %1356 = vadd.xlane.f32.xlu1 %v1355_v32  ;;  %v10981_v32 = vld [vmem:[#allocation107_spill] sm:$0xff] }
 0xd5d   :  { %v2654_v40 = vsel %vm657_vm1, %v10981_v32, 0.0 }
 0xd5f   :  { %1344 = vadd.xlane.f32.xlu0 %v1343_v52 }
 0xd60   :  { %2011 = vadd.xlane.f32.xlu1 %v2010_v26  ;;  %v3301_v26 = vsel %vm657_vm1, %v10983_v47, 0.0 }
 0xd63   :  { %1996 = vadd.xlane.f32.xlu0 %v1995_v58  ;;  %v10984_v58 = vld [vmem:[#allocation143_spill] sm:$0xff] }
 0xd64   :  { %2017 = vadd.xlane.f32.xlu1 %v2016_v22  ;;  %v3322_v31 = vsel %vm657_vm1, %v10984_v58, 0.0 }
 0xd65   :  { %v4531_v4 = vpop.xlane.xlu0 %4530 }
 0xd66   :  { %v4565_v53 = vsub.f32 %v9379_v49, %v4531_v4  ;;  %v4525_v16 = vpop.xlane.xlu1 %4524  ;;  %v2648_v49 = vsel %vm657_vm1, %v10979_v9, 0.0 }
 0xd67   :  { %v4563_v18 = vsub.f32 %v9381_v1, %v4525_v16  ;;  %2002 = vadd.xlane.f32.xlu0 %v2001_v50  ;;  %v2669_v1 = vsel %vm657_vm1, %v10980_v45, 0.0 }
 0xd68   :  { %v4587_v59 = vmul.f32 1.442695, %v4565_v53  ;;  %2664 = vadd.xlane.f32.xlu1 %v2663_v12 }
 0xd69   :  { %v4583_v48 = vmul.f32 1.442695, %v4563_v18  ;;  %v4528_v43 = vpop.xlane.xlu0 %4527  ;;  %v10985_v18 = vld [vmem:[#allocation138_spill] sm:$0xff] }
 0xd6a   :  { %v4564_v39 = vsub.f32 %v9389_v17, %v4528_v43  ;;  %v4534_v35 = vpop.xlane.xlu1 %4533  ;;  %7195 = vpow2.f32 %v4587_v59  ;;  %v10982_v17 = vld [vmem:[#allocation142_spill] sm:$0xff]  ;;  %v3307_v14 = vsel %vm657_vm1, %v10985_v18, 0.0  ;;  %v3969_v59 = vsel %vm657_vm1, %v9262_v15, 0.0 }
 0xd6b   :  { %v4566_v25 = vsub.f32 %v9385_v24, %v4534_v35  ;;  %2649 = vadd.xlane.f32.xlu0 %v2648_v49  ;;  %7197 = vpow2.f32 %v4583_v48  ;;  %v3316_v52 = vsel %vm657_vm1, %v10982_v17, 0.0  ;;  %v3975_v15 = vsel %vm657_vm1, %v9267_v34, 0.0 }
 0xd6c   :  { %v4585_v5 = vmul.f32 1.442695, %v4564_v39  ;;  %2670 = vadd.xlane.f32.xlu1 %v2669_v1  ;;  %v4607_v34 = vsel %vm657_vm1, %v9491_v57, 0.0 }
 0xd6d   :  { %v4589_v41 = vmul.f32 1.442695, %v4566_v25  ;;  %v3954_v25 = vsel %vm657_vm1, %v9169_v29, 0.0  ;;  %v3960_v29 = vsel %vm657_vm1, %v9177_v61, 0.0 }
 0xd6e   :  { %7199 = vpow2.f32 %v4585_v5 }
 0xd6f   :  { %7201 = vpow2.f32 %v4589_v41  ;;  %2655 = vadd.xlane.f32.xlu0 %v2654_v40 }
 0xd70   :  { %3317 = vadd.xlane.f32.xlu1 %v3316_v52 }
 0xd72   :  { %v4543_v24 = vpop.xlane.xlu0 %4542 }
 0xd73   :  { %v4569_v20 = vsub.f32 %v9403_v54, %v4543_v24  ;;  %3302 = vadd.xlane.f32.xlu0 %v3301_v26  ;;  %v4537_v22 = vpop.xlane.xlu1 %4536  ;;  %v4613_v24 = vsel %vm657_vm1, %v9494_v7, 0.0  ;;  %v10987_v7 = vld [vmem:[#allocation49_spill] sm:$0xff] }
 0xd74   :  { %3323 = vadd.xlane.f32.xlu1 %v3322_v31  ;;  %v4567_v4 = vsub.f32 %v9405_v46, %v4537_v22  ;;  %v9562_v16 = vpop.eup %7195  ;;  %v1346_v26 = vsel %vm657_vm1, %v10987_v7, 0.0  ;;  %v10990_v31 = vld [vmem:[#allocation84_spill] sm:$0xff] }
 0xd75   :  { %v4595_v53 = vmul.f32 1.442695, %v4569_v20  ;;  %v9566_v12 = vpop.eup %7197  ;;  %v10988_v20 = vld [vmem:[#allocation55_spill] sm:$0xff]  ;;  %v2022_v22 = vsel %vm657_vm1, %v10990_v31, 0.0 }
 0xd76   :  { %v4591_v42 = vmul.f32 1.442695, %v4567_v4  ;;  %v4540_v50 = vpop.xlane.xlu0 %4539  ;;  %v1367_v58 = vsel %vm657_vm1, %v10988_v20, 0.0 }
 0xd77   :  { %v4568_v54 = vsub.f32 %v9413_v23, %v4540_v50  ;;  %3308 = vadd.xlane.f32.xlu0 %v3307_v14  ;;  %v4546_v48 = vpop.xlane.xlu1 %4545  ;;  %7203 = vpow2.f32 %v4595_v53  ;;  %v5091_v53 = vsel %vm478_vm0, %v9437_v63, 0  ;;  %v10992_v50 = vld [vmem:[#allocation85_spill] sm:$0xff] }
 0xd78   :  { %v7200_v43 = vpop.eup %7199  ;;  %3970 = vadd.xlane.f32.xlu1 %v3969_v59  ;;  %v4570_v46 = vsub.f32 %v9409_v44, %v4546_v48  ;;  %7205 = vpow2.f32 %v4591_v42  ;;  %v2028_v18 = vsel %vm657_vm1, %v10992_v50, 0.0  ;;  %v5094_v48 = vsel %vm478_vm0, %v9445_v3, 0 }
 0xd79   :  { %v7202_v39 = vpop.eup %7201  ;;  %v4593_v35 = vmul.f32 1.442695, %v4568_v54  ;;  %v4673_v9 = vpack.c.bf16 %v7200_v43, %v9566_v12  ;;  %v4622_v1 = vsel %vm657_vm1, %v7200_v43, 0.0  ;;  %v10994_v54 = vld [vmem:[#allocation114_spill] sm:$0xff]  ;;  %v10995_v43 = vld [vmem:[#allocation109_spill] sm:$0xff] }
 0xd7a   :  { %v4597_v49 = vmul.f32 1.442695, %v4570_v46  ;;  %v4674_v23 = vpack.c.bf16 %v7202_v39, %v9562_v16  ;;  %v2675_v59 = vsel %vm657_vm1, %v10994_v54, 0.0  ;;  %v2660_v46 = vsel %vm657_vm1, %v10995_v43, 0.0  ;;  %v11010_v54 = vld [vmem:[#allocation119_spill] sm:$0xff] }
 0xd7b   :  { %7207 = vpow2.f32 %v4593_v35  ;;  %3955 = vadd.xlane.f32.xlu0 %v3954_v25  ;;  %6742 = vmatprep.mubr.msk.bf16.mxu0 %vm657_vm1, %v4673_v9  ;;  %v4555_v44 = vpop.xlane.xlu1 %4554  ;;  %v10997_v9 = vld [vmem:[#allocation108_spill] sm:$0xff]  ;;  %v10998_v25 = vld [vmem:[#allocation146_spill] sm:$0xff] }
 0xd7c   :  { %7209 = vpow2.f32 %v4597_v49  ;;  %3976 = vadd.xlane.f32.xlu1 %v3975_v15  ;;  %6743 = vmatmul.mubr.msk.bf16.gmra.mrb[116].mxu0 %vm657_vm1, %v4674_v23  ;;  %v4573_v45 = vsub.f32 %v9419_v37, %v4555_v44  ;;  %v2666_v49 = vsel %vm657_vm1, %v10997_v9, 0.0  ;;  %v3328_v23 = vsel %vm657_vm1, %v10998_v25, 0.0  ;;  %v9667_v15 = vpop.permute.xlu0 %5421  ;;  %v10999_v44 = vld [vmem:[#allocation141_spill] sm:$0xff] }
 0xd7d   :  { %6770 = vmatprep.mubr.msk.bf16.mxu0 %vm478_vm0, %v9441_v33  ;;  %v4628_v33 = vsel %vm657_vm1, %v7202_v39, 0.0  ;;  %v10996_v39 = vld [vmem:[#allocation115_spill] sm:$0xff]  ;;  %v11014_v25 = vld [vmem:[#allocation113_spill] sm:$0xff] }
 0xd7e   :  { %v4603_v32 = vmul.f32 1.442695, %v4573_v45  ;;  %v2681_v35 = vsel %vm657_vm1, %v10996_v39, 0.0  ;;  %v11000_v45 = vld [vmem:[#allocation147_spill] sm:$0xff] }
 0xd7f   :  { %3961 = vadd.xlane.f32.xlu0 %v3960_v29  ;;  %v9586_v5 = vpop.xlane.xlu1 %4548  ;;  %v3313_v29 = vsel %vm657_vm1, %v10999_v44, 0.0 }
 0xd80   :  { %4623 = vadd.xlane.f32.xlu1 %v4622_v1  ;;  %7211 = vpow2.f32 %v4603_v32  ;;  %v3334_v1 = vsel %vm657_vm1, %v11000_v45, 0.0 }
 0xd81   :  { %v9590_v41 = vpop.eup %7203 }
 0xd82   :  { %v9593_v17 = vpop.eup %7205 }
 0xd83   :  { %4608 = vadd.xlane.f32.xlu0 %v4607_v34  ;;  %v4558_v40 = vpop.xlane.xlu1 %4557  ;;  %v11001_v34 = vld [vmem:[#allocation140_spill] sm:$0xff] }
 0xd84   :  { %4629 = vadd.xlane.f32.xlu1 %v4628_v33  ;;  %v4574_v61 = vsub.f32 %v9425_v6, %v4558_v40  ;;  %6771 = vmatmul.mubr.msk.bf16.vlgmr.msra.gmra.mrb[120].mxu0 %vm478_vm0, %v9443_v38  ;;  %v3319_v32 = vsel %vm657_vm1, %v11001_v34, 0.0  ;;  %v4571_v33 = vsub.f32 %v9421_v19, %v9586_v5  ;;  %v3966_v40 = vsel %vm657_vm1, %v9259_v28, 0.0 }
 0xd85   :  { %v9598_v37 = vpop.eup %7207  ;;  %6795 = vmatpush3.bf16.msra.mxu0 %v9465_v10  ;;  %6774 = vmatprep.mubr.msk.bf16.mxu0 %vm478_vm0, %v9449_v60  ;;  %v10986_v10 = vld [vmem:[#allocation54_spill] sm:$0xff]  ;;  %v5088_v60 = vsel %vm478_vm0, %v9335_v0, 0  ;;  %v10989_v0 = vld [vmem:[#allocation48_spill] sm:$0xff]  ;;  %v3972_v19 = vsel %vm657_vm1, %v9257_v56, 0.0  ;;  %v4619_v28 = vsel %vm657_vm1, %v9566_v12, 0.0  ;;  %v11005_v12 = vld [vmem:[#allocation53_spill] sm:$0xff] }
 0xd86   :  { %v9603_v57 = vpop.eup %7209  ;;  %v4605_v52 = vmul.f32 1.442695, %v4574_v61  ;;  %6796 = vmatprep.subr.bf16.mxu0 %v9467_v2  ;;  %v4675_v6 = vpack.c.bf16 %v9598_v37, %v9593_v17  ;;  %v1361_v47 = vsel %vm657_vm1, %v10986_v10, 0.0  ;;  %v4599_v61 = vmul.f32 1.442695, %v4571_v33  ;;  %v11003_v10 = vld [vmem:[#allocation59_spill] sm:$0xff] }
 0xd87   :  { %v4676_v38 = vpack.c.bf16 %v9603_v57, %v9590_v41  ;;  %4614 = vadd.xlane.f32.xlu0 %v4613_v24  ;;  %v3987_v24 = vsel %vm657_vm1, %v9287_v36, 0.0  ;;  %v1379_v36 = vsel %vm657_vm1, %v11003_v10, 0.0  ;;  %v11004_v56 = vld [vmem:[#allocation86_spill] sm:$0xff]  ;;  %v11019_v33 = vld [vmem:[#allocation145_spill] sm:$0xff] }
 0xd88   :  { %7213 = vpow2.f32 %v4605_v52  ;;  %1362 = vadd.xlane.f32.xlu1 %v1361_v47  ;;  %6754 = vmatprep.mubr.msk.bf16.mxu1 %vm657_vm1, %v4675_v6  ;;  %v4625_v47 = vsel %vm657_vm1, %v9562_v16, 0.0  ;;  %v11024_v10 = vld [vmem:[#allocation14_spill] sm:$0xff] }
 0xd89   :  { %6797 = vmatpush3.bf16.msra.mxu0 %v9467_v2  ;;  %6755 = vmatmul.mubr.msk.bf16.vlgmr.msra.gmra.mrb[144].mxu1 %vm657_vm1, %v4676_v38  ;;  %v1352_v2 = vsel %vm657_vm1, %v10989_v0, 0.0  ;;  %7215 = vpow2.f32 %v4599_v61  ;;  %v11006_v0 = vld [vmem:[#allocation89_spill] sm:$0xff] }
 0xd8a   :  { %6779 = vmatpush3.bf16.xpose.msra.mxu1 %v5088_v60  ;;  %6798 = vmatprep.subr.bf16.mxu0 %v9469_v13  ;;  %v9634_v4 = vpop.eup %7211  ;;  %v2034_v60 = vsel %vm657_vm1, %v11004_v56, 0.0 }
 0xd8b   :  { %6935 = vmatprep.subr.msk.bf16.mxu1 %vm478_vm0, %v9437_v63  ;;  %1347 = vadd.xlane.f32.xlu0 %v1346_v26 }
 0xd8c   :  { %1368 = vadd.xlane.f32.xlu1 %v1367_v58  ;;  %6775 = vmatmul.mubr.msk.bf16.gmra.mrb[124].mxu0 %vm478_vm0, %v9451_v51  ;;  %v1358_v58 = vsel %vm657_vm1, %v11005_v12, 0.0 }
 0xd8d   :  { %6799 = vmatpush3.bf16.msra.mxu0 %v9469_v13  ;;  %v10991_v13 = vld [vmem:[#allocation79_spill] sm:$0xff] }
 0xd8e   :  { %6800 = vmatprep.subr.bf16.mxu0 %v9471_v11  ;;  %v2007_v42 = vsel %vm657_vm1, %v10991_v13, 0.0  ;;  %v11008_v13 = vld [vmem:[#allocation116_spill] sm:$0xff] }
 0xd8f   :  { %1353 = vadd.xlane.f32.xlu0 %v1352_v2  ;;  %v2040_v2 = vsel %vm657_vm1, %v11006_v0, 0.0 }
 0xd90   :  { %2023 = vadd.xlane.f32.xlu1 %v2022_v22  ;;  %v11007_v22 = vld [vmem:[#allocation52_spill] sm:$0xff] }
 0xd91   :  { %6801 = vmatpush3.bf16.msra.mxu0 %v9471_v11  ;;  %v10993_v11 = vld [vmem:[#allocation78_spill] sm:$0xff] }
 0xd92   :  { %v9639_v51 = vpop.eup %7213  ;;  %6781 = vmatpush3.bf16.xpose.msra.mxu1 %v5091_v53  ;;  %v2013_v63 = vsel %vm657_vm1, %v10993_v11, 0.0  ;;  %v1364_v53 = vsel %vm657_vm1, %v11007_v22, 0.0 }
 0xd93   :  { %6936 = vmatprep.subr.msk.bf16.mxu1 %vm478_vm0, %v9445_v3  ;;  %2008 = vadd.xlane.f32.xlu0 %v2007_v42  ;;  %v4678_v14 = vpack.c.bf16 %v9639_v51, %v9634_v4  ;;  %v5097_v3 = vsel %vm478_vm0, %v9453_v30, 0  ;;  %v9697_v26 = vpop.eup %7215  ;;  %v2687_v42 = vsel %vm657_vm1, %v11008_v13, 0.0  ;;  %v11029_v13 = vld [vmem:[#allocation58_spill] sm:$0xff] }
 0xd94   :  { %2029 = vadd.xlane.f32.xlu1 %v2028_v18  ;;  %v11009_v18 = vld [vmem:[#allocation83_spill] sm:$0xff] }
 0xd95   :  { %v2019_v11 = vsel %vm657_vm1, %v11009_v18, 0.0  ;;  %v11030_v18 = vld [vmem:[#allocation19_spill] sm:$0xff] }
 0xd97   :  { %2014 = vadd.xlane.f32.xlu0 %v2013_v63 }
 0xd98   :  { %2676 = vadd.xlane.f32.xlu1 %v2675_v59 }
 0xd9a   :  { %6783 = vmatpush3.bf16.xpose.msra.mxu1 %v5094_v48  ;;  %v11011_v48 = vld [vmem:[#allocation63_spill] sm:$0xff] }
 0xd9b   :  { %6937 = vmatprep.subr.msk.bf16.mxu1 %vm478_vm0, %v9453_v30  ;;  %2661 = vadd.xlane.f32.xlu0 %v2660_v46  ;;  %v3981_v30 = vsel %vm657_vm1, %v9285_v8, 0.0  ;;  %v11002_v8 = vld [vmem:[#allocation56_spill] sm:$0xff] }
 0xd9c   :  { %2682 = vadd.xlane.f32.xlu1 %v2681_v35  ;;  %v1373_v5 = vsel %vm657_vm1, %v11002_v8, 0.0  ;;  %v11013_v35 = vld [vmem:[#allocation148_spill] sm:$0xff] }
 0xd9d   :  { %v3340_v9 = vsel %vm657_vm1, %v11013_v35, 0.0 }
 0xd9f   :  { %2667 = vadd.xlane.f32.xlu0 %v2666_v49 }
 0xda0   :  { %3329 = vadd.xlane.f32.xlu1 %v3328_v23  ;;  %v2672_v23 = vsel %vm657_vm1, %v11014_v25, 0.0 }
 0xda2   :  { %6785 = vmatpush3.bf16.xpose.msra.mxu1 %v5097_v3  ;;  %v11015_v3 = vld [vmem:[#allocation151_spill] sm:$0xff] }
 0xda3   :  { %6810 = vmatprep.subr.bf16.mxu1 %v9667_v15  ;;  %3314 = vadd.xlane.f32.xlu0 %v3313_v29  ;;  %v11016_v29 = vld [vmem:[#allocation190_spill] sm:$0xff] }
 0xda4   :  { %3335 = vadd.xlane.f32.xlu1 %v3334_v1  ;;  %v11018_v1 = vld [vmem:[#allocation170_spill] sm:$0xff] }
 0xda5   :  { %v3993_v34 = vsel %vm657_vm1, %v11018_v1, 0.0  ;;  %v11039_v1 = vld [vmem:[#allocation117_spill] sm:$0xff] }
 0xda7   :  { %3320 = vadd.xlane.f32.xlu0 %v3319_v32 }
 0xda8   :  { %3982 = vadd.xlane.f32.xlu1 %v3981_v30  ;;  %v3325_v30 = vsel %vm657_vm1, %v11019_v33, 0.0 }
 0xdab   :  { %3967 = vadd.xlane.f32.xlu0 %v3966_v40  ;;  %v4552_v52 = vpop.xlane.xlu0 %4551  ;;  %v11020_v40 = vld [vmem:[#allocation173_spill] sm:$0xff] }
 0xdac   :  { %v4572_v6 = vsub.f32 %v9427_v27, %v4552_v52  ;;  %3988 = vadd.xlane.f32.xlu1 %v3987_v24  ;;  %v5428_v27 = vpop.permute.xlu1 %5427  ;;  %v3999_v61 = vsel %vm657_vm1, %v11020_v40, 0.0  ;;  %v11021_v24 = vld [vmem:[#allocation144_spill] sm:$0xff] }
 0xdad   :  { %v11040_v40 = vld [vmem:[#allocation60_spill] sm:$0xff] }
 0xdae   :  { %v4601_v38 = vmul.f32 1.442695, %v4572_v6  ;;  %v3331_v6 = vsel %vm657_vm1, %v11021_v24, 0.0 }
 0xdaf   :  { %3973 = vadd.xlane.f32.xlu0 %v3972_v19  ;;  %v5424_v46 = vpop.permute.xlu0 %5423 }
 0xdb0   :  { %7217 = vpow2.f32 %v4601_v38  ;;  %1374 = vadd.xlane.f32.xlu1 %v1373_v5  ;;  %v11022_v38 = vld [vmem:[#allocation20_spill] sm:$0xff]  ;;  %v11023_v5 = vld [vmem:[#allocation169_spill] sm:$0xff] }
 0xdb1   :  { %v757_v19 = vsel %vm657_vm1, %v11022_v38, 0.0 }
 0xdb3   :  { %4620 = vadd.xlane.f32.xlu0 %v4619_v28  ;;  %v3978_v28 = vsel %vm657_vm1, %v11023_v5, 0.0 }
 0xdb4   :  { %1380 = vadd.xlane.f32.xlu1 %v1379_v36  ;;  %v763_v36 = vsel %vm657_vm1, %v11024_v10, 0.0 }
 0xdb7   :  { %4626 = vadd.xlane.f32.xlu0 %v4625_v47  ;;  %v11025_v47 = vld [vmem:[#allocation168_spill] sm:$0xff] }
 0xdb8   :  { %2035 = vadd.xlane.f32.xlu1 %v2034_v60  ;;  %v1339_v7 = vpop.xlane.xlu1 %1338  ;;  %v3984_v56 = vsel %vm657_vm1, %v11025_v47, 0.0  ;;  %v11026_v60 = vld [vmem:[#allocation26_spill] sm:$0xff]  ;;  %v11045_v47 = vld [vmem:[#allocation149_spill] sm:$0xff] }
 0xdb9   :  { %7219 = vrcp.f32 %v1339_v7  ;;  %v769_v7 = vsel %vm657_vm1, %v11026_v60, 0.0 }
 0xdba   :  { %v9699_v20 = vpop.eup %7217 }
 0xdbb   :  { %1359 = vadd.xlane.f32.xlu0 %v1358_v58  ;;  %v4677_v16 = vpack.c.bf16 %v9699_v20, %v9697_v26  ;;  %v11027_v58 = vld [vmem:[#allocation57_spill] sm:$0xff] }
 0xdbc   :  { %2041 = vadd.xlane.f32.xlu1 %v2040_v2  ;;  %v9707_v31 = vpop.xlane.xlu1 %1999  ;;  %v1370_v0 = vsel %vm657_vm1, %v11027_v58, 0.0  ;;  %v11028_v2 = vld [vmem:[#allocation22_spill] sm:$0xff] }
 0xdbd   :  { %6758 = vmatprep.mubr.msk.bf16.mxu1 %vm657_vm1, %v4677_v16  ;;  %v775_v16 = vsel %vm657_vm1, %v11028_v2, 0.0  ;;  %v11047_v58 = vld [vmem:[#allocation150_spill] sm:$0xff] }
 0xdbe   :  { %6759 = vmatmul.mubr.msk.bf16.gmra.mrb[148].mxu1 %vm657_vm1, %v4678_v14  ;;  %v2693_v14 = vsel %vm657_vm1, %v11010_v54, 0.0 }
 0xdbf   :  { %1365 = vadd.xlane.f32.xlu0 %v1364_v53  ;;  %6786 = vmatprep.mubr.msk.bf16.mxu1 %vm478_vm0, %v9455_v55  ;;  %v11012_v55 = vld [vmem:[#allocation82_spill] sm:$0xff] }
 0xdc0   :  { %2688 = vadd.xlane.f32.xlu1 %v2687_v42  ;;  %v9720_v50 = vpop.xlane.xlu1 %2005  ;;  %v2025_v39 = vsel %vm657_vm1, %v11012_v55, 0.0  ;;  %v1376_v42 = vsel %vm657_vm1, %v11029_v13, 0.0 }
 0xdc3   :  { %v7220_v63 = vpop.eup %7219  ;;  %2020 = vadd.xlane.f32.xlu0 %v2019_v11  ;;  %v781_v11 = vsel %vm657_vm1, %v11030_v18, 0.0 }
 0xdc4   :  { %2694 = vadd.xlane.f32.xlu1 %v2693_v14  ;;  %v9726_v59 = vpop.xlane.xlu1 %2652  ;;  %v9729_v43 = vmul.f32 %v7220_v63, %v11011_v48  ;;  %v11032_v14 = vld [vmem:[#allocation87_spill] sm:$0xff] }
 0xdc5   :  { %v2031_v48 = vsel %vm657_vm1, %v11032_v14, 0.0 }
 0xdc6   :  { %6787 = vmatmul.mubr.msk.bf16.vlgmr.msra.gmra.mrb[152].mxu1 %vm478_vm0, %v9457_v21  ;;  %v5426_v21 = vpop.permute.xlu0 %5425 }
 0xdc7   :  { %6811 = vmatpush3.bf16.msra.mxu1 %v9667_v15  ;;  %2026 = vadd.xlane.f32.xlu0 %v2025_v39  ;;  %v3346_v15 = vsel %vm657_vm1, %v11015_v3, 0.0 }
 0xdc8   :  { %3341 = vadd.xlane.f32.xlu1 %v3340_v9  ;;  %6790 = vmatprep.mubr.msk.bf16.mxu1 %vm478_vm0, %v9459_v62  ;;  %v9740_v49 = vpop.xlane.xlu1 %2658  ;;  %v11017_v62 = vld [vmem:[#allocation112_spill] sm:$0xff] }
 0xdc9   :  { %6812 = vmatprep.subr.bf16.mxu1 %v5424_v46  ;;  %v2678_v45 = vsel %vm657_vm1, %v11017_v62, 0.0  ;;  %v11035_v9 = vld [vmem:[#allocation88_spill] sm:$0xff] }
 0xdca   :  { %v2037_v25 = vsel %vm657_vm1, %v11035_v9, 0.0 }
 0xdcb   :  { %6813 = vmatpush3.bf16.msra.mxu1 %v5424_v46  ;;  %2673 = vadd.xlane.f32.xlu0 %v2672_v23  ;;  %v11033_v46 = vld [vmem:[#allocation16_spill] sm:$0xff] }
 0xdcc   :  { %3347 = vadd.xlane.f32.xlu1 %v3346_v15  ;;  %6814 = vmatprep.subr.bf16.mxu1 %v5426_v21  ;;  %v9746_v44 = vpop.xlane.xlu1 %3305  ;;  %v787_v55 = vsel %vm657_vm1, %v11033_v46, 0.0  ;;  %v11053_v46 = vld [vmem:[#allocation17_spill] sm:$0xff] }
 0xdce   :  { %6791 = vmatmul.mubr.msk.bf16.gmra.mrb[156].mxu1 %vm478_vm0, %v11016_v29  ;;  %v11037_v29 = vld [vmem:[#allocation61_spill] sm:$0xff] }
 0xdcf   :  { %6815 = vmatpush3.bf16.msra.mxu1 %v5426_v21  ;;  %2679 = vadd.xlane.f32.xlu0 %v2678_v45  ;;  %v11036_v21 = vld [vmem:[#allocation28_spill] sm:$0xff] }
 0xdd0   :  { %3994 = vadd.xlane.f32.xlu1 %v3993_v34  ;;  %6816 = vmatprep.subr.bf16.mxu1 %v5428_v27  ;;  %v9754_v32 = vpop.xlane.xlu1 %3311  ;;  %v793_v3 = vsel %vm657_vm1, %v11036_v21, 0.0  ;;  %v2684_v34 = vsel %vm657_vm1, %v11039_v1, 0.0 }
 0xdd3   :  { %6817 = vmatpush3.bf16.msra.mxu1 %v5428_v27  ;;  %3326 = vadd.xlane.f32.xlu0 %v3325_v30 }
 0xdd4   :  { %4000 = vadd.xlane.f32.xlu1 %v3999_v61  ;;  %v9760_v52 = vpop.xlane.xlu1 %3958 }
 0xdd7   :  { %3332 = vadd.xlane.f32.xlu0 %v3331_v6  ;;  %v11042_v6 = vld [vmem:[#allocation118_spill] sm:$0xff] }
 0xdd8   :  { %758 = vadd.xlane.f32.xlu1 %v757_v19  ;;  %v9766_v8 = vpop.xlane.xlu1 %3964  ;;  %v2690_v38 = vsel %vm657_vm1, %v11042_v6, 0.0 }
 0xddb   :  { %3979 = vadd.xlane.f32.xlu0 %v3978_v28  ;;  %v11043_v28 = vld [vmem:[#allocation62_spill] sm:$0xff] }
 0xddc   :  { %764 = vadd.xlane.f32.xlu1 %v763_v36  ;;  %v9772_v27 = vpop.xlane.xlu1 %4611 }
 0xddf   :  { %3985 = vadd.xlane.f32.xlu0 %v3984_v56  ;;  %v3337_v56 = vsel %vm657_vm1, %v11045_v47, 0.0 }
 0xde0   :  { %770 = vadd.xlane.f32.xlu1 %v769_v7  ;;  %v9778_v12 = vpop.xlane.xlu1 %4617 }
 0xde3   :  { %1371 = vadd.xlane.f32.xlu0 %v1370_v0  ;;  %v3343_v0 = vsel %vm657_vm1, %v11047_v58, 0.0 }
 0xde4   :  { %776 = vadd.xlane.f32.xlu1 %v775_v16  ;;  %v1336_v22 = vpop.xlane.xlu0 %1335  ;;  %v9784_v53 = vpop.xlane.xlu1 %1350 }
 0xde5   :  { %7221 = vrcp.f32 %v1336_v22  ;;  %v11049_v22 = vld [vmem:[#allocation171_spill] sm:$0xff] }
 0xde6   :  { %v3990_v13 = vsel %vm657_vm1, %v11049_v22, 0.0 }
 0xde7   :  { %1377 = vadd.xlane.f32.xlu0 %v1376_v42 }
 0xde8   :  { %782 = vadd.xlane.f32.xlu1 %v781_v11  ;;  %v1342_v63 = vpop.xlane.xlu0 %1341  ;;  %v11051_v11 = vld [vmem:[#allocation172_spill] sm:$0xff] }
 0xde9   :  { %7223 = vrcp.f32 %v1342_v63  ;;  %v9790_v54 = vpop.xlane.xlu1 %1356  ;;  %v3996_v63 = vsel %vm657_vm1, %v11051_v11, 0.0 }
 0xdea   :  { %11031 = vst [vmem:[#allocation136_spill] sm:$0xff] %v9790_v54 }
 0xdeb   :  { %2032 = vadd.xlane.f32.xlu0 %v2031_v48 }
 0xdec   :  { %788 = vadd.xlane.f32.xlu1 %v787_v55  ;;  %v1345_v39 = vpop.xlane.xlu0 %1344  ;;  %v754_v55 = vsel %vm657_vm1, %v11053_v46, 0.0 }
 0xded   :  { %7225 = vrcp.f32 %v1345_v39  ;;  %v9796_v35 = vpop.xlane.xlu1 %2011 }
 0xdee   :  { %11034 = vst [vmem:[#allocation139_spill] sm:$0xff] %v9796_v35 }
 0xdef   :  { %v7222_v23 = vpop.eup %7221  ;;  %2038 = vadd.xlane.f32.xlu0 %v2037_v25  ;;  %v11055_v25 = vld [vmem:[#allocation13_spill] sm:$0xff] }
 0xdf0   :  { %794 = vadd.xlane.f32.xlu1 %v793_v3  ;;  %v9802_v15 = vpop.xlane.xlu0 %1996  ;;  %v9805_v62 = vmul.f32 %v7222_v23, %v11037_v29  ;;  %v760_v23 = vsel %vm657_vm1, %v11055_v25, 0.0  ;;  %v11057_v29 = vld [vmem:[#allocation25_spill] sm:$0xff] }
 0xdf1   :  { %v9807_v45 = vpop.xlane.xlu1 %2017  ;;  %v766_v1 = vsel %vm657_vm1, %v11057_v29, 0.0 }
 0xdf2   :  { %11038 = vst [vmem:[#allocation45_spill] sm:$0xff] %v9807_v45 }
 0xdf3   :  { %v7224_v33 = vpop.eup %7223  ;;  %2685 = vadd.xlane.f32.xlu0 %v2684_v34 }
 0xdf4   :  { %v9811_v30 = vpop.xlane.xlu0 %2002  ;;  %v9814_v61 = vmul.f32 %v7224_v33, %v11040_v40 }
 0xdf5   :  { %v9816_v24 = vpop.xlane.xlu1 %2664 }
 0xdf6   :  { %11041 = vst [vmem:[#allocation50_spill] sm:$0xff] %v9816_v24 }
 0xdf7   :  { %v7226_v19 = vpop.eup %7225  ;;  %2691 = vadd.xlane.f32.xlu0 %v2690_v38  ;;  %v11059_v38 = vld [vmem:[#allocation21_spill] sm:$0xff] }
 0xdf8   :  { %v9820_v5 = vpop.xlane.xlu0 %2649  ;;  %v9823_v10 = vmul.f32 %v7226_v19, %v11043_v28  ;;  %v772_v19 = vsel %vm657_vm1, %v11059_v38, 0.0 }
 0xdf9   :  { %v9825_v36 = vpop.xlane.xlu1 %2670 }
 0xdfa   :  { %11044 = vst [vmem:[#allocation46_spill] sm:$0xff] %v9825_v36 }
 0xdfb   :  { %3338 = vadd.xlane.f32.xlu0 %v3337_v56 }
 0xdfc   :  { %v9829_v60 = vpop.xlane.xlu0 %2655 }
 0xdfd   :  { %v9831_v7 = vpop.xlane.xlu1 %3317 }
 0xdfe   :  { %11046 = vst [vmem:[#allocation51_spill] sm:$0xff] %v9831_v7 }
 0xdff   :  { %3344 = vadd.xlane.f32.xlu0 %v3343_v0  ;;  %v11061_v0 = vld [vmem:[#allocation18_spill] sm:$0xff] }
 0xe00   :  { %v9835_v2 = vpop.xlane.xlu0 %3302  ;;  %v778_v22 = vsel %vm657_vm1, %v11061_v0, 0.0 }
 0xe01   :  { %v9837_v16 = vpop.xlane.xlu1 %3323 }
 0xe02   :  { %11048 = vst [vmem:[#allocation47_spill] sm:$0xff] %v9837_v16 }
 0xe03   :  { %3991 = vadd.xlane.f32.xlu0 %v3990_v13 }
 0xe04   :  { %v9841_v42 = vpop.xlane.xlu0 %3308 }
 0xe05   :  { %v9843_v18 = vpop.xlane.xlu1 %3970 }
 0xe06   :  { %11050 = vst [vmem:[#allocation80_spill] sm:$0xff] %v9843_v18 }
 0xe07   :  { %3997 = vadd.xlane.f32.xlu0 %v3996_v63  ;;  %v11063_v63 = vld [vmem:[#allocation15_spill] sm:$0xff] }
 0xe08   :  { %v9847_v14 = vpop.xlane.xlu0 %3955  ;;  %v784_v46 = vsel %vm657_vm1, %v11063_v63, 0.0 }
 0xe09   :  { %v9849_v48 = vpop.xlane.xlu1 %3976 }
 0xe0a   :  { %11052 = vst [vmem:[#allocation76_spill] sm:$0xff] %v9849_v48 }
 0xe0b   :  { %755 = vadd.xlane.f32.xlu0 %v754_v55 }
 0xe0c   :  { %v9853_v39 = vpop.xlane.xlu0 %3961 }
 0xe0d   :  { %v9855_v9 = vpop.xlane.xlu1 %4623 }
 0xe0e   :  { %11054 = vst [vmem:[#allocation81_spill] sm:$0xff] %v9855_v9 }
 0xe0f   :  { %761 = vadd.xlane.f32.xlu0 %v760_v23  ;;  %v11065_v23 = vld [vmem:[#allocation27_spill] sm:$0xff] }
 0xe10   :  { %v9859_v21 = vpop.xlane.xlu0 %4608  ;;  %v790_v29 = vsel %vm657_vm1, %v11065_v23, 0.0 }
 0xe11   :  { %v9861_v3 = vpop.xlane.xlu1 %4629 }
 0xe12   :  { %11056 = vst [vmem:[#allocation77_spill] sm:$0xff] %v9861_v3 }
 0xe13   :  { %767 = vadd.xlane.f32.xlu0 %v766_v1 }
 0xe14   :  { %v9865_v34 = vpop.xlane.xlu0 %4614 }
 0xe15   :  { %v9867_v33 = vpop.xlane.xlu1 %1362  ;;  %v9869_v40 = vpop.f32.mrb[112].mxu0 }
 0xe16   :  { %11058 = vst [vmem:[#allocation110_spill] sm:$0xff] %v9867_v33  ;;  %v9871_v6 = vpop.f32.mrb[113].mxu0 }
 0xe17   :  { %v9875_v28 = vpop.f32.mrb[114].mxu0  ;;  %773 = vadd.xlane.f32.xlu0 %v772_v19 }
 0xe18   :  { %v9877_v47 = vpop.xlane.xlu0 %1347  ;;  %v9879_v56 = vpop.f32.mrb[115].mxu0 }
 0xe19   :  { %v9881_v58 = vpop.xlane.xlu1 %1368 }
 0xe1a   :  { %11060 = vst [vmem:[#allocation106_spill] sm:$0xff] %v9881_v58 }
 0xe1b   :  { %779 = vadd.xlane.f32.xlu0 %v778_v22 }
 0xe1c   :  { %v9885_v13 = vpop.xlane.xlu0 %1353 }
 0xe1d   :  { %v9887_v11 = vpop.xlane.xlu1 %2023 }
 0xe1e   :  { %11062 = vst [vmem:[#allocation111_spill] sm:$0xff] %v9887_v11 }
 0xe1f   :  { %785 = vadd.xlane.f32.xlu0 %v784_v46 }
 0xe20   :  { %v9891_v55 = vpop.xlane.xlu0 %2008 }
 0xe21   :  { %v9893_v25 = vpop.xlane.xlu1 %2029 }
 0xe22   :  { %11064 = vst [vmem:[#allocation107_spill] sm:$0xff] %v9893_v25 }
 0xe23   :  { %791 = vadd.xlane.f32.xlu0 %v790_v29 }
 0xe24   :  { %v9897_v1 = vpop.xlane.xlu0 %2014 }
 0xe25   :  { %v9899_v38 = vpop.xlane.xlu1 %2676 }
 0xe26   :  { %11066 = vst [vmem:[#allocation142_spill] sm:$0xff] %v9899_v38 }
 0xe28   :  { %v9901_v19 = vpop.xlane.xlu0 %2661 }
 0xe29   :  { %v9903_v0 = vpop.xlane.xlu1 %2682 }
 0xe2a   :  { %11067 = vst [vmem:[#allocation137_spill] sm:$0xff] %v9903_v0 }
 0xe2c   :  { %v9905_v22 = vpop.xlane.xlu0 %2667 }
 0xe2d   :  { %v9907_v63 = vpop.xlane.xlu1 %3329 }
 0xe2e   :  { %11068 = vst [vmem:[#allocation143_spill] sm:$0xff] %v9907_v63 }
 0xe30   :  { %v9909_v46 = vpop.xlane.xlu0 %3314 }
 0xe31   :  { %v9911_v11 = vpop.xlane.xlu1 %3335 }
 0xe32   :  { %11069 = vst [vmem:[#allocation138_spill] sm:$0xff] %v9911_v11 }
 0xe34   :  { %v9913_v25 = vpop.xlane.xlu0 %3320 }
 0xe35   :  { %11070 = vst [vmem:[#allocation54_spill] sm:$0xff] %v9913_v25  ;;  %v9915_v23 = vpop.xlane.xlu1 %3982 }
 0xe36   :  { %11071 = vst [vmem:[#allocation49_spill] sm:$0xff] %v9915_v23 }
 0xe38   :  { %v9917_v29 = vpop.xlane.xlu0 %3967 }
 0xe39   :  { %11072 = vst [vmem:[#allocation55_spill] sm:$0xff] %v9917_v29  ;;  %v9919_v58 = vpop.xlane.xlu1 %3988  ;;  %v11130_v29 = vld [vmem:[#allocation34_spill] sm:$0xff] }
 0xe3a   :  { %11073 = vst [vmem:[#allocation48_spill] sm:$0xff] %v9919_v58 }
 0xe3c   :  { %v9921_v38 = vpop.xlane.xlu0 %3973 }
 0xe3d   :  { %11074 = vst [vmem:[#allocation84_spill] sm:$0xff] %v9921_v38  ;;  %v9923_v33 = vpop.xlane.xlu1 %1374 }
 0xe3e   :  { %11075 = vst [vmem:[#allocation79_spill] sm:$0xff] %v9923_v33 }
 0xe40   :  { %v9925_v0 = vpop.xlane.xlu0 %4620 }
 0xe41   :  { %11076 = vst [vmem:[#allocation85_spill] sm:$0xff] %v9925_v0  ;;  %v9927_v3 = vpop.xlane.xlu1 %1380 }
 0xe42   :  { %11077 = vst [vmem:[#allocation78_spill] sm:$0xff] %v9927_v3 }
 0xe44   :  { %v9929_v63 = vpop.xlane.xlu0 %4626 }
 0xe45   :  { %11078 = vst [vmem:[#allocation114_spill] sm:$0xff] %v9929_v63  ;;  %v9931_v9 = vpop.xlane.xlu1 %2035 }
 0xe46   :  { %11079 = vst [vmem:[#allocation109_spill] sm:$0xff] %v9931_v9 }
 0xe48   :  { %v9933_v11 = vpop.xlane.xlu0 %1359 }
 0xe49   :  { %11080 = vst [vmem:[#allocation115_spill] sm:$0xff] %v9933_v11  ;;  %v9935_v48 = vpop.xlane.xlu1 %2041 }
 0xe4a   :  { %11081 = vst [vmem:[#allocation108_spill] sm:$0xff] %v9935_v48 }
 0xe4c   :  { %v9937_v23 = vpop.xlane.xlu0 %1365 }
 0xe4d   :  { %11082 = vst [vmem:[#allocation146_spill] sm:$0xff] %v9937_v23  ;;  %v9939_v18 = vpop.xlane.xlu1 %2688 }
 0xe4e   :  { %11083 = vst [vmem:[#allocation141_spill] sm:$0xff] %v9939_v18 }
 0xe4f   :  { %v9941_v58 = vpop.f32.mrb[116].mxu0 }
 0xe50   :  { %11084 = vst [vmem:[#allocation147_spill] sm:$0xff] %v9941_v58  ;;  %v9943_v16 = vpop.xlane.xlu0 %2020  ;;  %v9945_v33 = vpop.f32.mrb[117].mxu0 }
 0xe51   :  { %11085 = vst [vmem:[#allocation140_spill] sm:$0xff] %v9943_v16  ;;  %11086 = vst [vmem:[#allocation56_spill] sm:$0xff] %v9945_v33  ;;  %v9947_v7 = vpop.xlane.xlu1 %2694  ;;  %v9949_v3 = vpop.f32.mrb[118].mxu0 }
 0xe52   :  { %11087 = vst [vmem:[#allocation59_spill] sm:$0xff] %v9947_v7  ;;  %11088 = vst [vmem:[#allocation86_spill] sm:$0xff] %v9949_v3  ;;  %v9951_v36 = vpop.f32.mrb[119].mxu0 }
 0xe53   :  { %11089 = vst [vmem:[#allocation53_spill] sm:$0xff] %v9951_v36 }
 0xe54   :  { %v9953_v9 = vpop.xlane.xlu0 %2026 }
 0xe55   :  { %11090 = vst [vmem:[#allocation89_spill] sm:$0xff] %v9953_v9  ;;  %v9955_v24 = vpop.xlane.xlu1 %3341 }
 0xe56   :  { %11091 = vst [vmem:[#allocation52_spill] sm:$0xff] %v9955_v24 }
 0xe57   :  { %v9957_v48 = vpop.f32.mrb[120].mxu0 }
 0xe58   :  { %v9959_v45 = vpop.xlane.xlu0 %2673  ;;  %v9961_v18 = vpop.f32.mrb[121].mxu0  ;;  %v5170_v35 = vsel %vm657_vm1, %v9957_v48, -inf }
 0xe59   :  { %11092 = vst [vmem:[#allocation116_spill] sm:$0xff] %v9959_v45  ;;  %v9965_v54 = vpop.xlane.xlu1 %3347  ;;  %5171 = vmax.xlane.f32.xlu0 %v5170_v35  ;;  %v9967_v7 = vpop.f32.mrb[122].mxu0  ;;  %v5164_v45 = vsel %vm657_vm1, %v9961_v18, -inf }
 0xe5a   :  { %11093 = vst [vmem:[#allocation83_spill] sm:$0xff] %v9965_v54  ;;  %v9969_v3 = vpop.f32.mrb[123].mxu0 }
 0xe5b   :  { %v5167_v36 = vsel %vm657_vm1, %v9969_v3, -inf }
 0xe5c   :  { %v9973_v24 = vpop.xlane.xlu0 %2679  ;;  %v9975_v9 = vpop.f32.mrb[144].mxu1  ;;  %5168 = vmax.xlane.f32.xlu1 %v5167_v36  ;;  %v5173_v36 = vsel %vm657_vm1, %v9967_v7, -inf }
 0xe5d   :  { %11094 = vst [vmem:[#allocation119_spill] sm:$0xff] %v9973_v24  ;;  %11095 = vst [vmem:[#allocation63_spill] sm:$0xff] %v9975_v9  ;;  %v9979_v58 = vpop.xlane.xlu1 %3994  ;;  %5165 = vmax.xlane.f32.xlu0 %v5164_v45  ;;  %v9981_v54 = vpop.f32.mrb[145].mxu1 }
 0xe5e   :  { %11096 = vst [vmem:[#allocation82_spill] sm:$0xff] %v9979_v58  ;;  %11097 = vst [vmem:[#allocation148_spill] sm:$0xff] %v9981_v54  ;;  %v9983_v35 = vpop.f32.mrb[146].mxu1 }
 0xe5f   :  { %11098 = vst [vmem:[#allocation113_spill] sm:$0xff] %v9983_v35  ;;  %v9985_v16 = vpop.f32.mrb[147].mxu1  ;;  %v9987_v33 = vpop.f32.mrb[124].mxu0 }
 0xe60   :  { %11099 = vst [vmem:[#allocation151_spill] sm:$0xff] %v9985_v16  ;;  %v9989_v23 = vpop.xlane.xlu0 %3326  ;;  %v9991_v24 = vpop.f32.mrb[125].mxu0  ;;  %v5182_v54 = vsel %vm657_vm1, %v9987_v33, -inf }
 0xe61   :  { %11100 = vst [vmem:[#allocation190_spill] sm:$0xff] %v9989_v23  ;;  %v9995_v9 = vpop.xlane.xlu1 %4000  ;;  %5174 = vmax.xlane.f32.xlu0 %v5173_v36  ;;  %v9997_v58 = vpop.f32.mrb[126].mxu0  ;;  %v5176_v11 = vsel %vm657_vm1, %v9991_v24, -inf }
 0xe62   :  { %11101 = vst [vmem:[#allocation112_spill] sm:$0xff] %v9995_v9  ;;  %v9999_v45 = vpop.f32.mrb[127].mxu0  ;;  %v5185_v35 = vsel %vm657_vm1, %v9997_v58, -inf }
 0xe63   :  { %5186 = vmax.xlane.f32.xlu1 %v5185_v35  ;;  %v5179_v9 = vsel %vm657_vm1, %v9999_v45, -inf  ;;  %v4640_v35 = vsel %vm657_vm1, %v9603_v57, 0.0 }
 0xe64   :  { %v10003_v16 = vpop.xlane.xlu0 %3332 }
 0xe65   :  { %11102 = vst [vmem:[#allocation170_spill] sm:$0xff] %v10003_v16  ;;  %v759_v23 = vpop.xlane.xlu1 %758  ;;  %5183 = vmax.xlane.f32.xlu0 %v5182_v54  ;;  %v4637_v54 = vsel %vm657_vm1, %v9590_v41, 0.0  ;;  %v4652_v41 = vsel %vm657_vm1, %v9639_v51, 0.0 }
 0xe66   :  { %7227 = vrcp.f32 %v759_v23 }
 0xe67   :  { %5180 = vmax.xlane.f32.xlu1 %v5179_v9  ;;  %v4634_v9 = vsel %vm657_vm1, %v9598_v37, 0.0 }
 0xe68   :  { %v10009_v36 = vpop.xlane.xlu0 %3979 }
 0xe69   :  { %11103 = vst [vmem:[#allocation145_spill] sm:$0xff] %v10009_v36  ;;  %v765_v63 = vpop.xlane.xlu1 %764  ;;  %5177 = vmax.xlane.f32.xlu0 %v5176_v11  ;;  %v4631_v11 = vsel %vm657_vm1, %v9593_v17, 0.0  ;;  %v11108_v17 = vld [vmem:[#allocation31_spill] sm:$0xff] }
 0xe6a   :  { %7229 = vrcp.f32 %v765_v63  ;;  %v11106_v63 = vld [vmem:[#allocation32_spill] sm:$0xff] }
 0xe6b   :  { %4641 = vadd.xlane.f32.xlu1 %v4640_v35 }
 0xe6c   :  { %v10015_v16 = vpop.xlane.xlu0 %3985 }
 0xe6d   :  { %11104 = vst [vmem:[#allocation173_spill] sm:$0xff] %v10015_v16  ;;  %v771_v23 = vpop.xlane.xlu1 %770  ;;  %4638 = vadd.xlane.f32.xlu0 %v4637_v54 }
 0xe6e   :  { %7231 = vrcp.f32 %v771_v23  ;;  %v4649_v23 = vsel %vm657_vm1, %v9634_v4, 0.0  ;;  %v11110_v4 = vld [vmem:[#allocation36_spill] sm:$0xff] }
 0xe6f   :  { %4635 = vadd.xlane.f32.xlu1 %v4634_v9 }
 0xe70   :  { %v7228_v36 = vpop.eup %7227  ;;  %v10021_v0 = vpop.xlane.xlu0 %1371 }
 0xe71   :  { %11105 = vst [vmem:[#allocation144_spill] sm:$0xff] %v10021_v0  ;;  %v777_v57 = vpop.xlane.xlu1 %776  ;;  %4632 = vadd.xlane.f32.xlu0 %v4631_v11  ;;  %v981_v35 = vmul.f32 %v7228_v36, %v11106_v63  ;;  %v4646_v36 = vsel %vm657_vm1, %v9699_v20, 0.0 }
 0xe72   :  { %7233 = vrcp.f32 %v777_v57  ;;  %v4643_v57 = vsel %vm657_vm1, %v9697_v26, 0.0  ;;  %v11114_v26 = vld [vmem:[#allocation40_spill] sm:$0xff] }
 0xe73   :  { %4653 = vadd.xlane.f32.xlu1 %v4652_v41  ;;  %997 = vst.msk [vmem:[#allocation2 + $0x8] sm:$0xff] %vm478_vm0, %v981_v35 }
 0xe74   :  { %v7230_v54 = vpop.eup %7229  ;;  %v10029_v37 = vpop.xlane.xlu0 %1377 }
 0xe75   :  { %11107 = vst [vmem:[#allocation20_spill] sm:$0xff] %v10029_v37  ;;  %v783_v9 = vpop.xlane.xlu1 %782  ;;  %4650 = vadd.xlane.f32.xlu0 %v4649_v23  ;;  %v983_v0 = vmul.f32 %v7230_v54, %v11108_v17  ;;  %v11112_v23 = vld [vmem:[#allocation35_spill] sm:$0xff] }
 0xe76   :  { %7235 = vrcp.f32 %v783_v9 }
 0xe77   :  { %4647 = vadd.xlane.f32.xlu1 %v4646_v36  ;;  %999 = vst.msk [vmem:[#allocation2 + $0x18] sm:$0xff] %vm478_vm0, %v983_v0 }
 0xe78   :  { %v7232_v51 = vpop.eup %7231  ;;  %v10037_v11 = vpop.xlane.xlu0 %2032 }
 0xe79   :  { %11109 = vst [vmem:[#allocation169_spill] sm:$0xff] %v10037_v11  ;;  %v789_v63 = vpop.xlane.xlu1 %788  ;;  %4644 = vadd.xlane.f32.xlu0 %v4643_v57  ;;  %v985_v35 = vmul.f32 %v7232_v51, %v11110_v4 }
 0xe7a   :  { %7237 = vrcp.f32 %v789_v63  ;;  %v11116_v63 = vld [vmem:[#allocation39_spill] sm:$0xff] }
 0xe7b   :  { %1001 = vst.msk [vmem:[#allocation2 + $0x28] sm:$0xff] %vm478_vm0, %v985_v35 }
 0xe7c   :  { %v7234_v41 = vpop.eup %7233  ;;  %v10043_v54 = vpop.xlane.xlu0 %2038 }
 0xe7d   :  { %11111 = vst [vmem:[#allocation14_spill] sm:$0xff] %v10043_v54  ;;  %v795_v20 = vpop.xlane.xlu1 %794  ;;  %v987_v9 = vmul.f32 %v7234_v41, %v11112_v23  ;;  %v11118_v41 = vld [vmem:[#allocation44_spill] sm:$0xff] }
 0xe7e   :  { %7239 = vrcp.f32 %v795_v20 }
 0xe7f   :  { %1003 = vst.msk [vmem:[#allocation2 + $0x38] sm:$0xff] %vm478_vm0, %v987_v9 }
 0xe80   :  { %v7236_v0 = vpop.eup %7235  ;;  %v10047_v17 = vpop.xlane.xlu0 %2685 }
 0xe81   :  { %11113 = vst [vmem:[#allocation168_spill] sm:$0xff] %v10047_v17  ;;  %v989_v36 = vmul.f32 %v7236_v0, %v11114_v26 }
 0xe83   :  { %1005 = vst.msk [vmem:[#allocation2 + $0x48] sm:$0xff] %vm478_vm0, %v989_v36 }
 0xe84   :  { %v7238_v51 = vpop.eup %7237  ;;  %v10051_v57 = vpop.xlane.xlu0 %2691 }
 0xe85   :  { %11115 = vst [vmem:[#allocation26_spill] sm:$0xff] %v10051_v57  ;;  %v991_v4 = vmul.f32 %v7238_v51, %v11116_v63  ;;  %v11128_v57 = vld [vmem:[#allocation30_spill] sm:$0xff] }
 0xe87   :  { %1007 = vst.msk [vmem:[#allocation2 + $0x58] sm:$0xff] %vm478_vm0, %v991_v4 }
 0xe88   :  { %v7240_v35 = vpop.eup %7239  ;;  %v10055_v54 = vpop.xlane.xlu0 %3338 }
 0xe89   :  { %11117 = vst [vmem:[#allocation57_spill] sm:$0xff] %v10055_v54  ;;  %v993_v20 = vmul.f32 %v7240_v35, %v11118_v41 }
 0xe8b   :  { %1009 = vst.msk [vmem:[#allocation2 + $0x68] sm:$0xff] %vm478_vm0, %v993_v20 }
 0xe8c   :  { %v10059_v23 = vpop.xlane.xlu0 %3344 }
 0xe8d   :  { %11119 = vst [vmem:[#allocation22_spill] sm:$0xff] %v10059_v23 }
 0xe90   :  { %v10061_v9 = vpop.xlane.xlu0 %3991 }
 0xe91   :  { %11120 = vst [vmem:[#allocation58_spill] sm:$0xff] %v10061_v9  ;;  %v10063_v0 = vpop.f32.mrb[148].mxu1 }
 0xe92   :  { %11121 = vst [vmem:[#allocation19_spill] sm:$0xff] %v10063_v0  ;;  %v10065_v26 = vpop.f32.mrb[149].mxu1 }
 0xe93   :  { %11122 = vst [vmem:[#allocation87_spill] sm:$0xff] %v10065_v26  ;;  %v10067_v36 = vpop.f32.mrb[150].mxu1 }
 0xe94   :  { %11123 = vst [vmem:[#allocation16_spill] sm:$0xff] %v10067_v36  ;;  %v10069_v51 = vpop.xlane.xlu0 %3997  ;;  %v10071_v63 = vpop.f32.mrb[151].mxu1 }
 0xe95   :  { %11124 = vst [vmem:[#allocation88_spill] sm:$0xff] %v10069_v51  ;;  %11125 = vst [vmem:[#allocation28_spill] sm:$0xff] %v10071_v63 }
 0xe98   :  { %v756_v4 = vpop.xlane.xlu0 %755 }
 0xe99   :  { %7241 = vrcp.f32 %v756_v4  ;;  %v10073_v54 = vpop.f32.mrb[152].mxu1 }
 0xe9a   :  { %v10075_v35 = vpop.f32.mrb[153].mxu1 }
 0xe9b   :  { %v10077_v41 = vpop.f32.mrb[154].mxu1 }
 0xe9c   :  { %v762_v20 = vpop.xlane.xlu0 %761  ;;  %v10079_v9 = vpop.f32.mrb[155].mxu1 }
 0xe9d   :  { %7243 = vrcp.f32 %v762_v20  ;;  %v11129_v20 = vld [vmem:[#allocation29_spill] sm:$0xff] }
 0xea0   :  { %v768_v0 = vpop.xlane.xlu0 %767 }
 0xea1   :  { %7245 = vrcp.f32 %v768_v0  ;;  %v10081_v26 = vpop.f32.mrb[156].mxu1 }
 0xea2   :  { %v10083_v36 = vpop.f32.mrb[157].mxu1 }
 0xea3   :  { %v7242_v51 = vpop.eup %7241  ;;  %v10085_v63 = vpop.f32.mrb[158].mxu1 }
 0xea4   :  { %11126 = vst [vmem:[#allocation61_spill] sm:$0xff] %v10085_v63  ;;  %v774_v4 = vpop.xlane.xlu0 %773  ;;  %v10087_v23 = vpop.f32.mrb[159].mxu1  ;;  %v980_v17 = vmul.f32 %v7242_v51, %v11128_v57  ;;  %v11131_v57 = vld [vmem:[#allocation33_spill] sm:$0xff] }
 0xea5   :  { %11127 = vst [vmem:[#allocation117_spill] sm:$0xff] %v10087_v23  ;;  %7247 = vrcp.f32 %v774_v4  ;;  %v11132_v4 = vld [vmem:[#allocation38_spill] sm:$0xff] }
 0xea6   :  { %996 = vst.msk [vmem:[#allocation2] sm:$0xff] %vm478_vm0, %v980_v17 }
 0xea7   :  { %v7244_v11 = vpop.eup %7243 }
 0xea8   :  { %v780_v37 = vpop.xlane.xlu0 %779  ;;  %v982_v16 = vmul.f32 %v7244_v11, %v11129_v20 }
 0xea9   :  { %7249 = vrcp.f32 %v780_v37  ;;  %v11133_v37 = vld [vmem:[#allocation37_spill] sm:$0xff] }
 0xeaa   :  { %998 = vst.msk [vmem:[#allocation2 + $0x10] sm:$0xff] %vm478_vm0, %v982_v16 }
 0xeab   :  { %v7246_v0 = vpop.eup %7245 }
 0xeac   :  { %v786_v38 = vpop.xlane.xlu0 %785  ;;  %v984_v25 = vmul.f32 %v7246_v0, %v11130_v29  ;;  %v11134_v29 = vld [vmem:[#allocation42_spill] sm:$0xff] }
 0xead   :  { %7251 = vrcp.f32 %v786_v38 }
 0xeae   :  { %1000 = vst.msk [vmem:[#allocation2 + $0x20] sm:$0xff] %vm478_vm0, %v984_v25 }
 0xeaf   :  { %v7248_v23 = vpop.eup %7247 }
 0xeb0   :  { %v792_v63 = vpop.xlane.xlu0 %791  ;;  %v986_v51 = vmul.f32 %v7248_v23, %v11131_v57 }
 0xeb1   :  { %7253 = vrcp.f32 %v792_v63 }
 0xeb2   :  { %1002 = vst.msk [vmem:[#allocation2 + $0x30] sm:$0xff] %vm478_vm0, %v986_v51 }
 0xeb3   :  { %v7250_v17 = vpop.eup %7249 }
 0xeb4   :  { %v988_v11 = vmul.f32 %v7250_v17, %v11132_v4 }
 0xeb6   :  { %1004 = vst.msk [vmem:[#allocation2 + $0x40] sm:$0xff] %vm478_vm0, %v988_v11 }
 0xeb7   :  { %v7252_v16 = vpop.eup %7251 }
 0xeb8   :  { %v990_v20 = vmul.f32 %v7252_v16, %v11133_v37 }
 0xeba   :  { %1006 = vst.msk [vmem:[#allocation2 + $0x50] sm:$0xff] %vm478_vm0, %v990_v20 }
 0xebb   :  { %v7254_v38 = vpop.eup %7253 }
 0xebc   :  { %v992_v25 = vmul.f32 %v7254_v38, %v11134_v29 }
 0xebe   :  { %1008 = vst.msk [vmem:[#allocation2 + $0x60] sm:$0xff] %vm478_vm0, %v992_v25 }
 0xee6   :  { %v5172_v0 = vpop.xlane.xlu0 %5171 }
 0xee7   :  { %v5214_v23 = vsub.f32 %v9957_v48, %v5172_v0 }
 0xee9   :  { %v5232_v63 = vmul.f32 1.442695, %v5214_v23  ;;  %v5169_v57 = vpop.xlane.xlu1 %5168 }
 0xeea   :  { %v5213_v51 = vsub.f32 %v9969_v3, %v5169_v57  ;;  %v5166_v17 = vpop.xlane.xlu0 %5165 }
 0xeeb   :  { %7255 = vpow2.f32 %v5232_v63  ;;  %v5212_v4 = vsub.f32 %v9961_v18, %v5166_v17 }
 0xeec   :  { %v5230_v11 = vmul.f32 1.442695, %v5213_v51 }
 0xeed   :  { %v5228_v16 = vmul.f32 1.442695, %v5212_v4 }
 0xeee   :  { %7257 = vpow2.f32 %v5230_v11  ;;  %v5175_v37 = vpop.xlane.xlu0 %5174 }
 0xeef   :  { %7259 = vpow2.f32 %v5228_v16  ;;  %v5215_v20 = vsub.f32 %v9967_v7, %v5175_v37 }
 0xef0   :  { %v5187_v38 = vpop.xlane.xlu1 %5186 }
 0xef1   :  { %v5234_v29 = vmul.f32 1.442695, %v5215_v20  ;;  %v5219_v25 = vsub.f32 %v9997_v58, %v5187_v38 }
 0xef2   :  { %v5184_v48 = vpop.xlane.xlu0 %5183 }
 0xef3   :  { %7261 = vpow2.f32 %v5234_v29  ;;  %v5242_v0 = vmul.f32 1.442695, %v5219_v25  ;;  %v5218_v3 = vsub.f32 %v9987_v33, %v5184_v48 }
 0xef4   :  { %v5181_v23 = vpop.xlane.xlu1 %5180 }
 0xef5   :  { %v7256_v63 = vpop.eup %7255  ;;  %v5240_v57 = vmul.f32 1.442695, %v5218_v3  ;;  %v5217_v18 = vsub.f32 %v9999_v45, %v5181_v23  ;;  %7263 = vpow2.f32 %v5242_v0 }
 0xef6   :  { %v5178_v51 = vpop.xlane.xlu0 %5177  ;;  %v5266_v17 = vsel %vm657_vm1, %v7256_v63, 0.0 }
 0xef7   :  { %7265 = vpow2.f32 %v5240_v57  ;;  %v5238_v7 = vmul.f32 1.442695, %v5217_v18  ;;  %v5216_v4 = vsub.f32 %v9991_v24, %v5178_v51  ;;  %5267 = vadd.xlane.f32.xlu0 %v5266_v17  ;;  %v5188_v51 = vsel %vm657_vm1, %v10075_v35, -inf }
 0xef8   :  { %v7258_v58 = vpop.eup %7257 }
 0xef9   :  { %v7260_v11 = vpop.eup %7259  ;;  %v5236_v16 = vmul.f32 1.442695, %v5216_v4  ;;  %7267 = vpow2.f32 %v5238_v7  ;;  %v5263_v48 = vsel %vm657_vm1, %v7258_v58, 0.0  ;;  %v11135_v7 = vld [vmem:[#allocation23_spill] sm:$0xff] }
 0xefa   :  { %v5260_v33 = vsel %vm657_vm1, %v7260_v11, 0.0  ;;  %v5324_v37 = vpack.c.bf16 %v7258_v58, %v7260_v11  ;;  %v796_v4 = vsel %vm657_vm1, %v11135_v7, 0.0  ;;  %v5194_v58 = vsel %vm657_vm1, %v10073_v54, -inf }
 0xefb   :  { %7269 = vpow2.f32 %v5236_v16  ;;  %5261 = vadd.xlane.f32.xlu0 %v5260_v33  ;;  %v5200_v11 = vsel %vm657_vm1, %v10083_v36, -inf  ;;  %v11136_v16 = vld [vmem:[#allocation24_spill] sm:$0xff] }
 0xefc   :  { %6802 = vmatprep.mubr.msk.bf16.mxu0 %vm657_vm1, %v5324_v37  ;;  %v799_v33 = vsel %vm657_vm1, %v11136_v16, 0.0  ;;  %v5197_v37 = vsel %vm657_vm1, %v10077_v41, -inf  ;;  %7271 = vrcp.f32 %v9802_v15  ;;  %v11138_v15 = vld [vmem:[#allocation90_spill] sm:$0xff] }
 0xefd   :  { %v7262_v45 = vpop.eup %7261  ;;  %7273 = vrcp.f32 %v9811_v30 }
 0xefe   :  { %v5325_v20 = vpack.c.bf16 %v7262_v45, %v7256_v63  ;;  %v5269_v38 = vsel %vm657_vm1, %v7262_v45, 0.0  ;;  %v5191_v45 = vsel %vm657_vm1, %v10079_v9, -inf  ;;  %7275 = vrcp.f32 %v9820_v5 }
 0xeff   :  { %5270 = vadd.xlane.f32.xlu1 %v5269_v38  ;;  %v7264_v29 = vpop.eup %7263  ;;  %7277 = vrcp.f32 %v9829_v60 }
 0xf00   :  { %6803 = vmatmul.mubr.msk.bf16.vlgmr.msra.gmra.mrb[128].mxu0 %vm657_vm1, %v5325_v20  ;;  %v5281_v63 = vsel %vm657_vm1, %v7264_v29, 0.0  ;;  %v5206_v20 = vsel %vm657_vm1, %v10081_v26, -inf  ;;  %7279 = vrcp.f32 %v9707_v31 }
 0xf01   :  { %v7266_v24 = vpop.eup %7265  ;;  %7281 = vrcp.f32 %v9835_v2 }
 0xf02   :  { %v5278_v25 = vsel %vm657_vm1, %v7266_v24, 0.0  ;;  %v5327_v0 = vpack.c.bf16 %v7264_v29, %v7266_v24  ;;  %v11137_v29 = vld [vmem:[#allocation91_spill] sm:$0xff]  ;;  %7283 = vrcp.f32 %v9720_v50 }
 0xf03   :  { %5279 = vadd.xlane.f32.xlu0 %v5278_v25  ;;  %5264 = vadd.xlane.f32.xlu1 %v5263_v48  ;;  %v7268_v3 = vpop.eup %7267  ;;  %7285 = vrcp.f32 %v9841_v42 }
 0xf04   :  { %v5275_v17 = vsel %vm657_vm1, %v7268_v3, 0.0  ;;  %7287 = vrcp.f32 %v9726_v59 }
 0xf05   :  { %v7270_v23 = vpop.eup %7269  ;;  %7289 = vrcp.f32 %v9847_v14 }
 0xf06   :  { %v5272_v57 = vsel %vm657_vm1, %v7270_v23, 0.0  ;;  %v5326_v18 = vpack.c.bf16 %v7268_v3, %v7270_v23  ;;  %v7272_v38 = vpop.eup %7271  ;;  %7291 = vrcp.f32 %v9740_v49 }
 0xf07   :  { %5273 = vadd.xlane.f32.xlu0 %v5272_v57  ;;  %5282 = vadd.xlane.f32.xlu1 %v5281_v63  ;;  %v2245_v24 = vmul.f32 %v7272_v38, %v11137_v29  ;;  %v7274_v25 = vpop.eup %7273  ;;  %7293 = vrcp.f32 %v9853_v39  ;;  %v11144_v57 = vld [vmem:[#allocation152_spill] sm:$0xff] }
 0xf08   :  { %6806 = vmatprep.mubr.msk.bf16.mxu0 %vm657_vm1, %v5326_v18  ;;  %v2247_v48 = vmul.f32 %v7274_v25, %v11138_v15  ;;  %v7276_v30 = vpop.eup %7275  ;;  %7295 = vrcp.f32 %v9746_v44  ;;  %v11145_v18 = vld [vmem:[#allocation123_spill] sm:$0xff] }
 0xf09   :  { %6807 = vmatmul.mubr.msk.bf16.gmra.mrb[132].mxu0 %vm657_vm1, %v5327_v0  ;;  %v7278_v60 = vpop.eup %7277  ;;  %v11142_v0 = vld [vmem:[#allocation153_spill] sm:$0xff]  ;;  %7297 = vrcp.f32 %v9859_v21 }
 0xf0a   :  { %v7280_v31 = vpop.eup %7279  ;;  %7299 = vrcp.f32 %v9754_v32 }
 0xf0b   :  { %5189 = vmax.xlane.f32.xlu0 %v5188_v51  ;;  %5276 = vadd.xlane.f32.xlu1 %v5275_v17  ;;  %v7282_v50 = vpop.eup %7281  ;;  %7301 = vrcp.f32 %v9865_v34  ;;  %v11146_v17 = vld [vmem:[#allocation175_spill] sm:$0xff] }
 0xf0c   :  { %v7284_v59 = vpop.eup %7283  ;;  %v3551_v3 = vmul.f32 %v7282_v50, %v11142_v0  ;;  %7303 = vrcp.f32 %v9760_v52  ;;  %v11156_v50 = vld [vmem:[#allocation94_spill] sm:$0xff]  ;;  %v11159_v0 = vld [vmem:[#allocation125_spill] sm:$0xff] }
 0xf0d   :  { %v7286_v23 = vpop.eup %7285  ;;  %7305 = vrcp.f32 %v9877_v47 }
 0xf0e   :  { %v7288_v14 = vpop.eup %7287  ;;  %v3553_v63 = vmul.f32 %v7286_v23, %v11144_v57  ;;  %7307 = vrcp.f32 %v9766_v8  ;;  %v11163_v57 = vld [vmem:[#allocation157_spill] sm:$0xff] }
 0xf0f   :  { %797 = vadd.xlane.f32.xlu0 %v796_v4  ;;  %5195 = vmax.xlane.f32.xlu1 %v5194_v58  ;;  %v7290_v39 = vpop.eup %7289  ;;  %v2899_v44 = vmul.f32 %v7288_v14, %v11145_v18  ;;  %v11147_v4 = vld [vmem:[#allocation122_spill] sm:$0xff]  ;;  %7309 = vrcp.f32 %v9885_v13  ;;  %v11162_v14 = vld [vmem:[#allocation84_spill] sm:$0xff] }
 0xf10   :  { %v7292_v51 = vpop.eup %7291  ;;  %v4204_v7 = vmul.f32 %v7290_v39, %v11146_v17  ;;  %7311 = vrcp.f32 %v9891_v55  ;;  %v11152_v55 = vld [vmem:[#allocation65_spill] sm:$0xff]  ;;  %v11164_v18 = vld [vmem:[#allocation156_spill] sm:$0xff] }
 0xf11   :  { %v7294_v21 = vpop.eup %7293  ;;  %v2901_v32 = vmul.f32 %v7292_v51, %v11147_v4  ;;  %7313 = vrcp.f32 %v9772_v27  ;;  %v11153_v27 = vld [vmem:[#allocation176_spill] sm:$0xff]  ;;  %v11165_v17 = vld [vmem:[#allocation85_spill] sm:$0xff]  ;;  %v11167_v4 = vld [vmem:[#allocation179_spill] sm:$0xff] }
 0xf12   :  { %v7296_v58 = vpop.eup %7295  ;;  %7315 = vrcp.f32 %v9897_v1 }
 0xf13   :  { %5201 = vmax.xlane.f32.xlu0 %v5200_v11  ;;  %800 = vadd.xlane.f32.xlu1 %v799_v33  ;;  %v11148_v11 = vld [vmem:[#allocation174_spill] sm:$0xff]  ;;  %v7298_v34 = vpop.eup %7297  ;;  %v11149_v33 = vld [vmem:[#allocation155_spill] sm:$0xff]  ;;  %7317 = vrcp.f32 %v9778_v12 }
 0xf14   :  { %v4206_v16 = vmul.f32 %v7294_v21, %v11148_v11  ;;  %v3552_v52 = vmul.f32 %v7296_v58, %v11149_v33  ;;  %7319 = vrcp.f32 %v9784_v53  ;;  %v11166_v21 = vld [vmem:[#allocation114_spill] sm:$0xff]  ;;  %v11168_v11 = vld [vmem:[#allocation115_spill] sm:$0xff] }
 0xf15   :  { %7321 = vrcp.f32 %v9901_v19  ;;  %v11169_v33 = vld [vmem:[#allocation178_spill] sm:$0xff] }
 0xf16   :  { %7323 = vrcp.f32 %v9905_v22  ;;  %v11158_v22 = vld [vmem:[#allocation67_spill] sm:$0xff] }
 0xf17   :  { %5198 = vmax.xlane.f32.xlu1 %v5197_v37  ;;  %v7300_v37 = vpop.eup %7299  ;;  %7325 = vrcp.f32 %v9909_v46  ;;  %v11161_v46 = vld [vmem:[#allocation124_spill] sm:$0xff] }
 0xf18   :  { %v7302_v47 = vpop.eup %7301 }
 0xf19   :  { %v7304_v29 = vpop.eup %7303  ;;  %v4859_v8 = vmul.f32 %v7302_v47, %v9869_v40  ;;  %v11171_v47 = vld [vmem:[#allocation56_spill] sm:$0xff] }
 0xf1a   :  { %v7306_v13 = vpop.eup %7305 }
 0xf1b   :  { %5192 = vmax.xlane.f32.xlu1 %v5191_v45  ;;  %v4857_v45 = vmul.f32 %v7298_v34, %v9871_v6  ;;  %v11151_v6 = vld [vmem:[#allocation177_spill] sm:$0xff]  ;;  %v7308_v25 = vpop.eup %7307  ;;  %v1596_v15 = vmul.f32 %v7306_v13, %v11152_v55  ;;  %v11172_v13 = vld [vmem:[#allocation140_spill] sm:$0xff] }
 0xf1c   :  { %v4207_v40 = vmul.f32 %v7308_v25, %v11153_v27  ;;  %v11174_v55 = vld [vmem:[#allocation89_spill] sm:$0xff] }
 0xf1d   :  { %v11175_v27 = vld [vmem:[#allocation69_spill] sm:$0xff] }
 0xf1f   :  { %5207 = vmax.xlane.f32.xlu1 %v5206_v20  ;;  %v11150_v20 = vld [vmem:[#allocation154_spill] sm:$0xff] }
 0xf20   :  { %v3554_v38 = vmul.f32 %v7300_v37, %v11150_v20 }
 0xf29   :  { %1624 = vrot.lane.b32.xlu0 %v9805_v62, %s7616_s7  ;;  %v11139_v62 = vld [vmem:[#allocation121_spill] sm:$0xff] }
 0xf2a   :  { %v2898_v5 = vmul.f32 %v7276_v30, %v11139_v62  ;;  %v11154_v30 = vld [vmem:[#allocation64_spill] sm:$0xff] }
 0xf2d   :  { %2277 = vrot.lane.b32.xlu0 %v2245_v24, %s7615_s6  ;;  %v4205_v24 = vmul.f32 %v7304_v29, %v11151_v6  ;;  %v11173_v6 = vld [vmem:[#allocation147_spill] sm:$0xff] }
 0xf30   :  { %1626 = vrot.lane.b32.xlu1 %v9729_v43, %s7616_s7  ;;  %v11140_v43 = vld [vmem:[#allocation120_spill] sm:$0xff] }
 0xf31   :  { %2281 = vrot.lane.b32.xlu0 %v2247_v48, %s7615_s6  ;;  %v2900_v2 = vmul.f32 %v7278_v60, %v11140_v43  ;;  %v7310_v48 = vpop.eup %7309  ;;  %v11155_v60 = vld [vmem:[#allocation95_spill] sm:$0xff] }
 0xf32   :  { %v1598_v1 = vmul.f32 %v7310_v48, %v11154_v30  ;;  %v7312_v62 = vpop.eup %7311 }
 0xf33   :  { %v2249_v53 = vmul.f32 %v7312_v62, %v11155_v60  ;;  %v11178_v60 = vld [vmem:[#allocation68_spill] sm:$0xff] }
 0xf34   :  { %1628 = vrot.lane.b32.xlu1 %v9814_v61, %s7616_s7  ;;  %v11141_v61 = vld [vmem:[#allocation93_spill] sm:$0xff] }
 0xf35   :  { %2930 = vrot.lane.b32.xlu0 %v2898_v5, %s7614_s5  ;;  %v2246_v42 = vmul.f32 %v7280_v31, %v11141_v61  ;;  %v7314_v5 = vpop.eup %7313 }
 0xf36   :  { %v4858_v12 = vmul.f32 %v7314_v5, %v9879_v56  ;;  %v7316_v31 = vpop.eup %7315  ;;  %v11157_v56 = vld [vmem:[#allocation54_spill] sm:$0xff]  ;;  %v11177_v5 = vld [vmem:[#allocation61_spill] sm:$0xff] }
 0xf37   :  { %v7318_v19 = vpop.eup %7317  ;;  %v2251_v61 = vmul.f32 %v7316_v31, %v11156_v50  ;;  %7327 = vrcp.f32 %v11157_v56 }
 0xf38   :  { %1630 = vrot.lane.b32.xlu1 %v9823_v10, %s7616_s7  ;;  %v11143_v10 = vld [vmem:[#allocation92_spill] sm:$0xff]  ;;  %v4860_v43 = vmul.f32 %v7318_v19, %v9875_v28  ;;  %v11160_v28 = vld [vmem:[#allocation55_spill] sm:$0xff] }
 0xf39   :  { %2934 = vrot.lane.b32.xlu0 %v2900_v2, %s7614_s5  ;;  %v2248_v49 = vmul.f32 %v7284_v59, %v11143_v10  ;;  %v7320_v2 = vpop.eup %7319  ;;  %7329 = vrcp.f32 %v11160_v28 }
 0xf3a   :  { %v1597_v59 = vmul.f32 %v7320_v2, %v11158_v22  ;;  %7331 = vrcp.f32 %v11162_v14  ;;  %v11180_v2 = vld [vmem:[#allocation117_spill] sm:$0xff]  ;;  %v11185_v14 = vld [vmem:[#allocation139_spill] sm:$0xff] }
 0xf3b   :  { %7333 = vrcp.f32 %v11165_v17  ;;  %v5203_v50 = vsel %vm657_vm1, %v11180_v2, -inf  ;;  %v11188_v17 = vld [vmem:[#allocation45_spill] sm:$0xff] }
 0xf3c   :  { %2279 = vrot.lane.b32.xlu1 %v2246_v42, %s7615_s6  ;;  %v7322_v42 = vpop.eup %7321  ;;  %7335 = vrcp.f32 %v11166_v21  ;;  %v11189_v21 = vld [vmem:[#allocation145_spill] sm:$0xff] }
 0xf3d   :  { %3583 = vrot.lane.b32.xlu0 %v3551_v3, %s7608_s0  ;;  %v2902_v3 = vmul.f32 %v7322_v42, %v11159_v0  ;;  %v7324_v23 = vpop.eup %7323  ;;  %7337 = vrcp.f32 %v11168_v11  ;;  %v11182_v0 = vld [vmem:[#allocation136_spill] sm:$0xff] }
 0xf3e   :  { %v2904_v10 = vmul.f32 %v7324_v23, %v11161_v46  ;;  %v11184_v23 = vld [vmem:[#allocation98_spill] sm:$0xff] }
 0xf40   :  { %2283 = vrot.lane.b32.xlu1 %v2248_v49, %s7615_s6  ;;  %v7326_v49 = vpop.eup %7325 }
 0xf41   :  { %3587 = vrot.lane.b32.xlu0 %v3553_v63, %s7608_s0  ;;  %v3555_v63 = vmul.f32 %v7326_v49, %v11163_v57  ;;  %v7328_v39 = vpop.eup %7327  ;;  %v11186_v57 = vld [vmem:[#allocation170_spill] sm:$0xff] }
 0xf43   :  { %v7330_v51 = vpop.eup %7329 }
 0xf44   :  { %2932 = vrot.lane.b32.xlu1 %v2899_v44, %s7614_s5  ;;  %v3557_v44 = vmul.f32 %v7328_v39, %v11164_v18  ;;  %v7332_v58 = vpop.eup %7331 }
 0xf45   :  { %4236 = vrot.lane.b32.xlu0 %v4204_v7, %s7613_s30  ;;  %v10236_v7 = vpop.xlane.xlu0 %4638  ;;  %v7334_v37 = vpop.eup %7333 }
 0xf46   :  { %v4861_v20 = vmul.f32 %v7334_v37, %v11171_v47  ;;  %v11191_v37 = vld [vmem:[#allocation50_spill] sm:$0xff] }
 0xf48   :  { %2936 = vrot.lane.b32.xlu1 %v2901_v32, %s7614_s5  ;;  %v4208_v32 = vmul.f32 %v7330_v51, %v11167_v4 }
 0xf49   :  { %4240 = vrot.lane.b32.xlu0 %v4206_v16, %s7613_s30  ;;  %v10243_v16 = vpop.xlane.xlu1 %4641  ;;  %v10245_v34 = vpop.xlane.xlu0 %4632 }
 0xf4c   :  { %3585 = vrot.lane.b32.xlu1 %v3552_v52, %s7608_s0  ;;  %v4210_v52 = vmul.f32 %v7332_v58, %v11169_v33 }
 0xf4d   :  { %4889 = vrot.lane.b32.xlu0 %v4857_v45, %s7612_s29  ;;  %v11170_v45 = vld [vmem:[#allocation146_spill] sm:$0xff]  ;;  %v10251_v29 = vpop.xlane.xlu1 %4635 }
 0xf4e   :  { %7339 = vrcp.f32 %v11170_v45  ;;  %v11192_v45 = vld [vmem:[#allocation173_spill] sm:$0xff] }
 0xf4f   :  { %7341 = vrcp.f32 %v11172_v13  ;;  %v11194_v13 = vld [vmem:[#allocation66_spill] sm:$0xff] }
 0xf50   :  { %3589 = vrot.lane.b32.xlu1 %v3554_v38, %s7608_s0  ;;  %v7336_v38 = vpop.eup %7335  ;;  %7343 = vrcp.f32 %v11174_v55 }
 0xf51   :  { %4893 = vrot.lane.b32.xlu0 %v4859_v8, %s7612_s29  ;;  %v10253_v8 = vpop.xlane.xlu0 %4650  ;;  %v7338_v25 = vpop.eup %7337 }
 0xf54   :  { %4238 = vrot.lane.b32.xlu1 %v4205_v24, %s7613_s30  ;;  %v4863_v24 = vmul.f32 %v7336_v38, %v11173_v6 }
 0xf55   :  { %1632 = vrot.lane.b32.xlu0 %v1596_v15, %s7616_s7  ;;  %v10260_v15 = vpop.xlane.xlu1 %4653  ;;  %v10262_v48 = vpop.xlane.xlu0 %4644 }
 0xf58   :  { %4242 = vrot.lane.b32.xlu1 %v4207_v40, %s7613_s30  ;;  %v1600_v40 = vmul.f32 %v7338_v25, %v11175_v27  ;;  %v7340_v30 = vpop.eup %7339  ;;  %v11195_v25 = vld [vmem:[#allocation46_spill] sm:$0xff] }
 0xf59   :  { %1636 = vrot.lane.b32.xlu0 %v1598_v1, %s7616_s7  ;;  %v11176_v1 = vld [vmem:[#allocation116_spill] sm:$0xff]  ;;  %v7342_v31 = vpop.eup %7341  ;;  %v10272_v19 = vpop.xlane.xlu1 %4647 }
 0xf5a   :  { %7345 = vrcp.f32 %v11176_v1  ;;  %v7344_v56 = vpop.eup %7343 }
 0xf5b   :  { %v2255_v28 = vmul.f32 %v7344_v56, %v11184_v23 }
 0xf5c   :  { %4891 = vrot.lane.b32.xlu1 %v4858_v12, %s7612_s29  ;;  %v5209_v12 = vsel %vm657_vm1, %v11177_v5, -inf }
 0xf5d   :  { %2285 = vrot.lane.b32.xlu0 %v2249_v53, %s7615_s6  ;;  %v1602_v53 = vmul.f32 %v7340_v30, %v11178_v60  ;;  %v11196_v30 = vld [vmem:[#allocation160_spill] sm:$0xff] }
 0xf60   :  { %4895 = vrot.lane.b32.xlu1 %v4860_v43, %s7612_s29  ;;  %v11179_v43 = vld [vmem:[#allocation119_spill] sm:$0xff] }
 0xf61   :  { %2289 = vrot.lane.b32.xlu0 %v2251_v61, %s7615_s6  ;;  %7347 = vrcp.f32 %v11179_v43  ;;  %v11181_v61 = vld [vmem:[#allocation99_spill] sm:$0xff] }
 0xf62   :  { %v2253_v42 = vmul.f32 %v7342_v31, %v11181_v61  ;;  %7349 = vrcp.f32 %v11182_v0  ;;  %v11198_v31 = vld [vmem:[#allocation51_spill] sm:$0xff]  ;;  %v11200_v0 = vld [vmem:[#allocation96_spill] sm:$0xff] }
 0xf64   :  { %1634 = vrot.lane.b32.xlu1 %v1597_v59, %s7616_s7  ;;  %v7346_v46 = vpop.eup %7345 }
 0xf65   :  { %2938 = vrot.lane.b32.xlu0 %v2902_v3, %s7614_s5  ;;  %v11183_v3 = vld [vmem:[#allocation190_spill] sm:$0xff] }
 0xf66   :  { %7351 = vrcp.f32 %v11183_v3 }
 0xf67   :  { %7353 = vrcp.f32 %v11185_v14 }
 0xf68   :  { %7355 = vrcp.f32 %v11186_v57  ;;  %v11201_v57 = vld [vmem:[#allocation47_spill] sm:$0xff] }
 0xf69   :  { %2942 = vrot.lane.b32.xlu0 %v2904_v10, %s7614_s5  ;;  %7357 = vrcp.f32 %v11188_v17 }
 0xf6a   :  { %7359 = vrcp.f32 %v11189_v21 }
 0xf6b   :  { %v7348_v18 = vpop.eup %7347  ;;  %7361 = vrcp.f32 %v11191_v37 }
 0xf6c   :  { %v7350_v4 = vpop.eup %7349  ;;  %7363 = vrcp.f32 %v11192_v45  ;;  %v11205_v45 = vld [vmem:[#allocation41_spill] sm:$0xff] }
 0xf6d   :  { %3591 = vrot.lane.b32.xlu0 %v3555_v63, %s7608_s0  ;;  %v11187_v63 = vld [vmem:[#allocation129_spill] sm:$0xff]  ;;  %v1599_v6 = vmul.f32 %v7350_v4, %v11194_v13  ;;  %7365 = vrcp.f32 %v11195_v25  ;;  %v11204_v4 = vld [vmem:[#allocation127_spill] sm:$0xff] }
 0xf6e   :  { %v2906_v39 = vmul.f32 %v7346_v46, %v11187_v63  ;;  %7367 = vrcp.f32 %v10245_v34 }
 0xf70   :  { %v7352_v11 = vpop.eup %7351 }
 0xf71   :  { %3595 = vrot.lane.b32.xlu0 %v3557_v44, %s7608_s0  ;;  %v7354_v47 = vpop.eup %7353 }
 0xf75   :  { %4244 = vrot.lane.b32.xlu0 %v4208_v32, %s7613_s30  ;;  %v11190_v32 = vld [vmem:[#allocation128_spill] sm:$0xff] }
 0xf76   :  { %v2908_v58 = vmul.f32 %v7348_v18, %v11190_v32 }
 0xf79   :  { %4248 = vrot.lane.b32.xlu0 %v4210_v52, %s7613_s30 }
 0xf7d   :  { %4897 = vrot.lane.b32.xlu0 %v4861_v20, %s7612_s29  ;;  %v11193_v20 = vld [vmem:[#allocation161_spill] sm:$0xff] }
 0xf7e   :  { %v3559_v38 = vmul.f32 %v7352_v11, %v11193_v20 }
 0xf81   :  { %4901 = vrot.lane.b32.xlu0 %v4863_v24, %s7612_s29  ;;  %v7356_v24 = vpop.eup %7355 }
 0xf82   :  { %v3561_v1 = vmul.f32 %v7356_v24, %v11196_v30  ;;  %v11207_v24 = vld [vmem:[#allocation148_spill] sm:$0xff] }
 0xf84   :  { %v10267_v62 = vpop.xlane.xlu0 %5267 }
 0xf85   :  { %1640 = vrot.lane.b32.xlu0 %v1600_v40, %s7616_s7  ;;  %v7358_v40 = vpop.eup %7357 }
 0xf86   :  { %v2252_v3 = vmul.f32 %v7358_v40, %v11200_v0 }
 0xf88   :  { %5210 = vmax.xlane.f32.xlu1 %v5209_v12  ;;  %v10279_v22 = vpop.xlane.xlu0 %5261  ;;  %v11197_v12 = vld [vmem:[#allocation97_spill] sm:$0xff] }
 0xf89   :  { %1644 = vrot.lane.b32.xlu0 %v1602_v53, %s7616_s7  ;;  %v2250_v60 = vmul.f32 %v7354_v47, %v11197_v12  ;;  %v7360_v53 = vpop.eup %7359 }
 0xf8a   :  { %v7362_v34 = vpop.eup %7361 }
 0xf8b   :  { %v7364_v23 = vpop.eup %7363  ;;  %v2903_v32 = vmul.f32 %v7362_v34, %v11204_v4 }
 0xf8c   :  { %5204 = vmax.xlane.f32.xlu1 %v5203_v50  ;;  %v10281_v59 = vpop.xlane.xlu1 %5270  ;;  %v7366_v63 = vpop.eup %7365 }
 0xf8d   :  { %2293 = vrot.lane.b32.xlu0 %v2253_v42, %s7615_s6  ;;  %v11199_v42 = vld [vmem:[#allocation183_spill] sm:$0xff]  ;;  %v7368_v18 = vpop.eup %7367 }
 0xf8e   :  { %v4212_v56 = vmul.f32 %v7360_v53, %v11199_v42  ;;  %v4865_v25 = vmul.f32 %v7368_v18, %v11207_v24  ;;  %v11221_v24 = vld [vmem:[#allocation53_spill] sm:$0xff] }
 0xf90   :  { %v10287_v10 = vpop.xlane.xlu0 %5279  ;;  %v10289_v49 = vpop.xlane.xlu1 %5264 }
 0xf91   :  { %2297 = vrot.lane.b32.xlu0 %v2255_v28, %s7615_s6 }
 0xf94   :  { %v10295_v44 = vpop.xlane.xlu0 %5273  ;;  %v10297_v51 = vpop.xlane.xlu1 %5282 }
 0xf95   :  { %2946 = vrot.lane.b32.xlu0 %v2906_v39, %s7614_s5  ;;  %v11202_v39 = vld [vmem:[#allocation144_spill] sm:$0xff] }
 0xf98   :  { %v5190_v33 = vpop.xlane.xlu0 %5189  ;;  %v10303_v52 = vpop.xlane.xlu1 %5276 }
 0xf99   :  { %2950 = vrot.lane.b32.xlu0 %v2908_v58, %s7614_s5  ;;  %v5220_v28 = vsub.f32 %v10075_v35, %v5190_v33  ;;  %v11203_v35 = vld [vmem:[#allocation182_spill] sm:$0xff] }
 0xf9a   :  { %v4214_v21 = vmul.f32 %v7364_v23, %v11203_v35 }
 0xf9b   :  { %v5244_v11 = vmul.f32 1.442695, %v5220_v28  ;;  %v11213_v28 = vld [vmem:[#allocation73_spill] sm:$0xff] }
 0xf9c   :  { %v798_v55 = vpop.xlane.xlu0 %797  ;;  %v5196_v27 = vpop.xlane.xlu1 %5195 }
 0xf9d   :  { %3599 = vrot.lane.b32.xlu0 %v3559_v38, %s7608_s0  ;;  %1638 = vrot.lane.b32.xlu1 %v1599_v6, %s7616_s7  ;;  %7369 = vrcp.f32 %v798_v55  ;;  %v5222_v43 = vsub.f32 %v10073_v54, %v5196_v27  ;;  %v11206_v38 = vld [vmem:[#allocation80_spill] sm:$0xff]  ;;  %v11208_v55 = vld [vmem:[#allocation126_spill] sm:$0xff] }
 0xf9e   :  { %7371 = vrcp.f32 %v11198_v31  ;;  %v2905_v27 = vmul.f32 %v7366_v63, %v11208_v55  ;;  %v11211_v31 = vld [vmem:[#allocation63_spill] sm:$0xff] }
 0xf9f   :  { %7373 = vrcp.f32 %v10236_v7  ;;  %v5248_v54 = vmul.f32 1.442695, %v5222_v43 }
 0xfa0   :  { %v10318_v50 = vpop.xlane.xlu0 %5201  ;;  %v801_v61 = vpop.xlane.xlu1 %800 }
 0xfa1   :  { %3603 = vrot.lane.b32.xlu0 %v3561_v1, %s7608_s0  ;;  %2287 = vrot.lane.b32.xlu1 %v2250_v60, %s7615_s6  ;;  %7375 = vrcp.f32 %v801_v61  ;;  %v11209_v1 = vld [vmem:[#allocation43_spill] sm:$0xff]  ;;  %v11210_v60 = vld [vmem:[#allocation76_spill] sm:$0xff] }
 0xfa2   :  { %7377 = vrcp.f32 %v11201_v57  ;;  %v11212_v61 = vld [vmem:[#allocation159_spill] sm:$0xff] }
 0xfa3   :  { %7379 = vrcp.f32 %v11202_v39 }
 0xfa4   :  { %v1625_v46 = vpop.permute.xlu0 %1624  ;;  %v5199_v14 = vpop.xlane.xlu1 %5198  ;;  %7381 = vpow2.f32 %v5248_v54 }
 0xfa5   :  { %1673 = vst.msk [vmem:[#allocation2] sm:$0xff] %vm1672_vm2, %v1625_v46  ;;  %v5223_v7 = vsub.f32 %v10077_v41, %v5199_v14  ;;  %4252 = vrot.lane.b32.xlu0 %v4212_v56, %s7613_s30  ;;  %2291 = vrot.lane.b32.xlu1 %v2252_v3, %s7615_s6  ;;  %v11214_v46 = vld [vmem:[#allocation158_spill] sm:$0xff] }
 0xfa7   :  { %v5250_v17 = vmul.f32 1.442695, %v5223_v7  ;;  %v7370_v58 = vpop.eup %7369  ;;  %v11215_v7 = vld [vmem:[#allocation81_spill] sm:$0xff] }
 0xfa8   :  { %v2278_v33 = vpop.permute.xlu0 %2277  ;;  %v5193_v37 = vpop.xlane.xlu1 %5192  ;;  %v994_v47 = vmul.f32 %v7370_v58, %v11205_v45  ;;  %v11217_v58 = vld [vmem:[#allocation77_spill] sm:$0xff]  ;;  %v11219_v45 = vld [vmem:[#allocation180_spill] sm:$0xff] }
 0xfa9   :  { %7383 = vpow2.f32 %v5250_v17  ;;  %2326 = vst.msk [vmem:[#allocation2] sm:$0xff] %vm2325_vm3, %v2278_v33  ;;  %v5221_v41 = vsub.f32 %v10079_v9, %v5193_v37  ;;  %4256 = vrot.lane.b32.xlu0 %v4214_v21, %s7613_s30  ;;  %2940 = vrot.lane.b32.xlu1 %v2903_v32, %s7614_s5  ;;  %v7372_v20 = vpop.eup %7371  ;;  %v11216_v21 = vld [vmem:[#allocation181_spill] sm:$0xff] }
 0xfaa   :  { %7385 = vrcp.f32 %v11206_v38  ;;  %v7374_v13 = vpop.eup %7373  ;;  %1010 = vst.msk [vmem:[#allocation2 + $0x70] sm:$0xff] %vm478_vm0, %v994_v47  ;;  %v3556_v34 = vmul.f32 %v7372_v20, %v11212_v61  ;;  %v11225_v61 = vld [vmem:[#allocation71_spill] sm:$0xff] }
 0xfab   :  { %v5246_v6 = vmul.f32 1.442695, %v5221_v41  ;;  %v7376_v40 = vpop.eup %7375  ;;  %7387 = vpow2.f32 %v5244_v11  ;;  %v4867_v43 = vmul.f32 %v7374_v13, %v11211_v31  ;;  %v11218_v41 = vld [vmem:[#allocation110_spill] sm:$0xff] }
 0xfac   :  { %v2282_v9 = vpop.permute.xlu0 %2281  ;;  %v10343_v30 = vpop.xlane.xlu1 %5207  ;;  %v995_v12 = vmul.f32 %v7376_v40, %v11209_v1  ;;  %v11223_v1 = vld [vmem:[#allocation86_spill] sm:$0xff] }
 0xfad   :  { %7389 = vpow2.f32 %v5246_v6  ;;  %4905 = vrot.lane.b32.xlu0 %v4865_v25, %s7612_s29  ;;  %2944 = vrot.lane.b32.xlu1 %v2905_v27, %s7614_s5  ;;  %v7378_v53 = vpop.eup %7377  ;;  %v11220_v6 = vld [vmem:[#allocation106_spill] sm:$0xff] }
 0xfae   :  { %7391 = vrcp.f32 %v11210_v60  ;;  %1011 = vst.msk [vmem:[#allocation2 + $0x78] sm:$0xff] %vm478_vm0, %v995_v12  ;;  %v7380_v42 = vpop.eup %7379  ;;  %v3558_v14 = vmul.f32 %v7378_v53, %v11214_v46 }
 0xfaf   :  { %v10356_v3 = vpop.eup %7381  ;;  %v1604_v54 = vmul.f32 %v7380_v42, %v11213_v28  ;;  %7393 = vrcp.f32 %v11215_v7  ;;  %v11226_v28 = vld [vmem:[#allocation142_spill] sm:$0xff] }
 0xfb0   :  { %v2931_v56 = vpop.permute.xlu0 %2930  ;;  %v1627_v0 = vpop.permute.xlu1 %1626  ;;  %7395 = vrcp.f32 %v11217_v58 }
 0xfb1   :  { %2979 = vst.msk [vmem:[#allocation2] sm:$0xff] %vm2978_vm4, %v2931_v56  ;;  %4909 = vrot.lane.b32.xlu0 %v4867_v43, %s7612_s29  ;;  %3593 = vrot.lane.b32.xlu1 %v3556_v34, %s7608_s0  ;;  %7397 = vrcp.f32 %v11218_v41  ;;  %v11224_v43 = vld [vmem:[#allocation107_spill] sm:$0xff] }
 0xfb2   :  { %1674 = vst.msk [vmem:[#allocation2 + $0x8] sm:$0xff] %vm1672_vm2, %v1627_v0  ;;  %7399 = vrcp.f32 %v11220_v6 }
 0xfb3   :  { %v10358_v23 = vpop.eup %7383 }
 0xfb4   :  { %v7386_v57 = vpop.eup %7385  ;;  %v5329_v63 = vpack.c.bf16 %v10358_v23, %v10356_v3  ;;  %v2935_v39 = vpop.permute.xlu0 %2934 }
 0xfb5   :  { %v1629_v18 = vpop.permute.xlu1 %1628  ;;  %1648 = vrot.lane.b32.xlu0 %v1604_v54, %s7616_s7  ;;  %3597 = vrot.lane.b32.xlu1 %v3558_v14, %s7608_s0  ;;  %v10368_v17 = vpop.eup %7387  ;;  %v4209_v4 = vmul.f32 %v7386_v57, %v11216_v21  ;;  %v11227_v54 = vld [vmem:[#allocation70_spill] sm:$0xff] }
 0xfb6   :  { %1675 = vst.msk [vmem:[#allocation2 + $0x10] sm:$0xff] %vm1672_vm2, %v1629_v18 }
 0xfb7   :  { %2328 = vst.msk [vmem:[#allocation2 + $0x10] sm:$0xff] %vm2325_vm3, %v2282_v9  ;;  %v10371_v35 = vpop.eup %7389  ;;  %v11222_v9 = vld [vmem:[#allocation111_spill] sm:$0xff] }
 0xfb8   :  { %2981 = vst.msk [vmem:[#allocation2 + $0x10] sm:$0xff] %vm2978_vm4, %v2935_v39  ;;  %v7392_v32 = vpop.eup %7391  ;;  %v3584_v11 = vpop.permute.xlu0 %3583  ;;  %v5328_v37 = vpack.c.bf16 %v10371_v35, %v10368_v17  ;;  %7401 = vrcp.f32 %v11222_v9 }
 0xfb9   :  { %v1631_v33 = vpop.permute.xlu1 %1630  ;;  %3632 = vst.msk [vmem:[#allocation2] sm:$0xff] %vm3631_vm5, %v3584_v11  ;;  %4246 = vrot.lane.b32.xlu1 %v4209_v4, %s7613_s30  ;;  %v4211_v47 = vmul.f32 %v7392_v32, %v11219_v45  ;;  %v7394_v13 = vpop.eup %7393  ;;  %7403 = vrcp.f32 %v11224_v43  ;;  %v11230_v32 = vld [vmem:[#allocation143_spill] sm:$0xff]  ;;  %v11231_v11 = vld [vmem:[#allocation100_spill] sm:$0xff] }
 0xfba   :  { %1676 = vst.msk [vmem:[#allocation2 + $0x18] sm:$0xff] %vm1672_vm2, %v1631_v33  ;;  %6818 = vmatprep.mubr.msk.bf16.mxu1 %vm657_vm1, %v5328_v37  ;;  %v4862_v25 = vmul.f32 %v7394_v13, %v11221_v24  ;;  %v7396_v40 = vpop.eup %7395  ;;  %7405 = vrcp.f32 %v10267_v62  ;;  %v11228_v62 = vld [vmem:[#allocation137_spill] sm:$0xff]  ;;  %v11233_v24 = vld [vmem:[#allocation131_spill] sm:$0xff] }
 0xfbb   :  { %6819 = vmatmul.mubr.msk.bf16.vlgmr.msra.gmra.mrb[160].mxu1 %vm657_vm1, %v5329_v63  ;;  %v4864_v12 = vmul.f32 %v7396_v40, %v11223_v1  ;;  %v7398_v60 = vpop.eup %7397  ;;  %7407 = vrcp.f32 %v11226_v28  ;;  %v11229_v63 = vld [vmem:[#allocation101_spill] sm:$0xff] }
 0xfbc   :  { %v3588_v20 = vpop.permute.xlu0 %3587  ;;  %v1601_v34 = vmul.f32 %v7398_v60, %v11225_v61  ;;  %v7400_v42 = vpop.eup %7399  ;;  %7409 = vrcp.f32 %v10279_v22  ;;  %v11234_v1 = vld [vmem:[#allocation49_spill] sm:$0xff] }
 0xfbd   :  { %v2280_v38 = vpop.permute.xlu1 %2279  ;;  %3634 = vst.msk [vmem:[#allocation2 + $0x10] sm:$0xff] %vm3631_vm5, %v3588_v20  ;;  %4250 = vrot.lane.b32.xlu1 %v4211_v47, %s7613_s30  ;;  %v1603_v46 = vmul.f32 %v7400_v42, %v11227_v54  ;;  %7411 = vrcp.f32 %v11228_v62  ;;  %v11232_v20 = vld [vmem:[#allocation138_spill] sm:$0xff] }
 0xfbe   :  { %2327 = vst.msk [vmem:[#allocation2 + $0x8] sm:$0xff] %vm2325_vm3, %v2280_v38  ;;  %7413 = vrcp.f32 %v11230_v32 }
 0xfbf   :  { %7415 = vrcp.f32 %v10287_v10 }
 0xfc0   :  { %v4237_v55 = vpop.permute.xlu0 %4236  ;;  %7417 = vrcp.f32 %v11232_v20 }
 0xfc1   :  { %v2284_v27 = vpop.permute.xlu1 %2283  ;;  %4285 = vst.msk [vmem:[#allocation2] sm:$0xff] %vm4284_vm6, %v4237_v55  ;;  %4899 = vrot.lane.b32.xlu1 %v4862_v25, %s7612_s29  ;;  %7419 = vrcp.f32 %v10295_v44 }
 0xfc2   :  { %2329 = vst.msk [vmem:[#allocation2 + $0x18] sm:$0xff] %vm2325_vm3, %v2284_v27  ;;  %v7402_v14 = vpop.eup %7401  ;;  %7421 = vrcp.f32 %v11234_v1  ;;  %v5226_v1 = vsub.f32 %v10081_v26, %v10343_v30 }
 0xfc3   :  { %v2254_v39 = vmul.f32 %v7402_v14, %v11229_v63  ;;  %v7404_v18 = vpop.eup %7403 }
 0xfc4   :  { %v4241_v53 = vpop.permute.xlu0 %4240  ;;  %v7406_v22 = vpop.eup %7405  ;;  %v2256_v33 = vmul.f32 %v7404_v18, %v11231_v11 }
 0xfc5   :  { %v2933_v31 = vpop.permute.xlu1 %2932  ;;  %4287 = vst.msk [vmem:[#allocation2 + $0x10] sm:$0xff] %vm4284_vm6, %v4241_v53  ;;  %4903 = vrot.lane.b32.xlu1 %v4864_v12, %s7612_s29  ;;  %v7408_v37 = vpop.eup %7407  ;;  %v11235_v12 = vld [vmem:[#allocation130_spill] sm:$0xff] }
 0xfc6   :  { %2980 = vst.msk [vmem:[#allocation2 + $0x8] sm:$0xff] %vm2978_vm4, %v2933_v31  ;;  %v7410_v6 = vpop.eup %7409  ;;  %v2907_v25 = vmul.f32 %v7408_v37, %v11233_v24  ;;  %v6987_v37 = vld [vmem:[#allocation8] sm:$0xff]  }
 0xfc7   :  { %v7412_v55 = vpop.eup %7411  ;;  %6826 = vmatprep.subr.bf16.mxu0 %v6987_v37 }
 0xfc8   :  { %v4890_v56 = vpop.permute.xlu0 %4889  ;;  %v7414_v44 = vpop.eup %7413  ;;  %v2909_v60 = vmul.f32 %v7412_v55, %v11235_v12  ;;  %6827 = vmatpush3.bf16.msra.mxu0 %v6987_v37  ;;  %v6989_v55 = vld [vmem:[#allocation8 + $0x10] sm:$0xff]  }
 0xfc9   :  { %v2937_v0 = vpop.permute.xlu1 %2936  ;;  %4938 = vst.msk [vmem:[#allocation2] sm:$0xff] %vm4937_vm7, %v4890_v56  ;;  %1642 = vrot.lane.b32.xlu1 %v1601_v34, %s7616_s7  ;;  %v7416_v53 = vpop.eup %7415  ;;  %v11236_v56 = vld [vmem:[#allocation48_spill] sm:$0xff]  ;;  %v11244_v12 = vld [vmem:[#allocation75_spill] sm:$0xff] }
 0xfca   :  { %2982 = vst.msk [vmem:[#allocation2 + $0x18] sm:$0xff] %vm2978_vm4, %v2937_v0  ;;  %7423 = vrcp.f32 %v11236_v56  ;;  %v7418_v28 = vpop.eup %7417 }
 0xfcb   :  { %7425 = vrcp.f32 %v10251_v29 }
 0xfcc   :  { %v4894_v57 = vpop.permute.xlu0 %4893  ;;  %7427 = vrcp.f32 %v10243_v16  ;;  %v6988_v16 = vld [vmem:[#allocation8 + $0x8] sm:$0xff]  }
 0xfcd   :  { %v3586_v7 = vpop.permute.xlu1 %3585  ;;  %4940 = vst.msk [vmem:[#allocation2 + $0x10] sm:$0xff] %vm4937_vm7, %v4894_v57  ;;  %1646 = vrot.lane.b32.xlu1 %v1603_v46, %s7616_s7  ;;  %v11237_v46 = vld [vmem:[#allocation163_spill] sm:$0xff]  ;;  %v7420_v57 = vpop.eup %7419  ;;  %6828 = vmatprep.subr.bf16.mxu0 %v6988_v16 }
 0xfce   :  { %3633 = vst.msk [vmem:[#allocation2 + $0x8] sm:$0xff] %vm3631_vm5, %v3586_v7  ;;  %v3560_v14 = vmul.f32 %v7414_v44, %v11237_v46  ;;  %6829 = vmatpush3.bf16.msra.mxu0 %v6988_v16  ;;  %v11248_v16 = vld [vmem:[#allocation168_spill] sm:$0xff] }
 0xfcf   :  { %6830 = vmatprep.subr.bf16.mxu0 %v6989_v55 }
 0xfd0   :  { %v1633_v21 = vpop.permute.xlu0 %1632 }
 0xfd1   :  { %v3590_v4 = vpop.permute.xlu1 %3589  ;;  %1677 = vst.msk [vmem:[#allocation2 + $0x20] sm:$0xff] %vm1672_vm2, %v1633_v21  ;;  %2295 = vrot.lane.b32.xlu1 %v2254_v39, %s7615_s6  ;;  %v11238_v39 = vld [vmem:[#allocation162_spill] sm:$0xff]  ;;  %v7422_v21 = vpop.eup %7421 }
 0xfd2   :  { %3635 = vst.msk [vmem:[#allocation2 + $0x18] sm:$0xff] %vm3631_vm5, %v3590_v4  ;;  %v3562_v18 = vmul.f32 %v7418_v28, %v11238_v39  ;;  %6831 = vmatpush3.bf16.msra.mxu0 %v6989_v55  ;;  %v6993_v28 = vld [vmem:[#allocation8 + $0x30] sm:$0xff]  }
 0xfd3   :  { %v6804_v58 = vpop.f32.mrb[128].mxu0 }
 0xfd4   :  { %v5512_v41 = vmul.f32 %v7406_v22, %v6804_v58  ;;  %v1637_v45 = vpop.permute.xlu0 %1636  ;;  %v5390_v47 = vpop.f32.mrb[129].mxu0  ;;  %v11239_v22 = vld [vmem:[#allocation185_spill] sm:$0xff] }
 0xfd5   :  { %1679 = vst.msk [vmem:[#allocation2 + $0x30] sm:$0xff] %vm1672_vm2, %v1637_v45  ;;  %v4239_v38 = vpop.permute.xlu1 %4238  ;;  %v10420_v13 = vpop.f32.mrb[130].mxu0  ;;  %2299 = vrot.lane.b32.xlu1 %v2256_v33, %s7615_s6  ;;  %v5510_v27 = vmul.f32 %v7410_v6, %v5390_v47  ;;  %v4213_v58 = vmul.f32 %v7422_v21, %v11239_v22  ;;  %v11240_v33 = vld [vmem:[#allocation79_spill] sm:$0xff]  ;;  %v11245_v21 = vld [vmem:[#allocation20_spill] sm:$0xff] }
 0xfd6   :  { %4286 = vst.msk [vmem:[#allocation2 + $0x8] sm:$0xff] %vm4284_vm6, %v4239_v38  ;;  %5546 = vrot.lane.b32.xlu0 %v5512_v41, %s7611_s2  ;;  %v10426_v10 = vpop.f32.mrb[131].mxu0  ;;  %v7424_v29 = vpop.eup %7423  ;;  %7429 = vrcp.f32 %v11240_v33  ;;  %v11241_v41 = vld [vmem:[#allocation184_spill] sm:$0xff]  ;;  %v11242_v38 = vld [vmem:[#allocation151_spill] sm:$0xff] }
 0xfd7   :  { %v4215_v45 = vmul.f32 %v7424_v29, %v11241_v41  ;;  %v7426_v47 = vpop.eup %7425  ;;  %7431 = vrcp.f32 %v10281_v59  ;;  %v6990_v59 = vld [vmem:[#allocation8 + $0x18] sm:$0xff]   ;;  %v11246_v29 = vld [vmem:[#allocation169_spill] sm:$0xff] }
 0xfd8   :  { %v2286_v40 = vpop.permute.xlu0 %2285  ;;  %v4866_v6 = vmul.f32 %v7426_v47, %v11242_v38  ;;  %v7428_v24 = vpop.eup %7427  ;;  %7433 = vrcp.f32 %v10289_v49  ;;  %6832 = vmatprep.subr.bf16.mxu0 %v6990_v59 }
 0xfd9   :  { %2330 = vst.msk [vmem:[#allocation2 + $0x20] sm:$0xff] %vm2325_vm3, %v2286_v40  ;;  %v4243_v9 = vpop.permute.xlu1 %4242  ;;  %2948 = vrot.lane.b32.xlu1 %v2907_v25, %s7614_s5  ;;  %7435 = vrcp.f32 %v10297_v51  ;;  %6833 = vmatpush3.bf16.msra.mxu0 %v6990_v59 }
 0xfda   :  { %4288 = vst.msk [vmem:[#allocation2 + $0x18] sm:$0xff] %vm4284_vm6, %v4243_v9  ;;  %5542 = vrot.lane.b32.xlu0 %v5510_v27, %s7611_s2  ;;  %v11243_v27 = vld [vmem:[#allocation113_spill] sm:$0xff]  ;;  %7437 = vrcp.f32 %v10303_v52  ;;  %v5290_v52 = vsel %vm657_vm1, %v10356_v3, 0.0 }
 0xfdb   :  { %v4868_v40 = vmul.f32 %v7428_v24, %v11243_v27  ;;  %v11250_v27 = vld [vmem:[#allocation26_spill] sm:$0xff] }
 0xfdc   :  { %v2290_v31 = vpop.permute.xlu0 %2289  ;;  %v6808_v43 = vpop.f32.mrb[132].mxu0 }
 0xfdd   :  { %2332 = vst.msk [vmem:[#allocation2 + $0x30] sm:$0xff] %vm2325_vm3, %v2290_v31  ;;  %v5516_v61 = vmul.f32 %v7416_v53, %v6808_v43  ;;  %v4892_v34 = vpop.permute.xlu1 %4891  ;;  %v5406_v42 = vpop.f32.mrb[133].mxu0  ;;  %2952 = vrot.lane.b32.xlu1 %v2909_v60, %s7614_s5  ;;  %v5224_v53 = vsub.f32 %v10083_v36, %v10318_v50  ;;  %v5256_v31 = vmul.f32 1.442695, %v5226_v1  ;;  %v6991_v43 = vld [vmem:[#allocation8 + $0x20] sm:$0xff]   ;;  %v11251_v1 = vld [vmem:[#allocation103_spill] sm:$0xff] }
 0xfde   :  { %4939 = vst.msk [vmem:[#allocation2 + $0x8] sm:$0xff] %vm4937_vm7, %v4892_v34  ;;  %v10439_v0 = vpop.f32.mrb[134].mxu0  ;;  %v5514_v62 = vmul.f32 %v7420_v57, %v5406_v42  ;;  %6834 = vmatprep.subr.bf16.mxu0 %v6991_v43  ;;  %v6992_v34 = vld [vmem:[#allocation8 + $0x28] sm:$0xff]  }
 0xfdf   :  { %5554 = vrot.lane.b32.xlu0 %v5516_v61, %s7611_s2  ;;  %v10442_v54 = vpop.f32.mrb[135].mxu0  ;;  %v5252_v61 = vmul.f32 1.442695, %v5224_v53  ;;  %7439 = vpow2.f32 %v5256_v31  ;;  %6835 = vmatpush3.bf16.msra.mxu0 %v6991_v43  ;;  %v11252_v53 = vld [vmem:[#allocation57_spill] sm:$0xff] }
 0xfe0   :  { %v2939_v7 = vpop.permute.xlu0 %2938  ;;  %v7430_v9 = vpop.eup %7429  ;;  %6836 = vmatprep.subr.bf16.mxu0 %v6992_v34 }
 0xfe1   :  { %2983 = vst.msk [vmem:[#allocation2 + $0x20] sm:$0xff] %vm2978_vm4, %v2939_v7  ;;  %v4896_v63 = vpop.permute.xlu1 %4895  ;;  %3601 = vrot.lane.b32.xlu1 %v3560_v14, %s7608_s0  ;;  %v1605_v60 = vmul.f32 %v7430_v9, %v11244_v12  ;;  %v7432_v26 = vpop.eup %7431  ;;  %7441 = vpow2.f32 %v5252_v61  ;;  %v6994_v7 = vld [vmem:[#allocation8 + $0x38] sm:$0xff]  }
 0xfe2   :  { %4941 = vst.msk [vmem:[#allocation2 + $0x18] sm:$0xff] %vm4937_vm7, %v4896_v63  ;;  %v5513_v30 = vmul.f32 %v7432_v26, %v10420_v13  ;;  %v7434_v36 = vpop.eup %7433  ;;  %7443 = vrcp.f32 %v11245_v21  ;;  %v11253_v26 = vld [vmem:[#allocation102_spill] sm:$0xff] }
 0xfe3   :  { %5550 = vrot.lane.b32.xlu0 %v5514_v62, %s7611_s2  ;;  %v5511_v50 = vmul.f32 %v7434_v36, %v10426_v10  ;;  %v7436_v13 = vpop.eup %7435  ;;  %6837 = vmatpush3.bf16.msra.mxu0 %v6992_v34  ;;  %v5284_v10 = vsel %vm657_vm1, %v10368_v17, 0.0  ;;  %7445 = vrcp.f32 %v11246_v29  ;;  %v11254_v36 = vld [vmem:[#allocation22_spill] sm:$0xff]  ;;  %v11255_v34 = vld [vmem:[#allocation133_spill] sm:$0xff] }
 0xfe4   :  { %v2943_v4 = vpop.permute.xlu0 %2942  ;;  %v5517_v56 = vmul.f32 %v7436_v13, %v10439_v0  ;;  %v7438_v14 = vpop.eup %7437  ;;  %6838 = vmatprep.subr.bf16.mxu0 %v6993_v28 }
 0xfe5   :  { %2985 = vst.msk [vmem:[#allocation2 + $0x30] sm:$0xff] %vm2978_vm4, %v2943_v4  ;;  %v1635_v32 = vpop.permute.xlu1 %1634  ;;  %3605 = vrot.lane.b32.xlu1 %v3562_v18, %s7608_s0  ;;  %v5515_v3 = vmul.f32 %v7438_v14, %v10442_v54 }
 0xfe6   :  { %1678 = vst.msk [vmem:[#allocation2 + $0x28] sm:$0xff] %vm1672_vm2, %v1635_v32 }
 0xfe7   :  { %6839 = vmatpush3.bf16.msra.mxu0 %v6993_v28  ;;  %v11256_v28 = vld [vmem:[#allocation58_spill] sm:$0xff] }
 0xfe8   :  { %v3592_v11 = vpop.permute.xlu0 %3591  ;;  %6840 = vmatprep.subr.bf16.mxu0 %v6994_v7 }
 0xfe9   :  { %3636 = vst.msk [vmem:[#allocation2 + $0x20] sm:$0xff] %vm3631_vm5, %v3592_v11  ;;  %4254 = vrot.lane.b32.xlu1 %v4213_v58, %s7613_s30  ;;  %v10492_v57 = vpop.eup %7439 }
 0xfea   :  { %v5302_v0 = vsel %vm657_vm1, %v10492_v57, 0.0 }
 0xfeb   :  { %v7442_v63 = vpop.eup %7441  ;;  %6841 = vmatpush3.bf16.msra.mxu0 %v6994_v7 }
 0xfec   :  { %v3596_v20 = vpop.permute.xlu0 %3595  ;;  %v5296_v39 = vsel %vm657_vm1, %v7442_v63, 0.0 }
 0xfed   :  { %3638 = vst.msk [vmem:[#allocation2 + $0x30] sm:$0xff] %vm3631_vm5, %v3596_v20  ;;  %4258 = vrot.lane.b32.xlu1 %v4215_v45, %s7613_s30  ;;  %v11247_v45 = vld [vmem:[#allocation14_spill] sm:$0xff] }
 0xff0   :  { %v4245_v25 = vpop.permute.xlu0 %4244 }
 0xff1   :  { %4289 = vst.msk [vmem:[#allocation2 + $0x20] sm:$0xff] %vm4284_vm6, %v4245_v25  ;;  %4907 = vrot.lane.b32.xlu1 %v4866_v6, %s7612_s29 }
 0xff4   :  { %v4249_v44 = vpop.permute.xlu0 %4248 }
 0xff5   :  { %4291 = vst.msk [vmem:[#allocation2 + $0x30] sm:$0xff] %vm4284_vm6, %v4249_v44  ;;  %4911 = vrot.lane.b32.xlu1 %v4868_v40, %s7612_s29 }
 0xff8   :  { %v4898_v49 = vpop.permute.xlu0 %4897 }
 0xff9   :  { %4942 = vst.msk [vmem:[#allocation2 + $0x20] sm:$0xff] %vm4937_vm7, %v4898_v49  ;;  %1650 = vrot.lane.b32.xlu1 %v1605_v60, %s7616_s7 }
 0xffc   :  { %v4902_v51 = vpop.permute.xlu0 %4901 }
 0xffd   :  { %4944 = vst.msk [vmem:[#allocation2 + $0x30] sm:$0xff] %vm4937_vm7, %v4902_v51  ;;  %5548 = vrot.lane.b32.xlu1 %v5513_v30, %s7611_s2  ;;  %v5293_v51 = vsel %vm657_vm1, %v10358_v23, 0.0 }
0x1000   :  { %v1641_v42 = vpop.permute.xlu0 %1640 }
0x1001   :  { %1681 = vst.msk [vmem:[#allocation2 + $0x40] sm:$0xff] %vm1672_vm2, %v1641_v42  ;;  %5544 = vrot.lane.b32.xlu1 %v5511_v50, %s7611_s2 }
0x1002   :  { %5291 = vadd.xlane.f32.xlu0 %v5290_v52 }
0x1004   :  { %v1645_v46 = vpop.permute.xlu0 %1644 }
0x1005   :  { %1683 = vst.msk [vmem:[#allocation2 + $0x50] sm:$0xff] %vm1672_vm2, %v1645_v46  ;;  %5556 = vrot.lane.b32.xlu1 %v5517_v56, %s7611_s2  ;;  %v5287_v56 = vsel %vm657_vm1, %v10371_v35, 0.0  ;;  %v11257_v46 = vld [vmem:[#allocation132_spill] sm:$0xff]  ;;  %v11260_v35 = vld [vmem:[#allocation165_spill] sm:$0xff] }
0x1006   :  { %5285 = vadd.xlane.f32.xlu0 %v5284_v10 }
0x1008   :  { %v2294_v62 = vpop.permute.xlu0 %2293 }
0x1009   :  { %2334 = vst.msk [vmem:[#allocation2 + $0x40] sm:$0xff] %vm2325_vm3, %v2294_v62  ;;  %5552 = vrot.lane.b32.xlu1 %v5515_v3, %s7611_s2  ;;  %v11259_v3 = vld [vmem:[#allocation88_spill] sm:$0xff] }
0x100a   :  { %5303 = vadd.xlane.f32.xlu0 %v5302_v0 }
0x100c   :  { %v2298_v17 = vpop.permute.xlu0 %2297 }
0x100d   :  { %2336 = vst.msk [vmem:[#allocation2 + $0x50] sm:$0xff] %vm2325_vm3, %v2298_v17  ;;  %v11261_v17 = vld [vmem:[#allocation164_spill] sm:$0xff] }
0x100e   :  { %5297 = vadd.xlane.f32.xlu0 %v5296_v39 }
0x1010   :  { %v2947_v54 = vpop.permute.xlu0 %2946 }
0x1011   :  { %2987 = vst.msk [vmem:[#allocation2 + $0x40] sm:$0xff] %vm2978_vm4, %v2947_v54 }
0x1014   :  { %v2951_v18 = vpop.permute.xlu0 %2950 }
0x1015   :  { %2989 = vst.msk [vmem:[#allocation2 + $0x50] sm:$0xff] %vm2978_vm4, %v2951_v18  ;;  %v5211_v4 = vpop.xlane.xlu1 %5210 }
0x1016   :  { %v5227_v32 = vsub.f32 %v11177_v5, %v5211_v4  ;;  %v7444_v5 = vpop.eup %7443  ;;  %v11262_v4 = vld [vmem:[#allocation187_spill] sm:$0xff] }
0x1017   :  { %v7446_v24 = vpop.eup %7445 }
0x1018   :  { %v5258_v22 = vmul.f32 1.442695, %v5227_v32  ;;  %v3600_v58 = vpop.permute.xlu0 %3599  ;;  %v2257_v44 = vmul.f32 %v7446_v24, %v11251_v1 }
0x1019   :  { %3640 = vst.msk [vmem:[#allocation2 + $0x40] sm:$0xff] %vm3631_vm5, %v3600_v58  ;;  %v5205_v11 = vpop.xlane.xlu1 %5204  ;;  %v11263_v58 = vld [vmem:[#allocation74_spill] sm:$0xff] }
0x101a   :  { %7447 = vpow2.f32 %v5258_v22  ;;  %v5225_v33 = vsub.f32 %v11180_v2, %v5205_v11  ;;  %v11249_v2 = vld [vmem:[#allocation72_spill] sm:$0xff]  ;;  %v11264_v11 = vld [vmem:[#allocation186_spill] sm:$0xff] }
0x101b   :  { %7449 = vrcp.f32 %v11247_v45  ;;  %v1606_v6 = vmul.f32 %v7444_v5, %v11249_v2  ;;  %v11265_v45 = vld [vmem:[#allocation87_spill] sm:$0xff] }
0x101c   :  { %v5254_v37 = vmul.f32 1.442695, %v5225_v33  ;;  %v3604_v41 = vpop.permute.xlu0 %3603 }
0x101d   :  { %3642 = vst.msk [vmem:[#allocation2 + $0x50] sm:$0xff] %vm3631_vm5, %v3604_v41  ;;  %v1639_v47 = vpop.permute.xlu1 %1638 }
0x101e   :  { %7451 = vpow2.f32 %v5254_v37  ;;  %1680 = vst.msk [vmem:[#allocation2 + $0x38] sm:$0xff] %vm1672_vm2, %v1639_v47 }
0x101f   :  { %7453 = vrcp.f32 %v11248_v16 }
0x1020   :  { %v4253_v20 = vpop.permute.xlu0 %4252  ;;  %7455 = vrcp.f32 %v11250_v27 }
0x1021   :  { %4293 = vst.msk [vmem:[#allocation2 + $0x40] sm:$0xff] %vm4284_vm6, %v4253_v20  ;;  %v2288_v38 = vpop.permute.xlu1 %2287  ;;  %7457 = vrcp.f32 %v11252_v53  ;;  %v11266_v53 = vld [vmem:[#allocation109_spill] sm:$0xff] }
0x1022   :  { %2331 = vst.msk [vmem:[#allocation2 + $0x28] sm:$0xff] %vm2325_vm3, %v2288_v38  ;;  %7459 = vrcp.f32 %v11254_v36 }
0x1023   :  { %7461 = vrcp.f32 %v11256_v28  ;;  %v11273_v28 = vld [vmem:[#allocation83_spill] sm:$0xff] }
0x1024   :  { %v10515_v25 = vpop.eup %7447  ;;  %v4257_v55 = vpop.permute.xlu0 %4256  ;;  %1652 = vrot.lane.b32.xlu0 %v1606_v6, %s7616_s7 }
0x1025   :  { %4295 = vst.msk [vmem:[#allocation2 + $0x50] sm:$0xff] %vm4284_vm6, %v4257_v55  ;;  %v2292_v40 = vpop.permute.xlu1 %2291  ;;  %v5331_v9 = vpack.c.bf16 %v10515_v25, %v10492_v57  ;;  %v7450_v59 = vpop.eup %7449  ;;  %v11258_v57 = vld [vmem:[#allocation78_spill] sm:$0xff] }
0x1026   :  { %2333 = vst.msk [vmem:[#allocation2 + $0x38] sm:$0xff] %vm2325_vm3, %v2292_v40  ;;  %v2259_v30 = vmul.f32 %v7450_v59, %v11253_v26  ;;  %7463 = vrcp.f32 %v11258_v57  ;;  %v11275_v57 = vld [vmem:[#allocation82_spill] sm:$0xff] }
0x1027   :  { %7465 = vrcp.f32 %v11259_v3 }
0x1028   :  { %v10524_v12 = vpop.eup %7451  ;;  %v4906_v60 = vpop.permute.xlu0 %4905  ;;  %2301 = vrot.lane.b32.xlu0 %v2257_v44, %s7615_s6  ;;  %7467 = vrcp.f32 %v10262_v48  ;;  %v5305_v44 = vsel %vm657_vm1, %v10515_v25, 0.0  ;;  %v11268_v25 = vld [vmem:[#allocation141_spill] sm:$0xff] }
0x1029   :  { %4946 = vst.msk [vmem:[#allocation2 + $0x40] sm:$0xff] %vm4937_vm7, %v4906_v60  ;;  %v2941_v31 = vpop.permute.xlu1 %2940  ;;  %v5330_v49 = vpack.c.bf16 %v10524_v12, %v7442_v63  ;;  %v7454_v43 = vpop.eup %7453  ;;  %v5299_v60 = vsel %vm657_vm1, %v10524_v12, 0.0  ;;  %7469 = vrcp.f32 %v11266_v53  ;;  %v11269_v12 = vld [vmem:[#allocation59_spill] sm:$0xff] }
0x102a   :  { %2984 = vst.msk [vmem:[#allocation2 + $0x28] sm:$0xff] %vm2978_vm4, %v2941_v31  ;;  %v2910_v42 = vmul.f32 %v7454_v43, %v11255_v34  ;;  %v7456_v52 = vpop.eup %7455  ;;  %v11271_v34 = vld [vmem:[#allocation52_spill] sm:$0xff] }
0x102b   :  { %6822 = vmatprep.mubr.msk.bf16.mxu1 %vm657_vm1, %v5330_v49  ;;  %v2912_v14 = vmul.f32 %v7456_v52, %v11257_v46  ;;  %v7458_v10 = vpop.eup %7457  ;;  %v11267_v49 = vld [vmem:[#allocation108_spill] sm:$0xff]  ;;  %v11274_v46 = vld [vmem:[#allocation135_spill] sm:$0xff] }
0x102c   :  { %v4910_v61 = vpop.permute.xlu0 %4909  ;;  %2305 = vrot.lane.b32.xlu0 %v2259_v30, %s7615_s6  ;;  %6823 = vmatmul.mubr.msk.bf16.gmra.mrb[164].mxu1 %vm657_vm1, %v5331_v9  ;;  %v3563_v62 = vmul.f32 %v7458_v10, %v11260_v35  ;;  %v7460_v0 = vpop.eup %7459  ;;  %7471 = vrcp.f32 %v11267_v49  ;;  %v11272_v52 = vld [vmem:[#allocation104_spill] sm:$0xff] }
0x102d   :  { %4948 = vst.msk [vmem:[#allocation2 + $0x50] sm:$0xff] %vm4937_vm7, %v4910_v61  ;;  %5294 = vadd.xlane.f32.xlu1 %v5293_v51  ;;  %v2945_v50 = vpop.permute.xlu1 %2944  ;;  %v3565_v39 = vmul.f32 %v7460_v0, %v11261_v17  ;;  %v7462_v54 = vpop.eup %7461  ;;  %7473 = vrcp.f32 %v11268_v25  ;;  %v11270_v51 = vld [vmem:[#allocation105_spill] sm:$0xff]  ;;  %v11277_v0 = vld [vmem:[#allocation112_spill] sm:$0xff] }
0x102e   :  { %2986 = vst.msk [vmem:[#allocation2 + $0x38] sm:$0xff] %vm2978_vm4, %v2945_v50  ;;  %v4216_v32 = vmul.f32 %v7462_v54, %v11262_v4  ;;  %7475 = vrcp.f32 %v11269_v12  ;;  %v11283_v12 = vld [vmem:[#allocation19_spill] sm:$0xff] }
0x102f   :  { %7477 = vrcp.f32 %v11271_v34 }
0x1030   :  { %v1649_v13 = vpop.permute.xlu0 %1648  ;;  %2954 = vrot.lane.b32.xlu0 %v2910_v42, %s7614_s5  ;;  %v7464_v18 = vpop.eup %7463  ;;  %7479 = vrcp.f32 %v11273_v28 }
0x1031   :  { %1685 = vst.msk [vmem:[#allocation2 + $0x60] sm:$0xff] %vm1672_vm2, %v1649_v13  ;;  %5288 = vadd.xlane.f32.xlu1 %v5287_v56  ;;  %v3594_v23 = vpop.permute.xlu1 %3593  ;;  %v7466_v22 = vpop.eup %7465  ;;  %v1607_v29 = vmul.f32 %v7464_v18, %v11263_v58  ;;  %7481 = vrcp.f32 %v11275_v57 }
0x1032   :  { %3637 = vst.msk [vmem:[#allocation2 + $0x28] sm:$0xff] %vm3631_vm5, %v3594_v23  ;;  %v4218_v33 = vmul.f32 %v7466_v22, %v11264_v11  ;;  %v7468_v37 = vpop.eup %7467  ;;  %7483 = vrcp.f32 %v11277_v0 }
0x1033   :  { %v4869_v47 = vmul.f32 %v7468_v37, %v11265_v45  ;;  %v7470_v43 = vpop.eup %7469  ;;  %7485 = vrcp.f32 %v10272_v19 }
0x1034   :  { %2958 = vrot.lane.b32.xlu0 %v2912_v14, %s7614_s5  ;;  %v2258_v36 = vmul.f32 %v7470_v43, %v11270_v51 }
0x1035   :  { %v3598_v7 = vpop.permute.xlu1 %3597 }
0x1036   :  { %3639 = vst.msk [vmem:[#allocation2 + $0x38] sm:$0xff] %vm3631_vm5, %v3598_v7  ;;  %v7472_v50 = vpop.eup %7471  ;;  %v11276_v7 = vld [vmem:[#allocation134_spill] sm:$0xff] }
0x1037   :  { %v2260_v13 = vmul.f32 %v7472_v50, %v11272_v52  ;;  %v7474_v56 = vpop.eup %7473 }
0x1038   :  { %3607 = vrot.lane.b32.xlu0 %v3563_v62, %s7608_s0  ;;  %v2911_v14 = vmul.f32 %v7474_v56, %v11274_v46  ;;  %v7476_v10 = vpop.eup %7475 }
0x1039   :  { %v4247_v63 = vpop.permute.xlu1 %4246  ;;  %v2913_v35 = vmul.f32 %v7476_v10, %v11276_v7  ;;  %v7478_v62 = vpop.eup %7477 }
0x103a   :  { %4290 = vst.msk [vmem:[#allocation2 + $0x28] sm:$0xff] %vm4284_vm6, %v4247_v63  ;;  %v7480_v4 = vpop.eup %7479 }
0x103b   :  { %v7482_v11 = vpop.eup %7481 }
0x103c   :  { %3611 = vrot.lane.b32.xlu0 %v3565_v39, %s7608_s0  ;;  %v11278_v39 = vld [vmem:[#allocation167_spill] sm:$0xff] }
0x103d   :  { %v4251_v21 = vpop.permute.xlu1 %4250  ;;  %v3564_v54 = vmul.f32 %v7478_v62, %v11278_v39 }
0x103e   :  { %4292 = vst.msk [vmem:[#allocation2 + $0x38] sm:$0xff] %vm4284_vm6, %v4251_v21 }
0x1040   :  { %4260 = vrot.lane.b32.xlu0 %v4216_v32, %s7613_s30 }
0x1041   :  { %v4900_v48 = vpop.permute.xlu1 %4899 }
0x1042   :  { %4943 = vst.msk [vmem:[#allocation2 + $0x28] sm:$0xff] %vm4937_vm7, %v4900_v48  ;;  %1654 = vrot.lane.b32.xlu1 %v1607_v29, %s7616_s7  ;;  %v11279_v29 = vld [vmem:[#allocation166_spill] sm:$0xff] }
0x1043   :  { %v3566_v48 = vmul.f32 %v7480_v4, %v11279_v29 }
0x1044   :  { %4264 = vrot.lane.b32.xlu0 %v4218_v33, %s7613_s30 }
0x1045   :  { %v4904_v41 = vpop.permute.xlu1 %4903 }
0x1046   :  { %4945 = vst.msk [vmem:[#allocation2 + $0x38] sm:$0xff] %vm4937_vm7, %v4904_v41 }
0x1048   :  { %v5547_v5 = vpop.permute.xlu0 %5546  ;;  %4913 = vrot.lane.b32.xlu0 %v4869_v47, %s7612_s29 }
0x1049   :  { %5593 = vst.msk [vmem:[#allocation2 + $0x10] sm:$0xff] %vm5590_vm8, %v5547_v5  ;;  %v1643_v20 = vpop.permute.xlu1 %1642 }
0x104a   :  { %1682 = vst.msk [vmem:[#allocation2 + $0x48] sm:$0xff] %vm1672_vm2, %v1643_v20  ;;  %v11280_v20 = vld [vmem:[#allocation189_spill] sm:$0xff] }
0x104c   :  { %v5543_v16 = vpop.permute.xlu0 %5542 }
0x104d   :  { %5591 = vst.msk [vmem:[#allocation2] sm:$0xff] %vm5590_vm8, %v5543_v16  ;;  %v1647_v38 = vpop.permute.xlu1 %1646  ;;  %v4217_v16 = vmul.f32 %v7482_v11, %v11280_v20 }
0x104e   :  { %1684 = vst.msk [vmem:[#allocation2 + $0x58] sm:$0xff] %vm1672_vm2, %v1647_v38 }
0x1050   :  { %v5609_v22 = vld [vmem:[#allocation2 + $0x10] sm:$0xff] }
0x1051   :  { %v5555_v2 = vpop.permute.xlu0 %5554  ;;  %v2296_v6 = vpop.permute.xlu1 %2295 }
0x1052   :  { %5597 = vst.msk [vmem:[#allocation2 + $0x30] sm:$0xff] %vm5590_vm8, %v5555_v2 }
0x1053   :  { %2335 = vst.msk [vmem:[#allocation2 + $0x48] sm:$0xff] %vm2325_vm3, %v2296_v6  ;;  %v7484_v6 = vpop.eup %7483 }
0x1054   :  { %v5607_v18 = vld [vmem:[#allocation2] sm:$0xff] }
0x1055   :  { %v5551_v24 = vpop.permute.xlu0 %5550  ;;  %v2300_v55 = vpop.permute.xlu1 %2299 }
0x1056   :  { %5595 = vst.msk [vmem:[#allocation2 + $0x20] sm:$0xff] %vm5590_vm8, %v5551_v24 }
0x1057   :  { %2337 = vst.msk [vmem:[#allocation2 + $0x58] sm:$0xff] %vm2325_vm3, %v2300_v55 }
0x1059   :  { %v2949_v27 = vpop.permute.xlu1 %2948  ;;  %v5613_v24 = vld [vmem:[#allocation2 + $0x30] sm:$0xff] }
0x105a   :  { %2988 = vst.msk [vmem:[#allocation2 + $0x48] sm:$0xff] %vm2978_vm4, %v2949_v27 }
0x105d   :  { %v2953_v40 = vpop.permute.xlu1 %2952  ;;  %v5611_v38 = vld [vmem:[#allocation2 + $0x20] sm:$0xff] }
0x105e   :  { %2990 = vst.msk [vmem:[#allocation2 + $0x58] sm:$0xff] %vm2978_vm4, %v2953_v40  ;;  %v11281_v40 = vld [vmem:[#allocation188_spill] sm:$0xff] }
0x1061   :  { %v3602_v9 = vpop.permute.xlu1 %3601 }
0x1062   :  { %3641 = vst.msk [vmem:[#allocation2 + $0x48] sm:$0xff] %vm3631_vm5, %v3602_v9  ;;  %v4219_v9 = vmul.f32 %v7484_v6, %v11281_v40 }
0x1065   :  { %v3606_v1 = vpop.permute.xlu1 %3605 }
0x1066   :  { %3643 = vst.msk [vmem:[#allocation2 + $0x58] sm:$0xff] %vm3631_vm5, %v3606_v1  ;;  %5306 = vadd.xlane.f32.xlu1 %v5305_v44  ;;  %v7486_v1 = vpop.eup %7485 }
0x1069   :  { %v4255_v59 = vpop.permute.xlu1 %4254 }
0x106a   :  { %4294 = vst.msk [vmem:[#allocation2 + $0x48] sm:$0xff] %vm4284_vm6, %v4255_v59  ;;  %5300 = vadd.xlane.f32.xlu1 %v5299_v60  ;;  %v11282_v59 = vld [vmem:[#allocation28_spill] sm:$0xff] }
0x106b   :  { %v4870_v60 = vmul.f32 %v7486_v1, %v11282_v59 }
0x106d   :  { %v4259_v31 = vpop.permute.xlu1 %4258 }
0x106e   :  { %4296 = vst.msk [vmem:[#allocation2 + $0x58] sm:$0xff] %vm4284_vm6, %v4259_v31 }
0x1071   :  { %v4908_v26 = vpop.permute.xlu1 %4907 }
0x1072   :  { %4947 = vst.msk [vmem:[#allocation2 + $0x48] sm:$0xff] %vm4937_vm7, %v4908_v26 }
0x1075   :  { %v4912_v30 = vpop.permute.xlu1 %4911 }
0x1076   :  { %4949 = vst.msk [vmem:[#allocation2 + $0x58] sm:$0xff] %vm4937_vm7, %v4912_v30 }
0x1079   :  { %v1651_v61 = vpop.permute.xlu1 %1650 }
0x107a   :  { %1686 = vst.msk [vmem:[#allocation2 + $0x68] sm:$0xff] %vm1672_vm2, %v1651_v61 }
0x107b   :  { %2303 = vrot.lane.b32.xlu1 %v2258_v36, %s7615_s6 }
0x107d   :  { %v5549_v42 = vpop.permute.xlu1 %5548 }
0x107e   :  { %5594 = vst.msk [vmem:[#allocation2 + $0x18] sm:$0xff] %vm5590_vm8, %v5549_v42 }
0x107f   :  { %2307 = vrot.lane.b32.xlu1 %v2260_v13, %s7615_s6 }
0x1081   :  { %v5545_v23 = vpop.permute.xlu1 %5544 }
0x1082   :  { %5592 = vst.msk [vmem:[#allocation2 + $0x8] sm:$0xff] %vm5590_vm8, %v5545_v23 }
0x1083   :  { %2956 = vrot.lane.b32.xlu1 %v2911_v14, %s7614_s5 }
0x1085   :  { %v5557_v3 = vpop.permute.xlu1 %5556  ;;  %v5610_v63 = vld [vmem:[#allocation2 + $0x18] sm:$0xff] }
0x1086   :  { %5598 = vst.msk [vmem:[#allocation2 + $0x38] sm:$0xff] %vm5590_vm8, %v5557_v3  ;;  %v5624_v58 = vpack.c.bf16 %v5610_v63, %v5609_v22 }
0x1087   :  { %2960 = vrot.lane.b32.xlu1 %v2913_v35, %s7614_s5  ;;  %v11284_v35 = vld [vmem:[#allocation16_spill] sm:$0xff] }
0x1089   :  { %v5553_v17 = vpop.permute.xlu1 %5552  ;;  %v5608_v21 = vld [vmem:[#allocation2 + $0x8] sm:$0xff] }
0x108a   :  { %5596 = vst.msk [vmem:[#allocation2 + $0x28] sm:$0xff] %vm5590_vm8, %v5553_v17  ;;  %v5623_v32 = vpack.c.bf16 %v5608_v21, %v5607_v18 }
0x108b   :  { %3609 = vrot.lane.b32.xlu1 %v3564_v54, %s7608_s0 }
0x108c   :  { %6842 = vmatprep.mubr.bf16.mxu0 %v5623_v32 }
0x108d   :  { %6843 = vmatmul.mubr.bf16.vlgmr.msra.gmra.mrb[136].mxu0 %v5624_v58  ;;  %v5614_v47 = vld [vmem:[#allocation2 + $0x38] sm:$0xff] }
0x108e   :  { %v6820_v33 = vpop.f32.mrb[160].mxu1  ;;  %v5626_v27 = vpack.c.bf16 %v5614_v47, %v5613_v24 }
0x108f   :  { %v5292_v37 = vpop.xlane.xlu0 %5291  ;;  %v5479_v41 = vpop.f32.mrb[161].mxu1  ;;  %3613 = vrot.lane.b32.xlu1 %v3566_v48, %s7608_s0 }
0x1090   :  { %7487 = vrcp.f32 %v5292_v37  ;;  %v6821_v45 = vpop.f32.mrb[162].mxu1 }
0x1091   :  { %v5482_v5 = vpop.f32.mrb[163].mxu1  ;;  %v5612_v2 = vld [vmem:[#allocation2 + $0x28] sm:$0xff] }
0x1092   :  { %v5625_v19 = vpack.c.bf16 %v5612_v2, %v5611_v38 }
0x1093   :  { %v5286_v55 = vpop.xlane.xlu0 %5285  ;;  %4262 = vrot.lane.b32.xlu1 %v4217_v16, %s7613_s30 }
0x1094   :  { %7489 = vrcp.f32 %v5286_v55  ;;  %6846 = vmatprep.mubr.bf16.mxu0 %v5625_v19 }
0x1095   :  { %6847 = vmatmul.mubr.bf16.gmra.mrb[140].mxu0 %v5626_v27  ;;  %7491 = vrcp.f32 %v10253_v8 }
0x1097   :  { %v5304_v44 = vpop.xlane.xlu0 %5303  ;;  %4266 = vrot.lane.b32.xlu1 %v4219_v9, %s7613_s30 }
0x109a   :  { %v7488_v53 = vpop.eup %7487 }
0x109b   :  { %v5298_v31 = vpop.xlane.xlu0 %5297  ;;  %4915 = vrot.lane.b32.xlu1 %v4870_v60, %s7612_s29  ;;  %v5520_v49 = vmul.f32 %v7488_v53, %v6820_v33  ;;  %v10664_v60 = vld [vmem:[%s10704_s3] ss:$0 sm:$0xff]  ;;  %s7617_s3 = smov [#allocation9]  }
0x109c   :  { %s5820_s10 = sshll.u32 %s7617_s3, 4  ;;  %s5821_s10 = int_to_ptr.vmem [resolvable:$true] %s5820_s10 }
0x109d   :  { %5562 = vrot.lane.b32.xlu0 %v5520_v49, %s7611_s2  ;;  %s7573_s11 = scalar_lea.vmem %s5821_s10, 2048  ;;  %p7578_p11 = scmp.lt.s32.totalorder %s5821_s10, %s5821_s10 }
0x109e   :  { %v7490_v26 = vpop.eup %7489  ;;  %p7574_p10 = scmp.ne.s32.totalorder %s5821_s10, %s7573_s11  ;;  %p7579_p12 = scmp.lt.s32.totalorder %s7573_s11, %s7573_s11 }
0x109f   :  { %v1653_v25 = vpop.permute.xlu0 %1652  ;;  %v5518_v30 = vmul.f32 %v7490_v26, %v5479_v41  ;;  %v7492_v43 = vpop.eup %7491 }
0x10a0   :  { %1687 = vst.msk [vmem:[#allocation2 + $0x70] sm:$0xff] %vm1672_vm2, %v1653_v25  ;;  %v4871_v61 = vmul.f32 %v7492_v43, %v11283_v12  ;;  %p7580_p13 = por %p7579_p12, %p7578_p11 }
0x10a1   :  { %5558 = vrot.lane.b32.xlu0 %v5518_v30, %s7611_s2 }
0x10a2   :  { %p7581_p0 = pnand %p7580_p13, %p7574_p10 }
0x10a3   :  { %v2302_v8 = vpop.permute.xlu0 %2301 }
0x10a4   :  { %2338 = vst.msk [vmem:[#allocation2 + $0x60] sm:$0xff] %vm2325_vm3, %v2302_v8 }
0x10a5   :  { %4917 = vrot.lane.b32.xlu0 %v4871_v61, %s7612_s29 }
0x10a7   :  { %v2306_v51 = vpop.permute.xlu0 %2305 }
0x10a8   :  { %2340 = vst.msk [vmem:[#allocation2 + $0x70] sm:$0xff] %vm2325_vm3, %v2306_v51 }
0x10ab   :  { %v2955_v36 = vpop.permute.xlu0 %2954 }
0x10ac   :  { %2991 = vst.msk [vmem:[#allocation2 + $0x60] sm:$0xff] %vm2978_vm4, %v2955_v36 }
0x10af   :  { %v2959_v50 = vpop.permute.xlu0 %2958 }
0x10b0   :  { %2993 = vst.msk [vmem:[#allocation2 + $0x70] sm:$0xff] %vm2978_vm4, %v2959_v50 }
0x10b3   :  { %v3608_v34 = vpop.permute.xlu0 %3607 }
0x10b4   :  { %3644 = vst.msk [vmem:[#allocation2 + $0x60] sm:$0xff] %vm3631_vm5, %v3608_v34 }
0x10b7   :  { %v3612_v42 = vpop.permute.xlu0 %3611 }
0x10b8   :  { %3646 = vst.msk [vmem:[#allocation2 + $0x70] sm:$0xff] %vm3631_vm5, %v3612_v42 }
0x10ba   :  { %v5295_v52 = vpop.xlane.xlu1 %5294 }
0x10bb   :  { %7493 = vrcp.f32 %v5295_v52  ;;  %v4261_v13 = vpop.permute.xlu0 %4260 }
0x10bc   :  { %4297 = vst.msk [vmem:[#allocation2 + $0x60] sm:$0xff] %vm4284_vm6, %v4261_v13 }
0x10be   :  { %v5289_v56 = vpop.xlane.xlu1 %5288 }
0x10bf   :  { %7495 = vrcp.f32 %v5289_v56  ;;  %v4265_v28 = vpop.permute.xlu0 %4264 }
0x10c0   :  { %4299 = vst.msk [vmem:[#allocation2 + $0x70] sm:$0xff] %vm4284_vm6, %v4265_v28  ;;  %7497 = vrcp.f32 %v10260_v15 }
0x10c1   :  { %7499 = vrcp.f32 %v5304_v44 }
0x10c2   :  { %v1655_v23 = vpop.permute.xlu1 %1654  ;;  %7501 = vrcp.f32 %v5298_v31 }
0x10c3   :  { %1688 = vst.msk [vmem:[#allocation2 + $0x78] sm:$0xff] %vm1672_vm2, %v1655_v23  ;;  %v4914_v46 = vpop.permute.xlu0 %4913 }
0x10c4   :  { %4950 = vst.msk [vmem:[#allocation2 + $0x60] sm:$0xff] %vm4937_vm7, %v4914_v46 }
0x10c5   :  { %v7494_v14 = vpop.eup %7493 }
0x10c6   :  { %v5521_v10 = vmul.f32 %v7494_v14, %v6821_v45 }
0x10c8   :  { %5564 = vrot.lane.b32.xlu1 %v5521_v10, %s7611_s2 }
0x10c9   :  { %v7496_v57 = vpop.eup %7495 }
0x10ca   :  { %v5519_v3 = vmul.f32 %v7496_v57, %v5482_v5  ;;  %v7498_v7 = vpop.eup %7497 }
0x10cb   :  { %v4872_v62 = vmul.f32 %v7498_v7, %v11284_v35  ;;  %v7500_v17 = vpop.eup %7499 }
0x10cc   :  { %5560 = vrot.lane.b32.xlu1 %v5519_v3, %s7611_s2  ;;  %v7502_v18 = vpop.eup %7501 }
0x10d0   :  { %4919 = vrot.lane.b32.xlu1 %v4872_v62, %s7612_s29 }
0x10f3   :  { %v5307_v15 = vpop.xlane.xlu1 %5306 }
0x10f7   :  { %v5301_v0 = vpop.xlane.xlu1 %5300 }
0x10f8   :  { %7503 = vrcp.f32 %v5301_v0 }
0x10f9   :  { %7505 = vrcp.f32 %v5307_v15 }
0x10fb   :  { %v2304_v63 = vpop.permute.xlu1 %2303 }
0x10fc   :  { %2339 = vst.msk [vmem:[#allocation2 + $0x68] sm:$0xff] %vm2325_vm3, %v2304_v63 }
0x10ff   :  { %v6824_v39 = vpop.f32.mrb[164].mxu1  ;;  %v2308_v54 = vpop.permute.xlu1 %2307 }
0x1100   :  { %v5524_v21 = vmul.f32 %v7500_v17, %v6824_v39  ;;  %2341 = vst.msk [vmem:[#allocation2 + $0x78] sm:$0xff] %vm2325_vm3, %v2308_v54  ;;  %v5495_v4 = vpop.f32.mrb[165].mxu1 }
0x1101   :  { %v5522_v32 = vmul.f32 %v7502_v18, %v5495_v4  ;;  %v6825_v22 = vpop.f32.mrb[166].mxu1 }
0x1102   :  { %v7504_v58 = vpop.eup %7503  ;;  %v5498_v29 = vpop.f32.mrb[167].mxu1 }
0x1103   :  { %v5523_v48 = vmul.f32 %v7504_v58, %v5498_v29  ;;  %5566 = vrot.lane.b32.xlu0 %v5522_v32, %s7611_s2  ;;  %v2957_v11 = vpop.permute.xlu1 %2956  ;;  %v7506_v33 = vpop.eup %7505 }
0x1104   :  { %2992 = vst.msk [vmem:[#allocation2 + $0x68] sm:$0xff] %vm2978_vm4, %v2957_v11  ;;  %v5525_v37 = vmul.f32 %v7506_v33, %v6825_v22 }
0x1105   :  { %5568 = vrot.lane.b32.xlu1 %v5523_v48, %s7611_s2 }
0x1107   :  { %5570 = vrot.lane.b32.xlu0 %v5524_v21, %s7611_s2  ;;  %v2961_v41 = vpop.permute.xlu1 %2960 }
0x1108   :  { %2994 = vst.msk [vmem:[#allocation2 + $0x78] sm:$0xff] %vm2978_vm4, %v2961_v41 }
0x1109   :  { %5572 = vrot.lane.b32.xlu1 %v5525_v37, %s7611_s2 }
0x110b   :  { %v3610_v45 = vpop.permute.xlu1 %3609 }
0x110c   :  { %3645 = vst.msk [vmem:[#allocation2 + $0x68] sm:$0xff] %vm3631_vm5, %v3610_v45 }
0x110f   :  { %v5563_v47 = vpop.permute.xlu0 %5562  ;;  %v3614_v5 = vpop.permute.xlu1 %3613 }
0x1110   :  { %5601 = vst.msk [vmem:[#allocation2 + $0x50] sm:$0xff] %vm5590_vm8, %v5563_v47 }
0x1111   :  { %3647 = vst.msk [vmem:[#allocation2 + $0x78] sm:$0xff] %vm3631_vm5, %v3614_v5 }
0x1113   :  { %v5559_v20 = vpop.permute.xlu0 %5558  ;;  %v4263_v16 = vpop.permute.xlu1 %4262 }
0x1114   :  { %5599 = vst.msk [vmem:[#allocation2 + $0x40] sm:$0xff] %vm5590_vm8, %v5559_v20 }
0x1115   :  { %4298 = vst.msk [vmem:[#allocation2 + $0x68] sm:$0xff] %vm4284_vm6, %v4263_v16 }
0x1117   :  { %v4918_v38 = vpop.permute.xlu0 %4917  ;;  %v4267_v2 = vpop.permute.xlu1 %4266  ;;  %v5617_v44 = vld [vmem:[#allocation2 + $0x50] sm:$0xff] }
0x1118   :  { %4952 = vst.msk [vmem:[#allocation2 + $0x70] sm:$0xff] %vm4937_vm7, %v4918_v38 }
0x1119   :  { %4300 = vst.msk [vmem:[#allocation2 + $0x78] sm:$0xff] %vm4284_vm6, %v4267_v2 }
0x111b   :  { %v4916_v6 = vpop.permute.xlu1 %4915  ;;  %v5615_v40 = vld [vmem:[#allocation2 + $0x40] sm:$0xff] }
0x111c   :  { %4951 = vst.msk [vmem:[#allocation2 + $0x68] sm:$0xff] %vm4937_vm7, %v4916_v6 }
0x113a   :  { %v5565_v19 = vpop.permute.xlu1 %5564 }
0x113b   :  { %5602 = vst.msk [vmem:[#allocation2 + $0x58] sm:$0xff] %vm5590_vm8, %v5565_v19 }
0x113e   :  { %v5561_v24 = vpop.permute.xlu1 %5560 }
0x113f   :  { %5600 = vst.msk [vmem:[#allocation2 + $0x48] sm:$0xff] %vm5590_vm8, %v5561_v24 }
0x1142   :  { %v4920_v55 = vpop.permute.xlu1 %4919  ;;  %v5618_v27 = vld [vmem:[#allocation2 + $0x58] sm:$0xff] }
0x1143   :  { %4953 = vst.msk [vmem:[#allocation2 + $0x78] sm:$0xff] %vm4937_vm7, %v4920_v55  ;;  %v5628_v59 = vpack.c.bf16 %v5618_v27, %v5617_v44 }
0x1146   :  { %v5616_v9 = vld [vmem:[#allocation2 + $0x48] sm:$0xff] }
0x1147   :  { %v5627_v1 = vpack.c.bf16 %v5616_v9, %v5615_v40 }
0x1149   :  { %6850 = vmatprep.mubr.bf16.mxu0 %v5627_v1 }
0x114a   :  { %6851 = vmatmul.mubr.bf16.gmra.mrb[144].mxu0 %v5628_v59 }
0x1160   :  { %v6844_v53 = vpop.f32.mrb[136].mxu0 }
0x1161   :  { %v5745_v31 = vadd.f32 %v6844_v53, %v10664_v60  ;;  %v5736_v49 = vpop.f32.mrb[137].mxu0 }
0x1162   :  { %v5737_v26 = vadd.f32 %v10664_v60, %v5736_v49  ;;  %v6845_v25 = vpop.f32.mrb[138].mxu0 }
0x1163   :  { %5801 = vst [vmem:[#allocation9 + $0x10] sm:$0xff] %v5745_v31  ;;  %v5748_v30 = vadd.f32 %v6845_v25, %v10664_v60  ;;  %v5739_v43 = vpop.f32.mrb[139].mxu0 }
0x1164   :  { %5799 = vst [vmem:[#allocation9] sm:$0xff] %v5737_v26  ;;  %v5740_v8 = vadd.f32 %v10664_v60, %v5739_v43 }
0x1165   :  { %5802 = vst [vmem:[#allocation9 + $0x18] sm:$0xff] %v5748_v30 }
0x1166   :  { %5800 = vst [vmem:[#allocation9 + $0x8] sm:$0xff] %v5740_v8 }
0x1168   :  { %v6848_v12 = vpop.f32.mrb[140].mxu0 }
0x1169   :  { %v5761_v61 = vadd.f32 %v6848_v12, %v10664_v60  ;;  %v5752_v51 = vpop.f32.mrb[141].mxu0 }
0x116a   :  { %v5753_v36 = vadd.f32 %v10664_v60, %v5752_v51  ;;  %v6849_v50 = vpop.f32.mrb[142].mxu0 }
0x116b   :  { %5805 = vst [vmem:[#allocation9 + $0x30] sm:$0xff] %v5761_v61  ;;  %v5764_v34 = vadd.f32 %v6849_v50, %v10664_v60  ;;  %v5755_v42 = vpop.f32.mrb[143].mxu0 }
0x116c   :  { %5803 = vst [vmem:[#allocation9 + $0x20] sm:$0xff] %v5753_v36  ;;  %v5756_v52 = vadd.f32 %v10664_v60, %v5755_v42 }
0x116d   :  { %5806 = vst [vmem:[#allocation9 + $0x38] sm:$0xff] %v5764_v34 }
0x116e   :  { %5804 = vst [vmem:[#allocation9 + $0x28] sm:$0xff] %v5756_v52 }
0x1175   :  { %v5567_v13 = vpop.permute.xlu0 %5566 }
0x1176   :  { %5603 = vst.msk [vmem:[#allocation2 + $0x60] sm:$0xff] %vm5590_vm8, %v5567_v13 }
0x1177   :  { %v5569_v56 = vpop.permute.xlu1 %5568 }
0x1178   :  { %5604 = vst.msk [vmem:[#allocation2 + $0x68] sm:$0xff] %vm5590_vm8, %v5569_v56 }
0x1179   :  { %v5571_v28 = vpop.permute.xlu0 %5570 }
0x117a   :  { %5605 = vst.msk [vmem:[#allocation2 + $0x70] sm:$0xff] %vm5590_vm8, %v5571_v28 }
0x117b   :  { %v5573_v23 = vpop.permute.xlu1 %5572 }
0x117c   :  { %5606 = vst.msk [vmem:[#allocation2 + $0x78] sm:$0xff] %vm5590_vm8, %v5573_v23 }
0x117d   :  { %v5619_v46 = vld [vmem:[#allocation2 + $0x60] sm:$0xff] }
0x117f   :  { %v5620_v14 = vld [vmem:[#allocation2 + $0x68] sm:$0xff] }
0x1180   :  { %v5629_v10 = vpack.c.bf16 %v5620_v14, %v5619_v46 }
0x1181   :  { %v5621_v57 = vld [vmem:[#allocation2 + $0x70] sm:$0xff] }
0x1182   :  { %6854 = vmatprep.mubr.bf16.mxu0 %v5629_v10 }
0x1183   :  { %v5622_v3 = vld [vmem:[#allocation2 + $0x78] sm:$0xff] }
0x1184   :  { %v5630_v7 = vpack.c.bf16 %v5622_v3, %v5621_v57 }
0x1186   :  { %6855 = vmatmul.mubr.bf16.gmra.mrb[148].mxu0 %v5630_v7 }
0x121d   :  { %v6852_v35 = vpop.f32.mrb[144].mxu0 }
0x121e   :  { %v5777_v62 = vadd.f32 %v6852_v35, %v10664_v60  ;;  %v5768_v15 = vpop.f32.mrb[145].mxu0 }
0x121f   :  { %v5769_v0 = vadd.f32 %v10664_v60, %v5768_v15  ;;  %v6853_v63 = vpop.f32.mrb[146].mxu0 }
0x1220   :  { %5809 = vst [vmem:[#allocation9 + $0x50] sm:$0xff] %v5777_v62  ;;  %v5780_v17 = vadd.f32 %v6853_v63, %v10664_v60  ;;  %v5771_v39 = vpop.f32.mrb[147].mxu0 }
0x1221   :  { %5807 = vst [vmem:[#allocation9 + $0x40] sm:$0xff] %v5769_v0  ;;  %v5772_v54 = vadd.f32 %v10664_v60, %v5771_v39 }
0x1222   :  { %5810 = vst [vmem:[#allocation9 + $0x58] sm:$0xff] %v5780_v17 }
0x1223   :  { %5808 = vst [vmem:[#allocation9 + $0x48] sm:$0xff] %v5772_v54 }
0x1259   :  { %v6856_v18 = vpop.f32.mrb[148].mxu0 }
0x125a   :  { %v5793_v21 = vadd.f32 %v6856_v18, %v10664_v60  ;;  %v5784_v4 = vpop.f32.mrb[149].mxu0 }
0x125b   :  { %v5785_v32 = vadd.f32 %v10664_v60, %v5784_v4  ;;  %v6857_v22 = vpop.f32.mrb[150].mxu0 }
0x125c   :  { %5813 = vst [vmem:[#allocation9 + $0x70] sm:$0xff] %v5793_v21  ;;  %v5796_v58 = vadd.f32 %v6857_v22, %v10664_v60  ;;  %v5787_v29 = vpop.f32.mrb[151].mxu0 }
0x125d   :  { %5811 = vst [vmem:[#allocation9 + $0x60] sm:$0xff] %v5785_v32  ;;  %v5788_v48 = vadd.f32 %v10664_v60, %v5787_v29 }
0x125e   :  { %5814 = vst [vmem:[#allocation9 + $0x78] sm:$0xff] %v5796_v58 }
0x125f   :  { %5812 = vst [vmem:[#allocation9 + $0x68] sm:$0xff] %v5788_v48 }
0x1260   :  { %7584 = shalt.err (!%p7581_p0)
}
0x1261   :  { %s7585_s15 = scalar_lea.hbm %s10705_s4, 2048 }
0x1262   :  { %p7586_p1 = scmp.ne.s32.totalorder %s10705_s4, %s7585_s15  ;;  %p7589_p2 = scmp.lt.u32.totalorder %s7585_s15, %s10705_s4 }
0x1264   :  { %p7591_p3 = pnand %p7589_p2, %p7586_p1 }
0x1266   :  { %7594 = shalt.err (!%p7591_p3)
}
0x1267   :  { %5826 = dma.vmem_to_hbm [thread:$0]  %s5821_s10, 2048, %s10705_s4, [#allocation5], %s7605_s1, %s7605_s1, %s7606_s13  }
0x1268   :  { %7599 = dma.done.wait [#allocation5], 2048  }
0x1269   :  { %7600 = vsyncadd [#allocation5], 4294965248 }
0x126a   :  { %5830 = vsyncpa [#allocation4], 1 }
0x126b   :  { %5831 = vsyncpa [#allocation7], 1 }
0x126c   :  { %5832 = vsyncpa [#allocation5], 1 }

</bundles_post_ra>
